<compile_context>
chip_gen: v7x
topology: tpu7x:2x2x1
jax: 0.10.0
libtpu: 0.0.40
codegen_flags: <defaults>
</compile_context>

<pallas_src>
import functools

import jax
import jax.numpy as jnp
import numpy as np
from jax import lax
from jax.experimental import pallas as pl
from jax.experimental.pallas import tpu as pltpu


def _odeblock_kernel(y0_ref, w_ref, mask_ref, out_ref, stk_ref, *,
                     offsets, n_steps):
    NC, P = out_ref.shape
    K = stk_ref.shape[0]                     # 9*NC + 8 (trailing rows: bias ones)

    # Loop-invariant values (hoisted: JAX does not CSE broadcasts/loads).
    wmat = w_ref[...]                        # (NC, K) fused block-diag weight
    mask = mask_ref[...]                     # (NC, P) 1.0 at interior pixels
    # Constant ones rows so the bias rides along in the single matmul.
    stk_ref[9 * NC:, :] = jnp.ones((K - 9 * NC, P), jnp.float32)

    def conv3x3(x):
        """f(t, y) = Conv2d(C, C, 3, padding=1)(y) + bias   (t unused)."""
        # im2col: 9 lane-rolled (XLU) copies of the zero-halo padded state.
        for t, off in enumerate(offsets):
            xs = x if off == 0 else pltpu.roll(x, shift=(-off) % P, axis=1)
            stk_ref[t * NC:(t + 1) * NC, :] = xs
        # One fused MXU contraction over (tap, batch-block, c_in) + bias.
        acc = jnp.dot(wmat, stk_ref[...], preferred_element_type=jnp.float32)
        # Single interior mask keeps the zero halo exact (replaces 9 selects).
        return acc * mask

    h = 1.0 / n_steps

    def rk4_step(_, y):
        k1 = conv3x3(y)
        k2 = conv3x3(y + (0.5 * h) * k1)
        k3 = conv3x3(y + (0.5 * h) * k2)
        k4 = conv3x3(y + h * k3)
        return y + (h / 6.0) * (k1 + 2.0 * k2 + 2.0 * k3 + k4)

    # Short static trip count: fully unroll for LLO scheduling visibility.
    y1 = lax.fori_loop(0, n_steps, rk4_step,
                       y0_ref[...].astype(jnp.float32), unroll=True)
    out_ref[...] = y1


def odeblock_forward(y0_nchw, w_oihw, bias, *, n_steps=8):
    """ODEBlock.forward: integrate dy/dt = conv(y)+b from t=0 to 1, return y(1)."""
    N, C, H, W = y0_nchw.shape
    NC = N * C
    Hp, Wp = H + 2, W + 2
    P = ((Hp * Wp + 127) // 128) * 128       # lane-dense padded spatial size

    # --- glue (plain JAX): NCHW -> (N*C, P) with physical zero halo ----------
    y = y0_nchw.astype(jnp.float32).reshape(NC, H, W)
    ypad = jnp.pad(y, ((0, 0), (1, 1), (1, 1))).reshape(NC, Hp * Wp)
    ypad = jnp.pad(ypad, ((0, 0), (0, P - Hp * Wp)))

    # Interior mask (depends on lanes only), materialized to (NC, P).
    mrow = jnp.pad(jnp.pad(jnp.ones((H, W), jnp.float32),
                           ((1, 1), (1, 1))).reshape(Hp * Wp),
                   (0, P - Hp * Wp))
    mask = jnp.tile(mrow[None, :], (NC, 1))

    # Fused block-diagonal im2col weight, bias folded in:
    #   rows = (n, c_out);  cols = (tap, n', c_in) ++ 8 bias columns.
    w_t = jnp.transpose(w_oihw.astype(jnp.float32), (2, 3, 0, 1)).reshape(9, C, C)
    eye_n = jnp.eye(N, dtype=jnp.float32)
    wmix = jnp.einsum('toi,nm->notmi', w_t, eye_n).reshape(NC, 9 * NC)
    bias_col = jnp.tile(bias.astype(jnp.float32), N).reshape(NC, 1)
    wbig = jnp.concatenate(
        [wmix, bias_col, jnp.zeros((NC, 7), jnp.float32)], axis=1)   # (NC, 9*NC+8)
    K = 9 * NC + 8

    # Lane offsets of the 9 taps in the flattened padded layout.
    offsets = tuple(di * Wp + dj for di in (-1, 0, 1) for dj in (-1, 0, 1))

    kernel = functools.partial(_odeblock_kernel, offsets=offsets, n_steps=n_steps)

    # NOTE (scaling / v7x): at this toy size the NC=8 rows exactly fill one
    # sublane group, so a single grid step on one TensorCore is optimal.  For
    # larger N/H/W, put the batch dim on a leading "parallel" grid axis (the
    # block-diagonal weight already prevents cross-batch mixing) and set
    # pltpu.CompilerParams(vmem_limit_bytes=...) for v7x's 64 MiB VMEM.
    out_pad = pl.pallas_call(
        kernel,
        out_shape=jax.ShapeDtypeStruct((NC, P), jnp.float32),
        grid=(1,),
        in_specs=[
            pl.BlockSpec((NC, P), lambda i: (0, 0)),   # padded state
            pl.BlockSpec((NC, K), lambda i: (0, 0)),   # fused weight (+bias)
            pl.BlockSpec((NC, P), lambda i: (0, 0)),   # interior mask
        ],
        out_specs=pl.BlockSpec((NC, P), lambda i: (0, 0)),
        scratch_shapes=[
            pltpu.VMEM((K, P), jnp.float32),           # im2col stack
        ],
        compiler_params=pltpu.CompilerParams(
            dimension_semantics=("arbitrary",)),
    )(ypad, wbig, mask)

    out = out_pad[:, :Hp * Wp].reshape(NC, Hp, Wp)[:, 1:H + 1, 1:W + 1]
    return out.reshape(N, C, H, W)


# ---------------------------------------------------------------- reference
def _cnn_ref(y, w, b):
    out = lax.conv_general_dilated(y, w, (1, 1), "SAME",
                                   dimension_numbers=("NCHW", "OIHW", "NCHW"))
    return out + b.reshape(1, -1, 1, 1)


def _odeblock_ref(y0, w, b, n_steps):
    h = 1.0 / n_steps
    y = y0
    for _ in range(n_steps):
        k1 = _cnn_ref(y, w, b)
        k2 = _cnn_ref(y + 0.5 * h * k1, w, b)
        k3 = _cnn_ref(y + 0.5 * h * k2, w, b)
        k4 = _cnn_ref(y + h * k3, w, b)
        y = y + (h / 6.0) * (k1 + 2.0 * k2 + 2.0 * k3 + k4)
    return y


if __name__ == "__main__":
    key = jax.random.PRNGKey(0)
    k_x, k_w, k_b = jax.random.split(key, 3)

    N, C, H, W = 2, 4, 16, 16
    y0 = jax.random.normal(k_x, (N, C, H, W), dtype=jnp.float32)
    # Deterministic synthetic Conv2d(C, C, 3, padding=1) parameters.
    w = 0.3 * jax.random.normal(k_w, (C, C, 3, 3), dtype=jnp.float32)
    b = 0.1 * jax.random.normal(k_b, (C,), dtype=jnp.float32)

    out = odeblock_forward(y0, w, b, n_steps=8)
    out = jax.block_until_ready(out)

    ref = _odeblock_ref(y0, w, b, n_steps=8)
    np.testing.assert_allclose(np.asarray(out), np.asarray(ref),
                               rtol=2e-3, atol=2e-3)
    assert out.shape == y0.shape and out.dtype == jnp.float32

    print("KERNEL_OK")
</pallas_src>

<mosaic_0001>
module attributes {stable_mosaic.version = 11 : i64} {
  func.func @_odeblock_kernel(%arg0: i32, %arg1: memref<8x384xf32, #tpu.memory_space<vmem>>, %arg2: memref<8x80xf32, #tpu.memory_space<vmem>>, %arg3: memref<8x384xf32, #tpu.memory_space<vmem>>, %arg4: memref<8x384xf32, #tpu.memory_space<vmem>>, %arg5: memref<80x384xf32, #tpu.memory_space<vmem>>) attributes {dimension_semantics = [#tpu.dimension_semantics<arbitrary>], iteration_bounds = array<i64: 1>, scalar_prefetch = 0 : i64, scratch_operands = 1 : i64, tpu.core_type = #tpu.core_type<tc>, window_params = [{pipeline_mode = #tpu.pipeline_mode<synchronous>, transform_indices = @transform_0, window_bounds = array<i64: 8, 384>}, {pipeline_mode = #tpu.pipeline_mode<synchronous>, transform_indices = @transform_1, window_bounds = array<i64: 8, 80>}, {pipeline_mode = #tpu.pipeline_mode<synchronous>, transform_indices = @transform_2, window_bounds = array<i64: 8, 384>}, {pipeline_mode = #tpu.pipeline_mode<synchronous>, transform_indices = @transform_3, window_bounds = array<i64: 8, 384>}]} {
    %c0 = arith.constant 0 : index
    %c0_0 = arith.constant 0 : index
    %0 = vector.load %arg2[%c0, %c0_0] : memref<8x80xf32, #tpu.memory_space<vmem>>, vector<8x80xf32>
    %c0_1 = arith.constant 0 : index
    %c0_2 = arith.constant 0 : index
    %1 = vector.load %arg3[%c0_1, %c0_2] : memref<8x384xf32, #tpu.memory_space<vmem>>, vector<8x384xf32>
    %cst = arith.constant 1.000000e+00 : f32
    %2 = vector.broadcast %cst : f32 to vector<8x384xf32>
    %c72 = arith.constant 72 : index
    %c0_3 = arith.constant 0 : index
    %3 = vector.load %arg5[%c72, %c0_3] : memref<80x384xf32, #tpu.memory_space<vmem>>, vector<8x384xf32>
    tpu.vector_store %arg5[%c72, %c0_3], %2 {strides = array<i32>} : memref<80x384xf32, #tpu.memory_space<vmem>>, vector<8x384xf32>,
    %c0_4 = arith.constant 0 : index
    %c0_5 = arith.constant 0 : index
    %4 = vector.load %arg1[%c0_4, %c0_5] : memref<8x384xf32, #tpu.memory_space<vmem>>, vector<8x384xf32>
    %c0_i32 = arith.constant 0 : i32
    %c19_i32 = arith.constant 19 : i32
    %5 = tpu.dynamic_rotate %4 by %c19_i32 dim 1 : vector<8x384xf32>, i32 -> vector<8x384xf32>
    %c0_6 = arith.constant 0 : index
    %c0_7 = arith.constant 0 : index
    %6 = vector.load %arg5[%c0_6, %c0_7] : memref<80x384xf32, #tpu.memory_space<vmem>>, vector<8x384xf32>
    tpu.vector_store %arg5[%c0_6, %c0_7], %5 {strides = array<i32>} : memref<80x384xf32, #tpu.memory_space<vmem>>, vector<8x384xf32>,
    %c18_i32 = arith.constant 18 : i32
    %7 = tpu.dynamic_rotate %4 by %c18_i32 dim 1 : vector<8x384xf32>, i32 -> vector<8x384xf32>
    %c8 = arith.constant 8 : index
    %c0_8 = arith.constant 0 : index
    %8 = vector.load %arg5[%c8, %c0_8] : memref<80x384xf32, #tpu.memory_space<vmem>>, vector<8x384xf32>
    tpu.vector_store %arg5[%c8, %c0_8], %7 {strides = array<i32>} : memref<80x384xf32, #tpu.memory_space<vmem>>, vector<8x384xf32>,
    %c17_i32 = arith.constant 17 : i32
    %9 = tpu.dynamic_rotate %4 by %c17_i32 dim 1 : vector<8x384xf32>, i32 -> vector<8x384xf32>
    %c16 = arith.constant 16 : index
    %c0_9 = arith.constant 0 : index
    %10 = vector.load %arg5[%c16, %c0_9] : memref<80x384xf32, #tpu.memory_space<vmem>>, vector<8x384xf32>
    tpu.vector_store %arg5[%c16, %c0_9], %9 {strides = array<i32>} : memref<80x384xf32, #tpu.memory_space<vmem>>, vector<8x384xf32>,
    %c1_i32 = arith.constant 1 : i32
    %11 = tpu.dynamic_rotate %4 by %c1_i32 dim 1 : vector<8x384xf32>, i32 -> vector<8x384xf32>
    %c24 = arith.constant 24 : index
    %c0_10 = arith.constant 0 : index
    %12 = vector.load %arg5[%c24, %c0_10] : memref<80x384xf32, #tpu.memory_space<vmem>>, vector<8x384xf32>
    tpu.vector_store %arg5[%c24, %c0_10], %11 {strides = array<i32>} : memref<80x384xf32, #tpu.memory_space<vmem>>, vector<8x384xf32>,
    %c32 = arith.constant 32 : index
    %c0_11 = arith.constant 0 : index
    %13 = vector.load %arg5[%c32, %c0_11] : memref<80x384xf32, #tpu.memory_space<vmem>>, vector<8x384xf32>
    tpu.vector_store %arg5[%c32, %c0_11], %4 {strides = array<i32>} : memref<80x384xf32, #tpu.memory_space<vmem>>, vector<8x384xf32>,
    %c383_i32 = arith.constant 383 : i32
    %14 = tpu.dynamic_rotate %4 by %c383_i32 dim 1 : vector<8x384xf32>, i32 -> vector<8x384xf32>
    %c40 = arith.constant 40 : index
    %c0_12 = arith.constant 0 : index
    %15 = vector.load %arg5[%c40, %c0_12] : memref<80x384xf32, #tpu.memory_space<vmem>>, vector<8x384xf32>
    tpu.vector_store %arg5[%c40, %c0_12], %14 {strides = array<i32>} : memref<80x384xf32, #tpu.memory_space<vmem>>, vector<8x384xf32>,
    %c367_i32 = arith.constant 367 : i32
    %16 = tpu.dynamic_rotate %4 by %c367_i32 dim 1 : vector<8x384xf32>, i32 -> vector<8x384xf32>
    %c48 = arith.constant 48 : index
    %c0_13 = arith.constant 0 : index
    %17 = vector.load %arg5[%c48, %c0_13] : memref<80x384xf32, #tpu.memory_space<vmem>>, vector<8x384xf32>
    tpu.vector_store %arg5[%c48, %c0_13], %16 {strides = array<i32>} : memref<80x384xf32, #tpu.memory_space<vmem>>, vector<8x384xf32>,
    %c366_i32 = arith.constant 366 : i32
    %18 = tpu.dynamic_rotate %4 by %c366_i32 dim 1 : vector<8x384xf32>, i32 -> vector<8x384xf32>
    %c56 = arith.constant 56 : index
    %c0_14 = arith.constant 0 : index
    %19 = vector.load %arg5[%c56, %c0_14] : memref<80x384xf32, #tpu.memory_space<vmem>>, vector<8x384xf32>
    tpu.vector_store %arg5[%c56, %c0_14], %18 {strides = array<i32>} : memref<80x384xf32, #tpu.memory_space<vmem>>, vector<8x384xf32>,
    %c365_i32 = arith.constant 365 : i32
    %20 = tpu.dynamic_rotate %4 by %c365_i32 dim 1 : vector<8x384xf32>, i32 -> vector<8x384xf32>
    %c64 = arith.constant 64 : index
    %c0_15 = arith.constant 0 : index
    %21 = vector.load %arg5[%c64, %c0_15] : memref<80x384xf32, #tpu.memory_space<vmem>>, vector<8x384xf32>
    tpu.vector_store %arg5[%c64, %c0_15], %20 {strides = array<i32>} : memref<80x384xf32, #tpu.memory_space<vmem>>, vector<8x384xf32>,
    %c0_16 = arith.constant 0 : index
    %c0_17 = arith.constant 0 : index
    %22 = vector.load %arg5[%c0_16, %c0_17] : memref<80x384xf32, #tpu.memory_space<vmem>>, vector<80x384xf32>
    %cst_18 = arith.constant dense<0.000000e+00> : vector<8x384xf32>
    %23 = tpu.matmul %0, %22, %cst_18 {dimension_numbers = #tpu.dot_dimension_numbers<[1], [0], [0], [1], [0, 0, 1, 1], [], []>} : vector<8x80xf32>, vector<80x384xf32>, vector<8x384xf32> -> vector<8x384xf32>
    %24 = arith.mulf %23, %1 : vector<8x384xf32>
    %cst_19 = arith.constant 6.250000e-02 : f32
    %25 = vector.broadcast %cst_19 : f32 to vector<8x384xf32>
    %26 = arith.mulf %25, %24 : vector<8x384xf32>
    %27 = arith.addf %4, %26 : vector<8x384xf32>
    %c19_i32_20 = arith.constant 19 : i32
    %28 = tpu.dynamic_rotate %27 by %c19_i32_20 dim 1 : vector<8x384xf32>, i32 -> vector<8x384xf32>
    %c0_21 = arith.constant 0 : index
    %c0_22 = arith.constant 0 : index
    %29 = vector.load %arg5[%c0_21, %c0_22] : memref<80x384xf32, #tpu.memory_space<vmem>>, vector<8x384xf32>
    tpu.vector_store %arg5[%c0_21, %c0_22], %28 {strides = array<i32>} : memref<80x384xf32, #tpu.memory_space<vmem>>, vector<8x384xf32>,
    %c18_i32_23 = arith.constant 18 : i32
    %30 = tpu.dynamic_rotate %27 by %c18_i32_23 dim 1 : vector<8x384xf32>, i32 -> vector<8x384xf32>
    %c8_24 = arith.constant 8 : index
    %c0_25 = arith.constant 0 : index
    %31 = vector.load %arg5[%c8_24, %c0_25] : memref<80x384xf32, #tpu.memory_space<vmem>>, vector<8x384xf32>
    tpu.vector_store %arg5[%c8_24, %c0_25], %30 {strides = array<i32>} : memref<80x384xf32, #tpu.memory_space<vmem>>, vector<8x384xf32>,
    %c17_i32_26 = arith.constant 17 : i32
    %32 = tpu.dynamic_rotate %27 by %c17_i32_26 dim 1 : vector<8x384xf32>, i32 -> vector<8x384xf32>
    %c16_27 = arith.constant 16 : index
    %c0_28 = arith.constant 0 : index
    %33 = vector.load %arg5[%c16_27, %c0_28] : memref<80x384xf32, #tpu.memory_space<vmem>>, vector<8x384xf32>
    tpu.vector_store %arg5[%c16_27, %c0_28], %32 {strides = array<i32>} : memref<80x384xf32, #tpu.memory_space<vmem>>, vector<8x384xf32>,
    %c1_i32_29 = arith.constant 1 : i32
    %34 = tpu.dynamic_rotate %27 by %c1_i32_29 dim 1 : vector<8x384xf32>, i32 -> vector<8x384xf32>
    %c24_30 = arith.constant 24 : index
    %c0_31 = arith.constant 0 : index
    %35 = vector.load %arg5[%c24_30, %c0_31] : memref<80x384xf32, #tpu.memory_space<vmem>>, vector<8x384xf32>
    tpu.vector_store %arg5[%c24_30, %c0_31], %34 {strides = array<i32>} : memref<80x384xf32, #tpu.memory_space<vmem>>, vector<8x384xf32>,
    %c32_32 = arith.constant 32 : index
    %c0_33 = arith.constant 0 : index
    %36 = vector.load %arg5[%c32_32, %c0_33] : memref<80x384xf32, #tpu.memory_space<vmem>>, vector<8x384xf32>
    tpu.vector_store %arg5[%c32_32, %c0_33], %27 {strides = array<i32>} : memref<80x384xf32, #tpu.memory_space<vmem>>, vector<8x384xf32>,
    %c383_i32_34 = arith.constant 383 : i32
    %37 = tpu.dynamic_rotate %27 by %c383_i32_34 dim 1 : vector<8x384xf32>, i32 -> vector<8x384xf32>
    %c40_35 = arith.constant 40 : index
    %c0_36 = arith.constant 0 : index
    %38 = vector.load %arg5[%c40_35, %c0_36] : memref<80x384xf32, #tpu.memory_space<vmem>>, vector<8x384xf32>
    tpu.vector_store %arg5[%c40_35, %c0_36], %37 {strides = array<i32>} : memref<80x384xf32, #tpu.memory_space<vmem>>, vector<8x384xf32>,
    %c367_i32_37 = arith.constant 367 : i32
    %39 = tpu.dynamic_rotate %27 by %c367_i32_37 dim 1 : vector<8x384xf32>, i32 -> vector<8x384xf32>
    %c48_38 = arith.constant 48 : index
    %c0_39 = arith.constant 0 : index
    %40 = vector.load %arg5[%c48_38, %c0_39] : memref<80x384xf32, #tpu.memory_space<vmem>>, vector<8x384xf32>
    tpu.vector_store %arg5[%c48_38, %c0_39], %39 {strides = array<i32>} : memref<80x384xf32, #tpu.memory_space<vmem>>, vector<8x384xf32>,
    %c366_i32_40 = arith.constant 366 : i32
    %41 = tpu.dynamic_rotate %27 by %c366_i32_40 dim 1 : vector<8x384xf32>, i32 -> vector<8x384xf32>
    %c56_41 = arith.constant 56 : index
    %c0_42 = arith.constant 0 : index
    %42 = vector.load %arg5[%c56_41, %c0_42] : memref<80x384xf32, #tpu.memory_space<vmem>>, vector<8x384xf32>
    tpu.vector_store %arg5[%c56_41, %c0_42], %41 {strides = array<i32>} : memref<80x384xf32, #tpu.memory_space<vmem>>, vector<8x384xf32>,
    %c365_i32_43 = arith.constant 365 : i32
    %43 = tpu.dynamic_rotate %27 by %c365_i32_43 dim 1 : vector<8x384xf32>, i32 -> vector<8x384xf32>
    %c64_44 = arith.constant 64 : index
    %c0_45 = arith.constant 0 : index
    %44 = vector.load %arg5[%c64_44, %c0_45] : memref<80x384xf32, #tpu.memory_space<vmem>>, vector<8x384xf32>
    tpu.vector_store %arg5[%c64_44, %c0_45], %43 {strides = array<i32>} : memref<80x384xf32, #tpu.memory_space<vmem>>, vector<8x384xf32>,
    %c0_46 = arith.constant 0 : index
    %c0_47 = arith.constant 0 : index
    %45 = vector.load %arg5[%c0_46, %c0_47] : memref<80x384xf32, #tpu.memory_space<vmem>>, vector<80x384xf32>
    %cst_48 = arith.constant dense<0.000000e+00> : vector<8x384xf32>
    %46 = tpu.matmul %0, %45, %cst_48 {dimension_numbers = #tpu.dot_dimension_numbers<[1], [0], [0], [1], [0, 0, 1, 1], [], []>} : vector<8x80xf32>, vector<80x384xf32>, vector<8x384xf32> -> vector<8x384xf32>
    %47 = arith.mulf %46, %1 : vector<8x384xf32>
    %cst_49 = arith.constant 6.250000e-02 : f32
    %48 = vector.broadcast %cst_49 : f32 to vector<8x384xf32>
    %49 = arith.mulf %48, %47 : vector<8x384xf32>
    %50 = arith.addf %4, %49 : vector<8x384xf32>
    %c19_i32_50 = arith.constant 19 : i32
    %51 = tpu.dynamic_rotate %50 by %c19_i32_50 dim 1 : vector<8x384xf32>, i32 -> vector<8x384xf32>
    %c0_51 = arith.constant 0 : index
    %c0_52 = arith.constant 0 : index
    %52 = vector.load %arg5[%c0_51, %c0_52] : memref<80x384xf32, #tpu.memory_space<vmem>>, vector<8x384xf32>
    tpu.vector_store %arg5[%c0_51, %c0_52], %51 {strides = array<i32>} : memref<80x384xf32, #tpu.memory_space<vmem>>, vector<8x384xf32>,
    %c18_i32_53 = arith.constant 18 : i32
    %53 = tpu.dynamic_rotate %50 by %c18_i32_53 dim 1 : vector<8x384xf32>, i32 -> vector<8x384xf32>
    %c8_54 = arith.constant 8 : index
    %c0_55 = arith.constant 0 : index
    %54 = vector.load %arg5[%c8_54, %c0_55] : memref<80x384xf32, #tpu.memory_space<vmem>>, vector<8x384xf32>
    tpu.vector_store %arg5[%c8_54, %c0_55], %53 {strides = array<i32>} : memref<80x384xf32, #tpu.memory_space<vmem>>, vector<8x384xf32>,
    %c17_i32_56 = arith.constant 17 : i32
    %55 = tpu.dynamic_rotate %50 by %c17_i32_56 dim 1 : vector<8x384xf32>, i32 -> vector<8x384xf32>
    %c16_57 = arith.constant 16 : index
    %c0_58 = arith.constant 0 : index
    %56 = vector.load %arg5[%c16_57, %c0_58] : memref<80x384xf32, #tpu.memory_space<vmem>>, vector<8x384xf32>
    tpu.vector_store %arg5[%c16_57, %c0_58], %55 {strides = array<i32>} : memref<80x384xf32, #tpu.memory_space<vmem>>, vector<8x384xf32>,
    %c1_i32_59 = arith.constant 1 : i32
    %57 = tpu.dynamic_rotate %50 by %c1_i32_59 dim 1 : vector<8x384xf32>, i32 -> vector<8x384xf32>
    %c24_60 = arith.constant 24 : index
    %c0_61 = arith.constant 0 : index
    %58 = vector.load %arg5[%c24_60, %c0_61] : memref<80x384xf32, #tpu.memory_space<vmem>>, vector<8x384xf32>
    tpu.vector_store %arg5[%c24_60, %c0_61], %57 {strides = array<i32>} : memref<80x384xf32, #tpu.memory_space<vmem>>, vector<8x384xf32>,
    %c32_62 = arith.constant 32 : index
    %c0_63 = arith.constant 0 : index
    %59 = vector.load %arg5[%c32_62, %c0_63] : memref<80x384xf32, #tpu.memory_space<vmem>>, vector<8x384xf32>
    tpu.vector_store %arg5[%c32_62, %c0_63], %50 {strides = array<i32>} : memref<80x384xf32, #tpu.memory_space<vmem>>, vector<8x384xf32>,
    %c383_i32_64 = arith.constant 383 : i32
    %60 = tpu.dynamic_rotate %50 by %c383_i32_64 dim 1 : vector<8x384xf32>, i32 -> vector<8x384xf32>
    %c40_65 = arith.constant 40 : index
    %c0_66 = arith.constant 0 : index
    %61 = vector.load %arg5[%c40_65, %c0_66] : memref<80x384xf32, #tpu.memory_space<vmem>>, vector<8x384xf32>
    tpu.vector_store %arg5[%c40_65, %c0_66], %60 {strides = array<i32>} : memref<80x384xf32, #tpu.memory_space<vmem>>, vector<8x384xf32>,
    %c367_i32_67 = arith.constant 367 : i32
    %62 = tpu.dynamic_rotate %50 by %c367_i32_67 dim 1 : vector<8x384xf32>, i32 -> vector<8x384xf32>
    %c48_68 = arith.constant 48 : index
    %c0_69 = arith.constant 0 : index
    %63 = vector.load %arg5[%c48_68, %c0_69] : memref<80x384xf32, #tpu.memory_space<vmem>>, vector<8x384xf32>
    tpu.vector_store %arg5[%c48_68, %c0_69], %62 {strides = array<i32>} : memref<80x384xf32, #tpu.memory_space<vmem>>, vector<8x384xf32>,
    %c366_i32_70 = arith.constant 366 : i32
    %64 = tpu.dynamic_rotate %50 by %c366_i32_70 dim 1 : vector<8x384xf32>, i32 -> vector<8x384xf32>
    %c56_71 = arith.constant 56 : index
    %c0_72 = arith.constant 0 : index
    %65 = vector.load %arg5[%c56_71, %c0_72] : memref<80x384xf32, #tpu.memory_space<vmem>>, vector<8x384xf32>
    tpu.vector_store %arg5[%c56_71, %c0_72], %64 {strides = array<i32>} : memref<80x384xf32, #tpu.memory_space<vmem>>, vector<8x384xf32>,
    %c365_i32_73 = arith.constant 365 : i32
    %66 = tpu.dynamic_rotate %50 by %c365_i32_73 dim 1 : vector<8x384xf32>, i32 -> vector<8x384xf32>
    %c64_74 = arith.constant 64 : index
    %c0_75 = arith.constant 0 : index
    %67 = vector.load %arg5[%c64_74, %c0_75] : memref<80x384xf32, #tpu.memory_space<vmem>>, vector<8x384xf32>
    tpu.vector_store %arg5[%c64_74, %c0_75], %66 {strides = array<i32>} : memref<80x384xf32, #tpu.memory_space<vmem>>, vector<8x384xf32>,
    %c0_76 = arith.constant 0 : index
    %c0_77 = arith.constant 0 : index
    %68 = vector.load %arg5[%c0_76, %c0_77] : memref<80x384xf32, #tpu.memory_space<vmem>>, vector<80x384xf32>
    %cst_78 = arith.constant dense<0.000000e+00> : vector<8x384xf32>
    %69 = tpu.matmul %0, %68, %cst_78 {dimension_numbers = #tpu.dot_dimension_numbers<[1], [0], [0], [1], [0, 0, 1, 1], [], []>} : vector<8x80xf32>, vector<80x384xf32>, vector<8x384xf32> -> vector<8x384xf32>
    %70 = arith.mulf %69, %1 : vector<8x384xf32>
    %cst_79 = arith.constant 1.250000e-01 : f32
    %71 = vector.broadcast %cst_79 : f32 to vector<8x384xf32>
    %72 = arith.mulf %71, %70 : vector<8x384xf32>
    %73 = arith.addf %4, %72 : vector<8x384xf32>
    %c19_i32_80 = arith.constant 19 : i32
    %74 = tpu.dynamic_rotate %73 by %c19_i32_80 dim 1 : vector<8x384xf32>, i32 -> vector<8x384xf32>
    %c0_81 = arith.constant 0 : index
    %c0_82 = arith.constant 0 : index
    %75 = vector.load %arg5[%c0_81, %c0_82] : memref<80x384xf32, #tpu.memory_space<vmem>>, vector<8x384xf32>
    tpu.vector_store %arg5[%c0_81, %c0_82], %74 {strides = array<i32>} : memref<80x384xf32, #tpu.memory_space<vmem>>, vector<8x384xf32>,
    %c18_i32_83 = arith.constant 18 : i32
    %76 = tpu.dynamic_rotate %73 by %c18_i32_83 dim 1 : vector<8x384xf32>, i32 -> vector<8x384xf32>
    %c8_84 = arith.constant 8 : index
    %c0_85 = arith.constant 0 : index
    %77 = vector.load %arg5[%c8_84, %c0_85] : memref<80x384xf32, #tpu.memory_space<vmem>>, vector<8x384xf32>
    tpu.vector_store %arg5[%c8_84, %c0_85], %76 {strides = array<i32>} : memref<80x384xf32, #tpu.memory_space<vmem>>, vector<8x384xf32>,
    %c17_i32_86 = arith.constant 17 : i32
    %78 = tpu.dynamic_rotate %73 by %c17_i32_86 dim 1 : vector<8x384xf32>, i32 -> vector<8x384xf32>
    %c16_87 = arith.constant 16 : index
    %c0_88 = arith.constant 0 : index
    %79 = vector.load %arg5[%c16_87, %c0_88] : memref<80x384xf32, #tpu.memory_space<vmem>>, vector<8x384xf32>
    tpu.vector_store %arg5[%c16_87, %c0_88], %78 {strides = array<i32>} : memref<80x384xf32, #tpu.memory_space<vmem>>, vector<8x384xf32>,
    %c1_i32_89 = arith.constant 1 : i32
    %80 = tpu.dynamic_rotate %73 by %c1_i32_89 dim 1 : vector<8x384xf32>, i32 -> vector<8x384xf32>
    %c24_90 = arith.constant 24 : index
    %c0_91 = arith.constant 0 : index
    %81 = vector.load %arg5[%c24_90, %c0_91] : memref<80x384xf32, #tpu.memory_space<vmem>>, vector<8x384xf32>
    tpu.vector_store %arg5[%c24_90, %c0_91], %80 {strides = array<i32>} : memref<80x384xf32, #tpu.memory_space<vmem>>, vector<8x384xf32>,
    %c32_92 = arith.constant 32 : index
    %c0_93 = arith.constant 0 : index
    %82 = vector.load %arg5[%c32_92, %c0_93] : memref<80x384xf32, #tpu.memory_space<vmem>>, vector<8x384xf32>
    tpu.vector_store %arg5[%c32_92, %c0_93], %73 {strides = array<i32>} : memref<80x384xf32, #tpu.memory_space<vmem>>, vector<8x384xf32>,
    %c383_i32_94 = arith.constant 383 : i32
    %83 = tpu.dynamic_rotate %73 by %c383_i32_94 dim 1 : vector<8x384xf32>, i32 -> vector<8x384xf32>
    %c40_95 = arith.constant 40 : index
    %c0_96 = arith.constant 0 : index
    %84 = vector.load %arg5[%c40_95, %c0_96] : memref<80x384xf32, #tpu.memory_space<vmem>>, vector<8x384xf32>
    tpu.vector_store %arg5[%c40_95, %c0_96], %83 {strides = array<i32>} : memref<80x384xf32, #tpu.memory_space<vmem>>, vector<8x384xf32>,
    %c367_i32_97 = arith.constant 367 : i32
    %85 = tpu.dynamic_rotate %73 by %c367_i32_97 dim 1 : vector<8x384xf32>, i32 -> vector<8x384xf32>
    %c48_98 = arith.constant 48 : index
    %c0_99 = arith.constant 0 : index
    %86 = vector.load %arg5[%c48_98, %c0_99] : memref<80x384xf32, #tpu.memory_space<vmem>>, vector<8x384xf32>
    tpu.vector_store %arg5[%c48_98, %c0_99], %85 {strides = array<i32>} : memref<80x384xf32, #tpu.memory_space<vmem>>, vector<8x384xf32>,
    %c366_i32_100 = arith.constant 366 : i32
    %87 = tpu.dynamic_rotate %73 by %c366_i32_100 dim 1 : vector<8x384xf32>, i32 -> vector<8x384xf32>
    %c56_101 = arith.constant 56 : index
    %c0_102 = arith.constant 0 : index
    %88 = vector.load %arg5[%c56_101, %c0_102] : memref<80x384xf32, #tpu.memory_space<vmem>>, vector<8x384xf32>
    tpu.vector_store %arg5[%c56_101, %c0_102], %87 {strides = array<i32>} : memref<80x384xf32, #tpu.memory_space<vmem>>, vector<8x384xf32>,
    %c365_i32_103 = arith.constant 365 : i32
    %89 = tpu.dynamic_rotate %73 by %c365_i32_103 dim 1 : vector<8x384xf32>, i32 -> vector<8x384xf32>
    %c64_104 = arith.constant 64 : index
    %c0_105 = arith.constant 0 : index
    %90 = vector.load %arg5[%c64_104, %c0_105] : memref<80x384xf32, #tpu.memory_space<vmem>>, vector<8x384xf32>
    tpu.vector_store %arg5[%c64_104, %c0_105], %89 {strides = array<i32>} : memref<80x384xf32, #tpu.memory_space<vmem>>, vector<8x384xf32>,
    %c0_106 = arith.constant 0 : index
    %c0_107 = arith.constant 0 : index
    %91 = vector.load %arg5[%c0_106, %c0_107] : memref<80x384xf32, #tpu.memory_space<vmem>>, vector<80x384xf32>
    %cst_108 = arith.constant dense<0.000000e+00> : vector<8x384xf32>
    %92 = tpu.matmul %0, %91, %cst_108 {dimension_numbers = #tpu.dot_dimension_numbers<[1], [0], [0], [1], [0, 0, 1, 1], [], []>} : vector<8x80xf32>, vector<80x384xf32>, vector<8x384xf32> -> vector<8x384xf32>
    %93 = arith.mulf %92, %1 : vector<8x384xf32>
    %cst_109 = arith.constant 2.000000e+00 : f32
    %94 = vector.broadcast %cst_109 : f32 to vector<8x384xf32>
    %95 = arith.mulf %94, %47 : vector<8x384xf32>
    %96 = arith.addf %24, %95 : vector<8x384xf32>
    %cst_110 = arith.constant 2.000000e+00 : f32
    %97 = vector.broadcast %cst_110 : f32 to vector<8x384xf32>
    %98 = arith.mulf %97, %70 : vector<8x384xf32>
    %99 = arith.addf %96, %98 : vector<8x384xf32>
    %100 = arith.addf %99, %93 : vector<8x384xf32>
    %cst_111 = arith.constant 0.020833334 : f32
    %101 = vector.broadcast %cst_111 : f32 to vector<8x384xf32>
    %102 = arith.mulf %101, %100 : vector<8x384xf32>
    %103 = arith.addf %4, %102 : vector<8x384xf32>
    %c1_i32_112 = arith.constant 1 : i32
    %c19_i32_113 = arith.constant 19 : i32
    %104 = tpu.dynamic_rotate %103 by %c19_i32_113 dim 1 : vector<8x384xf32>, i32 -> vector<8x384xf32>
    %c0_114 = arith.constant 0 : index
    %c0_115 = arith.constant 0 : index
    %105 = vector.load %arg5[%c0_114, %c0_115] : memref<80x384xf32, #tpu.memory_space<vmem>>, vector<8x384xf32>
    tpu.vector_store %arg5[%c0_114, %c0_115], %104 {strides = array<i32>} : memref<80x384xf32, #tpu.memory_space<vmem>>, vector<8x384xf32>,
    %c18_i32_116 = arith.constant 18 : i32
    %106 = tpu.dynamic_rotate %103 by %c18_i32_116 dim 1 : vector<8x384xf32>, i32 -> vector<8x384xf32>
    %c8_117 = arith.constant 8 : index
    %c0_118 = arith.constant 0 : index
    %107 = vector.load %arg5[%c8_117, %c0_118] : memref<80x384xf32, #tpu.memory_space<vmem>>, vector<8x384xf32>
    tpu.vector_store %arg5[%c8_117, %c0_118], %106 {strides = array<i32>} : memref<80x384xf32, #tpu.memory_space<vmem>>, vector<8x384xf32>,
    %c17_i32_119 = arith.constant 17 : i32
    %108 = tpu.dynamic_rotate %103 by %c17_i32_119 dim 1 : vector<8x384xf32>, i32 -> vector<8x384xf32>
    %c16_120 = arith.constant 16 : index
    %c0_121 = arith.constant 0 : index
    %109 = vector.load %arg5[%c16_120, %c0_121] : memref<80x384xf32, #tpu.memory_space<vmem>>, vector<8x384xf32>
    tpu.vector_store %arg5[%c16_120, %c0_121], %108 {strides = array<i32>} : memref<80x384xf32, #tpu.memory_space<vmem>>, vector<8x384xf32>,
    %c1_i32_122 = arith.constant 1 : i32
    %110 = tpu.dynamic_rotate %103 by %c1_i32_122 dim 1 : vector<8x384xf32>, i32 -> vector<8x384xf32>
    %c24_123 = arith.constant 24 : index
    %c0_124 = arith.constant 0 : index
    %111 = vector.load %arg5[%c24_123, %c0_124] : memref<80x384xf32, #tpu.memory_space<vmem>>, vector<8x384xf32>
    tpu.vector_store %arg5[%c24_123, %c0_124], %110 {strides = array<i32>} : memref<80x384xf32, #tpu.memory_space<vmem>>, vector<8x384xf32>,
    %c32_125 = arith.constant 32 : index
    %c0_126 = arith.constant 0 : index
    %112 = vector.load %arg5[%c32_125, %c0_126] : memref<80x384xf32, #tpu.memory_space<vmem>>, vector<8x384xf32>
    tpu.vector_store %arg5[%c32_125, %c0_126], %103 {strides = array<i32>} : memref<80x384xf32, #tpu.memory_space<vmem>>, vector<8x384xf32>,
    %c383_i32_127 = arith.constant 383 : i32
    %113 = tpu.dynamic_rotate %103 by %c383_i32_127 dim 1 : vector<8x384xf32>, i32 -> vector<8x384xf32>
    %c40_128 = arith.constant 40 : index
    %c0_129 = arith.constant 0 : index
    %114 = vector.load %arg5[%c40_128, %c0_129] : memref<80x384xf32, #tpu.memory_space<vmem>>, vector<8x384xf32>
    tpu.vector_store %arg5[%c40_128, %c0_129], %113 {strides = array<i32>} : memref<80x384xf32, #tpu.memory_space<vmem>>, vector<8x384xf32>,
    %c367_i32_130 = arith.constant 367 : i32
    %115 = tpu.dynamic_rotate %103 by %c367_i32_130 dim 1 : vector<8x384xf32>, i32 -> vector<8x384xf32>
    %c48_131 = arith.constant 48 : index
    %c0_132 = arith.constant 0 : index
    %116 = vector.load %arg5[%c48_131, %c0_132] : memref<80x384xf32, #tpu.memory_space<vmem>>, vector<8x384xf32>
    tpu.vector_store %arg5[%c48_131, %c0_132], %115 {strides = array<i32>} : memref<80x384xf32, #tpu.memory_space<vmem>>, vector<8x384xf32>,
    %c366_i32_133 = arith.constant 366 : i32
    %117 = tpu.dynamic_rotate %103 by %c366_i32_133 dim 1 : vector<8x384xf32>, i32 -> vector<8x384xf32>
    %c56_134 = arith.constant 56 : index
    %c0_135 = arith.constant 0 : index
    %118 = vector.load %arg5[%c56_134, %c0_135] : memref<80x384xf32, #tpu.memory_space<vmem>>, vector<8x384xf32>
    tpu.vector_store %arg5[%c56_134, %c0_135], %117 {strides = array<i32>} : memref<80x384xf32, #tpu.memory_space<vmem>>, vector<8x384xf32>,
    %c365_i32_136 = arith.constant 365 : i32
    %119 = tpu.dynamic_rotate %103 by %c365_i32_136 dim 1 : vector<8x384xf32>, i32 -> vector<8x384xf32>
    %c64_137 = arith.constant 64 : index
    %c0_138 = arith.constant 0 : index
    %120 = vector.load %arg5[%c64_137, %c0_138] : memref<80x384xf32, #tpu.memory_space<vmem>>, vector<8x384xf32>
    tpu.vector_store %arg5[%c64_137, %c0_138], %119 {strides = array<i32>} : memref<80x384xf32, #tpu.memory_space<vmem>>, vector<8x384xf32>,
    %c0_139 = arith.constant 0 : index
    %c0_140 = arith.constant 0 : index
    %121 = vector.load %arg5[%c0_139, %c0_140] : memref<80x384xf32, #tpu.memory_space<vmem>>, vector<80x384xf32>
    %cst_141 = arith.constant dense<0.000000e+00> : vector<8x384xf32>
    %122 = tpu.matmul %0, %121, %cst_141 {dimension_numbers = #tpu.dot_dimension_numbers<[1], [0], [0], [1], [0, 0, 1, 1], [], []>} : vector<8x80xf32>, vector<80x384xf32>, vector<8x384xf32> -> vector<8x384xf32>
    %123 = arith.mulf %122, %1 : vector<8x384xf32>
    %cst_142 = arith.constant 6.250000e-02 : f32
    %124 = vector.broadcast %cst_142 : f32 to vector<8x384xf32>
    %125 = arith.mulf %124, %123 : vector<8x384xf32>
    %126 = arith.addf %103, %125 : vector<8x384xf32>
    %c19_i32_143 = arith.constant 19 : i32
    %127 = tpu.dynamic_rotate %126 by %c19_i32_143 dim 1 : vector<8x384xf32>, i32 -> vector<8x384xf32>
    %c0_144 = arith.constant 0 : index
    %c0_145 = arith.constant 0 : index
    %128 = vector.load %arg5[%c0_144, %c0_145] : memref<80x384xf32, #tpu.memory_space<vmem>>, vector<8x384xf32>
    tpu.vector_store %arg5[%c0_144, %c0_145], %127 {strides = array<i32>} : memref<80x384xf32, #tpu.memory_space<vmem>>, vector<8x384xf32>,
    %c18_i32_146 = arith.constant 18 : i32
    %129 = tpu.dynamic_rotate %126 by %c18_i32_146 dim 1 : vector<8x384xf32>, i32 -> vector<8x384xf32>
    %c8_147 = arith.constant 8 : index
    %c0_148 = arith.constant 0 : index
    %130 = vector.load %arg5[%c8_147, %c0_148] : memref<80x384xf32, #tpu.memory_space<vmem>>, vector<8x384xf32>
    tpu.vector_store %arg5[%c8_147, %c0_148], %129 {strides = array<i32>} : memref<80x384xf32, #tpu.memory_space<vmem>>, vector<8x384xf32>,
    %c17_i32_149 = arith.constant 17 : i32
    %131 = tpu.dynamic_rotate %126 by %c17_i32_149 dim 1 : vector<8x384xf32>, i32 -> vector<8x384xf32>
    %c16_150 = arith.constant 16 : index
    %c0_151 = arith.constant 0 : index
    %132 = vector.load %arg5[%c16_150, %c0_151] : memref<80x384xf32, #tpu.memory_space<vmem>>, vector<8x384xf32>
    tpu.vector_store %arg5[%c16_150, %c0_151], %131 {strides = array<i32>} : memref<80x384xf32, #tpu.memory_space<vmem>>, vector<8x384xf32>,
    %c1_i32_152 = arith.constant 1 : i32
    %133 = tpu.dynamic_rotate %126 by %c1_i32_152 dim 1 : vector<8x384xf32>, i32 -> vector<8x384xf32>
    %c24_153 = arith.constant 24 : index
    %c0_154 = arith.constant 0 : index
    %134 = vector.load %arg5[%c24_153, %c0_154] : memref<80x384xf32, #tpu.memory_space<vmem>>, vector<8x384xf32>
    tpu.vector_store %arg5[%c24_153, %c0_154], %133 {strides = array<i32>} : memref<80x384xf32, #tpu.memory_space<vmem>>, vector<8x384xf32>,
    %c32_155 = arith.constant 32 : index
    %c0_156 = arith.constant 0 : index
    %135 = vector.load %arg5[%c32_155, %c0_156] : memref<80x384xf32, #tpu.memory_space<vmem>>, vector<8x384xf32>
    tpu.vector_store %arg5[%c32_155, %c0_156], %126 {strides = array<i32>} : memref<80x384xf32, #tpu.memory_space<vmem>>, vector<8x384xf32>,
    %c383_i32_157 = arith.constant 383 : i32
    %136 = tpu.dynamic_rotate %126 by %c383_i32_157 dim 1 : vector<8x384xf32>, i32 -> vector<8x384xf32>
    %c40_158 = arith.constant 40 : index
    %c0_159 = arith.constant 0 : index
    %137 = vector.load %arg5[%c40_158, %c0_159] : memref<80x384xf32, #tpu.memory_space<vmem>>, vector<8x384xf32>
    tpu.vector_store %arg5[%c40_158, %c0_159], %136 {strides = array<i32>} : memref<80x384xf32, #tpu.memory_space<vmem>>, vector<8x384xf32>,
    %c367_i32_160 = arith.constant 367 : i32
    %138 = tpu.dynamic_rotate %126 by %c367_i32_160 dim 1 : vector<8x384xf32>, i32 -> vector<8x384xf32>
    %c48_161 = arith.constant 48 : index
    %c0_162 = arith.constant 0 : index
    %139 = vector.load %arg5[%c48_161, %c0_162] : memref<80x384xf32, #tpu.memory_space<vmem>>, vector<8x384xf32>
    tpu.vector_store %arg5[%c48_161, %c0_162], %138 {strides = array<i32>} : memref<80x384xf32, #tpu.memory_space<vmem>>, vector<8x384xf32>,
    %c366_i32_163 = arith.constant 366 : i32
    %140 = tpu.dynamic_rotate %126 by %c366_i32_163 dim 1 : vector<8x384xf32>, i32 -> vector<8x384xf32>
    %c56_164 = arith.constant 56 : index
    %c0_165 = arith.constant 0 : index
    %141 = vector.load %arg5[%c56_164, %c0_165] : memref<80x384xf32, #tpu.memory_space<vmem>>, vector<8x384xf32>
    tpu.vector_store %arg5[%c56_164, %c0_165], %140 {strides = array<i32>} : memref<80x384xf32, #tpu.memory_space<vmem>>, vector<8x384xf32>,
    %c365_i32_166 = arith.constant 365 : i32
    %142 = tpu.dynamic_rotate %126 by %c365_i32_166 dim 1 : vector<8x384xf32>, i32 -> vector<8x384xf32>
    %c64_167 = arith.constant 64 : index
    %c0_168 = arith.constant 0 : index
    %143 = vector.load %arg5[%c64_167, %c0_168] : memref<80x384xf32, #tpu.memory_space<vmem>>, vector<8x384xf32>
    tpu.vector_store %arg5[%c64_167, %c0_168], %142 {strides = array<i32>} : memref<80x384xf32, #tpu.memory_space<vmem>>, vector<8x384xf32>,
    %c0_169 = arith.constant 0 : index
    %c0_170 = arith.constant 0 : index
    %144 = vector.load %arg5[%c0_169, %c0_170] : memref<80x384xf32, #tpu.memory_space<vmem>>, vector<80x384xf32>
    %cst_171 = arith.constant dense<0.000000e+00> : vector<8x384xf32>
    %145 = tpu.matmul %0, %144, %cst_171 {dimension_numbers = #tpu.dot_dimension_numbers<[1], [0], [0], [1], [0, 0, 1, 1], [], []>} : vector<8x80xf32>, vector<80x384xf32>, vector<8x384xf32> -> vector<8x384xf32>
    %146 = arith.mulf %145, %1 : vector<8x384xf32>
    %cst_172 = arith.constant 6.250000e-02 : f32
    %147 = vector.broadcast %cst_172 : f32 to vector<8x384xf32>
    %148 = arith.mulf %147, %146 : vector<8x384xf32>
    %149 = arith.addf %103, %148 : vector<8x384xf32>
    %c19_i32_173 = arith.constant 19 : i32
    %150 = tpu.dynamic_rotate %149 by %c19_i32_173 dim 1 : vector<8x384xf32>, i32 -> vector<8x384xf32>
    %c0_174 = arith.constant 0 : index
    %c0_175 = arith.constant 0 : index
    %151 = vector.load %arg5[%c0_174, %c0_175] : memref<80x384xf32, #tpu.memory_space<vmem>>, vector<8x384xf32>
    tpu.vector_store %arg5[%c0_174, %c0_175], %150 {strides = array<i32>} : memref<80x384xf32, #tpu.memory_space<vmem>>, vector<8x384xf32>,
    %c18_i32_176 = arith.constant 18 : i32
    %152 = tpu.dynamic_rotate %149 by %c18_i32_176 dim 1 : vector<8x384xf32>, i32 -> vector<8x384xf32>
    %c8_177 = arith.constant 8 : index
    %c0_178 = arith.constant 0 : index
    %153 = vector.load %arg5[%c8_177, %c0_178] : memref<80x384xf32, #tpu.memory_space<vmem>>, vector<8x384xf32>
    tpu.vector_store %arg5[%c8_177, %c0_178], %152 {strides = array<i32>} : memref<80x384xf32, #tpu.memory_space<vmem>>, vector<8x384xf32>,
    %c17_i32_179 = arith.constant 17 : i32
    %154 = tpu.dynamic_rotate %149 by %c17_i32_179 dim 1 : vector<8x384xf32>, i32 -> vector<8x384xf32>
    %c16_180 = arith.constant 16 : index
    %c0_181 = arith.constant 0 : index
    %155 = vector.load %arg5[%c16_180, %c0_181] : memref<80x384xf32, #tpu.memory_space<vmem>>, vector<8x384xf32>
    tpu.vector_store %arg5[%c16_180, %c0_181], %154 {strides = array<i32>} : memref<80x384xf32, #tpu.memory_space<vmem>>, vector<8x384xf32>,
    %c1_i32_182 = arith.constant 1 : i32
    %156 = tpu.dynamic_rotate %149 by %c1_i32_182 dim 1 : vector<8x384xf32>, i32 -> vector<8x384xf32>
    %c24_183 = arith.constant 24 : index
    %c0_184 = arith.constant 0 : index
    %157 = vector.load %arg5[%c24_183, %c0_184] : memref<80x384xf32, #tpu.memory_space<vmem>>, vector<8x384xf32>
    tpu.vector_store %arg5[%c24_183, %c0_184], %156 {strides = array<i32>} : memref<80x384xf32, #tpu.memory_space<vmem>>, vector<8x384xf32>,
    %c32_185 = arith.constant 32 : index
    %c0_186 = arith.constant 0 : index
    %158 = vector.load %arg5[%c32_185, %c0_186] : memref<80x384xf32, #tpu.memory_space<vmem>>, vector<8x384xf32>
    tpu.vector_store %arg5[%c32_185, %c0_186], %149 {strides = array<i32>} : memref<80x384xf32, #tpu.memory_space<vmem>>, vector<8x384xf32>,
    %c383_i32_187 = arith.constant 383 : i32
    %159 = tpu.dynamic_rotate %149 by %c383_i32_187 dim 1 : vector<8x384xf32>, i32 -> vector<8x384xf32>
    %c40_188 = arith.constant 40 : index
    %c0_189 = arith.constant 0 : index
    %160 = vector.load %arg5[%c40_188, %c0_189] : memref<80x384xf32, #tpu.memory_space<vmem>>, vector<8x384xf32>
    tpu.vector_store %arg5[%c40_188, %c0_189], %159 {strides = array<i32>} : memref<80x384xf32, #tpu.memory_space<vmem>>, vector<8x384xf32>,
    %c367_i32_190 = arith.constant 367 : i32
    %161 = tpu.dynamic_rotate %149 by %c367_i32_190 dim 1 : vector<8x384xf32>, i32 -> vector<8x384xf32>
    %c48_191 = arith.constant 48 : index
    %c0_192 = arith.constant 0 : index
    %162 = vector.load %arg5[%c48_191, %c0_192] : memref<80x384xf32, #tpu.memory_space<vmem>>, vector<8x384xf32>
    tpu.vector_store %arg5[%c48_191, %c0_192], %161 {strides = array<i32>} : memref<80x384xf32, #tpu.memory_space<vmem>>, vector<8x384xf32>,
    %c366_i32_193 = arith.constant 366 : i32
    %163 = tpu.dynamic_rotate %149 by %c366_i32_193 dim 1 : vector<8x384xf32>, i32 -> vector<8x384xf32>
    %c56_194 = arith.constant 56 : index
    %c0_195 = arith.constant 0 : index
    %164 = vector.load %arg5[%c56_194, %c0_195] : memref<80x384xf32, #tpu.memory_space<vmem>>, vector<8x384xf32>
    tpu.vector_store %arg5[%c56_194, %c0_195], %163 {strides = array<i32>} : memref<80x384xf32, #tpu.memory_space<vmem>>, vector<8x384xf32>,
    %c365_i32_196 = arith.constant 365 : i32
    %165 = tpu.dynamic_rotate %149 by %c365_i32_196 dim 1 : vector<8x384xf32>, i32 -> vector<8x384xf32>
    %c64_197 = arith.constant 64 : index
    %c0_198 = arith.constant 0 : index
    %166 = vector.load %arg5[%c64_197, %c0_198] : memref<80x384xf32, #tpu.memory_space<vmem>>, vector<8x384xf32>
    tpu.vector_store %arg5[%c64_197, %c0_198], %165 {strides = array<i32>} : memref<80x384xf32, #tpu.memory_space<vmem>>, vector<8x384xf32>,
    %c0_199 = arith.constant 0 : index
    %c0_200 = arith.constant 0 : index
    %167 = vector.load %arg5[%c0_199, %c0_200] : memref<80x384xf32, #tpu.memory_space<vmem>>, vector<80x384xf32>
    %cst_201 = arith.constant dense<0.000000e+00> : vector<8x384xf32>
    %168 = tpu.matmul %0, %167, %cst_201 {dimension_numbers = #tpu.dot_dimension_numbers<[1], [0], [0], [1], [0, 0, 1, 1], [], []>} : vector<8x80xf32>, vector<80x384xf32>, vector<8x384xf32> -> vector<8x384xf32>
    %169 = arith.mulf %168, %1 : vector<8x384xf32>
    %cst_202 = arith.constant 1.250000e-01 : f32
    %170 = vector.broadcast %cst_202 : f32 to vector<8x384xf32>
    %171 = arith.mulf %170, %169 : vector<8x384xf32>
    %172 = arith.addf %103, %171 : vector<8x384xf32>
    %c19_i32_203 = arith.constant 19 : i32
    %173 = tpu.dynamic_rotate %172 by %c19_i32_203 dim 1 : vector<8x384xf32>, i32 -> vector<8x384xf32>
    %c0_204 = arith.constant 0 : index
    %c0_205 = arith.constant 0 : index
    %174 = vector.load %arg5[%c0_204, %c0_205] : memref<80x384xf32, #tpu.memory_space<vmem>>, vector<8x384xf32>
    tpu.vector_store %arg5[%c0_204, %c0_205], %173 {strides = array<i32>} : memref<80x384xf32, #tpu.memory_space<vmem>>, vector<8x384xf32>,
    %c18_i32_206 = arith.constant 18 : i32
    %175 = tpu.dynamic_rotate %172 by %c18_i32_206 dim 1 : vector<8x384xf32>, i32 -> vector<8x384xf32>
    %c8_207 = arith.constant 8 : index
    %c0_208 = arith.constant 0 : index
    %176 = vector.load %arg5[%c8_207, %c0_208] : memref<80x384xf32, #tpu.memory_space<vmem>>, vector<8x384xf32>
    tpu.vector_store %arg5[%c8_207, %c0_208], %175 {strides = array<i32>} : memref<80x384xf32, #tpu.memory_space<vmem>>, vector<8x384xf32>,
    %c17_i32_209 = arith.constant 17 : i32
    %177 = tpu.dynamic_rotate %172 by %c17_i32_209 dim 1 : vector<8x384xf32>, i32 -> vector<8x384xf32>
    %c16_210 = arith.constant 16 : index
    %c0_211 = arith.constant 0 : index
    %178 = vector.load %arg5[%c16_210, %c0_211] : memref<80x384xf32, #tpu.memory_space<vmem>>, vector<8x384xf32>
    tpu.vector_store %arg5[%c16_210, %c0_211], %177 {strides = array<i32>} : memref<80x384xf32, #tpu.memory_space<vmem>>, vector<8x384xf32>,
    %c1_i32_212 = arith.constant 1 : i32
    %179 = tpu.dynamic_rotate %172 by %c1_i32_212 dim 1 : vector<8x384xf32>, i32 -> vector<8x384xf32>
    %c24_213 = arith.constant 24 : index
    %c0_214 = arith.constant 0 : index
    %180 = vector.load %arg5[%c24_213, %c0_214] : memref<80x384xf32, #tpu.memory_space<vmem>>, vector<8x384xf32>
    tpu.vector_store %arg5[%c24_213, %c0_214], %179 {strides = array<i32>} : memref<80x384xf32, #tpu.memory_space<vmem>>, vector<8x384xf32>,
    %c32_215 = arith.constant 32 : index
    %c0_216 = arith.constant 0 : index
    %181 = vector.load %arg5[%c32_215, %c0_216] : memref<80x384xf32, #tpu.memory_space<vmem>>, vector<8x384xf32>
    tpu.vector_store %arg5[%c32_215, %c0_216], %172 {strides = array<i32>} : memref<80x384xf32, #tpu.memory_space<vmem>>, vector<8x384xf32>,
    %c383_i32_217 = arith.constant 383 : i32
    %182 = tpu.dynamic_rotate %172 by %c383_i32_217 dim 1 : vector<8x384xf32>, i32 -> vector<8x384xf32>
    %c40_218 = arith.constant 40 : index
    %c0_219 = arith.constant 0 : index
    %183 = vector.load %arg5[%c40_218, %c0_219] : memref<80x384xf32, #tpu.memory_space<vmem>>, vector<8x384xf32>
    tpu.vector_store %arg5[%c40_218, %c0_219], %182 {strides = array<i32>} : memref<80x384xf32, #tpu.memory_space<vmem>>, vector<8x384xf32>,
    %c367_i32_220 = arith.constant 367 : i32
    %184 = tpu.dynamic_rotate %172 by %c367_i32_220 dim 1 : vector<8x384xf32>, i32 -> vector<8x384xf32>
    %c48_221 = arith.constant 48 : index
    %c0_222 = arith.constant 0 : index
    %185 = vector.load %arg5[%c48_221, %c0_222] : memref<80x384xf32, #tpu.memory_space<vmem>>, vector<8x384xf32>
    tpu.vector_store %arg5[%c48_221, %c0_222], %184 {strides = array<i32>} : memref<80x384xf32, #tpu.memory_space<vmem>>, vector<8x384xf32>,
    %c366_i32_223 = arith.constant 366 : i32
    %186 = tpu.dynamic_rotate %172 by %c366_i32_223 dim 1 : vector<8x384xf32>, i32 -> vector<8x384xf32>
    %c56_224 = arith.constant 56 : index
    %c0_225 = arith.constant 0 : index
    %187 = vector.load %arg5[%c56_224, %c0_225] : memref<80x384xf32, #tpu.memory_space<vmem>>, vector<8x384xf32>
    tpu.vector_store %arg5[%c56_224, %c0_225], %186 {strides = array<i32>} : memref<80x384xf32, #tpu.memory_space<vmem>>, vector<8x384xf32>,
    %c365_i32_226 = arith.constant 365 : i32
    %188 = tpu.dynamic_rotate %172 by %c365_i32_226 dim 1 : vector<8x384xf32>, i32 -> vector<8x384xf32>
    %c64_227 = arith.constant 64 : index
    %c0_228 = arith.constant 0 : index
    %189 = vector.load %arg5[%c64_227, %c0_228] : memref<80x384xf32, #tpu.memory_space<vmem>>, vector<8x384xf32>
    tpu.vector_store %arg5[%c64_227, %c0_228], %188 {strides = array<i32>} : memref<80x384xf32, #tpu.memory_space<vmem>>, vector<8x384xf32>,
    %c0_229 = arith.constant 0 : index
    %c0_230 = arith.constant 0 : index
    %190 = vector.load %arg5[%c0_229, %c0_230] : memref<80x384xf32, #tpu.memory_space<vmem>>, vector<80x384xf32>
    %cst_231 = arith.constant dense<0.000000e+00> : vector<8x384xf32>
    %191 = tpu.matmul %0, %190, %cst_231 {dimension_numbers = #tpu.dot_dimension_numbers<[1], [0], [0], [1], [0, 0, 1, 1], [], []>} : vector<8x80xf32>, vector<80x384xf32>, vector<8x384xf32> -> vector<8x384xf32>
    %192 = arith.mulf %191, %1 : vector<8x384xf32>
    %cst_232 = arith.constant 2.000000e+00 : f32
    %193 = vector.broadcast %cst_232 : f32 to vector<8x384xf32>
    %194 = arith.mulf %193, %146 : vector<8x384xf32>
    %195 = arith.addf %123, %194 : vector<8x384xf32>
    %cst_233 = arith.constant 2.000000e+00 : f32
    %196 = vector.broadcast %cst_233 : f32 to vector<8x384xf32>
    %197 = arith.mulf %196, %169 : vector<8x384xf32>
    %198 = arith.addf %195, %197 : vector<8x384xf32>
    %199 = arith.addf %198, %192 : vector<8x384xf32>
    %cst_234 = arith.constant 0.020833334 : f32
    %200 = vector.broadcast %cst_234 : f32 to vector<8x384xf32>
    %201 = arith.mulf %200, %199 : vector<8x384xf32>
    %202 = arith.addf %103, %201 : vector<8x384xf32>
    %c2_i32 = arith.constant 2 : i32
    %c19_i32_235 = arith.constant 19 : i32
    %203 = tpu.dynamic_rotate %202 by %c19_i32_235 dim 1 : vector<8x384xf32>, i32 -> vector<8x384xf32>
    %c0_236 = arith.constant 0 : index
    %c0_237 = arith.constant 0 : index
    %204 = vector.load %arg5[%c0_236, %c0_237] : memref<80x384xf32, #tpu.memory_space<vmem>>, vector<8x384xf32>
    tpu.vector_store %arg5[%c0_236, %c0_237], %203 {strides = array<i32>} : memref<80x384xf32, #tpu.memory_space<vmem>>, vector<8x384xf32>,
    %c18_i32_238 = arith.constant 18 : i32
    %205 = tpu.dynamic_rotate %202 by %c18_i32_238 dim 1 : vector<8x384xf32>, i32 -> vector<8x384xf32>
    %c8_239 = arith.constant 8 : index
    %c0_240 = arith.constant 0 : index
    %206 = vector.load %arg5[%c8_239, %c0_240] : memref<80x384xf32, #tpu.memory_space<vmem>>, vector<8x384xf32>
    tpu.vector_store %arg5[%c8_239, %c0_240], %205 {strides = array<i32>} : memref<80x384xf32, #tpu.memory_space<vmem>>, vector<8x384xf32>,
    %c17_i32_241 = arith.constant 17 : i32
    %207 = tpu.dynamic_rotate %202 by %c17_i32_241 dim 1 : vector<8x384xf32>, i32 -> vector<8x384xf32>
    %c16_242 = arith.constant 16 : index
    %c0_243 = arith.constant 0 : index
    %208 = vector.load %arg5[%c16_242, %c0_243] : memref<80x384xf32, #tpu.memory_space<vmem>>, vector<8x384xf32>
    tpu.vector_store %arg5[%c16_242, %c0_243], %207 {strides = array<i32>} : memref<80x384xf32, #tpu.memory_space<vmem>>, vector<8x384xf32>,
    %c1_i32_244 = arith.constant 1 : i32
    %209 = tpu.dynamic_rotate %202 by %c1_i32_244 dim 1 : vector<8x384xf32>, i32 -> vector<8x384xf32>
    %c24_245 = arith.constant 24 : index
    %c0_246 = arith.constant 0 : index
    %210 = vector.load %arg5[%c24_245, %c0_246] : memref<80x384xf32, #tpu.memory_space<vmem>>, vector<8x384xf32>
    tpu.vector_store %arg5[%c24_245, %c0_246], %209 {strides = array<i32>} : memref<80x384xf32, #tpu.memory_space<vmem>>, vector<8x384xf32>,
    %c32_247 = arith.constant 32 : index
    %c0_248 = arith.constant 0 : index
    %211 = vector.load %arg5[%c32_247, %c0_248] : memref<80x384xf32, #tpu.memory_space<vmem>>, vector<8x384xf32>
    tpu.vector_store %arg5[%c32_247, %c0_248], %202 {strides = array<i32>} : memref<80x384xf32, #tpu.memory_space<vmem>>, vector<8x384xf32>,
    %c383_i32_249 = arith.constant 383 : i32
    %212 = tpu.dynamic_rotate %202 by %c383_i32_249 dim 1 : vector<8x384xf32>, i32 -> vector<8x384xf32>
    %c40_250 = arith.constant 40 : index
    %c0_251 = arith.constant 0 : index
    %213 = vector.load %arg5[%c40_250, %c0_251] : memref<80x384xf32, #tpu.memory_space<vmem>>, vector<8x384xf32>
    tpu.vector_store %arg5[%c40_250, %c0_251], %212 {strides = array<i32>} : memref<80x384xf32, #tpu.memory_space<vmem>>, vector<8x384xf32>,
    %c367_i32_252 = arith.constant 367 : i32
    %214 = tpu.dynamic_rotate %202 by %c367_i32_252 dim 1 : vector<8x384xf32>, i32 -> vector<8x384xf32>
    %c48_253 = arith.constant 48 : index
    %c0_254 = arith.constant 0 : index
    %215 = vector.load %arg5[%c48_253, %c0_254] : memref<80x384xf32, #tpu.memory_space<vmem>>, vector<8x384xf32>
    tpu.vector_store %arg5[%c48_253, %c0_254], %214 {strides = array<i32>} : memref<80x384xf32, #tpu.memory_space<vmem>>, vector<8x384xf32>,
    %c366_i32_255 = arith.constant 366 : i32
    %216 = tpu.dynamic_rotate %202 by %c366_i32_255 dim 1 : vector<8x384xf32>, i32 -> vector<8x384xf32>
    %c56_256 = arith.constant 56 : index
    %c0_257 = arith.constant 0 : index
    %217 = vector.load %arg5[%c56_256, %c0_257] : memref<80x384xf32, #tpu.memory_space<vmem>>, vector<8x384xf32>
    tpu.vector_store %arg5[%c56_256, %c0_257], %216 {strides = array<i32>} : memref<80x384xf32, #tpu.memory_space<vmem>>, vector<8x384xf32>,
    %c365_i32_258 = arith.constant 365 : i32
    %218 = tpu.dynamic_rotate %202 by %c365_i32_258 dim 1 : vector<8x384xf32>, i32 -> vector<8x384xf32>
    %c64_259 = arith.constant 64 : index
    %c0_260 = arith.constant 0 : index
    %219 = vector.load %arg5[%c64_259, %c0_260] : memref<80x384xf32, #tpu.memory_space<vmem>>, vector<8x384xf32>
    tpu.vector_store %arg5[%c64_259, %c0_260], %218 {strides = array<i32>} : memref<80x384xf32, #tpu.memory_space<vmem>>, vector<8x384xf32>,
    %c0_261 = arith.constant 0 : index
    %c0_262 = arith.constant 0 : index
    %220 = vector.load %arg5[%c0_261, %c0_262] : memref<80x384xf32, #tpu.memory_space<vmem>>, vector<80x384xf32>
    %cst_263 = arith.constant dense<0.000000e+00> : vector<8x384xf32>
    %221 = tpu.matmul %0, %220, %cst_263 {dimension_numbers = #tpu.dot_dimension_numbers<[1], [0], [0], [1], [0, 0, 1, 1], [], []>} : vector<8x80xf32>, vector<80x384xf32>, vector<8x384xf32> -> vector<8x384xf32>
    %222 = arith.mulf %221, %1 : vector<8x384xf32>
    %cst_264 = arith.constant 6.250000e-02 : f32
    %223 = vector.broadcast %cst_264 : f32 to vector<8x384xf32>
    %224 = arith.mulf %223, %222 : vector<8x384xf32>
    %225 = arith.addf %202, %224 : vector<8x384xf32>
    %c19_i32_265 = arith.constant 19 : i32
    %226 = tpu.dynamic_rotate %225 by %c19_i32_265 dim 1 : vector<8x384xf32>, i32 -> vector<8x384xf32>
    %c0_266 = arith.constant 0 : index
    %c0_267 = arith.constant 0 : index
    %227 = vector.load %arg5[%c0_266, %c0_267] : memref<80x384xf32, #tpu.memory_space<vmem>>, vector<8x384xf32>
    tpu.vector_store %arg5[%c0_266, %c0_267], %226 {strides = array<i32>} : memref<80x384xf32, #tpu.memory_space<vmem>>, vector<8x384xf32>,
    %c18_i32_268 = arith.constant 18 : i32
    %228 = tpu.dynamic_rotate %225 by %c18_i32_268 dim 1 : vector<8x384xf32>, i32 -> vector<8x384xf32>
    %c8_269 = arith.constant 8 : index
    %c0_270 = arith.constant 0 : index
    %229 = vector.load %arg5[%c8_269, %c0_270] : memref<80x384xf32, #tpu.memory_space<vmem>>, vector<8x384xf32>
    tpu.vector_store %arg5[%c8_269, %c0_270], %228 {strides = array<i32>} : memref<80x384xf32, #tpu.memory_space<vmem>>, vector<8x384xf32>,
    %c17_i32_271 = arith.constant 17 : i32
    %230 = tpu.dynamic_rotate %225 by %c17_i32_271 dim 1 : vector<8x384xf32>, i32 -> vector<8x384xf32>
    %c16_272 = arith.constant 16 : index
    %c0_273 = arith.constant 0 : index
    %231 = vector.load %arg5[%c16_272, %c0_273] : memref<80x384xf32, #tpu.memory_space<vmem>>, vector<8x384xf32>
    tpu.vector_store %arg5[%c16_272, %c0_273], %230 {strides = array<i32>} : memref<80x384xf32, #tpu.memory_space<vmem>>, vector<8x384xf32>,
    %c1_i32_274 = arith.constant 1 : i32
    %232 = tpu.dynamic_rotate %225 by %c1_i32_274 dim 1 : vector<8x384xf32>, i32 -> vector<8x384xf32>
    %c24_275 = arith.constant 24 : index
    %c0_276 = arith.constant 0 : index
    %233 = vector.load %arg5[%c24_275, %c0_276] : memref<80x384xf32, #tpu.memory_space<vmem>>, vector<8x384xf32>
    tpu.vector_store %arg5[%c24_275, %c0_276], %232 {strides = array<i32>} : memref<80x384xf32, #tpu.memory_space<vmem>>, vector<8x384xf32>,
    %c32_277 = arith.constant 32 : index
    %c0_278 = arith.constant 0 : index
    %234 = vector.load %arg5[%c32_277, %c0_278] : memref<80x384xf32, #tpu.memory_space<vmem>>, vector<8x384xf32>
    tpu.vector_store %arg5[%c32_277, %c0_278], %225 {strides = array<i32>} : memref<80x384xf32, #tpu.memory_space<vmem>>, vector<8x384xf32>,
    %c383_i32_279 = arith.constant 383 : i32
    %235 = tpu.dynamic_rotate %225 by %c383_i32_279 dim 1 : vector<8x384xf32>, i32 -> vector<8x384xf32>
    %c40_280 = arith.constant 40 : index
    %c0_281 = arith.constant 0 : index
    %236 = vector.load %arg5[%c40_280, %c0_281] : memref<80x384xf32, #tpu.memory_space<vmem>>, vector<8x384xf32>
    tpu.vector_store %arg5[%c40_280, %c0_281], %235 {strides = array<i32>} : memref<80x384xf32, #tpu.memory_space<vmem>>, vector<8x384xf32>,
    %c367_i32_282 = arith.constant 367 : i32
    %237 = tpu.dynamic_rotate %225 by %c367_i32_282 dim 1 : vector<8x384xf32>, i32 -> vector<8x384xf32>
    %c48_283 = arith.constant 48 : index
    %c0_284 = arith.constant 0 : index
    %238 = vector.load %arg5[%c48_283, %c0_284] : memref<80x384xf32, #tpu.memory_space<vmem>>, vector<8x384xf32>
    tpu.vector_store %arg5[%c48_283, %c0_284], %237 {strides = array<i32>} : memref<80x384xf32, #tpu.memory_space<vmem>>, vector<8x384xf32>,
    %c366_i32_285 = arith.constant 366 : i32
    %239 = tpu.dynamic_rotate %225 by %c366_i32_285 dim 1 : vector<8x384xf32>, i32 -> vector<8x384xf32>
    %c56_286 = arith.constant 56 : index
    %c0_287 = arith.constant 0 : index
    %240 = vector.load %arg5[%c56_286, %c0_287] : memref<80x384xf32, #tpu.memory_space<vmem>>, vector<8x384xf32>
    tpu.vector_store %arg5[%c56_286, %c0_287], %239 {strides = array<i32>} : memref<80x384xf32, #tpu.memory_space<vmem>>, vector<8x384xf32>,
    %c365_i32_288 = arith.constant 365 : i32
    %241 = tpu.dynamic_rotate %225 by %c365_i32_288 dim 1 : vector<8x384xf32>, i32 -> vector<8x384xf32>
    %c64_289 = arith.constant 64 : index
    %c0_290 = arith.constant 0 : index
    %242 = vector.load %arg5[%c64_289, %c0_290] : memref<80x384xf32, #tpu.memory_space<vmem>>, vector<8x384xf32>
    tpu.vector_store %arg5[%c64_289, %c0_290], %241 {strides = array<i32>} : memref<80x384xf32, #tpu.memory_space<vmem>>, vector<8x384xf32>,
    %c0_291 = arith.constant 0 : index
    %c0_292 = arith.constant 0 : index
    %243 = vector.load %arg5[%c0_291, %c0_292] : memref<80x384xf32, #tpu.memory_space<vmem>>, vector<80x384xf32>
    %cst_293 = arith.constant dense<0.000000e+00> : vector<8x384xf32>
    %244 = tpu.matmul %0, %243, %cst_293 {dimension_numbers = #tpu.dot_dimension_numbers<[1], [0], [0], [1], [0, 0, 1, 1], [], []>} : vector<8x80xf32>, vector<80x384xf32>, vector<8x384xf32> -> vector<8x384xf32>
    %245 = arith.mulf %244, %1 : vector<8x384xf32>
    %cst_294 = arith.constant 6.250000e-02 : f32
    %246 = vector.broadcast %cst_294 : f32 to vector<8x384xf32>
    %247 = arith.mulf %246, %245 : vector<8x384xf32>
    %248 = arith.addf %202, %247 : vector<8x384xf32>
    %c19_i32_295 = arith.constant 19 : i32
    %249 = tpu.dynamic_rotate %248 by %c19_i32_295 dim 1 : vector<8x384xf32>, i32 -> vector<8x384xf32>
    %c0_296 = arith.constant 0 : index
    %c0_297 = arith.constant 0 : index
    %250 = vector.load %arg5[%c0_296, %c0_297] : memref<80x384xf32, #tpu.memory_space<vmem>>, vector<8x384xf32>
    tpu.vector_store %arg5[%c0_296, %c0_297], %249 {strides = array<i32>} : memref<80x384xf32, #tpu.memory_space<vmem>>, vector<8x384xf32>,
    %c18_i32_298 = arith.constant 18 : i32
    %251 = tpu.dynamic_rotate %248 by %c18_i32_298 dim 1 : vector<8x384xf32>, i32 -> vector<8x384xf32>
    %c8_299 = arith.constant 8 : index
    %c0_300 = arith.constant 0 : index
    %252 = vector.load %arg5[%c8_299, %c0_300] : memref<80x384xf32, #tpu.memory_space<vmem>>, vector<8x384xf32>
    tpu.vector_store %arg5[%c8_299, %c0_300], %251 {strides = array<i32>} : memref<80x384xf32, #tpu.memory_space<vmem>>, vector<8x384xf32>,
    %c17_i32_301 = arith.constant 17 : i32
    %253 = tpu.dynamic_rotate %248 by %c17_i32_301 dim 1 : vector<8x384xf32>, i32 -> vector<8x384xf32>
    %c16_302 = arith.constant 16 : index
    %c0_303 = arith.constant 0 : index
    %254 = vector.load %arg5[%c16_302, %c0_303] : memref<80x384xf32, #tpu.memory_space<vmem>>, vector<8x384xf32>
    tpu.vector_store %arg5[%c16_302, %c0_303], %253 {strides = array<i32>} : memref<80x384xf32, #tpu.memory_space<vmem>>, vector<8x384xf32>,
    %c1_i32_304 = arith.constant 1 : i32
    %255 = tpu.dynamic_rotate %248 by %c1_i32_304 dim 1 : vector<8x384xf32>, i32 -> vector<8x384xf32>
    %c24_305 = arith.constant 24 : index
    %c0_306 = arith.constant 0 : index
    %256 = vector.load %arg5[%c24_305, %c0_306] : memref<80x384xf32, #tpu.memory_space<vmem>>, vector<8x384xf32>
    tpu.vector_store %arg5[%c24_305, %c0_306], %255 {strides = array<i32>} : memref<80x384xf32, #tpu.memory_space<vmem>>, vector<8x384xf32>,
    %c32_307 = arith.constant 32 : index
    %c0_308 = arith.constant 0 : index
    %257 = vector.load %arg5[%c32_307, %c0_308] : memref<80x384xf32, #tpu.memory_space<vmem>>, vector<8x384xf32>
    tpu.vector_store %arg5[%c32_307, %c0_308], %248 {strides = array<i32>} : memref<80x384xf32, #tpu.memory_space<vmem>>, vector<8x384xf32>,
    %c383_i32_309 = arith.constant 383 : i32
    %258 = tpu.dynamic_rotate %248 by %c383_i32_309 dim 1 : vector<8x384xf32>, i32 -> vector<8x384xf32>
    %c40_310 = arith.constant 40 : index
    %c0_311 = arith.constant 0 : index
    %259 = vector.load %arg5[%c40_310, %c0_311] : memref<80x384xf32, #tpu.memory_space<vmem>>, vector<8x384xf32>
    tpu.vector_store %arg5[%c40_310, %c0_311], %258 {strides = array<i32>} : memref<80x384xf32, #tpu.memory_space<vmem>>, vector<8x384xf32>,
    %c367_i32_312 = arith.constant 367 : i32
    %260 = tpu.dynamic_rotate %248 by %c367_i32_312 dim 1 : vector<8x384xf32>, i32 -> vector<8x384xf32>
    %c48_313 = arith.constant 48 : index
    %c0_314 = arith.constant 0 : index
    %261 = vector.load %arg5[%c48_313, %c0_314] : memref<80x384xf32, #tpu.memory_space<vmem>>, vector<8x384xf32>
    tpu.vector_store %arg5[%c48_313, %c0_314], %260 {strides = array<i32>} : memref<80x384xf32, #tpu.memory_space<vmem>>, vector<8x384xf32>,
    %c366_i32_315 = arith.constant 366 : i32
    %262 = tpu.dynamic_rotate %248 by %c366_i32_315 dim 1 : vector<8x384xf32>, i32 -> vector<8x384xf32>
    %c56_316 = arith.constant 56 : index
    %c0_317 = arith.constant 0 : index
    %263 = vector.load %arg5[%c56_316, %c0_317] : memref<80x384xf32, #tpu.memory_space<vmem>>, vector<8x384xf32>
    tpu.vector_store %arg5[%c56_316, %c0_317], %262 {strides = array<i32>} : memref<80x384xf32, #tpu.memory_space<vmem>>, vector<8x384xf32>,
    %c365_i32_318 = arith.constant 365 : i32
    %264 = tpu.dynamic_rotate %248 by %c365_i32_318 dim 1 : vector<8x384xf32>, i32 -> vector<8x384xf32>
    %c64_319 = arith.constant 64 : index
    %c0_320 = arith.constant 0 : index
    %265 = vector.load %arg5[%c64_319, %c0_320] : memref<80x384xf32, #tpu.memory_space<vmem>>, vector<8x384xf32>
    tpu.vector_store %arg5[%c64_319, %c0_320], %264 {strides = array<i32>} : memref<80x384xf32, #tpu.memory_space<vmem>>, vector<8x384xf32>,
    %c0_321 = arith.constant 0 : index
    %c0_322 = arith.constant 0 : index
    %266 = vector.load %arg5[%c0_321, %c0_322] : memref<80x384xf32, #tpu.memory_space<vmem>>, vector<80x384xf32>
    %cst_323 = arith.constant dense<0.000000e+00> : vector<8x384xf32>
    %267 = tpu.matmul %0, %266, %cst_323 {dimension_numbers = #tpu.dot_dimension_numbers<[1], [0], [0], [1], [0, 0, 1, 1], [], []>} : vector<8x80xf32>, vector<80x384xf32>, vector<8x384xf32> -> vector<8x384xf32>
    %268 = arith.mulf %267, %1 : vector<8x384xf32>
    %cst_324 = arith.constant 1.250000e-01 : f32
    %269 = vector.broadcast %cst_324 : f32 to vector<8x384xf32>
    %270 = arith.mulf %269, %268 : vector<8x384xf32>
    %271 = arith.addf %202, %270 : vector<8x384xf32>
    %c19_i32_325 = arith.constant 19 : i32
    %272 = tpu.dynamic_rotate %271 by %c19_i32_325 dim 1 : vector<8x384xf32>, i32 -> vector<8x384xf32>
    %c0_326 = arith.constant 0 : index
    %c0_327 = arith.constant 0 : index
    %273 = vector.load %arg5[%c0_326, %c0_327] : memref<80x384xf32, #tpu.memory_space<vmem>>, vector<8x384xf32>
    tpu.vector_store %arg5[%c0_326, %c0_327], %272 {strides = array<i32>} : memref<80x384xf32, #tpu.memory_space<vmem>>, vector<8x384xf32>,
    %c18_i32_328 = arith.constant 18 : i32
    %274 = tpu.dynamic_rotate %271 by %c18_i32_328 dim 1 : vector<8x384xf32>, i32 -> vector<8x384xf32>
    %c8_329 = arith.constant 8 : index
    %c0_330 = arith.constant 0 : index
    %275 = vector.load %arg5[%c8_329, %c0_330] : memref<80x384xf32, #tpu.memory_space<vmem>>, vector<8x384xf32>
    tpu.vector_store %arg5[%c8_329, %c0_330], %274 {strides = array<i32>} : memref<80x384xf32, #tpu.memory_space<vmem>>, vector<8x384xf32>,
    %c17_i32_331 = arith.constant 17 : i32
    %276 = tpu.dynamic_rotate %271 by %c17_i32_331 dim 1 : vector<8x384xf32>, i32 -> vector<8x384xf32>
    %c16_332 = arith.constant 16 : index
    %c0_333 = arith.constant 0 : index
    %277 = vector.load %arg5[%c16_332, %c0_333] : memref<80x384xf32, #tpu.memory_space<vmem>>, vector<8x384xf32>
    tpu.vector_store %arg5[%c16_332, %c0_333], %276 {strides = array<i32>} : memref<80x384xf32, #tpu.memory_space<vmem>>, vector<8x384xf32>,
    %c1_i32_334 = arith.constant 1 : i32
    %278 = tpu.dynamic_rotate %271 by %c1_i32_334 dim 1 : vector<8x384xf32>, i32 -> vector<8x384xf32>
    %c24_335 = arith.constant 24 : index
    %c0_336 = arith.constant 0 : index
    %279 = vector.load %arg5[%c24_335, %c0_336] : memref<80x384xf32, #tpu.memory_space<vmem>>, vector<8x384xf32>
    tpu.vector_store %arg5[%c24_335, %c0_336], %278 {strides = array<i32>} : memref<80x384xf32, #tpu.memory_space<vmem>>, vector<8x384xf32>,
    %c32_337 = arith.constant 32 : index
    %c0_338 = arith.constant 0 : index
    %280 = vector.load %arg5[%c32_337, %c0_338] : memref<80x384xf32, #tpu.memory_space<vmem>>, vector<8x384xf32>
    tpu.vector_store %arg5[%c32_337, %c0_338], %271 {strides = array<i32>} : memref<80x384xf32, #tpu.memory_space<vmem>>, vector<8x384xf32>,
    %c383_i32_339 = arith.constant 383 : i32
    %281 = tpu.dynamic_rotate %271 by %c383_i32_339 dim 1 : vector<8x384xf32>, i32 -> vector<8x384xf32>
    %c40_340 = arith.constant 40 : index
    %c0_341 = arith.constant 0 : index
    %282 = vector.load %arg5[%c40_340, %c0_341] : memref<80x384xf32, #tpu.memory_space<vmem>>, vector<8x384xf32>
    tpu.vector_store %arg5[%c40_340, %c0_341], %281 {strides = array<i32>} : memref<80x384xf32, #tpu.memory_space<vmem>>, vector<8x384xf32>,
    %c367_i32_342 = arith.constant 367 : i32
    %283 = tpu.dynamic_rotate %271 by %c367_i32_342 dim 1 : vector<8x384xf32>, i32 -> vector<8x384xf32>
    %c48_343 = arith.constant 48 : index
    %c0_344 = arith.constant 0 : index
    %284 = vector.load %arg5[%c48_343, %c0_344] : memref<80x384xf32, #tpu.memory_space<vmem>>, vector<8x384xf32>
    tpu.vector_store %arg5[%c48_343, %c0_344], %283 {strides = array<i32>} : memref<80x384xf32, #tpu.memory_space<vmem>>, vector<8x384xf32>,
    %c366_i32_345 = arith.constant 366 : i32
    %285 = tpu.dynamic_rotate %271 by %c366_i32_345 dim 1 : vector<8x384xf32>, i32 -> vector<8x384xf32>
    %c56_346 = arith.constant 56 : index
    %c0_347 = arith.constant 0 : index
    %286 = vector.load %arg5[%c56_346, %c0_347] : memref<80x384xf32, #tpu.memory_space<vmem>>, vector<8x384xf32>
    tpu.vector_store %arg5[%c56_346, %c0_347], %285 {strides = array<i32>} : memref<80x384xf32, #tpu.memory_space<vmem>>, vector<8x384xf32>,
    %c365_i32_348 = arith.constant 365 : i32
    %287 = tpu.dynamic_rotate %271 by %c365_i32_348 dim 1 : vector<8x384xf32>, i32 -> vector<8x384xf32>
    %c64_349 = arith.constant 64 : index
    %c0_350 = arith.constant 0 : index
    %288 = vector.load %arg5[%c64_349, %c0_350] : memref<80x384xf32, #tpu.memory_space<vmem>>, vector<8x384xf32>
    tpu.vector_store %arg5[%c64_349, %c0_350], %287 {strides = array<i32>} : memref<80x384xf32, #tpu.memory_space<vmem>>, vector<8x384xf32>,
    %c0_351 = arith.constant 0 : index
    %c0_352 = arith.constant 0 : index
    %289 = vector.load %arg5[%c0_351, %c0_352] : memref<80x384xf32, #tpu.memory_space<vmem>>, vector<80x384xf32>
    %cst_353 = arith.constant dense<0.000000e+00> : vector<8x384xf32>
    %290 = tpu.matmul %0, %289, %cst_353 {dimension_numbers = #tpu.dot_dimension_numbers<[1], [0], [0], [1], [0, 0, 1, 1], [], []>} : vector<8x80xf32>, vector<80x384xf32>, vector<8x384xf32> -> vector<8x384xf32>
    %291 = arith.mulf %290, %1 : vector<8x384xf32>
    %cst_354 = arith.constant 2.000000e+00 : f32
    %292 = vector.broadcast %cst_354 : f32 to vector<8x384xf32>
    %293 = arith.mulf %292, %245 : vector<8x384xf32>
    %294 = arith.addf %222, %293 : vector<8x384xf32>
    %cst_355 = arith.constant 2.000000e+00 : f32
    %295 = vector.broadcast %cst_355 : f32 to vector<8x384xf32>
    %296 = arith.mulf %295, %268 : vector<8x384xf32>
    %297 = arith.addf %294, %296 : vector<8x384xf32>
    %298 = arith.addf %297, %291 : vector<8x384xf32>
    %cst_356 = arith.constant 0.020833334 : f32
    %299 = vector.broadcast %cst_356 : f32 to vector<8x384xf32>
    %300 = arith.mulf %299, %298 : vector<8x384xf32>
    %301 = arith.addf %202, %300 : vector<8x384xf32>
    %c3_i32 = arith.constant 3 : i32
    %c19_i32_357 = arith.constant 19 : i32
    %302 = tpu.dynamic_rotate %301 by %c19_i32_357 dim 1 : vector<8x384xf32>, i32 -> vector<8x384xf32>
    %c0_358 = arith.constant 0 : index
    %c0_359 = arith.constant 0 : index
    %303 = vector.load %arg5[%c0_358, %c0_359] : memref<80x384xf32, #tpu.memory_space<vmem>>, vector<8x384xf32>
    tpu.vector_store %arg5[%c0_358, %c0_359], %302 {strides = array<i32>} : memref<80x384xf32, #tpu.memory_space<vmem>>, vector<8x384xf32>,
    %c18_i32_360 = arith.constant 18 : i32
    %304 = tpu.dynamic_rotate %301 by %c18_i32_360 dim 1 : vector<8x384xf32>, i32 -> vector<8x384xf32>
    %c8_361 = arith.constant 8 : index
    %c0_362 = arith.constant 0 : index
    %305 = vector.load %arg5[%c8_361, %c0_362] : memref<80x384xf32, #tpu.memory_space<vmem>>, vector<8x384xf32>
    tpu.vector_store %arg5[%c8_361, %c0_362], %304 {strides = array<i32>} : memref<80x384xf32, #tpu.memory_space<vmem>>, vector<8x384xf32>,
    %c17_i32_363 = arith.constant 17 : i32
    %306 = tpu.dynamic_rotate %301 by %c17_i32_363 dim 1 : vector<8x384xf32>, i32 -> vector<8x384xf32>
    %c16_364 = arith.constant 16 : index
    %c0_365 = arith.constant 0 : index
    %307 = vector.load %arg5[%c16_364, %c0_365] : memref<80x384xf32, #tpu.memory_space<vmem>>, vector<8x384xf32>
    tpu.vector_store %arg5[%c16_364, %c0_365], %306 {strides = array<i32>} : memref<80x384xf32, #tpu.memory_space<vmem>>, vector<8x384xf32>,
    %c1_i32_366 = arith.constant 1 : i32
    %308 = tpu.dynamic_rotate %301 by %c1_i32_366 dim 1 : vector<8x384xf32>, i32 -> vector<8x384xf32>
    %c24_367 = arith.constant 24 : index
    %c0_368 = arith.constant 0 : index
    %309 = vector.load %arg5[%c24_367, %c0_368] : memref<80x384xf32, #tpu.memory_space<vmem>>, vector<8x384xf32>
    tpu.vector_store %arg5[%c24_367, %c0_368], %308 {strides = array<i32>} : memref<80x384xf32, #tpu.memory_space<vmem>>, vector<8x384xf32>,
    %c32_369 = arith.constant 32 : index
    %c0_370 = arith.constant 0 : index
    %310 = vector.load %arg5[%c32_369, %c0_370] : memref<80x384xf32, #tpu.memory_space<vmem>>, vector<8x384xf32>
    tpu.vector_store %arg5[%c32_369, %c0_370], %301 {strides = array<i32>} : memref<80x384xf32, #tpu.memory_space<vmem>>, vector<8x384xf32>,
    %c383_i32_371 = arith.constant 383 : i32
    %311 = tpu.dynamic_rotate %301 by %c383_i32_371 dim 1 : vector<8x384xf32>, i32 -> vector<8x384xf32>
    %c40_372 = arith.constant 40 : index
    %c0_373 = arith.constant 0 : index
    %312 = vector.load %arg5[%c40_372, %c0_373] : memref<80x384xf32, #tpu.memory_space<vmem>>, vector<8x384xf32>
    tpu.vector_store %arg5[%c40_372, %c0_373], %311 {strides = array<i32>} : memref<80x384xf32, #tpu.memory_space<vmem>>, vector<8x384xf32>,
    %c367_i32_374 = arith.constant 367 : i32
    %313 = tpu.dynamic_rotate %301 by %c367_i32_374 dim 1 : vector<8x384xf32>, i32 -> vector<8x384xf32>
    %c48_375 = arith.constant 48 : index
    %c0_376 = arith.constant 0 : index
    %314 = vector.load %arg5[%c48_375, %c0_376] : memref<80x384xf32, #tpu.memory_space<vmem>>, vector<8x384xf32>
    tpu.vector_store %arg5[%c48_375, %c0_376], %313 {strides = array<i32>} : memref<80x384xf32, #tpu.memory_space<vmem>>, vector<8x384xf32>,
    %c366_i32_377 = arith.constant 366 : i32
    %315 = tpu.dynamic_rotate %301 by %c366_i32_377 dim 1 : vector<8x384xf32>, i32 -> vector<8x384xf32>
    %c56_378 = arith.constant 56 : index
    %c0_379 = arith.constant 0 : index
    %316 = vector.load %arg5[%c56_378, %c0_379] : memref<80x384xf32, #tpu.memory_space<vmem>>, vector<8x384xf32>
    tpu.vector_store %arg5[%c56_378, %c0_379], %315 {strides = array<i32>} : memref<80x384xf32, #tpu.memory_space<vmem>>, vector<8x384xf32>,
    %c365_i32_380 = arith.constant 365 : i32
    %317 = tpu.dynamic_rotate %301 by %c365_i32_380 dim 1 : vector<8x384xf32>, i32 -> vector<8x384xf32>
    %c64_381 = arith.constant 64 : index
    %c0_382 = arith.constant 0 : index
    %318 = vector.load %arg5[%c64_381, %c0_382] : memref<80x384xf32, #tpu.memory_space<vmem>>, vector<8x384xf32>
    tpu.vector_store %arg5[%c64_381, %c0_382], %317 {strides = array<i32>} : memref<80x384xf32, #tpu.memory_space<vmem>>, vector<8x384xf32>,
    %c0_383 = arith.constant 0 : index
    %c0_384 = arith.constant 0 : index
    %319 = vector.load %arg5[%c0_383, %c0_384] : memref<80x384xf32, #tpu.memory_space<vmem>>, vector<80x384xf32>
    %cst_385 = arith.constant dense<0.000000e+00> : vector<8x384xf32>
    %320 = tpu.matmul %0, %319, %cst_385 {dimension_numbers = #tpu.dot_dimension_numbers<[1], [0], [0], [1], [0, 0, 1, 1], [], []>} : vector<8x80xf32>, vector<80x384xf32>, vector<8x384xf32> -> vector<8x384xf32>
    %321 = arith.mulf %320, %1 : vector<8x384xf32>
    %cst_386 = arith.constant 6.250000e-02 : f32
    %322 = vector.broadcast %cst_386 : f32 to vector<8x384xf32>
    %323 = arith.mulf %322, %321 : vector<8x384xf32>
    %324 = arith.addf %301, %323 : vector<8x384xf32>
    %c19_i32_387 = arith.constant 19 : i32
    %325 = tpu.dynamic_rotate %324 by %c19_i32_387 dim 1 : vector<8x384xf32>, i32 -> vector<8x384xf32>
    %c0_388 = arith.constant 0 : index
    %c0_389 = arith.constant 0 : index
    %326 = vector.load %arg5[%c0_388, %c0_389] : memref<80x384xf32, #tpu.memory_space<vmem>>, vector<8x384xf32>
    tpu.vector_store %arg5[%c0_388, %c0_389], %325 {strides = array<i32>} : memref<80x384xf32, #tpu.memory_space<vmem>>, vector<8x384xf32>,
    %c18_i32_390 = arith.constant 18 : i32
    %327 = tpu.dynamic_rotate %324 by %c18_i32_390 dim 1 : vector<8x384xf32>, i32 -> vector<8x384xf32>
    %c8_391 = arith.constant 8 : index
    %c0_392 = arith.constant 0 : index
    %328 = vector.load %arg5[%c8_391, %c0_392] : memref<80x384xf32, #tpu.memory_space<vmem>>, vector<8x384xf32>
    tpu.vector_store %arg5[%c8_391, %c0_392], %327 {strides = array<i32>} : memref<80x384xf32, #tpu.memory_space<vmem>>, vector<8x384xf32>,
    %c17_i32_393 = arith.constant 17 : i32
    %329 = tpu.dynamic_rotate %324 by %c17_i32_393 dim 1 : vector<8x384xf32>, i32 -> vector<8x384xf32>
    %c16_394 = arith.constant 16 : index
    %c0_395 = arith.constant 0 : index
    %330 = vector.load %arg5[%c16_394, %c0_395] : memref<80x384xf32, #tpu.memory_space<vmem>>, vector<8x384xf32>
    tpu.vector_store %arg5[%c16_394, %c0_395], %329 {strides = array<i32>} : memref<80x384xf32, #tpu.memory_space<vmem>>, vector<8x384xf32>,
    %c1_i32_396 = arith.constant 1 : i32
    %331 = tpu.dynamic_rotate %324 by %c1_i32_396 dim 1 : vector<8x384xf32>, i32 -> vector<8x384xf32>
    %c24_397 = arith.constant 24 : index
    %c0_398 = arith.constant 0 : index
    %332 = vector.load %arg5[%c24_397, %c0_398] : memref<80x384xf32, #tpu.memory_space<vmem>>, vector<8x384xf32>
    tpu.vector_store %arg5[%c24_397, %c0_398], %331 {strides = array<i32>} : memref<80x384xf32, #tpu.memory_space<vmem>>, vector<8x384xf32>,
    %c32_399 = arith.constant 32 : index
    %c0_400 = arith.constant 0 : index
    %333 = vector.load %arg5[%c32_399, %c0_400] : memref<80x384xf32, #tpu.memory_space<vmem>>, vector<8x384xf32>
    tpu.vector_store %arg5[%c32_399, %c0_400], %324 {strides = array<i32>} : memref<80x384xf32, #tpu.memory_space<vmem>>, vector<8x384xf32>,
    %c383_i32_401 = arith.constant 383 : i32
    %334 = tpu.dynamic_rotate %324 by %c383_i32_401 dim 1 : vector<8x384xf32>, i32 -> vector<8x384xf32>
    %c40_402 = arith.constant 40 : index
    %c0_403 = arith.constant 0 : index
    %335 = vector.load %arg5[%c40_402, %c0_403] : memref<80x384xf32, #tpu.memory_space<vmem>>, vector<8x384xf32>
    tpu.vector_store %arg5[%c40_402, %c0_403], %334 {strides = array<i32>} : memref<80x384xf32, #tpu.memory_space<vmem>>, vector<8x384xf32>,
    %c367_i32_404 = arith.constant 367 : i32
    %336 = tpu.dynamic_rotate %324 by %c367_i32_404 dim 1 : vector<8x384xf32>, i32 -> vector<8x384xf32>
    %c48_405 = arith.constant 48 : index
    %c0_406 = arith.constant 0 : index
    %337 = vector.load %arg5[%c48_405, %c0_406] : memref<80x384xf32, #tpu.memory_space<vmem>>, vector<8x384xf32>
    tpu.vector_store %arg5[%c48_405, %c0_406], %336 {strides = array<i32>} : memref<80x384xf32, #tpu.memory_space<vmem>>, vector<8x384xf32>,
    %c366_i32_407 = arith.constant 366 : i32
    %338 = tpu.dynamic_rotate %324 by %c366_i32_407 dim 1 : vector<8x384xf32>, i32 -> vector<8x384xf32>
    %c56_408 = arith.constant 56 : index
    %c0_409 = arith.constant 0 : index
    %339 = vector.load %arg5[%c56_408, %c0_409] : memref<80x384xf32, #tpu.memory_space<vmem>>, vector<8x384xf32>
    tpu.vector_store %arg5[%c56_408, %c0_409], %338 {strides = array<i32>} : memref<80x384xf32, #tpu.memory_space<vmem>>, vector<8x384xf32>,
    %c365_i32_410 = arith.constant 365 : i32
    %340 = tpu.dynamic_rotate %324 by %c365_i32_410 dim 1 : vector<8x384xf32>, i32 -> vector<8x384xf32>
    %c64_411 = arith.constant 64 : index
    %c0_412 = arith.constant 0 : index
    %341 = vector.load %arg5[%c64_411, %c0_412] : memref<80x384xf32, #tpu.memory_space<vmem>>, vector<8x384xf32>
    tpu.vector_store %arg5[%c64_411, %c0_412], %340 {strides = array<i32>} : memref<80x384xf32, #tpu.memory_space<vmem>>, vector<8x384xf32>,
    %c0_413 = arith.constant 0 : index
    %c0_414 = arith.constant 0 : index
    %342 = vector.load %arg5[%c0_413, %c0_414] : memref<80x384xf32, #tpu.memory_space<vmem>>, vector<80x384xf32>
    %cst_415 = arith.constant dense<0.000000e+00> : vector<8x384xf32>
    %343 = tpu.matmul %0, %342, %cst_415 {dimension_numbers = #tpu.dot_dimension_numbers<[1], [0], [0], [1], [0, 0, 1, 1], [], []>} : vector<8x80xf32>, vector<80x384xf32>, vector<8x384xf32> -> vector<8x384xf32>
    %344 = arith.mulf %343, %1 : vector<8x384xf32>
    %cst_416 = arith.constant 6.250000e-02 : f32
    %345 = vector.broadcast %cst_416 : f32 to vector<8x384xf32>
    %346 = arith.mulf %345, %344 : vector<8x384xf32>
    %347 = arith.addf %301, %346 : vector<8x384xf32>
    %c19_i32_417 = arith.constant 19 : i32
    %348 = tpu.dynamic_rotate %347 by %c19_i32_417 dim 1 : vector<8x384xf32>, i32 -> vector<8x384xf32>
    %c0_418 = arith.constant 0 : index
    %c0_419 = arith.constant 0 : index
    %349 = vector.load %arg5[%c0_418, %c0_419] : memref<80x384xf32, #tpu.memory_space<vmem>>, vector<8x384xf32>
    tpu.vector_store %arg5[%c0_418, %c0_419], %348 {strides = array<i32>} : memref<80x384xf32, #tpu.memory_space<vmem>>, vector<8x384xf32>,
    %c18_i32_420 = arith.constant 18 : i32
    %350 = tpu.dynamic_rotate %347 by %c18_i32_420 dim 1 : vector<8x384xf32>, i32 -> vector<8x384xf32>
    %c8_421 = arith.constant 8 : index
    %c0_422 = arith.constant 0 : index
    %351 = vector.load %arg5[%c8_421, %c0_422] : memref<80x384xf32, #tpu.memory_space<vmem>>, vector<8x384xf32>
    tpu.vector_store %arg5[%c8_421, %c0_422], %350 {strides = array<i32>} : memref<80x384xf32, #tpu.memory_space<vmem>>, vector<8x384xf32>,
    %c17_i32_423 = arith.constant 17 : i32
    %352 = tpu.dynamic_rotate %347 by %c17_i32_423 dim 1 : vector<8x384xf32>, i32 -> vector<8x384xf32>
    %c16_424 = arith.constant 16 : index
    %c0_425 = arith.constant 0 : index
    %353 = vector.load %arg5[%c16_424, %c0_425] : memref<80x384xf32, #tpu.memory_space<vmem>>, vector<8x384xf32>
    tpu.vector_store %arg5[%c16_424, %c0_425], %352 {strides = array<i32>} : memref<80x384xf32, #tpu.memory_space<vmem>>, vector<8x384xf32>,
    %c1_i32_426 = arith.constant 1 : i32
    %354 = tpu.dynamic_rotate %347 by %c1_i32_426 dim 1 : vector<8x384xf32>, i32 -> vector<8x384xf32>
    %c24_427 = arith.constant 24 : index
    %c0_428 = arith.constant 0 : index
    %355 = vector.load %arg5[%c24_427, %c0_428] : memref<80x384xf32, #tpu.memory_space<vmem>>, vector<8x384xf32>
    tpu.vector_store %arg5[%c24_427, %c0_428], %354 {strides = array<i32>} : memref<80x384xf32, #tpu.memory_space<vmem>>, vector<8x384xf32>,
    %c32_429 = arith.constant 32 : index
    %c0_430 = arith.constant 0 : index
    %356 = vector.load %arg5[%c32_429, %c0_430] : memref<80x384xf32, #tpu.memory_space<vmem>>, vector<8x384xf32>
    tpu.vector_store %arg5[%c32_429, %c0_430], %347 {strides = array<i32>} : memref<80x384xf32, #tpu.memory_space<vmem>>, vector<8x384xf32>,
    %c383_i32_431 = arith.constant 383 : i32
    %357 = tpu.dynamic_rotate %347 by %c383_i32_431 dim 1 : vector<8x384xf32>, i32 -> vector<8x384xf32>
    %c40_432 = arith.constant 40 : index
    %c0_433 = arith.constant 0 : index
    %358 = vector.load %arg5[%c40_432, %c0_433] : memref<80x384xf32, #tpu.memory_space<vmem>>, vector<8x384xf32>
    tpu.vector_store %arg5[%c40_432, %c0_433], %357 {strides = array<i32>} : memref<80x384xf32, #tpu.memory_space<vmem>>, vector<8x384xf32>,
    %c367_i32_434 = arith.constant 367 : i32
    %359 = tpu.dynamic_rotate %347 by %c367_i32_434 dim 1 : vector<8x384xf32>, i32 -> vector<8x384xf32>
    %c48_435 = arith.constant 48 : index
    %c0_436 = arith.constant 0 : index
    %360 = vector.load %arg5[%c48_435, %c0_436] : memref<80x384xf32, #tpu.memory_space<vmem>>, vector<8x384xf32>
    tpu.vector_store %arg5[%c48_435, %c0_436], %359 {strides = array<i32>} : memref<80x384xf32, #tpu.memory_space<vmem>>, vector<8x384xf32>,
    %c366_i32_437 = arith.constant 366 : i32
    %361 = tpu.dynamic_rotate %347 by %c366_i32_437 dim 1 : vector<8x384xf32>, i32 -> vector<8x384xf32>
    %c56_438 = arith.constant 56 : index
    %c0_439 = arith.constant 0 : index
    %362 = vector.load %arg5[%c56_438, %c0_439] : memref<80x384xf32, #tpu.memory_space<vmem>>, vector<8x384xf32>
    tpu.vector_store %arg5[%c56_438, %c0_439], %361 {strides = array<i32>} : memref<80x384xf32, #tpu.memory_space<vmem>>, vector<8x384xf32>,
    %c365_i32_440 = arith.constant 365 : i32
    %363 = tpu.dynamic_rotate %347 by %c365_i32_440 dim 1 : vector<8x384xf32>, i32 -> vector<8x384xf32>
    %c64_441 = arith.constant 64 : index
    %c0_442 = arith.constant 0 : index
    %364 = vector.load %arg5[%c64_441, %c0_442] : memref<80x384xf32, #tpu.memory_space<vmem>>, vector<8x384xf32>
    tpu.vector_store %arg5[%c64_441, %c0_442], %363 {strides = array<i32>} : memref<80x384xf32, #tpu.memory_space<vmem>>, vector<8x384xf32>,
    %c0_443 = arith.constant 0 : index
    %c0_444 = arith.constant 0 : index
    %365 = vector.load %arg5[%c0_443, %c0_444] : memref<80x384xf32, #tpu.memory_space<vmem>>, vector<80x384xf32>
    %cst_445 = arith.constant dense<0.000000e+00> : vector<8x384xf32>
    %366 = tpu.matmul %0, %365, %cst_445 {dimension_numbers = #tpu.dot_dimension_numbers<[1], [0], [0], [1], [0, 0, 1, 1], [], []>} : vector<8x80xf32>, vector<80x384xf32>, vector<8x384xf32> -> vector<8x384xf32>
    %367 = arith.mulf %366, %1 : vector<8x384xf32>
    %cst_446 = arith.constant 1.250000e-01 : f32
    %368 = vector.broadcast %cst_446 : f32 to vector<8x384xf32>
    %369 = arith.mulf %368, %367 : vector<8x384xf32>
    %370 = arith.addf %301, %369 : vector<8x384xf32>
    %c19_i32_447 = arith.constant 19 : i32
    %371 = tpu.dynamic_rotate %370 by %c19_i32_447 dim 1 : vector<8x384xf32>, i32 -> vector<8x384xf32>
    %c0_448 = arith.constant 0 : index
    %c0_449 = arith.constant 0 : index
    %372 = vector.load %arg5[%c0_448, %c0_449] : memref<80x384xf32, #tpu.memory_space<vmem>>, vector<8x384xf32>
    tpu.vector_store %arg5[%c0_448, %c0_449], %371 {strides = array<i32>} : memref<80x384xf32, #tpu.memory_space<vmem>>, vector<8x384xf32>,
    %c18_i32_450 = arith.constant 18 : i32
    %373 = tpu.dynamic_rotate %370 by %c18_i32_450 dim 1 : vector<8x384xf32>, i32 -> vector<8x384xf32>
    %c8_451 = arith.constant 8 : index
    %c0_452 = arith.constant 0 : index
    %374 = vector.load %arg5[%c8_451, %c0_452] : memref<80x384xf32, #tpu.memory_space<vmem>>, vector<8x384xf32>
    tpu.vector_store %arg5[%c8_451, %c0_452], %373 {strides = array<i32>} : memref<80x384xf32, #tpu.memory_space<vmem>>, vector<8x384xf32>,
    %c17_i32_453 = arith.constant 17 : i32
    %375 = tpu.dynamic_rotate %370 by %c17_i32_453 dim 1 : vector<8x384xf32>, i32 -> vector<8x384xf32>
    %c16_454 = arith.constant 16 : index
    %c0_455 = arith.constant 0 : index
    %376 = vector.load %arg5[%c16_454, %c0_455] : memref<80x384xf32, #tpu.memory_space<vmem>>, vector<8x384xf32>
    tpu.vector_store %arg5[%c16_454, %c0_455], %375 {strides = array<i32>} : memref<80x384xf32, #tpu.memory_space<vmem>>, vector<8x384xf32>,
    %c1_i32_456 = arith.constant 1 : i32
    %377 = tpu.dynamic_rotate %370 by %c1_i32_456 dim 1 : vector<8x384xf32>, i32 -> vector<8x384xf32>
    %c24_457 = arith.constant 24 : index
    %c0_458 = arith.constant 0 : index
    %378 = vector.load %arg5[%c24_457, %c0_458] : memref<80x384xf32, #tpu.memory_space<vmem>>, vector<8x384xf32>
    tpu.vector_store %arg5[%c24_457, %c0_458], %377 {strides = array<i32>} : memref<80x384xf32, #tpu.memory_space<vmem>>, vector<8x384xf32>,
    %c32_459 = arith.constant 32 : index
    %c0_460 = arith.constant 0 : index
    %379 = vector.load %arg5[%c32_459, %c0_460] : memref<80x384xf32, #tpu.memory_space<vmem>>, vector<8x384xf32>
    tpu.vector_store %arg5[%c32_459, %c0_460], %370 {strides = array<i32>} : memref<80x384xf32, #tpu.memory_space<vmem>>, vector<8x384xf32>,
    %c383_i32_461 = arith.constant 383 : i32
    %380 = tpu.dynamic_rotate %370 by %c383_i32_461 dim 1 : vector<8x384xf32>, i32 -> vector<8x384xf32>
    %c40_462 = arith.constant 40 : index
    %c0_463 = arith.constant 0 : index
    %381 = vector.load %arg5[%c40_462, %c0_463] : memref<80x384xf32, #tpu.memory_space<vmem>>, vector<8x384xf32>
    tpu.vector_store %arg5[%c40_462, %c0_463], %380 {strides = array<i32>} : memref<80x384xf32, #tpu.memory_space<vmem>>, vector<8x384xf32>,
    %c367_i32_464 = arith.constant 367 : i32
    %382 = tpu.dynamic_rotate %370 by %c367_i32_464 dim 1 : vector<8x384xf32>, i32 -> vector<8x384xf32>
    %c48_465 = arith.constant 48 : index
    %c0_466 = arith.constant 0 : index
    %383 = vector.load %arg5[%c48_465, %c0_466] : memref<80x384xf32, #tpu.memory_space<vmem>>, vector<8x384xf32>
    tpu.vector_store %arg5[%c48_465, %c0_466], %382 {strides = array<i32>} : memref<80x384xf32, #tpu.memory_space<vmem>>, vector<8x384xf32>,
    %c366_i32_467 = arith.constant 366 : i32
    %384 = tpu.dynamic_rotate %370 by %c366_i32_467 dim 1 : vector<8x384xf32>, i32 -> vector<8x384xf32>
    %c56_468 = arith.constant 56 : index
    %c0_469 = arith.constant 0 : index
    %385 = vector.load %arg5[%c56_468, %c0_469] : memref<80x384xf32, #tpu.memory_space<vmem>>, vector<8x384xf32>
    tpu.vector_store %arg5[%c56_468, %c0_469], %384 {strides = array<i32>} : memref<80x384xf32, #tpu.memory_space<vmem>>, vector<8x384xf32>,
    %c365_i32_470 = arith.constant 365 : i32
    %386 = tpu.dynamic_rotate %370 by %c365_i32_470 dim 1 : vector<8x384xf32>, i32 -> vector<8x384xf32>
    %c64_471 = arith.constant 64 : index
    %c0_472 = arith.constant 0 : index
    %387 = vector.load %arg5[%c64_471, %c0_472] : memref<80x384xf32, #tpu.memory_space<vmem>>, vector<8x384xf32>
    tpu.vector_store %arg5[%c64_471, %c0_472], %386 {strides = array<i32>} : memref<80x384xf32, #tpu.memory_space<vmem>>, vector<8x384xf32>,
    %c0_473 = arith.constant 0 : index
    %c0_474 = arith.constant 0 : index
    %388 = vector.load %arg5[%c0_473, %c0_474] : memref<80x384xf32, #tpu.memory_space<vmem>>, vector<80x384xf32>
    %cst_475 = arith.constant dense<0.000000e+00> : vector<8x384xf32>
    %389 = tpu.matmul %0, %388, %cst_475 {dimension_numbers = #tpu.dot_dimension_numbers<[1], [0], [0], [1], [0, 0, 1, 1], [], []>} : vector<8x80xf32>, vector<80x384xf32>, vector<8x384xf32> -> vector<8x384xf32>
    %390 = arith.mulf %389, %1 : vector<8x384xf32>
    %cst_476 = arith.constant 2.000000e+00 : f32
    %391 = vector.broadcast %cst_476 : f32 to vector<8x384xf32>
    %392 = arith.mulf %391, %344 : vector<8x384xf32>
    %393 = arith.addf %321, %392 : vector<8x384xf32>
    %cst_477 = arith.constant 2.000000e+00 : f32
    %394 = vector.broadcast %cst_477 : f32 to vector<8x384xf32>
    %395 = arith.mulf %394, %367 : vector<8x384xf32>
    %396 = arith.addf %393, %395 : vector<8x384xf32>
    %397 = arith.addf %396, %390 : vector<8x384xf32>
    %cst_478 = arith.constant 0.020833334 : f32
    %398 = vector.broadcast %cst_478 : f32 to vector<8x384xf32>
    %399 = arith.mulf %398, %397 : vector<8x384xf32>
    %400 = arith.addf %301, %399 : vector<8x384xf32>
    %c4_i32 = arith.constant 4 : i32
    %c19_i32_479 = arith.constant 19 : i32
    %401 = tpu.dynamic_rotate %400 by %c19_i32_479 dim 1 : vector<8x384xf32>, i32 -> vector<8x384xf32>
    %c0_480 = arith.constant 0 : index
    %c0_481 = arith.constant 0 : index
    %402 = vector.load %arg5[%c0_480, %c0_481] : memref<80x384xf32, #tpu.memory_space<vmem>>, vector<8x384xf32>
    tpu.vector_store %arg5[%c0_480, %c0_481], %401 {strides = array<i32>} : memref<80x384xf32, #tpu.memory_space<vmem>>, vector<8x384xf32>,
    %c18_i32_482 = arith.constant 18 : i32
    %403 = tpu.dynamic_rotate %400 by %c18_i32_482 dim 1 : vector<8x384xf32>, i32 -> vector<8x384xf32>
    %c8_483 = arith.constant 8 : index
    %c0_484 = arith.constant 0 : index
    %404 = vector.load %arg5[%c8_483, %c0_484] : memref<80x384xf32, #tpu.memory_space<vmem>>, vector<8x384xf32>
    tpu.vector_store %arg5[%c8_483, %c0_484], %403 {strides = array<i32>} : memref<80x384xf32, #tpu.memory_space<vmem>>, vector<8x384xf32>,
    %c17_i32_485 = arith.constant 17 : i32
    %405 = tpu.dynamic_rotate %400 by %c17_i32_485 dim 1 : vector<8x384xf32>, i32 -> vector<8x384xf32>
    %c16_486 = arith.constant 16 : index
    %c0_487 = arith.constant 0 : index
    %406 = vector.load %arg5[%c16_486, %c0_487] : memref<80x384xf32, #tpu.memory_space<vmem>>, vector<8x384xf32>
    tpu.vector_store %arg5[%c16_486, %c0_487], %405 {strides = array<i32>} : memref<80x384xf32, #tpu.memory_space<vmem>>, vector<8x384xf32>,
    %c1_i32_488 = arith.constant 1 : i32
    %407 = tpu.dynamic_rotate %400 by %c1_i32_488 dim 1 : vector<8x384xf32>, i32 -> vector<8x384xf32>
    %c24_489 = arith.constant 24 : index
    %c0_490 = arith.constant 0 : index
    %408 = vector.load %arg5[%c24_489, %c0_490] : memref<80x384xf32, #tpu.memory_space<vmem>>, vector<8x384xf32>
    tpu.vector_store %arg5[%c24_489, %c0_490], %407 {strides = array<i32>} : memref<80x384xf32, #tpu.memory_space<vmem>>, vector<8x384xf32>,
    %c32_491 = arith.constant 32 : index
    %c0_492 = arith.constant 0 : index
    %409 = vector.load %arg5[%c32_491, %c0_492] : memref<80x384xf32, #tpu.memory_space<vmem>>, vector<8x384xf32>
    tpu.vector_store %arg5[%c32_491, %c0_492], %400 {strides = array<i32>} : memref<80x384xf32, #tpu.memory_space<vmem>>, vector<8x384xf32>,
    %c383_i32_493 = arith.constant 383 : i32
    %410 = tpu.dynamic_rotate %400 by %c383_i32_493 dim 1 : vector<8x384xf32>, i32 -> vector<8x384xf32>
    %c40_494 = arith.constant 40 : index
    %c0_495 = arith.constant 0 : index
    %411 = vector.load %arg5[%c40_494, %c0_495] : memref<80x384xf32, #tpu.memory_space<vmem>>, vector<8x384xf32>
    tpu.vector_store %arg5[%c40_494, %c0_495], %410 {strides = array<i32>} : memref<80x384xf32, #tpu.memory_space<vmem>>, vector<8x384xf32>,
    %c367_i32_496 = arith.constant 367 : i32
    %412 = tpu.dynamic_rotate %400 by %c367_i32_496 dim 1 : vector<8x384xf32>, i32 -> vector<8x384xf32>
    %c48_497 = arith.constant 48 : index
    %c0_498 = arith.constant 0 : index
    %413 = vector.load %arg5[%c48_497, %c0_498] : memref<80x384xf32, #tpu.memory_space<vmem>>, vector<8x384xf32>
    tpu.vector_store %arg5[%c48_497, %c0_498], %412 {strides = array<i32>} : memref<80x384xf32, #tpu.memory_space<vmem>>, vector<8x384xf32>,
    %c366_i32_499 = arith.constant 366 : i32
    %414 = tpu.dynamic_rotate %400 by %c366_i32_499 dim 1 : vector<8x384xf32>, i32 -> vector<8x384xf32>
    %c56_500 = arith.constant 56 : index
    %c0_501 = arith.constant 0 : index
    %415 = vector.load %arg5[%c56_500, %c0_501] : memref<80x384xf32, #tpu.memory_space<vmem>>, vector<8x384xf32>
    tpu.vector_store %arg5[%c56_500, %c0_501], %414 {strides = array<i32>} : memref<80x384xf32, #tpu.memory_space<vmem>>, vector<8x384xf32>,
    %c365_i32_502 = arith.constant 365 : i32
    %416 = tpu.dynamic_rotate %400 by %c365_i32_502 dim 1 : vector<8x384xf32>, i32 -> vector<8x384xf32>
    %c64_503 = arith.constant 64 : index
    %c0_504 = arith.constant 0 : index
    %417 = vector.load %arg5[%c64_503, %c0_504] : memref<80x384xf32, #tpu.memory_space<vmem>>, vector<8x384xf32>
    tpu.vector_store %arg5[%c64_503, %c0_504], %416 {strides = array<i32>} : memref<80x384xf32, #tpu.memory_space<vmem>>, vector<8x384xf32>,
    %c0_505 = arith.constant 0 : index
    %c0_506 = arith.constant 0 : index
    %418 = vector.load %arg5[%c0_505, %c0_506] : memref<80x384xf32, #tpu.memory_space<vmem>>, vector<80x384xf32>
    %cst_507 = arith.constant dense<0.000000e+00> : vector<8x384xf32>
    %419 = tpu.matmul %0, %418, %cst_507 {dimension_numbers = #tpu.dot_dimension_numbers<[1], [0], [0], [1], [0, 0, 1, 1], [], []>} : vector<8x80xf32>, vector<80x384xf32>, vector<8x384xf32> -> vector<8x384xf32>
    %420 = arith.mulf %419, %1 : vector<8x384xf32>
    %cst_508 = arith.constant 6.250000e-02 : f32
    %421 = vector.broadcast %cst_508 : f32 to vector<8x384xf32>
    %422 = arith.mulf %421, %420 : vector<8x384xf32>
    %423 = arith.addf %400, %422 : vector<8x384xf32>
    %c19_i32_509 = arith.constant 19 : i32
    %424 = tpu.dynamic_rotate %423 by %c19_i32_509 dim 1 : vector<8x384xf32>, i32 -> vector<8x384xf32>
    %c0_510 = arith.constant 0 : index
    %c0_511 = arith.constant 0 : index
    %425 = vector.load %arg5[%c0_510, %c0_511] : memref<80x384xf32, #tpu.memory_space<vmem>>, vector<8x384xf32>
    tpu.vector_store %arg5[%c0_510, %c0_511], %424 {strides = array<i32>} : memref<80x384xf32, #tpu.memory_space<vmem>>, vector<8x384xf32>,
    %c18_i32_512 = arith.constant 18 : i32
    %426 = tpu.dynamic_rotate %423 by %c18_i32_512 dim 1 : vector<8x384xf32>, i32 -> vector<8x384xf32>
    %c8_513 = arith.constant 8 : index
    %c0_514 = arith.constant 0 : index
    %427 = vector.load %arg5[%c8_513, %c0_514] : memref<80x384xf32, #tpu.memory_space<vmem>>, vector<8x384xf32>
    tpu.vector_store %arg5[%c8_513, %c0_514], %426 {strides = array<i32>} : memref<80x384xf32, #tpu.memory_space<vmem>>, vector<8x384xf32>,
    %c17_i32_515 = arith.constant 17 : i32
    %428 = tpu.dynamic_rotate %423 by %c17_i32_515 dim 1 : vector<8x384xf32>, i32 -> vector<8x384xf32>
    %c16_516 = arith.constant 16 : index
    %c0_517 = arith.constant 0 : index
    %429 = vector.load %arg5[%c16_516, %c0_517] : memref<80x384xf32, #tpu.memory_space<vmem>>, vector<8x384xf32>
    tpu.vector_store %arg5[%c16_516, %c0_517], %428 {strides = array<i32>} : memref<80x384xf32, #tpu.memory_space<vmem>>, vector<8x384xf32>,
    %c1_i32_518 = arith.constant 1 : i32
    %430 = tpu.dynamic_rotate %423 by %c1_i32_518 dim 1 : vector<8x384xf32>, i32 -> vector<8x384xf32>
    %c24_519 = arith.constant 24 : index
    %c0_520 = arith.constant 0 : index
    %431 = vector.load %arg5[%c24_519, %c0_520] : memref<80x384xf32, #tpu.memory_space<vmem>>, vector<8x384xf32>
    tpu.vector_store %arg5[%c24_519, %c0_520], %430 {strides = array<i32>} : memref<80x384xf32, #tpu.memory_space<vmem>>, vector<8x384xf32>,
    %c32_521 = arith.constant 32 : index
    %c0_522 = arith.constant 0 : index
    %432 = vector.load %arg5[%c32_521, %c0_522] : memref<80x384xf32, #tpu.memory_space<vmem>>, vector<8x384xf32>
    tpu.vector_store %arg5[%c32_521, %c0_522], %423 {strides = array<i32>} : memref<80x384xf32, #tpu.memory_space<vmem>>, vector<8x384xf32>,
    %c383_i32_523 = arith.constant 383 : i32
    %433 = tpu.dynamic_rotate %423 by %c383_i32_523 dim 1 : vector<8x384xf32>, i32 -> vector<8x384xf32>
    %c40_524 = arith.constant 40 : index
    %c0_525 = arith.constant 0 : index
    %434 = vector.load %arg5[%c40_524, %c0_525] : memref<80x384xf32, #tpu.memory_space<vmem>>, vector<8x384xf32>
    tpu.vector_store %arg5[%c40_524, %c0_525], %433 {strides = array<i32>} : memref<80x384xf32, #tpu.memory_space<vmem>>, vector<8x384xf32>,
    %c367_i32_526 = arith.constant 367 : i32
    %435 = tpu.dynamic_rotate %423 by %c367_i32_526 dim 1 : vector<8x384xf32>, i32 -> vector<8x384xf32>
    %c48_527 = arith.constant 48 : index
    %c0_528 = arith.constant 0 : index
    %436 = vector.load %arg5[%c48_527, %c0_528] : memref<80x384xf32, #tpu.memory_space<vmem>>, vector<8x384xf32>
    tpu.vector_store %arg5[%c48_527, %c0_528], %435 {strides = array<i32>} : memref<80x384xf32, #tpu.memory_space<vmem>>, vector<8x384xf32>,
    %c366_i32_529 = arith.constant 366 : i32
    %437 = tpu.dynamic_rotate %423 by %c366_i32_529 dim 1 : vector<8x384xf32>, i32 -> vector<8x384xf32>
    %c56_530 = arith.constant 56 : index
    %c0_531 = arith.constant 0 : index
    %438 = vector.load %arg5[%c56_530, %c0_531] : memref<80x384xf32, #tpu.memory_space<vmem>>, vector<8x384xf32>
    tpu.vector_store %arg5[%c56_530, %c0_531], %437 {strides = array<i32>} : memref<80x384xf32, #tpu.memory_space<vmem>>, vector<8x384xf32>,
    %c365_i32_532 = arith.constant 365 : i32
    %439 = tpu.dynamic_rotate %423 by %c365_i32_532 dim 1 : vector<8x384xf32>, i32 -> vector<8x384xf32>
    %c64_533 = arith.constant 64 : index
    %c0_534 = arith.constant 0 : index
    %440 = vector.load %arg5[%c64_533, %c0_534] : memref<80x384xf32, #tpu.memory_space<vmem>>, vector<8x384xf32>
    tpu.vector_store %arg5[%c64_533, %c0_534], %439 {strides = array<i32>} : memref<80x384xf32, #tpu.memory_space<vmem>>, vector<8x384xf32>,
    %c0_535 = arith.constant 0 : index
    %c0_536 = arith.constant 0 : index
    %441 = vector.load %arg5[%c0_535, %c0_536] : memref<80x384xf32, #tpu.memory_space<vmem>>, vector<80x384xf32>
    %cst_537 = arith.constant dense<0.000000e+00> : vector<8x384xf32>
    %442 = tpu.matmul %0, %441, %cst_537 {dimension_numbers = #tpu.dot_dimension_numbers<[1], [0], [0], [1], [0, 0, 1, 1], [], []>} : vector<8x80xf32>, vector<80x384xf32>, vector<8x384xf32> -> vector<8x384xf32>
    %443 = arith.mulf %442, %1 : vector<8x384xf32>
    %cst_538 = arith.constant 6.250000e-02 : f32
    %444 = vector.broadcast %cst_538 : f32 to vector<8x384xf32>
    %445 = arith.mulf %444, %443 : vector<8x384xf32>
    %446 = arith.addf %400, %445 : vector<8x384xf32>
    %c19_i32_539 = arith.constant 19 : i32
    %447 = tpu.dynamic_rotate %446 by %c19_i32_539 dim 1 : vector<8x384xf32>, i32 -> vector<8x384xf32>
    %c0_540 = arith.constant 0 : index
    %c0_541 = arith.constant 0 : index
    %448 = vector.load %arg5[%c0_540, %c0_541] : memref<80x384xf32, #tpu.memory_space<vmem>>, vector<8x384xf32>
    tpu.vector_store %arg5[%c0_540, %c0_541], %447 {strides = array<i32>} : memref<80x384xf32, #tpu.memory_space<vmem>>, vector<8x384xf32>,
    %c18_i32_542 = arith.constant 18 : i32
    %449 = tpu.dynamic_rotate %446 by %c18_i32_542 dim 1 : vector<8x384xf32>, i32 -> vector<8x384xf32>
    %c8_543 = arith.constant 8 : index
    %c0_544 = arith.constant 0 : index
    %450 = vector.load %arg5[%c8_543, %c0_544] : memref<80x384xf32, #tpu.memory_space<vmem>>, vector<8x384xf32>
    tpu.vector_store %arg5[%c8_543, %c0_544], %449 {strides = array<i32>} : memref<80x384xf32, #tpu.memory_space<vmem>>, vector<8x384xf32>,
    %c17_i32_545 = arith.constant 17 : i32
    %451 = tpu.dynamic_rotate %446 by %c17_i32_545 dim 1 : vector<8x384xf32>, i32 -> vector<8x384xf32>
    %c16_546 = arith.constant 16 : index
    %c0_547 = arith.constant 0 : index
    %452 = vector.load %arg5[%c16_546, %c0_547] : memref<80x384xf32, #tpu.memory_space<vmem>>, vector<8x384xf32>
    tpu.vector_store %arg5[%c16_546, %c0_547], %451 {strides = array<i32>} : memref<80x384xf32, #tpu.memory_space<vmem>>, vector<8x384xf32>,
    %c1_i32_548 = arith.constant 1 : i32
    %453 = tpu.dynamic_rotate %446 by %c1_i32_548 dim 1 : vector<8x384xf32>, i32 -> vector<8x384xf32>
    %c24_549 = arith.constant 24 : index
    %c0_550 = arith.constant 0 : index
    %454 = vector.load %arg5[%c24_549, %c0_550] : memref<80x384xf32, #tpu.memory_space<vmem>>, vector<8x384xf32>
    tpu.vector_store %arg5[%c24_549, %c0_550], %453 {strides = array<i32>} : memref<80x384xf32, #tpu.memory_space<vmem>>, vector<8x384xf32>,
    %c32_551 = arith.constant 32 : index
    %c0_552 = arith.constant 0 : index
    %455 = vector.load %arg5[%c32_551, %c0_552] : memref<80x384xf32, #tpu.memory_space<vmem>>, vector<8x384xf32>
    tpu.vector_store %arg5[%c32_551, %c0_552], %446 {strides = array<i32>} : memref<80x384xf32, #tpu.memory_space<vmem>>, vector<8x384xf32>,
    %c383_i32_553 = arith.constant 383 : i32
    %456 = tpu.dynamic_rotate %446 by %c383_i32_553 dim 1 : vector<8x384xf32>, i32 -> vector<8x384xf32>
    %c40_554 = arith.constant 40 : index
    %c0_555 = arith.constant 0 : index
    %457 = vector.load %arg5[%c40_554, %c0_555] : memref<80x384xf32, #tpu.memory_space<vmem>>, vector<8x384xf32>
    tpu.vector_store %arg5[%c40_554, %c0_555], %456 {strides = array<i32>} : memref<80x384xf32, #tpu.memory_space<vmem>>, vector<8x384xf32>,
    %c367_i32_556 = arith.constant 367 : i32
    %458 = tpu.dynamic_rotate %446 by %c367_i32_556 dim 1 : vector<8x384xf32>, i32 -> vector<8x384xf32>
    %c48_557 = arith.constant 48 : index
    %c0_558 = arith.constant 0 : index
    %459 = vector.load %arg5[%c48_557, %c0_558] : memref<80x384xf32, #tpu.memory_space<vmem>>, vector<8x384xf32>
    tpu.vector_store %arg5[%c48_557, %c0_558], %458 {strides = array<i32>} : memref<80x384xf32, #tpu.memory_space<vmem>>, vector<8x384xf32>,
    %c366_i32_559 = arith.constant 366 : i32
    %460 = tpu.dynamic_rotate %446 by %c366_i32_559 dim 1 : vector<8x384xf32>, i32 -> vector<8x384xf32>
    %c56_560 = arith.constant 56 : index
    %c0_561 = arith.constant 0 : index
    %461 = vector.load %arg5[%c56_560, %c0_561] : memref<80x384xf32, #tpu.memory_space<vmem>>, vector<8x384xf32>
    tpu.vector_store %arg5[%c56_560, %c0_561], %460 {strides = array<i32>} : memref<80x384xf32, #tpu.memory_space<vmem>>, vector<8x384xf32>,
    %c365_i32_562 = arith.constant 365 : i32
    %462 = tpu.dynamic_rotate %446 by %c365_i32_562 dim 1 : vector<8x384xf32>, i32 -> vector<8x384xf32>
    %c64_563 = arith.constant 64 : index
    %c0_564 = arith.constant 0 : index
    %463 = vector.load %arg5[%c64_563, %c0_564] : memref<80x384xf32, #tpu.memory_space<vmem>>, vector<8x384xf32>
    tpu.vector_store %arg5[%c64_563, %c0_564], %462 {strides = array<i32>} : memref<80x384xf32, #tpu.memory_space<vmem>>, vector<8x384xf32>,
    %c0_565 = arith.constant 0 : index
    %c0_566 = arith.constant 0 : index
    %464 = vector.load %arg5[%c0_565, %c0_566] : memref<80x384xf32, #tpu.memory_space<vmem>>, vector<80x384xf32>
    %cst_567 = arith.constant dense<0.000000e+00> : vector<8x384xf32>
    %465 = tpu.matmul %0, %464, %cst_567 {dimension_numbers = #tpu.dot_dimension_numbers<[1], [0], [0], [1], [0, 0, 1, 1], [], []>} : vector<8x80xf32>, vector<80x384xf32>, vector<8x384xf32> -> vector<8x384xf32>
    %466 = arith.mulf %465, %1 : vector<8x384xf32>
    %cst_568 = arith.constant 1.250000e-01 : f32
    %467 = vector.broadcast %cst_568 : f32 to vector<8x384xf32>
    %468 = arith.mulf %467, %466 : vector<8x384xf32>
    %469 = arith.addf %400, %468 : vector<8x384xf32>
    %c19_i32_569 = arith.constant 19 : i32
    %470 = tpu.dynamic_rotate %469 by %c19_i32_569 dim 1 : vector<8x384xf32>, i32 -> vector<8x384xf32>
    %c0_570 = arith.constant 0 : index
    %c0_571 = arith.constant 0 : index
    %471 = vector.load %arg5[%c0_570, %c0_571] : memref<80x384xf32, #tpu.memory_space<vmem>>, vector<8x384xf32>
    tpu.vector_store %arg5[%c0_570, %c0_571], %470 {strides = array<i32>} : memref<80x384xf32, #tpu.memory_space<vmem>>, vector<8x384xf32>,
    %c18_i32_572 = arith.constant 18 : i32
    %472 = tpu.dynamic_rotate %469 by %c18_i32_572 dim 1 : vector<8x384xf32>, i32 -> vector<8x384xf32>
    %c8_573 = arith.constant 8 : index
    %c0_574 = arith.constant 0 : index
    %473 = vector.load %arg5[%c8_573, %c0_574] : memref<80x384xf32, #tpu.memory_space<vmem>>, vector<8x384xf32>
    tpu.vector_store %arg5[%c8_573, %c0_574], %472 {strides = array<i32>} : memref<80x384xf32, #tpu.memory_space<vmem>>, vector<8x384xf32>,
    %c17_i32_575 = arith.constant 17 : i32
    %474 = tpu.dynamic_rotate %469 by %c17_i32_575 dim 1 : vector<8x384xf32>, i32 -> vector<8x384xf32>
    %c16_576 = arith.constant 16 : index
    %c0_577 = arith.constant 0 : index
    %475 = vector.load %arg5[%c16_576, %c0_577] : memref<80x384xf32, #tpu.memory_space<vmem>>, vector<8x384xf32>
    tpu.vector_store %arg5[%c16_576, %c0_577], %474 {strides = array<i32>} : memref<80x384xf32, #tpu.memory_space<vmem>>, vector<8x384xf32>,
    %c1_i32_578 = arith.constant 1 : i32
    %476 = tpu.dynamic_rotate %469 by %c1_i32_578 dim 1 : vector<8x384xf32>, i32 -> vector<8x384xf32>
    %c24_579 = arith.constant 24 : index
    %c0_580 = arith.constant 0 : index
    %477 = vector.load %arg5[%c24_579, %c0_580] : memref<80x384xf32, #tpu.memory_space<vmem>>, vector<8x384xf32>
    tpu.vector_store %arg5[%c24_579, %c0_580], %476 {strides = array<i32>} : memref<80x384xf32, #tpu.memory_space<vmem>>, vector<8x384xf32>,
    %c32_581 = arith.constant 32 : index
    %c0_582 = arith.constant 0 : index
    %478 = vector.load %arg5[%c32_581, %c0_582] : memref<80x384xf32, #tpu.memory_space<vmem>>, vector<8x384xf32>
    tpu.vector_store %arg5[%c32_581, %c0_582], %469 {strides = array<i32>} : memref<80x384xf32, #tpu.memory_space<vmem>>, vector<8x384xf32>,
    %c383_i32_583 = arith.constant 383 : i32
    %479 = tpu.dynamic_rotate %469 by %c383_i32_583 dim 1 : vector<8x384xf32>, i32 -> vector<8x384xf32>
    %c40_584 = arith.constant 40 : index
    %c0_585 = arith.constant 0 : index
    %480 = vector.load %arg5[%c40_584, %c0_585] : memref<80x384xf32, #tpu.memory_space<vmem>>, vector<8x384xf32>
    tpu.vector_store %arg5[%c40_584, %c0_585], %479 {strides = array<i32>} : memref<80x384xf32, #tpu.memory_space<vmem>>, vector<8x384xf32>,
    %c367_i32_586 = arith.constant 367 : i32
    %481 = tpu.dynamic_rotate %469 by %c367_i32_586 dim 1 : vector<8x384xf32>, i32 -> vector<8x384xf32>
    %c48_587 = arith.constant 48 : index
    %c0_588 = arith.constant 0 : index
    %482 = vector.load %arg5[%c48_587, %c0_588] : memref<80x384xf32, #tpu.memory_space<vmem>>, vector<8x384xf32>
    tpu.vector_store %arg5[%c48_587, %c0_588], %481 {strides = array<i32>} : memref<80x384xf32, #tpu.memory_space<vmem>>, vector<8x384xf32>,
    %c366_i32_589 = arith.constant 366 : i32
    %483 = tpu.dynamic_rotate %469 by %c366_i32_589 dim 1 : vector<8x384xf32>, i32 -> vector<8x384xf32>
    %c56_590 = arith.constant 56 : index
    %c0_591 = arith.constant 0 : index
    %484 = vector.load %arg5[%c56_590, %c0_591] : memref<80x384xf32, #tpu.memory_space<vmem>>, vector<8x384xf32>
    tpu.vector_store %arg5[%c56_590, %c0_591], %483 {strides = array<i32>} : memref<80x384xf32, #tpu.memory_space<vmem>>, vector<8x384xf32>,
    %c365_i32_592 = arith.constant 365 : i32
    %485 = tpu.dynamic_rotate %469 by %c365_i32_592 dim 1 : vector<8x384xf32>, i32 -> vector<8x384xf32>
    %c64_593 = arith.constant 64 : index
    %c0_594 = arith.constant 0 : index
    %486 = vector.load %arg5[%c64_593, %c0_594] : memref<80x384xf32, #tpu.memory_space<vmem>>, vector<8x384xf32>
    tpu.vector_store %arg5[%c64_593, %c0_594], %485 {strides = array<i32>} : memref<80x384xf32, #tpu.memory_space<vmem>>, vector<8x384xf32>,
    %c0_595 = arith.constant 0 : index
    %c0_596 = arith.constant 0 : index
    %487 = vector.load %arg5[%c0_595, %c0_596] : memref<80x384xf32, #tpu.memory_space<vmem>>, vector<80x384xf32>
    %cst_597 = arith.constant dense<0.000000e+00> : vector<8x384xf32>
    %488 = tpu.matmul %0, %487, %cst_597 {dimension_numbers = #tpu.dot_dimension_numbers<[1], [0], [0], [1], [0, 0, 1, 1], [], []>} : vector<8x80xf32>, vector<80x384xf32>, vector<8x384xf32> -> vector<8x384xf32>
    %489 = arith.mulf %488, %1 : vector<8x384xf32>
    %cst_598 = arith.constant 2.000000e+00 : f32
    %490 = vector.broadcast %cst_598 : f32 to vector<8x384xf32>
    %491 = arith.mulf %490, %443 : vector<8x384xf32>
    %492 = arith.addf %420, %491 : vector<8x384xf32>
    %cst_599 = arith.constant 2.000000e+00 : f32
    %493 = vector.broadcast %cst_599 : f32 to vector<8x384xf32>
    %494 = arith.mulf %493, %466 : vector<8x384xf32>
    %495 = arith.addf %492, %494 : vector<8x384xf32>
    %496 = arith.addf %495, %489 : vector<8x384xf32>
    %cst_600 = arith.constant 0.020833334 : f32
    %497 = vector.broadcast %cst_600 : f32 to vector<8x384xf32>
    %498 = arith.mulf %497, %496 : vector<8x384xf32>
    %499 = arith.addf %400, %498 : vector<8x384xf32>
    %c5_i32 = arith.constant 5 : i32
    %c19_i32_601 = arith.constant 19 : i32
    %500 = tpu.dynamic_rotate %499 by %c19_i32_601 dim 1 : vector<8x384xf32>, i32 -> vector<8x384xf32>
    %c0_602 = arith.constant 0 : index
    %c0_603 = arith.constant 0 : index
    %501 = vector.load %arg5[%c0_602, %c0_603] : memref<80x384xf32, #tpu.memory_space<vmem>>, vector<8x384xf32>
    tpu.vector_store %arg5[%c0_602, %c0_603], %500 {strides = array<i32>} : memref<80x384xf32, #tpu.memory_space<vmem>>, vector<8x384xf32>,
    %c18_i32_604 = arith.constant 18 : i32
    %502 = tpu.dynamic_rotate %499 by %c18_i32_604 dim 1 : vector<8x384xf32>, i32 -> vector<8x384xf32>
    %c8_605 = arith.constant 8 : index
    %c0_606 = arith.constant 0 : index
    %503 = vector.load %arg5[%c8_605, %c0_606] : memref<80x384xf32, #tpu.memory_space<vmem>>, vector<8x384xf32>
    tpu.vector_store %arg5[%c8_605, %c0_606], %502 {strides = array<i32>} : memref<80x384xf32, #tpu.memory_space<vmem>>, vector<8x384xf32>,
    %c17_i32_607 = arith.constant 17 : i32
    %504 = tpu.dynamic_rotate %499 by %c17_i32_607 dim 1 : vector<8x384xf32>, i32 -> vector<8x384xf32>
    %c16_608 = arith.constant 16 : index
    %c0_609 = arith.constant 0 : index
    %505 = vector.load %arg5[%c16_608, %c0_609] : memref<80x384xf32, #tpu.memory_space<vmem>>, vector<8x384xf32>
    tpu.vector_store %arg5[%c16_608, %c0_609], %504 {strides = array<i32>} : memref<80x384xf32, #tpu.memory_space<vmem>>, vector<8x384xf32>,
    %c1_i32_610 = arith.constant 1 : i32
    %506 = tpu.dynamic_rotate %499 by %c1_i32_610 dim 1 : vector<8x384xf32>, i32 -> vector<8x384xf32>
    %c24_611 = arith.constant 24 : index
    %c0_612 = arith.constant 0 : index
    %507 = vector.load %arg5[%c24_611, %c0_612] : memref<80x384xf32, #tpu.memory_space<vmem>>, vector<8x384xf32>
    tpu.vector_store %arg5[%c24_611, %c0_612], %506 {strides = array<i32>} : memref<80x384xf32, #tpu.memory_space<vmem>>, vector<8x384xf32>,
    %c32_613 = arith.constant 32 : index
    %c0_614 = arith.constant 0 : index
    %508 = vector.load %arg5[%c32_613, %c0_614] : memref<80x384xf32, #tpu.memory_space<vmem>>, vector<8x384xf32>
    tpu.vector_store %arg5[%c32_613, %c0_614], %499 {strides = array<i32>} : memref<80x384xf32, #tpu.memory_space<vmem>>, vector<8x384xf32>,
    %c383_i32_615 = arith.constant 383 : i32
    %509 = tpu.dynamic_rotate %499 by %c383_i32_615 dim 1 : vector<8x384xf32>, i32 -> vector<8x384xf32>
    %c40_616 = arith.constant 40 : index
    %c0_617 = arith.constant 0 : index
    %510 = vector.load %arg5[%c40_616, %c0_617] : memref<80x384xf32, #tpu.memory_space<vmem>>, vector<8x384xf32>
    tpu.vector_store %arg5[%c40_616, %c0_617], %509 {strides = array<i32>} : memref<80x384xf32, #tpu.memory_space<vmem>>, vector<8x384xf32>,
    %c367_i32_618 = arith.constant 367 : i32
    %511 = tpu.dynamic_rotate %499 by %c367_i32_618 dim 1 : vector<8x384xf32>, i32 -> vector<8x384xf32>
    %c48_619 = arith.constant 48 : index
    %c0_620 = arith.constant 0 : index
    %512 = vector.load %arg5[%c48_619, %c0_620] : memref<80x384xf32, #tpu.memory_space<vmem>>, vector<8x384xf32>
    tpu.vector_store %arg5[%c48_619, %c0_620], %511 {strides = array<i32>} : memref<80x384xf32, #tpu.memory_space<vmem>>, vector<8x384xf32>,
    %c366_i32_621 = arith.constant 366 : i32
    %513 = tpu.dynamic_rotate %499 by %c366_i32_621 dim 1 : vector<8x384xf32>, i32 -> vector<8x384xf32>
    %c56_622 = arith.constant 56 : index
    %c0_623 = arith.constant 0 : index
    %514 = vector.load %arg5[%c56_622, %c0_623] : memref<80x384xf32, #tpu.memory_space<vmem>>, vector<8x384xf32>
    tpu.vector_store %arg5[%c56_622, %c0_623], %513 {strides = array<i32>} : memref<80x384xf32, #tpu.memory_space<vmem>>, vector<8x384xf32>,
    %c365_i32_624 = arith.constant 365 : i32
    %515 = tpu.dynamic_rotate %499 by %c365_i32_624 dim 1 : vector<8x384xf32>, i32 -> vector<8x384xf32>
    %c64_625 = arith.constant 64 : index
    %c0_626 = arith.constant 0 : index
    %516 = vector.load %arg5[%c64_625, %c0_626] : memref<80x384xf32, #tpu.memory_space<vmem>>, vector<8x384xf32>
    tpu.vector_store %arg5[%c64_625, %c0_626], %515 {strides = array<i32>} : memref<80x384xf32, #tpu.memory_space<vmem>>, vector<8x384xf32>,
    %c0_627 = arith.constant 0 : index
    %c0_628 = arith.constant 0 : index
    %517 = vector.load %arg5[%c0_627, %c0_628] : memref<80x384xf32, #tpu.memory_space<vmem>>, vector<80x384xf32>
    %cst_629 = arith.constant dense<0.000000e+00> : vector<8x384xf32>
    %518 = tpu.matmul %0, %517, %cst_629 {dimension_numbers = #tpu.dot_dimension_numbers<[1], [0], [0], [1], [0, 0, 1, 1], [], []>} : vector<8x80xf32>, vector<80x384xf32>, vector<8x384xf32> -> vector<8x384xf32>
    %519 = arith.mulf %518, %1 : vector<8x384xf32>
    %cst_630 = arith.constant 6.250000e-02 : f32
    %520 = vector.broadcast %cst_630 : f32 to vector<8x384xf32>
    %521 = arith.mulf %520, %519 : vector<8x384xf32>
    %522 = arith.addf %499, %521 : vector<8x384xf32>
    %c19_i32_631 = arith.constant 19 : i32
    %523 = tpu.dynamic_rotate %522 by %c19_i32_631 dim 1 : vector<8x384xf32>, i32 -> vector<8x384xf32>
    %c0_632 = arith.constant 0 : index
    %c0_633 = arith.constant 0 : index
    %524 = vector.load %arg5[%c0_632, %c0_633] : memref<80x384xf32, #tpu.memory_space<vmem>>, vector<8x384xf32>
    tpu.vector_store %arg5[%c0_632, %c0_633], %523 {strides = array<i32>} : memref<80x384xf32, #tpu.memory_space<vmem>>, vector<8x384xf32>,
    %c18_i32_634 = arith.constant 18 : i32
    %525 = tpu.dynamic_rotate %522 by %c18_i32_634 dim 1 : vector<8x384xf32>, i32 -> vector<8x384xf32>
    %c8_635 = arith.constant 8 : index
    %c0_636 = arith.constant 0 : index
    %526 = vector.load %arg5[%c8_635, %c0_636] : memref<80x384xf32, #tpu.memory_space<vmem>>, vector<8x384xf32>
    tpu.vector_store %arg5[%c8_635, %c0_636], %525 {strides = array<i32>} : memref<80x384xf32, #tpu.memory_space<vmem>>, vector<8x384xf32>,
    %c17_i32_637 = arith.constant 17 : i32
    %527 = tpu.dynamic_rotate %522 by %c17_i32_637 dim 1 : vector<8x384xf32>, i32 -> vector<8x384xf32>
    %c16_638 = arith.constant 16 : index
    %c0_639 = arith.constant 0 : index
    %528 = vector.load %arg5[%c16_638, %c0_639] : memref<80x384xf32, #tpu.memory_space<vmem>>, vector<8x384xf32>
    tpu.vector_store %arg5[%c16_638, %c0_639], %527 {strides = array<i32>} : memref<80x384xf32, #tpu.memory_space<vmem>>, vector<8x384xf32>,
    %c1_i32_640 = arith.constant 1 : i32
    %529 = tpu.dynamic_rotate %522 by %c1_i32_640 dim 1 : vector<8x384xf32>, i32 -> vector<8x384xf32>
    %c24_641 = arith.constant 24 : index
    %c0_642 = arith.constant 0 : index
    %530 = vector.load %arg5[%c24_641, %c0_642] : memref<80x384xf32, #tpu.memory_space<vmem>>, vector<8x384xf32>
    tpu.vector_store %arg5[%c24_641, %c0_642], %529 {strides = array<i32>} : memref<80x384xf32, #tpu.memory_space<vmem>>, vector<8x384xf32>,
    %c32_643 = arith.constant 32 : index
    %c0_644 = arith.constant 0 : index
    %531 = vector.load %arg5[%c32_643, %c0_644] : memref<80x384xf32, #tpu.memory_space<vmem>>, vector<8x384xf32>
    tpu.vector_store %arg5[%c32_643, %c0_644], %522 {strides = array<i32>} : memref<80x384xf32, #tpu.memory_space<vmem>>, vector<8x384xf32>,
    %c383_i32_645 = arith.constant 383 : i32
    %532 = tpu.dynamic_rotate %522 by %c383_i32_645 dim 1 : vector<8x384xf32>, i32 -> vector<8x384xf32>
    %c40_646 = arith.constant 40 : index
    %c0_647 = arith.constant 0 : index
    %533 = vector.load %arg5[%c40_646, %c0_647] : memref<80x384xf32, #tpu.memory_space<vmem>>, vector<8x384xf32>
    tpu.vector_store %arg5[%c40_646, %c0_647], %532 {strides = array<i32>} : memref<80x384xf32, #tpu.memory_space<vmem>>, vector<8x384xf32>,
    %c367_i32_648 = arith.constant 367 : i32
    %534 = tpu.dynamic_rotate %522 by %c367_i32_648 dim 1 : vector<8x384xf32>, i32 -> vector<8x384xf32>
    %c48_649 = arith.constant 48 : index
    %c0_650 = arith.constant 0 : index
    %535 = vector.load %arg5[%c48_649, %c0_650] : memref<80x384xf32, #tpu.memory_space<vmem>>, vector<8x384xf32>
    tpu.vector_store %arg5[%c48_649, %c0_650], %534 {strides = array<i32>} : memref<80x384xf32, #tpu.memory_space<vmem>>, vector<8x384xf32>,
    %c366_i32_651 = arith.constant 366 : i32
    %536 = tpu.dynamic_rotate %522 by %c366_i32_651 dim 1 : vector<8x384xf32>, i32 -> vector<8x384xf32>
    %c56_652 = arith.constant 56 : index
    %c0_653 = arith.constant 0 : index
    %537 = vector.load %arg5[%c56_652, %c0_653] : memref<80x384xf32, #tpu.memory_space<vmem>>, vector<8x384xf32>
    tpu.vector_store %arg5[%c56_652, %c0_653], %536 {strides = array<i32>} : memref<80x384xf32, #tpu.memory_space<vmem>>, vector<8x384xf32>,
    %c365_i32_654 = arith.constant 365 : i32
    %538 = tpu.dynamic_rotate %522 by %c365_i32_654 dim 1 : vector<8x384xf32>, i32 -> vector<8x384xf32>
    %c64_655 = arith.constant 64 : index
    %c0_656 = arith.constant 0 : index
    %539 = vector.load %arg5[%c64_655, %c0_656] : memref<80x384xf32, #tpu.memory_space<vmem>>, vector<8x384xf32>
    tpu.vector_store %arg5[%c64_655, %c0_656], %538 {strides = array<i32>} : memref<80x384xf32, #tpu.memory_space<vmem>>, vector<8x384xf32>,
    %c0_657 = arith.constant 0 : index
    %c0_658 = arith.constant 0 : index
    %540 = vector.load %arg5[%c0_657, %c0_658] : memref<80x384xf32, #tpu.memory_space<vmem>>, vector<80x384xf32>
    %cst_659 = arith.constant dense<0.000000e+00> : vector<8x384xf32>
    %541 = tpu.matmul %0, %540, %cst_659 {dimension_numbers = #tpu.dot_dimension_numbers<[1], [0], [0], [1], [0, 0, 1, 1], [], []>} : vector<8x80xf32>, vector<80x384xf32>, vector<8x384xf32> -> vector<8x384xf32>
    %542 = arith.mulf %541, %1 : vector<8x384xf32>
    %cst_660 = arith.constant 6.250000e-02 : f32
    %543 = vector.broadcast %cst_660 : f32 to vector<8x384xf32>
    %544 = arith.mulf %543, %542 : vector<8x384xf32>
    %545 = arith.addf %499, %544 : vector<8x384xf32>
    %c19_i32_661 = arith.constant 19 : i32
    %546 = tpu.dynamic_rotate %545 by %c19_i32_661 dim 1 : vector<8x384xf32>, i32 -> vector<8x384xf32>
    %c0_662 = arith.constant 0 : index
    %c0_663 = arith.constant 0 : index
    %547 = vector.load %arg5[%c0_662, %c0_663] : memref<80x384xf32, #tpu.memory_space<vmem>>, vector<8x384xf32>
    tpu.vector_store %arg5[%c0_662, %c0_663], %546 {strides = array<i32>} : memref<80x384xf32, #tpu.memory_space<vmem>>, vector<8x384xf32>,
    %c18_i32_664 = arith.constant 18 : i32
    %548 = tpu.dynamic_rotate %545 by %c18_i32_664 dim 1 : vector<8x384xf32>, i32 -> vector<8x384xf32>
    %c8_665 = arith.constant 8 : index
    %c0_666 = arith.constant 0 : index
    %549 = vector.load %arg5[%c8_665, %c0_666] : memref<80x384xf32, #tpu.memory_space<vmem>>, vector<8x384xf32>
    tpu.vector_store %arg5[%c8_665, %c0_666], %548 {strides = array<i32>} : memref<80x384xf32, #tpu.memory_space<vmem>>, vector<8x384xf32>,
    %c17_i32_667 = arith.constant 17 : i32
    %550 = tpu.dynamic_rotate %545 by %c17_i32_667 dim 1 : vector<8x384xf32>, i32 -> vector<8x384xf32>
    %c16_668 = arith.constant 16 : index
    %c0_669 = arith.constant 0 : index
    %551 = vector.load %arg5[%c16_668, %c0_669] : memref<80x384xf32, #tpu.memory_space<vmem>>, vector<8x384xf32>
    tpu.vector_store %arg5[%c16_668, %c0_669], %550 {strides = array<i32>} : memref<80x384xf32, #tpu.memory_space<vmem>>, vector<8x384xf32>,
    %c1_i32_670 = arith.constant 1 : i32
    %552 = tpu.dynamic_rotate %545 by %c1_i32_670 dim 1 : vector<8x384xf32>, i32 -> vector<8x384xf32>
    %c24_671 = arith.constant 24 : index
    %c0_672 = arith.constant 0 : index
    %553 = vector.load %arg5[%c24_671, %c0_672] : memref<80x384xf32, #tpu.memory_space<vmem>>, vector<8x384xf32>
    tpu.vector_store %arg5[%c24_671, %c0_672], %552 {strides = array<i32>} : memref<80x384xf32, #tpu.memory_space<vmem>>, vector<8x384xf32>,
    %c32_673 = arith.constant 32 : index
    %c0_674 = arith.constant 0 : index
    %554 = vector.load %arg5[%c32_673, %c0_674] : memref<80x384xf32, #tpu.memory_space<vmem>>, vector<8x384xf32>
    tpu.vector_store %arg5[%c32_673, %c0_674], %545 {strides = array<i32>} : memref<80x384xf32, #tpu.memory_space<vmem>>, vector<8x384xf32>,
    %c383_i32_675 = arith.constant 383 : i32
    %555 = tpu.dynamic_rotate %545 by %c383_i32_675 dim 1 : vector<8x384xf32>, i32 -> vector<8x384xf32>
    %c40_676 = arith.constant 40 : index
    %c0_677 = arith.constant 0 : index
    %556 = vector.load %arg5[%c40_676, %c0_677] : memref<80x384xf32, #tpu.memory_space<vmem>>, vector<8x384xf32>
    tpu.vector_store %arg5[%c40_676, %c0_677], %555 {strides = array<i32>} : memref<80x384xf32, #tpu.memory_space<vmem>>, vector<8x384xf32>,
    %c367_i32_678 = arith.constant 367 : i32
    %557 = tpu.dynamic_rotate %545 by %c367_i32_678 dim 1 : vector<8x384xf32>, i32 -> vector<8x384xf32>
    %c48_679 = arith.constant 48 : index
    %c0_680 = arith.constant 0 : index
    %558 = vector.load %arg5[%c48_679, %c0_680] : memref<80x384xf32, #tpu.memory_space<vmem>>, vector<8x384xf32>
    tpu.vector_store %arg5[%c48_679, %c0_680], %557 {strides = array<i32>} : memref<80x384xf32, #tpu.memory_space<vmem>>, vector<8x384xf32>,
    %c366_i32_681 = arith.constant 366 : i32
    %559 = tpu.dynamic_rotate %545 by %c366_i32_681 dim 1 : vector<8x384xf32>, i32 -> vector<8x384xf32>
    %c56_682 = arith.constant 56 : index
    %c0_683 = arith.constant 0 : index
    %560 = vector.load %arg5[%c56_682, %c0_683] : memref<80x384xf32, #tpu.memory_space<vmem>>, vector<8x384xf32>
    tpu.vector_store %arg5[%c56_682, %c0_683], %559 {strides = array<i32>} : memref<80x384xf32, #tpu.memory_space<vmem>>, vector<8x384xf32>,
    %c365_i32_684 = arith.constant 365 : i32
    %561 = tpu.dynamic_rotate %545 by %c365_i32_684 dim 1 : vector<8x384xf32>, i32 -> vector<8x384xf32>
    %c64_685 = arith.constant 64 : index
    %c0_686 = arith.constant 0 : index
    %562 = vector.load %arg5[%c64_685, %c0_686] : memref<80x384xf32, #tpu.memory_space<vmem>>, vector<8x384xf32>
    tpu.vector_store %arg5[%c64_685, %c0_686], %561 {strides = array<i32>} : memref<80x384xf32, #tpu.memory_space<vmem>>, vector<8x384xf32>,
    %c0_687 = arith.constant 0 : index
    %c0_688 = arith.constant 0 : index
    %563 = vector.load %arg5[%c0_687, %c0_688] : memref<80x384xf32, #tpu.memory_space<vmem>>, vector<80x384xf32>
    %cst_689 = arith.constant dense<0.000000e+00> : vector<8x384xf32>
    %564 = tpu.matmul %0, %563, %cst_689 {dimension_numbers = #tpu.dot_dimension_numbers<[1], [0], [0], [1], [0, 0, 1, 1], [], []>} : vector<8x80xf32>, vector<80x384xf32>, vector<8x384xf32> -> vector<8x384xf32>
    %565 = arith.mulf %564, %1 : vector<8x384xf32>
    %cst_690 = arith.constant 1.250000e-01 : f32
    %566 = vector.broadcast %cst_690 : f32 to vector<8x384xf32>
    %567 = arith.mulf %566, %565 : vector<8x384xf32>
    %568 = arith.addf %499, %567 : vector<8x384xf32>
    %c19_i32_691 = arith.constant 19 : i32
    %569 = tpu.dynamic_rotate %568 by %c19_i32_691 dim 1 : vector<8x384xf32>, i32 -> vector<8x384xf32>
    %c0_692 = arith.constant 0 : index
    %c0_693 = arith.constant 0 : index
    %570 = vector.load %arg5[%c0_692, %c0_693] : memref<80x384xf32, #tpu.memory_space<vmem>>, vector<8x384xf32>
    tpu.vector_store %arg5[%c0_692, %c0_693], %569 {strides = array<i32>} : memref<80x384xf32, #tpu.memory_space<vmem>>, vector<8x384xf32>,
    %c18_i32_694 = arith.constant 18 : i32
    %571 = tpu.dynamic_rotate %568 by %c18_i32_694 dim 1 : vector<8x384xf32>, i32 -> vector<8x384xf32>
    %c8_695 = arith.constant 8 : index
    %c0_696 = arith.constant 0 : index
    %572 = vector.load %arg5[%c8_695, %c0_696] : memref<80x384xf32, #tpu.memory_space<vmem>>, vector<8x384xf32>
    tpu.vector_store %arg5[%c8_695, %c0_696], %571 {strides = array<i32>} : memref<80x384xf32, #tpu.memory_space<vmem>>, vector<8x384xf32>,
    %c17_i32_697 = arith.constant 17 : i32
    %573 = tpu.dynamic_rotate %568 by %c17_i32_697 dim 1 : vector<8x384xf32>, i32 -> vector<8x384xf32>
    %c16_698 = arith.constant 16 : index
    %c0_699 = arith.constant 0 : index
    %574 = vector.load %arg5[%c16_698, %c0_699] : memref<80x384xf32, #tpu.memory_space<vmem>>, vector<8x384xf32>
    tpu.vector_store %arg5[%c16_698, %c0_699], %573 {strides = array<i32>} : memref<80x384xf32, #tpu.memory_space<vmem>>, vector<8x384xf32>,
    %c1_i32_700 = arith.constant 1 : i32
    %575 = tpu.dynamic_rotate %568 by %c1_i32_700 dim 1 : vector<8x384xf32>, i32 -> vector<8x384xf32>
    %c24_701 = arith.constant 24 : index
    %c0_702 = arith.constant 0 : index
    %576 = vector.load %arg5[%c24_701, %c0_702] : memref<80x384xf32, #tpu.memory_space<vmem>>, vector<8x384xf32>
    tpu.vector_store %arg5[%c24_701, %c0_702], %575 {strides = array<i32>} : memref<80x384xf32, #tpu.memory_space<vmem>>, vector<8x384xf32>,
    %c32_703 = arith.constant 32 : index
    %c0_704 = arith.constant 0 : index
    %577 = vector.load %arg5[%c32_703, %c0_704] : memref<80x384xf32, #tpu.memory_space<vmem>>, vector<8x384xf32>
    tpu.vector_store %arg5[%c32_703, %c0_704], %568 {strides = array<i32>} : memref<80x384xf32, #tpu.memory_space<vmem>>, vector<8x384xf32>,
    %c383_i32_705 = arith.constant 383 : i32
    %578 = tpu.dynamic_rotate %568 by %c383_i32_705 dim 1 : vector<8x384xf32>, i32 -> vector<8x384xf32>
    %c40_706 = arith.constant 40 : index
    %c0_707 = arith.constant 0 : index
    %579 = vector.load %arg5[%c40_706, %c0_707] : memref<80x384xf32, #tpu.memory_space<vmem>>, vector<8x384xf32>
    tpu.vector_store %arg5[%c40_706, %c0_707], %578 {strides = array<i32>} : memref<80x384xf32, #tpu.memory_space<vmem>>, vector<8x384xf32>,
    %c367_i32_708 = arith.constant 367 : i32
    %580 = tpu.dynamic_rotate %568 by %c367_i32_708 dim 1 : vector<8x384xf32>, i32 -> vector<8x384xf32>
    %c48_709 = arith.constant 48 : index
    %c0_710 = arith.constant 0 : index
    %581 = vector.load %arg5[%c48_709, %c0_710] : memref<80x384xf32, #tpu.memory_space<vmem>>, vector<8x384xf32>
    tpu.vector_store %arg5[%c48_709, %c0_710], %580 {strides = array<i32>} : memref<80x384xf32, #tpu.memory_space<vmem>>, vector<8x384xf32>,
    %c366_i32_711 = arith.constant 366 : i32
    %582 = tpu.dynamic_rotate %568 by %c366_i32_711 dim 1 : vector<8x384xf32>, i32 -> vector<8x384xf32>
    %c56_712 = arith.constant 56 : index
    %c0_713 = arith.constant 0 : index
    %583 = vector.load %arg5[%c56_712, %c0_713] : memref<80x384xf32, #tpu.memory_space<vmem>>, vector<8x384xf32>
    tpu.vector_store %arg5[%c56_712, %c0_713], %582 {strides = array<i32>} : memref<80x384xf32, #tpu.memory_space<vmem>>, vector<8x384xf32>,
    %c365_i32_714 = arith.constant 365 : i32
    %584 = tpu.dynamic_rotate %568 by %c365_i32_714 dim 1 : vector<8x384xf32>, i32 -> vector<8x384xf32>
    %c64_715 = arith.constant 64 : index
    %c0_716 = arith.constant 0 : index
    %585 = vector.load %arg5[%c64_715, %c0_716] : memref<80x384xf32, #tpu.memory_space<vmem>>, vector<8x384xf32>
    tpu.vector_store %arg5[%c64_715, %c0_716], %584 {strides = array<i32>} : memref<80x384xf32, #tpu.memory_space<vmem>>, vector<8x384xf32>,
    %c0_717 = arith.constant 0 : index
    %c0_718 = arith.constant 0 : index
    %586 = vector.load %arg5[%c0_717, %c0_718] : memref<80x384xf32, #tpu.memory_space<vmem>>, vector<80x384xf32>
    %cst_719 = arith.constant dense<0.000000e+00> : vector<8x384xf32>
    %587 = tpu.matmul %0, %586, %cst_719 {dimension_numbers = #tpu.dot_dimension_numbers<[1], [0], [0], [1], [0, 0, 1, 1], [], []>} : vector<8x80xf32>, vector<80x384xf32>, vector<8x384xf32> -> vector<8x384xf32>
    %588 = arith.mulf %587, %1 : vector<8x384xf32>
    %cst_720 = arith.constant 2.000000e+00 : f32
    %589 = vector.broadcast %cst_720 : f32 to vector<8x384xf32>
    %590 = arith.mulf %589, %542 : vector<8x384xf32>
    %591 = arith.addf %519, %590 : vector<8x384xf32>
    %cst_721 = arith.constant 2.000000e+00 : f32
    %592 = vector.broadcast %cst_721 : f32 to vector<8x384xf32>
    %593 = arith.mulf %592, %565 : vector<8x384xf32>
    %594 = arith.addf %591, %593 : vector<8x384xf32>
    %595 = arith.addf %594, %588 : vector<8x384xf32>
    %cst_722 = arith.constant 0.020833334 : f32
    %596 = vector.broadcast %cst_722 : f32 to vector<8x384xf32>
    %597 = arith.mulf %596, %595 : vector<8x384xf32>
    %598 = arith.addf %499, %597 : vector<8x384xf32>
    %c6_i32 = arith.constant 6 : i32
    %c19_i32_723 = arith.constant 19 : i32
    %599 = tpu.dynamic_rotate %598 by %c19_i32_723 dim 1 : vector<8x384xf32>, i32 -> vector<8x384xf32>
    %c0_724 = arith.constant 0 : index
    %c0_725 = arith.constant 0 : index
    %600 = vector.load %arg5[%c0_724, %c0_725] : memref<80x384xf32, #tpu.memory_space<vmem>>, vector<8x384xf32>
    tpu.vector_store %arg5[%c0_724, %c0_725], %599 {strides = array<i32>} : memref<80x384xf32, #tpu.memory_space<vmem>>, vector<8x384xf32>,
    %c18_i32_726 = arith.constant 18 : i32
    %601 = tpu.dynamic_rotate %598 by %c18_i32_726 dim 1 : vector<8x384xf32>, i32 -> vector<8x384xf32>
    %c8_727 = arith.constant 8 : index
    %c0_728 = arith.constant 0 : index
    %602 = vector.load %arg5[%c8_727, %c0_728] : memref<80x384xf32, #tpu.memory_space<vmem>>, vector<8x384xf32>
    tpu.vector_store %arg5[%c8_727, %c0_728], %601 {strides = array<i32>} : memref<80x384xf32, #tpu.memory_space<vmem>>, vector<8x384xf32>,
    %c17_i32_729 = arith.constant 17 : i32
    %603 = tpu.dynamic_rotate %598 by %c17_i32_729 dim 1 : vector<8x384xf32>, i32 -> vector<8x384xf32>
    %c16_730 = arith.constant 16 : index
    %c0_731 = arith.constant 0 : index
    %604 = vector.load %arg5[%c16_730, %c0_731] : memref<80x384xf32, #tpu.memory_space<vmem>>, vector<8x384xf32>
    tpu.vector_store %arg5[%c16_730, %c0_731], %603 {strides = array<i32>} : memref<80x384xf32, #tpu.memory_space<vmem>>, vector<8x384xf32>,
    %c1_i32_732 = arith.constant 1 : i32
    %605 = tpu.dynamic_rotate %598 by %c1_i32_732 dim 1 : vector<8x384xf32>, i32 -> vector<8x384xf32>
    %c24_733 = arith.constant 24 : index
    %c0_734 = arith.constant 0 : index
    %606 = vector.load %arg5[%c24_733, %c0_734] : memref<80x384xf32, #tpu.memory_space<vmem>>, vector<8x384xf32>
    tpu.vector_store %arg5[%c24_733, %c0_734], %605 {strides = array<i32>} : memref<80x384xf32, #tpu.memory_space<vmem>>, vector<8x384xf32>,
    %c32_735 = arith.constant 32 : index
    %c0_736 = arith.constant 0 : index
    %607 = vector.load %arg5[%c32_735, %c0_736] : memref<80x384xf32, #tpu.memory_space<vmem>>, vector<8x384xf32>
    tpu.vector_store %arg5[%c32_735, %c0_736], %598 {strides = array<i32>} : memref<80x384xf32, #tpu.memory_space<vmem>>, vector<8x384xf32>,
    %c383_i32_737 = arith.constant 383 : i32
    %608 = tpu.dynamic_rotate %598 by %c383_i32_737 dim 1 : vector<8x384xf32>, i32 -> vector<8x384xf32>
    %c40_738 = arith.constant 40 : index
    %c0_739 = arith.constant 0 : index
    %609 = vector.load %arg5[%c40_738, %c0_739] : memref<80x384xf32, #tpu.memory_space<vmem>>, vector<8x384xf32>
    tpu.vector_store %arg5[%c40_738, %c0_739], %608 {strides = array<i32>} : memref<80x384xf32, #tpu.memory_space<vmem>>, vector<8x384xf32>,
    %c367_i32_740 = arith.constant 367 : i32
    %610 = tpu.dynamic_rotate %598 by %c367_i32_740 dim 1 : vector<8x384xf32>, i32 -> vector<8x384xf32>
    %c48_741 = arith.constant 48 : index
    %c0_742 = arith.constant 0 : index
    %611 = vector.load %arg5[%c48_741, %c0_742] : memref<80x384xf32, #tpu.memory_space<vmem>>, vector<8x384xf32>
    tpu.vector_store %arg5[%c48_741, %c0_742], %610 {strides = array<i32>} : memref<80x384xf32, #tpu.memory_space<vmem>>, vector<8x384xf32>,
    %c366_i32_743 = arith.constant 366 : i32
    %612 = tpu.dynamic_rotate %598 by %c366_i32_743 dim 1 : vector<8x384xf32>, i32 -> vector<8x384xf32>
    %c56_744 = arith.constant 56 : index
    %c0_745 = arith.constant 0 : index
    %613 = vector.load %arg5[%c56_744, %c0_745] : memref<80x384xf32, #tpu.memory_space<vmem>>, vector<8x384xf32>
    tpu.vector_store %arg5[%c56_744, %c0_745], %612 {strides = array<i32>} : memref<80x384xf32, #tpu.memory_space<vmem>>, vector<8x384xf32>,
    %c365_i32_746 = arith.constant 365 : i32
    %614 = tpu.dynamic_rotate %598 by %c365_i32_746 dim 1 : vector<8x384xf32>, i32 -> vector<8x384xf32>
    %c64_747 = arith.constant 64 : index
    %c0_748 = arith.constant 0 : index
    %615 = vector.load %arg5[%c64_747, %c0_748] : memref<80x384xf32, #tpu.memory_space<vmem>>, vector<8x384xf32>
    tpu.vector_store %arg5[%c64_747, %c0_748], %614 {strides = array<i32>} : memref<80x384xf32, #tpu.memory_space<vmem>>, vector<8x384xf32>,
    %c0_749 = arith.constant 0 : index
    %c0_750 = arith.constant 0 : index
    %616 = vector.load %arg5[%c0_749, %c0_750] : memref<80x384xf32, #tpu.memory_space<vmem>>, vector<80x384xf32>
    %cst_751 = arith.constant dense<0.000000e+00> : vector<8x384xf32>
    %617 = tpu.matmul %0, %616, %cst_751 {dimension_numbers = #tpu.dot_dimension_numbers<[1], [0], [0], [1], [0, 0, 1, 1], [], []>} : vector<8x80xf32>, vector<80x384xf32>, vector<8x384xf32> -> vector<8x384xf32>
    %618 = arith.mulf %617, %1 : vector<8x384xf32>
    %cst_752 = arith.constant 6.250000e-02 : f32
    %619 = vector.broadcast %cst_752 : f32 to vector<8x384xf32>
    %620 = arith.mulf %619, %618 : vector<8x384xf32>
    %621 = arith.addf %598, %620 : vector<8x384xf32>
    %c19_i32_753 = arith.constant 19 : i32
    %622 = tpu.dynamic_rotate %621 by %c19_i32_753 dim 1 : vector<8x384xf32>, i32 -> vector<8x384xf32>
    %c0_754 = arith.constant 0 : index
    %c0_755 = arith.constant 0 : index
    %623 = vector.load %arg5[%c0_754, %c0_755] : memref<80x384xf32, #tpu.memory_space<vmem>>, vector<8x384xf32>
    tpu.vector_store %arg5[%c0_754, %c0_755], %622 {strides = array<i32>} : memref<80x384xf32, #tpu.memory_space<vmem>>, vector<8x384xf32>,
    %c18_i32_756 = arith.constant 18 : i32
    %624 = tpu.dynamic_rotate %621 by %c18_i32_756 dim 1 : vector<8x384xf32>, i32 -> vector<8x384xf32>
    %c8_757 = arith.constant 8 : index
    %c0_758 = arith.constant 0 : index
    %625 = vector.load %arg5[%c8_757, %c0_758] : memref<80x384xf32, #tpu.memory_space<vmem>>, vector<8x384xf32>
    tpu.vector_store %arg5[%c8_757, %c0_758], %624 {strides = array<i32>} : memref<80x384xf32, #tpu.memory_space<vmem>>, vector<8x384xf32>,
    %c17_i32_759 = arith.constant 17 : i32
    %626 = tpu.dynamic_rotate %621 by %c17_i32_759 dim 1 : vector<8x384xf32>, i32 -> vector<8x384xf32>
    %c16_760 = arith.constant 16 : index
    %c0_761 = arith.constant 0 : index
    %627 = vector.load %arg5[%c16_760, %c0_761] : memref<80x384xf32, #tpu.memory_space<vmem>>, vector<8x384xf32>
    tpu.vector_store %arg5[%c16_760, %c0_761], %626 {strides = array<i32>} : memref<80x384xf32, #tpu.memory_space<vmem>>, vector<8x384xf32>,
    %c1_i32_762 = arith.constant 1 : i32
    %628 = tpu.dynamic_rotate %621 by %c1_i32_762 dim 1 : vector<8x384xf32>, i32 -> vector<8x384xf32>
    %c24_763 = arith.constant 24 : index
    %c0_764 = arith.constant 0 : index
    %629 = vector.load %arg5[%c24_763, %c0_764] : memref<80x384xf32, #tpu.memory_space<vmem>>, vector<8x384xf32>
    tpu.vector_store %arg5[%c24_763, %c0_764], %628 {strides = array<i32>} : memref<80x384xf32, #tpu.memory_space<vmem>>, vector<8x384xf32>,
    %c32_765 = arith.constant 32 : index
    %c0_766 = arith.constant 0 : index
    %630 = vector.load %arg5[%c32_765, %c0_766] : memref<80x384xf32, #tpu.memory_space<vmem>>, vector<8x384xf32>
    tpu.vector_store %arg5[%c32_765, %c0_766], %621 {strides = array<i32>} : memref<80x384xf32, #tpu.memory_space<vmem>>, vector<8x384xf32>,
    %c383_i32_767 = arith.constant 383 : i32
    %631 = tpu.dynamic_rotate %621 by %c383_i32_767 dim 1 : vector<8x384xf32>, i32 -> vector<8x384xf32>
    %c40_768 = arith.constant 40 : index
    %c0_769 = arith.constant 0 : index
    %632 = vector.load %arg5[%c40_768, %c0_769] : memref<80x384xf32, #tpu.memory_space<vmem>>, vector<8x384xf32>
    tpu.vector_store %arg5[%c40_768, %c0_769], %631 {strides = array<i32>} : memref<80x384xf32, #tpu.memory_space<vmem>>, vector<8x384xf32>,
    %c367_i32_770 = arith.constant 367 : i32
    %633 = tpu.dynamic_rotate %621 by %c367_i32_770 dim 1 : vector<8x384xf32>, i32 -> vector<8x384xf32>
    %c48_771 = arith.constant 48 : index
    %c0_772 = arith.constant 0 : index
    %634 = vector.load %arg5[%c48_771, %c0_772] : memref<80x384xf32, #tpu.memory_space<vmem>>, vector<8x384xf32>
    tpu.vector_store %arg5[%c48_771, %c0_772], %633 {strides = array<i32>} : memref<80x384xf32, #tpu.memory_space<vmem>>, vector<8x384xf32>,
    %c366_i32_773 = arith.constant 366 : i32
    %635 = tpu.dynamic_rotate %621 by %c366_i32_773 dim 1 : vector<8x384xf32>, i32 -> vector<8x384xf32>
    %c56_774 = arith.constant 56 : index
    %c0_775 = arith.constant 0 : index
    %636 = vector.load %arg5[%c56_774, %c0_775] : memref<80x384xf32, #tpu.memory_space<vmem>>, vector<8x384xf32>
    tpu.vector_store %arg5[%c56_774, %c0_775], %635 {strides = array<i32>} : memref<80x384xf32, #tpu.memory_space<vmem>>, vector<8x384xf32>,
    %c365_i32_776 = arith.constant 365 : i32
    %637 = tpu.dynamic_rotate %621 by %c365_i32_776 dim 1 : vector<8x384xf32>, i32 -> vector<8x384xf32>
    %c64_777 = arith.constant 64 : index
    %c0_778 = arith.constant 0 : index
    %638 = vector.load %arg5[%c64_777, %c0_778] : memref<80x384xf32, #tpu.memory_space<vmem>>, vector<8x384xf32>
    tpu.vector_store %arg5[%c64_777, %c0_778], %637 {strides = array<i32>} : memref<80x384xf32, #tpu.memory_space<vmem>>, vector<8x384xf32>,
    %c0_779 = arith.constant 0 : index
    %c0_780 = arith.constant 0 : index
    %639 = vector.load %arg5[%c0_779, %c0_780] : memref<80x384xf32, #tpu.memory_space<vmem>>, vector<80x384xf32>
    %cst_781 = arith.constant dense<0.000000e+00> : vector<8x384xf32>
    %640 = tpu.matmul %0, %639, %cst_781 {dimension_numbers = #tpu.dot_dimension_numbers<[1], [0], [0], [1], [0, 0, 1, 1], [], []>} : vector<8x80xf32>, vector<80x384xf32>, vector<8x384xf32> -> vector<8x384xf32>
    %641 = arith.mulf %640, %1 : vector<8x384xf32>
    %cst_782 = arith.constant 6.250000e-02 : f32
    %642 = vector.broadcast %cst_782 : f32 to vector<8x384xf32>
    %643 = arith.mulf %642, %641 : vector<8x384xf32>
    %644 = arith.addf %598, %643 : vector<8x384xf32>
    %c19_i32_783 = arith.constant 19 : i32
    %645 = tpu.dynamic_rotate %644 by %c19_i32_783 dim 1 : vector<8x384xf32>, i32 -> vector<8x384xf32>
    %c0_784 = arith.constant 0 : index
    %c0_785 = arith.constant 0 : index
    %646 = vector.load %arg5[%c0_784, %c0_785] : memref<80x384xf32, #tpu.memory_space<vmem>>, vector<8x384xf32>
    tpu.vector_store %arg5[%c0_784, %c0_785], %645 {strides = array<i32>} : memref<80x384xf32, #tpu.memory_space<vmem>>, vector<8x384xf32>,
    %c18_i32_786 = arith.constant 18 : i32
    %647 = tpu.dynamic_rotate %644 by %c18_i32_786 dim 1 : vector<8x384xf32>, i32 -> vector<8x384xf32>
    %c8_787 = arith.constant 8 : index
    %c0_788 = arith.constant 0 : index
    %648 = vector.load %arg5[%c8_787, %c0_788] : memref<80x384xf32, #tpu.memory_space<vmem>>, vector<8x384xf32>
    tpu.vector_store %arg5[%c8_787, %c0_788], %647 {strides = array<i32>} : memref<80x384xf32, #tpu.memory_space<vmem>>, vector<8x384xf32>,
    %c17_i32_789 = arith.constant 17 : i32
    %649 = tpu.dynamic_rotate %644 by %c17_i32_789 dim 1 : vector<8x384xf32>, i32 -> vector<8x384xf32>
    %c16_790 = arith.constant 16 : index
    %c0_791 = arith.constant 0 : index
    %650 = vector.load %arg5[%c16_790, %c0_791] : memref<80x384xf32, #tpu.memory_space<vmem>>, vector<8x384xf32>
    tpu.vector_store %arg5[%c16_790, %c0_791], %649 {strides = array<i32>} : memref<80x384xf32, #tpu.memory_space<vmem>>, vector<8x384xf32>,
    %c1_i32_792 = arith.constant 1 : i32
    %651 = tpu.dynamic_rotate %644 by %c1_i32_792 dim 1 : vector<8x384xf32>, i32 -> vector<8x384xf32>
    %c24_793 = arith.constant 24 : index
    %c0_794 = arith.constant 0 : index
    %652 = vector.load %arg5[%c24_793, %c0_794] : memref<80x384xf32, #tpu.memory_space<vmem>>, vector<8x384xf32>
    tpu.vector_store %arg5[%c24_793, %c0_794], %651 {strides = array<i32>} : memref<80x384xf32, #tpu.memory_space<vmem>>, vector<8x384xf32>,
    %c32_795 = arith.constant 32 : index
    %c0_796 = arith.constant 0 : index
    %653 = vector.load %arg5[%c32_795, %c0_796] : memref<80x384xf32, #tpu.memory_space<vmem>>, vector<8x384xf32>
    tpu.vector_store %arg5[%c32_795, %c0_796], %644 {strides = array<i32>} : memref<80x384xf32, #tpu.memory_space<vmem>>, vector<8x384xf32>,
    %c383_i32_797 = arith.constant 383 : i32
    %654 = tpu.dynamic_rotate %644 by %c383_i32_797 dim 1 : vector<8x384xf32>, i32 -> vector<8x384xf32>
    %c40_798 = arith.constant 40 : index
    %c0_799 = arith.constant 0 : index
    %655 = vector.load %arg5[%c40_798, %c0_799] : memref<80x384xf32, #tpu.memory_space<vmem>>, vector<8x384xf32>
    tpu.vector_store %arg5[%c40_798, %c0_799], %654 {strides = array<i32>} : memref<80x384xf32, #tpu.memory_space<vmem>>, vector<8x384xf32>,
    %c367_i32_800 = arith.constant 367 : i32
    %656 = tpu.dynamic_rotate %644 by %c367_i32_800 dim 1 : vector<8x384xf32>, i32 -> vector<8x384xf32>
    %c48_801 = arith.constant 48 : index
    %c0_802 = arith.constant 0 : index
    %657 = vector.load %arg5[%c48_801, %c0_802] : memref<80x384xf32, #tpu.memory_space<vmem>>, vector<8x384xf32>
    tpu.vector_store %arg5[%c48_801, %c0_802], %656 {strides = array<i32>} : memref<80x384xf32, #tpu.memory_space<vmem>>, vector<8x384xf32>,
    %c366_i32_803 = arith.constant 366 : i32
    %658 = tpu.dynamic_rotate %644 by %c366_i32_803 dim 1 : vector<8x384xf32>, i32 -> vector<8x384xf32>
    %c56_804 = arith.constant 56 : index
    %c0_805 = arith.constant 0 : index
    %659 = vector.load %arg5[%c56_804, %c0_805] : memref<80x384xf32, #tpu.memory_space<vmem>>, vector<8x384xf32>
    tpu.vector_store %arg5[%c56_804, %c0_805], %658 {strides = array<i32>} : memref<80x384xf32, #tpu.memory_space<vmem>>, vector<8x384xf32>,
    %c365_i32_806 = arith.constant 365 : i32
    %660 = tpu.dynamic_rotate %644 by %c365_i32_806 dim 1 : vector<8x384xf32>, i32 -> vector<8x384xf32>
    %c64_807 = arith.constant 64 : index
    %c0_808 = arith.constant 0 : index
    %661 = vector.load %arg5[%c64_807, %c0_808] : memref<80x384xf32, #tpu.memory_space<vmem>>, vector<8x384xf32>
    tpu.vector_store %arg5[%c64_807, %c0_808], %660 {strides = array<i32>} : memref<80x384xf32, #tpu.memory_space<vmem>>, vector<8x384xf32>,
    %c0_809 = arith.constant 0 : index
    %c0_810 = arith.constant 0 : index
    %662 = vector.load %arg5[%c0_809, %c0_810] : memref<80x384xf32, #tpu.memory_space<vmem>>, vector<80x384xf32>
    %cst_811 = arith.constant dense<0.000000e+00> : vector<8x384xf32>
    %663 = tpu.matmul %0, %662, %cst_811 {dimension_numbers = #tpu.dot_dimension_numbers<[1], [0], [0], [1], [0, 0, 1, 1], [], []>} : vector<8x80xf32>, vector<80x384xf32>, vector<8x384xf32> -> vector<8x384xf32>
    %664 = arith.mulf %663, %1 : vector<8x384xf32>
    %cst_812 = arith.constant 1.250000e-01 : f32
    %665 = vector.broadcast %cst_812 : f32 to vector<8x384xf32>
    %666 = arith.mulf %665, %664 : vector<8x384xf32>
    %667 = arith.addf %598, %666 : vector<8x384xf32>
    %c19_i32_813 = arith.constant 19 : i32
    %668 = tpu.dynamic_rotate %667 by %c19_i32_813 dim 1 : vector<8x384xf32>, i32 -> vector<8x384xf32>
    %c0_814 = arith.constant 0 : index
    %c0_815 = arith.constant 0 : index
    %669 = vector.load %arg5[%c0_814, %c0_815] : memref<80x384xf32, #tpu.memory_space<vmem>>, vector<8x384xf32>
    tpu.vector_store %arg5[%c0_814, %c0_815], %668 {strides = array<i32>} : memref<80x384xf32, #tpu.memory_space<vmem>>, vector<8x384xf32>,
    %c18_i32_816 = arith.constant 18 : i32
    %670 = tpu.dynamic_rotate %667 by %c18_i32_816 dim 1 : vector<8x384xf32>, i32 -> vector<8x384xf32>
    %c8_817 = arith.constant 8 : index
    %c0_818 = arith.constant 0 : index
    %671 = vector.load %arg5[%c8_817, %c0_818] : memref<80x384xf32, #tpu.memory_space<vmem>>, vector<8x384xf32>
    tpu.vector_store %arg5[%c8_817, %c0_818], %670 {strides = array<i32>} : memref<80x384xf32, #tpu.memory_space<vmem>>, vector<8x384xf32>,
    %c17_i32_819 = arith.constant 17 : i32
    %672 = tpu.dynamic_rotate %667 by %c17_i32_819 dim 1 : vector<8x384xf32>, i32 -> vector<8x384xf32>
    %c16_820 = arith.constant 16 : index
    %c0_821 = arith.constant 0 : index
    %673 = vector.load %arg5[%c16_820, %c0_821] : memref<80x384xf32, #tpu.memory_space<vmem>>, vector<8x384xf32>
    tpu.vector_store %arg5[%c16_820, %c0_821], %672 {strides = array<i32>} : memref<80x384xf32, #tpu.memory_space<vmem>>, vector<8x384xf32>,
    %c1_i32_822 = arith.constant 1 : i32
    %674 = tpu.dynamic_rotate %667 by %c1_i32_822 dim 1 : vector<8x384xf32>, i32 -> vector<8x384xf32>
    %c24_823 = arith.constant 24 : index
    %c0_824 = arith.constant 0 : index
    %675 = vector.load %arg5[%c24_823, %c0_824] : memref<80x384xf32, #tpu.memory_space<vmem>>, vector<8x384xf32>
    tpu.vector_store %arg5[%c24_823, %c0_824], %674 {strides = array<i32>} : memref<80x384xf32, #tpu.memory_space<vmem>>, vector<8x384xf32>,
    %c32_825 = arith.constant 32 : index
    %c0_826 = arith.constant 0 : index
    %676 = vector.load %arg5[%c32_825, %c0_826] : memref<80x384xf32, #tpu.memory_space<vmem>>, vector<8x384xf32>
    tpu.vector_store %arg5[%c32_825, %c0_826], %667 {strides = array<i32>} : memref<80x384xf32, #tpu.memory_space<vmem>>, vector<8x384xf32>,
    %c383_i32_827 = arith.constant 383 : i32
    %677 = tpu.dynamic_rotate %667 by %c383_i32_827 dim 1 : vector<8x384xf32>, i32 -> vector<8x384xf32>
    %c40_828 = arith.constant 40 : index
    %c0_829 = arith.constant 0 : index
    %678 = vector.load %arg5[%c40_828, %c0_829] : memref<80x384xf32, #tpu.memory_space<vmem>>, vector<8x384xf32>
    tpu.vector_store %arg5[%c40_828, %c0_829], %677 {strides = array<i32>} : memref<80x384xf32, #tpu.memory_space<vmem>>, vector<8x384xf32>,
    %c367_i32_830 = arith.constant 367 : i32
    %679 = tpu.dynamic_rotate %667 by %c367_i32_830 dim 1 : vector<8x384xf32>, i32 -> vector<8x384xf32>
    %c48_831 = arith.constant 48 : index
    %c0_832 = arith.constant 0 : index
    %680 = vector.load %arg5[%c48_831, %c0_832] : memref<80x384xf32, #tpu.memory_space<vmem>>, vector<8x384xf32>
    tpu.vector_store %arg5[%c48_831, %c0_832], %679 {strides = array<i32>} : memref<80x384xf32, #tpu.memory_space<vmem>>, vector<8x384xf32>,
    %c366_i32_833 = arith.constant 366 : i32
    %681 = tpu.dynamic_rotate %667 by %c366_i32_833 dim 1 : vector<8x384xf32>, i32 -> vector<8x384xf32>
    %c56_834 = arith.constant 56 : index
    %c0_835 = arith.constant 0 : index
    %682 = vector.load %arg5[%c56_834, %c0_835] : memref<80x384xf32, #tpu.memory_space<vmem>>, vector<8x384xf32>
    tpu.vector_store %arg5[%c56_834, %c0_835], %681 {strides = array<i32>} : memref<80x384xf32, #tpu.memory_space<vmem>>, vector<8x384xf32>,
    %c365_i32_836 = arith.constant 365 : i32
    %683 = tpu.dynamic_rotate %667 by %c365_i32_836 dim 1 : vector<8x384xf32>, i32 -> vector<8x384xf32>
    %c64_837 = arith.constant 64 : index
    %c0_838 = arith.constant 0 : index
    %684 = vector.load %arg5[%c64_837, %c0_838] : memref<80x384xf32, #tpu.memory_space<vmem>>, vector<8x384xf32>
    tpu.vector_store %arg5[%c64_837, %c0_838], %683 {strides = array<i32>} : memref<80x384xf32, #tpu.memory_space<vmem>>, vector<8x384xf32>,
    %c0_839 = arith.constant 0 : index
    %c0_840 = arith.constant 0 : index
    %685 = vector.load %arg5[%c0_839, %c0_840] : memref<80x384xf32, #tpu.memory_space<vmem>>, vector<80x384xf32>
    %cst_841 = arith.constant dense<0.000000e+00> : vector<8x384xf32>
    %686 = tpu.matmul %0, %685, %cst_841 {dimension_numbers = #tpu.dot_dimension_numbers<[1], [0], [0], [1], [0, 0, 1, 1], [], []>} : vector<8x80xf32>, vector<80x384xf32>, vector<8x384xf32> -> vector<8x384xf32>
    %687 = arith.mulf %686, %1 : vector<8x384xf32>
    %cst_842 = arith.constant 2.000000e+00 : f32
    %688 = vector.broadcast %cst_842 : f32 to vector<8x384xf32>
    %689 = arith.mulf %688, %641 : vector<8x384xf32>
    %690 = arith.addf %618, %689 : vector<8x384xf32>
    %cst_843 = arith.constant 2.000000e+00 : f32
    %691 = vector.broadcast %cst_843 : f32 to vector<8x384xf32>
    %692 = arith.mulf %691, %664 : vector<8x384xf32>
    %693 = arith.addf %690, %692 : vector<8x384xf32>
    %694 = arith.addf %693, %687 : vector<8x384xf32>
    %cst_844 = arith.constant 0.020833334 : f32
    %695 = vector.broadcast %cst_844 : f32 to vector<8x384xf32>
    %696 = arith.mulf %695, %694 : vector<8x384xf32>
    %697 = arith.addf %598, %696 : vector<8x384xf32>
    %c7_i32 = arith.constant 7 : i32
    %c19_i32_845 = arith.constant 19 : i32
    %698 = tpu.dynamic_rotate %697 by %c19_i32_845 dim 1 : vector<8x384xf32>, i32 -> vector<8x384xf32>
    %c0_846 = arith.constant 0 : index
    %c0_847 = arith.constant 0 : index
    %699 = vector.load %arg5[%c0_846, %c0_847] : memref<80x384xf32, #tpu.memory_space<vmem>>, vector<8x384xf32>
    tpu.vector_store %arg5[%c0_846, %c0_847], %698 {strides = array<i32>} : memref<80x384xf32, #tpu.memory_space<vmem>>, vector<8x384xf32>,
    %c18_i32_848 = arith.constant 18 : i32
    %700 = tpu.dynamic_rotate %697 by %c18_i32_848 dim 1 : vector<8x384xf32>, i32 -> vector<8x384xf32>
    %c8_849 = arith.constant 8 : index
    %c0_850 = arith.constant 0 : index
    %701 = vector.load %arg5[%c8_849, %c0_850] : memref<80x384xf32, #tpu.memory_space<vmem>>, vector<8x384xf32>
    tpu.vector_store %arg5[%c8_849, %c0_850], %700 {strides = array<i32>} : memref<80x384xf32, #tpu.memory_space<vmem>>, vector<8x384xf32>,
    %c17_i32_851 = arith.constant 17 : i32
    %702 = tpu.dynamic_rotate %697 by %c17_i32_851 dim 1 : vector<8x384xf32>, i32 -> vector<8x384xf32>
    %c16_852 = arith.constant 16 : index
    %c0_853 = arith.constant 0 : index
    %703 = vector.load %arg5[%c16_852, %c0_853] : memref<80x384xf32, #tpu.memory_space<vmem>>, vector<8x384xf32>
    tpu.vector_store %arg5[%c16_852, %c0_853], %702 {strides = array<i32>} : memref<80x384xf32, #tpu.memory_space<vmem>>, vector<8x384xf32>,
    %c1_i32_854 = arith.constant 1 : i32
    %704 = tpu.dynamic_rotate %697 by %c1_i32_854 dim 1 : vector<8x384xf32>, i32 -> vector<8x384xf32>
    %c24_855 = arith.constant 24 : index
    %c0_856 = arith.constant 0 : index
    %705 = vector.load %arg5[%c24_855, %c0_856] : memref<80x384xf32, #tpu.memory_space<vmem>>, vector<8x384xf32>
    tpu.vector_store %arg5[%c24_855, %c0_856], %704 {strides = array<i32>} : memref<80x384xf32, #tpu.memory_space<vmem>>, vector<8x384xf32>,
    %c32_857 = arith.constant 32 : index
    %c0_858 = arith.constant 0 : index
    %706 = vector.load %arg5[%c32_857, %c0_858] : memref<80x384xf32, #tpu.memory_space<vmem>>, vector<8x384xf32>
    tpu.vector_store %arg5[%c32_857, %c0_858], %697 {strides = array<i32>} : memref<80x384xf32, #tpu.memory_space<vmem>>, vector<8x384xf32>,
    %c383_i32_859 = arith.constant 383 : i32
    %707 = tpu.dynamic_rotate %697 by %c383_i32_859 dim 1 : vector<8x384xf32>, i32 -> vector<8x384xf32>
    %c40_860 = arith.constant 40 : index
    %c0_861 = arith.constant 0 : index
    %708 = vector.load %arg5[%c40_860, %c0_861] : memref<80x384xf32, #tpu.memory_space<vmem>>, vector<8x384xf32>
    tpu.vector_store %arg5[%c40_860, %c0_861], %707 {strides = array<i32>} : memref<80x384xf32, #tpu.memory_space<vmem>>, vector<8x384xf32>,
    %c367_i32_862 = arith.constant 367 : i32
    %709 = tpu.dynamic_rotate %697 by %c367_i32_862 dim 1 : vector<8x384xf32>, i32 -> vector<8x384xf32>
    %c48_863 = arith.constant 48 : index
    %c0_864 = arith.constant 0 : index
    %710 = vector.load %arg5[%c48_863, %c0_864] : memref<80x384xf32, #tpu.memory_space<vmem>>, vector<8x384xf32>
    tpu.vector_store %arg5[%c48_863, %c0_864], %709 {strides = array<i32>} : memref<80x384xf32, #tpu.memory_space<vmem>>, vector<8x384xf32>,
    %c366_i32_865 = arith.constant 366 : i32
    %711 = tpu.dynamic_rotate %697 by %c366_i32_865 dim 1 : vector<8x384xf32>, i32 -> vector<8x384xf32>
    %c56_866 = arith.constant 56 : index
    %c0_867 = arith.constant 0 : index
    %712 = vector.load %arg5[%c56_866, %c0_867] : memref<80x384xf32, #tpu.memory_space<vmem>>, vector<8x384xf32>
    tpu.vector_store %arg5[%c56_866, %c0_867], %711 {strides = array<i32>} : memref<80x384xf32, #tpu.memory_space<vmem>>, vector<8x384xf32>,
    %c365_i32_868 = arith.constant 365 : i32
    %713 = tpu.dynamic_rotate %697 by %c365_i32_868 dim 1 : vector<8x384xf32>, i32 -> vector<8x384xf32>
    %c64_869 = arith.constant 64 : index
    %c0_870 = arith.constant 0 : index
    %714 = vector.load %arg5[%c64_869, %c0_870] : memref<80x384xf32, #tpu.memory_space<vmem>>, vector<8x384xf32>
    tpu.vector_store %arg5[%c64_869, %c0_870], %713 {strides = array<i32>} : memref<80x384xf32, #tpu.memory_space<vmem>>, vector<8x384xf32>,
    %c0_871 = arith.constant 0 : index
    %c0_872 = arith.constant 0 : index
    %715 = vector.load %arg5[%c0_871, %c0_872] : memref<80x384xf32, #tpu.memory_space<vmem>>, vector<80x384xf32>
    %cst_873 = arith.constant dense<0.000000e+00> : vector<8x384xf32>
    %716 = tpu.matmul %0, %715, %cst_873 {dimension_numbers = #tpu.dot_dimension_numbers<[1], [0], [0], [1], [0, 0, 1, 1], [], []>} : vector<8x80xf32>, vector<80x384xf32>, vector<8x384xf32> -> vector<8x384xf32>
    %717 = arith.mulf %716, %1 : vector<8x384xf32>
    %cst_874 = arith.constant 6.250000e-02 : f32
    %718 = vector.broadcast %cst_874 : f32 to vector<8x384xf32>
    %719 = arith.mulf %718, %717 : vector<8x384xf32>
    %720 = arith.addf %697, %719 : vector<8x384xf32>
    %c19_i32_875 = arith.constant 19 : i32
    %721 = tpu.dynamic_rotate %720 by %c19_i32_875 dim 1 : vector<8x384xf32>, i32 -> vector<8x384xf32>
    %c0_876 = arith.constant 0 : index
    %c0_877 = arith.constant 0 : index
    %722 = vector.load %arg5[%c0_876, %c0_877] : memref<80x384xf32, #tpu.memory_space<vmem>>, vector<8x384xf32>
    tpu.vector_store %arg5[%c0_876, %c0_877], %721 {strides = array<i32>} : memref<80x384xf32, #tpu.memory_space<vmem>>, vector<8x384xf32>,
    %c18_i32_878 = arith.constant 18 : i32
    %723 = tpu.dynamic_rotate %720 by %c18_i32_878 dim 1 : vector<8x384xf32>, i32 -> vector<8x384xf32>
    %c8_879 = arith.constant 8 : index
    %c0_880 = arith.constant 0 : index
    %724 = vector.load %arg5[%c8_879, %c0_880] : memref<80x384xf32, #tpu.memory_space<vmem>>, vector<8x384xf32>
    tpu.vector_store %arg5[%c8_879, %c0_880], %723 {strides = array<i32>} : memref<80x384xf32, #tpu.memory_space<vmem>>, vector<8x384xf32>,
    %c17_i32_881 = arith.constant 17 : i32
    %725 = tpu.dynamic_rotate %720 by %c17_i32_881 dim 1 : vector<8x384xf32>, i32 -> vector<8x384xf32>
    %c16_882 = arith.constant 16 : index
    %c0_883 = arith.constant 0 : index
    %726 = vector.load %arg5[%c16_882, %c0_883] : memref<80x384xf32, #tpu.memory_space<vmem>>, vector<8x384xf32>
    tpu.vector_store %arg5[%c16_882, %c0_883], %725 {strides = array<i32>} : memref<80x384xf32, #tpu.memory_space<vmem>>, vector<8x384xf32>,
    %c1_i32_884 = arith.constant 1 : i32
    %727 = tpu.dynamic_rotate %720 by %c1_i32_884 dim 1 : vector<8x384xf32>, i32 -> vector<8x384xf32>
    %c24_885 = arith.constant 24 : index
    %c0_886 = arith.constant 0 : index
    %728 = vector.load %arg5[%c24_885, %c0_886] : memref<80x384xf32, #tpu.memory_space<vmem>>, vector<8x384xf32>
    tpu.vector_store %arg5[%c24_885, %c0_886], %727 {strides = array<i32>} : memref<80x384xf32, #tpu.memory_space<vmem>>, vector<8x384xf32>,
    %c32_887 = arith.constant 32 : index
    %c0_888 = arith.constant 0 : index
    %729 = vector.load %arg5[%c32_887, %c0_888] : memref<80x384xf32, #tpu.memory_space<vmem>>, vector<8x384xf32>
    tpu.vector_store %arg5[%c32_887, %c0_888], %720 {strides = array<i32>} : memref<80x384xf32, #tpu.memory_space<vmem>>, vector<8x384xf32>,
    %c383_i32_889 = arith.constant 383 : i32
    %730 = tpu.dynamic_rotate %720 by %c383_i32_889 dim 1 : vector<8x384xf32>, i32 -> vector<8x384xf32>
    %c40_890 = arith.constant 40 : index
    %c0_891 = arith.constant 0 : index
    %731 = vector.load %arg5[%c40_890, %c0_891] : memref<80x384xf32, #tpu.memory_space<vmem>>, vector<8x384xf32>
    tpu.vector_store %arg5[%c40_890, %c0_891], %730 {strides = array<i32>} : memref<80x384xf32, #tpu.memory_space<vmem>>, vector<8x384xf32>,
    %c367_i32_892 = arith.constant 367 : i32
    %732 = tpu.dynamic_rotate %720 by %c367_i32_892 dim 1 : vector<8x384xf32>, i32 -> vector<8x384xf32>
    %c48_893 = arith.constant 48 : index
    %c0_894 = arith.constant 0 : index
    %733 = vector.load %arg5[%c48_893, %c0_894] : memref<80x384xf32, #tpu.memory_space<vmem>>, vector<8x384xf32>
    tpu.vector_store %arg5[%c48_893, %c0_894], %732 {strides = array<i32>} : memref<80x384xf32, #tpu.memory_space<vmem>>, vector<8x384xf32>,
    %c366_i32_895 = arith.constant 366 : i32
    %734 = tpu.dynamic_rotate %720 by %c366_i32_895 dim 1 : vector<8x384xf32>, i32 -> vector<8x384xf32>
    %c56_896 = arith.constant 56 : index
    %c0_897 = arith.constant 0 : index
    %735 = vector.load %arg5[%c56_896, %c0_897] : memref<80x384xf32, #tpu.memory_space<vmem>>, vector<8x384xf32>
    tpu.vector_store %arg5[%c56_896, %c0_897], %734 {strides = array<i32>} : memref<80x384xf32, #tpu.memory_space<vmem>>, vector<8x384xf32>,
    %c365_i32_898 = arith.constant 365 : i32
    %736 = tpu.dynamic_rotate %720 by %c365_i32_898 dim 1 : vector<8x384xf32>, i32 -> vector<8x384xf32>
    %c64_899 = arith.constant 64 : index
    %c0_900 = arith.constant 0 : index
    %737 = vector.load %arg5[%c64_899, %c0_900] : memref<80x384xf32, #tpu.memory_space<vmem>>, vector<8x384xf32>
    tpu.vector_store %arg5[%c64_899, %c0_900], %736 {strides = array<i32>} : memref<80x384xf32, #tpu.memory_space<vmem>>, vector<8x384xf32>,
    %c0_901 = arith.constant 0 : index
    %c0_902 = arith.constant 0 : index
    %738 = vector.load %arg5[%c0_901, %c0_902] : memref<80x384xf32, #tpu.memory_space<vmem>>, vector<80x384xf32>
    %cst_903 = arith.constant dense<0.000000e+00> : vector<8x384xf32>
    %739 = tpu.matmul %0, %738, %cst_903 {dimension_numbers = #tpu.dot_dimension_numbers<[1], [0], [0], [1], [0, 0, 1, 1], [], []>} : vector<8x80xf32>, vector<80x384xf32>, vector<8x384xf32> -> vector<8x384xf32>
    %740 = arith.mulf %739, %1 : vector<8x384xf32>
    %cst_904 = arith.constant 6.250000e-02 : f32
    %741 = vector.broadcast %cst_904 : f32 to vector<8x384xf32>
    %742 = arith.mulf %741, %740 : vector<8x384xf32>
    %743 = arith.addf %697, %742 : vector<8x384xf32>
    %c19_i32_905 = arith.constant 19 : i32
    %744 = tpu.dynamic_rotate %743 by %c19_i32_905 dim 1 : vector<8x384xf32>, i32 -> vector<8x384xf32>
    %c0_906 = arith.constant 0 : index
    %c0_907 = arith.constant 0 : index
    %745 = vector.load %arg5[%c0_906, %c0_907] : memref<80x384xf32, #tpu.memory_space<vmem>>, vector<8x384xf32>
    tpu.vector_store %arg5[%c0_906, %c0_907], %744 {strides = array<i32>} : memref<80x384xf32, #tpu.memory_space<vmem>>, vector<8x384xf32>,
    %c18_i32_908 = arith.constant 18 : i32
    %746 = tpu.dynamic_rotate %743 by %c18_i32_908 dim 1 : vector<8x384xf32>, i32 -> vector<8x384xf32>
    %c8_909 = arith.constant 8 : index
    %c0_910 = arith.constant 0 : index
    %747 = vector.load %arg5[%c8_909, %c0_910] : memref<80x384xf32, #tpu.memory_space<vmem>>, vector<8x384xf32>
    tpu.vector_store %arg5[%c8_909, %c0_910], %746 {strides = array<i32>} : memref<80x384xf32, #tpu.memory_space<vmem>>, vector<8x384xf32>,
    %c17_i32_911 = arith.constant 17 : i32
    %748 = tpu.dynamic_rotate %743 by %c17_i32_911 dim 1 : vector<8x384xf32>, i32 -> vector<8x384xf32>
    %c16_912 = arith.constant 16 : index
    %c0_913 = arith.constant 0 : index
    %749 = vector.load %arg5[%c16_912, %c0_913] : memref<80x384xf32, #tpu.memory_space<vmem>>, vector<8x384xf32>
    tpu.vector_store %arg5[%c16_912, %c0_913], %748 {strides = array<i32>} : memref<80x384xf32, #tpu.memory_space<vmem>>, vector<8x384xf32>,
    %c1_i32_914 = arith.constant 1 : i32
    %750 = tpu.dynamic_rotate %743 by %c1_i32_914 dim 1 : vector<8x384xf32>, i32 -> vector<8x384xf32>
    %c24_915 = arith.constant 24 : index
    %c0_916 = arith.constant 0 : index
    %751 = vector.load %arg5[%c24_915, %c0_916] : memref<80x384xf32, #tpu.memory_space<vmem>>, vector<8x384xf32>
    tpu.vector_store %arg5[%c24_915, %c0_916], %750 {strides = array<i32>} : memref<80x384xf32, #tpu.memory_space<vmem>>, vector<8x384xf32>,
    %c32_917 = arith.constant 32 : index
    %c0_918 = arith.constant 0 : index
    %752 = vector.load %arg5[%c32_917, %c0_918] : memref<80x384xf32, #tpu.memory_space<vmem>>, vector<8x384xf32>
    tpu.vector_store %arg5[%c32_917, %c0_918], %743 {strides = array<i32>} : memref<80x384xf32, #tpu.memory_space<vmem>>, vector<8x384xf32>,
    %c383_i32_919 = arith.constant 383 : i32
    %753 = tpu.dynamic_rotate %743 by %c383_i32_919 dim 1 : vector<8x384xf32>, i32 -> vector<8x384xf32>
    %c40_920 = arith.constant 40 : index
    %c0_921 = arith.constant 0 : index
    %754 = vector.load %arg5[%c40_920, %c0_921] : memref<80x384xf32, #tpu.memory_space<vmem>>, vector<8x384xf32>
    tpu.vector_store %arg5[%c40_920, %c0_921], %753 {strides = array<i32>} : memref<80x384xf32, #tpu.memory_space<vmem>>, vector<8x384xf32>,
    %c367_i32_922 = arith.constant 367 : i32
    %755 = tpu.dynamic_rotate %743 by %c367_i32_922 dim 1 : vector<8x384xf32>, i32 -> vector<8x384xf32>
    %c48_923 = arith.constant 48 : index
    %c0_924 = arith.constant 0 : index
    %756 = vector.load %arg5[%c48_923, %c0_924] : memref<80x384xf32, #tpu.memory_space<vmem>>, vector<8x384xf32>
    tpu.vector_store %arg5[%c48_923, %c0_924], %755 {strides = array<i32>} : memref<80x384xf32, #tpu.memory_space<vmem>>, vector<8x384xf32>,
    %c366_i32_925 = arith.constant 366 : i32
    %757 = tpu.dynamic_rotate %743 by %c366_i32_925 dim 1 : vector<8x384xf32>, i32 -> vector<8x384xf32>
    %c56_926 = arith.constant 56 : index
    %c0_927 = arith.constant 0 : index
    %758 = vector.load %arg5[%c56_926, %c0_927] : memref<80x384xf32, #tpu.memory_space<vmem>>, vector<8x384xf32>
    tpu.vector_store %arg5[%c56_926, %c0_927], %757 {strides = array<i32>} : memref<80x384xf32, #tpu.memory_space<vmem>>, vector<8x384xf32>,
    %c365_i32_928 = arith.constant 365 : i32
    %759 = tpu.dynamic_rotate %743 by %c365_i32_928 dim 1 : vector<8x384xf32>, i32 -> vector<8x384xf32>
    %c64_929 = arith.constant 64 : index
    %c0_930 = arith.constant 0 : index
    %760 = vector.load %arg5[%c64_929, %c0_930] : memref<80x384xf32, #tpu.memory_space<vmem>>, vector<8x384xf32>
    tpu.vector_store %arg5[%c64_929, %c0_930], %759 {strides = array<i32>} : memref<80x384xf32, #tpu.memory_space<vmem>>, vector<8x384xf32>,
    %c0_931 = arith.constant 0 : index
    %c0_932 = arith.constant 0 : index
    %761 = vector.load %arg5[%c0_931, %c0_932] : memref<80x384xf32, #tpu.memory_space<vmem>>, vector<80x384xf32>
    %cst_933 = arith.constant dense<0.000000e+00> : vector<8x384xf32>
    %762 = tpu.matmul %0, %761, %cst_933 {dimension_numbers = #tpu.dot_dimension_numbers<[1], [0], [0], [1], [0, 0, 1, 1], [], []>} : vector<8x80xf32>, vector<80x384xf32>, vector<8x384xf32> -> vector<8x384xf32>
    %763 = arith.mulf %762, %1 : vector<8x384xf32>
    %cst_934 = arith.constant 1.250000e-01 : f32
    %764 = vector.broadcast %cst_934 : f32 to vector<8x384xf32>
    %765 = arith.mulf %764, %763 : vector<8x384xf32>
    %766 = arith.addf %697, %765 : vector<8x384xf32>
    %c19_i32_935 = arith.constant 19 : i32
    %767 = tpu.dynamic_rotate %766 by %c19_i32_935 dim 1 : vector<8x384xf32>, i32 -> vector<8x384xf32>
    %c0_936 = arith.constant 0 : index
    %c0_937 = arith.constant 0 : index
    %768 = vector.load %arg5[%c0_936, %c0_937] : memref<80x384xf32, #tpu.memory_space<vmem>>, vector<8x384xf32>
    tpu.vector_store %arg5[%c0_936, %c0_937], %767 {strides = array<i32>} : memref<80x384xf32, #tpu.memory_space<vmem>>, vector<8x384xf32>,
    %c18_i32_938 = arith.constant 18 : i32
    %769 = tpu.dynamic_rotate %766 by %c18_i32_938 dim 1 : vector<8x384xf32>, i32 -> vector<8x384xf32>
    %c8_939 = arith.constant 8 : index
    %c0_940 = arith.constant 0 : index
    %770 = vector.load %arg5[%c8_939, %c0_940] : memref<80x384xf32, #tpu.memory_space<vmem>>, vector<8x384xf32>
    tpu.vector_store %arg5[%c8_939, %c0_940], %769 {strides = array<i32>} : memref<80x384xf32, #tpu.memory_space<vmem>>, vector<8x384xf32>,
    %c17_i32_941 = arith.constant 17 : i32
    %771 = tpu.dynamic_rotate %766 by %c17_i32_941 dim 1 : vector<8x384xf32>, i32 -> vector<8x384xf32>
    %c16_942 = arith.constant 16 : index
    %c0_943 = arith.constant 0 : index
    %772 = vector.load %arg5[%c16_942, %c0_943] : memref<80x384xf32, #tpu.memory_space<vmem>>, vector<8x384xf32>
    tpu.vector_store %arg5[%c16_942, %c0_943], %771 {strides = array<i32>} : memref<80x384xf32, #tpu.memory_space<vmem>>, vector<8x384xf32>,
    %c1_i32_944 = arith.constant 1 : i32
    %773 = tpu.dynamic_rotate %766 by %c1_i32_944 dim 1 : vector<8x384xf32>, i32 -> vector<8x384xf32>
    %c24_945 = arith.constant 24 : index
    %c0_946 = arith.constant 0 : index
    %774 = vector.load %arg5[%c24_945, %c0_946] : memref<80x384xf32, #tpu.memory_space<vmem>>, vector<8x384xf32>
    tpu.vector_store %arg5[%c24_945, %c0_946], %773 {strides = array<i32>} : memref<80x384xf32, #tpu.memory_space<vmem>>, vector<8x384xf32>,
    %c32_947 = arith.constant 32 : index
    %c0_948 = arith.constant 0 : index
    %775 = vector.load %arg5[%c32_947, %c0_948] : memref<80x384xf32, #tpu.memory_space<vmem>>, vector<8x384xf32>
    tpu.vector_store %arg5[%c32_947, %c0_948], %766 {strides = array<i32>} : memref<80x384xf32, #tpu.memory_space<vmem>>, vector<8x384xf32>,
    %c383_i32_949 = arith.constant 383 : i32
    %776 = tpu.dynamic_rotate %766 by %c383_i32_949 dim 1 : vector<8x384xf32>, i32 -> vector<8x384xf32>
    %c40_950 = arith.constant 40 : index
    %c0_951 = arith.constant 0 : index
    %777 = vector.load %arg5[%c40_950, %c0_951] : memref<80x384xf32, #tpu.memory_space<vmem>>, vector<8x384xf32>
    tpu.vector_store %arg5[%c40_950, %c0_951], %776 {strides = array<i32>} : memref<80x384xf32, #tpu.memory_space<vmem>>, vector<8x384xf32>,
    %c367_i32_952 = arith.constant 367 : i32
    %778 = tpu.dynamic_rotate %766 by %c367_i32_952 dim 1 : vector<8x384xf32>, i32 -> vector<8x384xf32>
    %c48_953 = arith.constant 48 : index
    %c0_954 = arith.constant 0 : index
    %779 = vector.load %arg5[%c48_953, %c0_954] : memref<80x384xf32, #tpu.memory_space<vmem>>, vector<8x384xf32>
    tpu.vector_store %arg5[%c48_953, %c0_954], %778 {strides = array<i32>} : memref<80x384xf32, #tpu.memory_space<vmem>>, vector<8x384xf32>,
    %c366_i32_955 = arith.constant 366 : i32
    %780 = tpu.dynamic_rotate %766 by %c366_i32_955 dim 1 : vector<8x384xf32>, i32 -> vector<8x384xf32>
    %c56_956 = arith.constant 56 : index
    %c0_957 = arith.constant 0 : index
    %781 = vector.load %arg5[%c56_956, %c0_957] : memref<80x384xf32, #tpu.memory_space<vmem>>, vector<8x384xf32>
    tpu.vector_store %arg5[%c56_956, %c0_957], %780 {strides = array<i32>} : memref<80x384xf32, #tpu.memory_space<vmem>>, vector<8x384xf32>,
    %c365_i32_958 = arith.constant 365 : i32
    %782 = tpu.dynamic_rotate %766 by %c365_i32_958 dim 1 : vector<8x384xf32>, i32 -> vector<8x384xf32>
    %c64_959 = arith.constant 64 : index
    %c0_960 = arith.constant 0 : index
    %783 = vector.load %arg5[%c64_959, %c0_960] : memref<80x384xf32, #tpu.memory_space<vmem>>, vector<8x384xf32>
    tpu.vector_store %arg5[%c64_959, %c0_960], %782 {strides = array<i32>} : memref<80x384xf32, #tpu.memory_space<vmem>>, vector<8x384xf32>,
    %c0_961 = arith.constant 0 : index
    %c0_962 = arith.constant 0 : index
    %784 = vector.load %arg5[%c0_961, %c0_962] : memref<80x384xf32, #tpu.memory_space<vmem>>, vector<80x384xf32>
    %cst_963 = arith.constant dense<0.000000e+00> : vector<8x384xf32>
    %785 = tpu.matmul %0, %784, %cst_963 {dimension_numbers = #tpu.dot_dimension_numbers<[1], [0], [0], [1], [0, 0, 1, 1], [], []>} : vector<8x80xf32>, vector<80x384xf32>, vector<8x384xf32> -> vector<8x384xf32>
    %786 = arith.mulf %785, %1 : vector<8x384xf32>
    %cst_964 = arith.constant 2.000000e+00 : f32
    %787 = vector.broadcast %cst_964 : f32 to vector<8x384xf32>
    %788 = arith.mulf %787, %740 : vector<8x384xf32>
    %789 = arith.addf %717, %788 : vector<8x384xf32>
    %cst_965 = arith.constant 2.000000e+00 : f32
    %790 = vector.broadcast %cst_965 : f32 to vector<8x384xf32>
    %791 = arith.mulf %790, %763 : vector<8x384xf32>
    %792 = arith.addf %789, %791 : vector<8x384xf32>
    %793 = arith.addf %792, %786 : vector<8x384xf32>
    %cst_966 = arith.constant 0.020833334 : f32
    %794 = vector.broadcast %cst_966 : f32 to vector<8x384xf32>
    %795 = arith.mulf %794, %793 : vector<8x384xf32>
    %796 = arith.addf %697, %795 : vector<8x384xf32>
    %c0_967 = arith.constant 0 : index
    %c0_968 = arith.constant 0 : index
    %797 = vector.load %arg4[%c0_967, %c0_968] : memref<8x384xf32, #tpu.memory_space<vmem>>, vector<8x384xf32>
    tpu.vector_store %arg4[%c0_967, %c0_968], %796 {strides = array<i32>} : memref<8x384xf32, #tpu.memory_space<vmem>>, vector<8x384xf32>,
    return
  }
  func.func @transform_0(%arg0: i32) -> (i32, i32) {
    %c0_i32 = arith.constant 0 : i32
    %c0_i32_0 = arith.constant 0 : i32
    %c0_i32_1 = arith.constant 0 : i32
    return %c0_i32, %c0_i32_0 : i32, i32
  }
  func.func @transform_1(%arg0: i32) -> (i32, i32) {
    %c0_i32 = arith.constant 0 : i32
    %c0_i32_0 = arith.constant 0 : i32
    %c0_i32_1 = arith.constant 0 : i32
    return %c0_i32, %c0_i32_0 : i32, i32
  }
  func.func @transform_2(%arg0: i32) -> (i32, i32) {
    %c0_i32 = arith.constant 0 : i32
    %c0_i32_0 = arith.constant 0 : i32
    %c0_i32_1 = arith.constant 0 : i32
    return %c0_i32, %c0_i32_0 : i32, i32
  }
  func.func @transform_3(%arg0: i32) -> (i32, i32) {
    %c0_i32 = arith.constant 0 : i32
    %c0_i32_0 = arith.constant 0 : i32
    %c0_i32_1 = arith.constant 0 : i32
    return %c0_i32, %c0_i32_0 : i32, i32
  }
}

</mosaic_0001>

<bundles_post_ra>
// kernel: tpu_custom_call.1
= control target key start
LH: loop header
LB: loop body
LE: loop exit
PB: predicated region body
PF: predicated region fallthrough
CT: control target
= control target key end

     0   :  { %8 = vsyncpa [#allocation4], 0  ;;  %s16645_s0 = inlined_call_operand.hbm [shape: f32[8,384], index: 0, kind: input, shape index: {}]   ;;  %s16646_s1 = inlined_call_operand.hbm [shape: f32[8,80], index: 1, kind: input, shape index: {}]   ;;  %s16647_s2 = inlined_call_operand.hbm [shape: f32[8,384], index: 2, kind: input, shape index: {}]   ;;  %s16648_s3 = inlined_call_operand.hbm [shape: f32[8,384], index: 3, kind: output, shape index: {}]  }
   0x1   :  { %9 = vsyncpa [#allocation7], 0 }
   0x2   :  { %10 = vsyncpa [#allocation5], 0  ;;  %s12834_s12 = smov [#allocation6]   ;;  %s12835_s14 = smov [#allocation3]  }
   0x3   :  { %s27_s13 = sshll.u32 %s12834_s12, 4  ;;  %s17_s15 = sshll.u32 %s12835_s14, 4  ;;  %s28_s13 = int_to_ptr.vmem [resolvable:$true] %s27_s13  ;;  %s18_s15 = int_to_ptr.vmem [resolvable:$true] %s17_s15 }
   0x4   :  { %s12740_s18 = scalar_lea.hbm %s16646_s1, 128 }
   0x5   :  { %p12741_p0 = scmp.ne.s32.totalorder %s16646_s1, %s12740_s18  ;;  %p12744_p1 = scmp.lt.u32.totalorder %s12740_s18, %s16646_s1 }
   0x7   :  { %p12746_p2 = pnand %p12744_p1, %p12741_p0 }
   0x9   :  { %12749 = shalt.err (!%p12746_p2)
}
   0xa   :  { %s12750_s23 = scalar_lea.vmem %s28_s13, 128  ;;  %p12755_p4 = scmp.lt.s32.totalorder %s28_s13, %s28_s13 }
   0xb   :  { %p12751_p3 = scmp.ne.s32.totalorder %s28_s13, %s12750_s23  ;;  %p12756_p5 = scmp.lt.s32.totalorder %s12750_s23, %s12750_s23 }
   0xd   :  { %p12757_p6 = por %p12756_p5, %p12755_p4 }
   0xf   :  { %p12758_p7 = pnand %p12757_p6, %p12751_p3 }
  0x11   :  { %12761 = shalt.err (!%p12758_p7)
}
  0x12   :  { %30 = dma.hbm_to_vmem [thread:$0]  %s16646_s1, 128, %s28_s13, [#allocation7]  }
  0x13   :  { %s12762_s28 = scalar_lea.hbm %s16645_s0, 384 }
  0x14   :  { %p12763_p8 = scmp.ne.s32.totalorder %s16645_s0, %s12762_s28  ;;  %p12766_p9 = scmp.lt.u32.totalorder %s12762_s28, %s16645_s0 }
  0x16   :  { %p12768_p10 = pnand %p12766_p9, %p12763_p8 }
  0x18   :  { %12771 = shalt.err (!%p12768_p10)
}
  0x19   :  { %s12772_s6 = scalar_lea.vmem %s18_s15, 384  ;;  %p12777_p12 = scmp.lt.s32.totalorder %s18_s15, %s18_s15 }
  0x1a   :  { %p12773_p11 = scmp.ne.s32.totalorder %s18_s15, %s12772_s6  ;;  %p12778_p13 = scmp.lt.s32.totalorder %s12772_s6, %s12772_s6 }
  0x1c   :  { %p12779_p0 = por %p12778_p13, %p12777_p12 }
  0x1e   :  { %p12780_p1 = pnand %p12779_p0, %p12773_p11 }
  0x20   :  { %12783 = shalt.err (!%p12780_p1)
}
  0x21   :  { %20 = dma.hbm_to_vmem [thread:$0]  %s16645_s0, 384, %s18_s15, [#allocation4]  }
  0x22   :  { %s12836_s8 = smov [#allocation8]   ;;  %s12784_s12 = scalar_lea.hbm %s16647_s2, 384 }
  0x23   :  { %s37_s9 = sshll.u32 %s12836_s8, 4  ;;  %p12785_p2 = scmp.ne.s32.totalorder %s16647_s2, %s12784_s12  ;;  %s38_s9 = int_to_ptr.vmem [resolvable:$true] %s37_s9 }
  0x24   :  { %p12788_p3 = scmp.lt.u32.totalorder %s12784_s12, %s16647_s2 }
  0x26   :  { %p12790_p4 = pnand %p12788_p3, %p12785_p2 }
  0x28   :  { %12793 = shalt.err (!%p12790_p4)
}
  0x29   :  { %s12794_s18 = scalar_lea.vmem %s38_s9, 384  ;;  %p12799_p6 = scmp.lt.s32.totalorder %s38_s9, %s38_s9 }
  0x2a   :  { %p12795_p5 = scmp.ne.s32.totalorder %s38_s9, %s12794_s18  ;;  %p12800_p7 = scmp.lt.s32.totalorder %s12794_s18, %s12794_s18 }
  0x2c   :  { %p12801_p8 = por %p12800_p7, %p12799_p6 }
  0x2e   :  { %p12802_p9 = pnand %p12801_p8, %p12795_p5 }
  0x30   :  { %12805 = shalt.err (!%p12802_p9)
}
  0x31   :  { %40 = dma.hbm_to_vmem [thread:$0]  %s16647_s2, 384, %s38_s9, [#allocation7]  }
  0x32   :  { %12828 = dma.done.wait [#allocation4], 384  }
  0x33   :  { %12829 = vsyncadd [#allocation4], 4294966912 }
  0x34   :  { %12830 = dma.done.wait [#allocation7], 512  }
  0x35   :  { %12831 = vsyncadd [#allocation7], 4294966784  ;;  %v12837_v0 = vmov 0.0|0.0   ;;  %v12907_v1 = vld [vmem:[#allocation3 + $0x10] sm:$0xff]  ;;  %v12909_v2 = vld [vmem:[#allocation3] sm:$0xff]  ;;  %s12838_s19 = smov 19   ;;  %v66_v7 = vlaneseq }
  0x36   :  { %10313 = vmatprep.subr.bf16.mxu1 %v12837_v0  ;;  %64 = vrot.lane.b32.xlu1 %v12907_v1, %s12838_s19  ;;  %v12913_v3 = vld [vmem:[#allocation3 + $0x8] sm:$0xff]  ;;  %s12839_s2 = smov 18   ;;  %s12840_s20 = smov 1   ;;  %vm12845_vm0 = vmmov 0   ;;  %v12846_v6 = vmov 0.0   ;;  %vm199_vm9 = vcmask 654336  }
  0x37   :  { %v11429_v4 = vpack.i.bf16 %v12913_v3, %v12909_v2  ;;  %s12841_s21 = smov 17   ;;  %v11449_v5 = vpack.i.bf16 %v12907_v1, %v12913_v3  ;;  %s12842_s22 = smov 127   ;;  %9577 = vmatprep.mubr.msk.f32.mxu1 %vm12845_vm0, %v12846_v6  ;;  %267 = vmatprep.mubr.f32.mxu0 %v12846_v6  ;;  %v12944_v9 = vand.u32 127, %v66_v7 }
  0x38   :  { %s12843_s23 = smov 110   ;;  %s12844_s24 = smov 111  }
  0x39   :  { %11430 = vrot.lane.b32.xlu0 %v11429_v4, %s12838_s19  ;;  %s12847_s25 = smov 109   ;;  %vm68_vm1 = vcmp.lt.s32.totalorder %v12944_v9, 19  ;;  %vm81_vm2 = vcmp.lt.s32.totalorder %v12944_v9, 18  ;;  %vm107_vm3 = vcmp.lt.s32.totalorder %v12944_v9, 1  ;;  %vm94_vm4 = vcmp.lt.s32.totalorder %v12944_v9, 17  ;;  %s12849_s26 = smov [#allocation9]  }
  0x3a   :  { %79 = vrot.lane.b32.xlu1 %v12907_v1, %s12839_s2  ;;  %vm123_vm5 = vcmp.lt.s32.totalorder %v12944_v9, 127  ;;  %vm149_vm6 = vcmp.lt.s32.totalorder %v12944_v9, 110  ;;  %vm136_vm7 = vcmp.lt.s32.totalorder %v12944_v9, 111  ;;  %vm162_vm8 = vcmp.lt.s32.totalorder %v12944_v9, 109  ;;  %s9131_s27 = sshll.u32 %s12849_s26, 4  ;;  %s9132_s27 = int_to_ptr.vmem [resolvable:$true] %s9131_s27 }
  0x3b   :  { %s12806_s28 = scalar_lea.vmem %s9132_s27, 384  ;;  %p12811_p11 = scmp.lt.s32.totalorder %s9132_s27, %s9132_s27 }
  0x3c   :  { %p12807_p10 = scmp.ne.s32.totalorder %s9132_s27, %s12806_s28  ;;  %p12812_p12 = scmp.lt.s32.totalorder %s12806_s28, %s12806_s28 }
  0x3d   :  { %11435 = vrot.lane.b32.xlu0 %v11429_v4, %s12839_s2 }
  0x3e   :  { %11445 = vrot.lane.b32.xlu1 %v11429_v4, %s12840_s20  ;;  %p12813_p13 = por %p12812_p12, %p12811_p11 }
  0x40   :  { %p12814_p0 = pnand %p12813_p13, %p12807_p10 }
  0x41   :  { %11440 = vrot.lane.b32.xlu0 %v11429_v4, %s12841_s21 }
  0x42   :  { %105 = vrot.lane.b32.xlu1 %v12907_v1, %s12840_s20 }
  0x45   :  { %92 = vrot.lane.b32.xlu0 %v12907_v1, %s12841_s21 }
  0x46   :  { %117 = vrot.lane.b32.xlu1 %v12909_v2, %s12842_s22 }
  0x49   :  { %11450 = vrot.lane.b32.xlu0 %v11449_v5, %s12842_s22 }
  0x4a   :  { %11460 = vrot.lane.b32.xlu1 %v11449_v5, %s12843_s23 }
  0x4d   :  { %11455 = vrot.lane.b32.xlu0 %v11449_v5, %s12844_s24 }
  0x4e   :  { %143 = vrot.lane.b32.xlu1 %v12909_v2, %s12843_s23 }
  0x51   :  { %130 = vrot.lane.b32.xlu0 %v12909_v2, %s12844_s24 }
  0x52   :  { %156 = vrot.lane.b32.xlu1 %v12909_v2, %s12847_s25 }
  0x55   :  { %11465 = vrot.lane.b32.xlu0 %v11449_v5, %s12847_s25 }
  0xa8   :  { %v65_v8 = vpop.permute.xlu1 %64 }
  0xab   :  { %v11431_v10 = vpop.permute.xlu0 %11430 }
  0xac   :  { %v80_v11 = vpop.permute.xlu1 %79  ;;  %v11433_v12 = vunpack.i.h.bf16 %v11431_v10  ;;  %v11432_v13 = vunpack.i.l.bf16 %v11431_v10 }
  0xae   :  { %v70_v20 = vsel %vm68_vm1, %v11432_v13, %v11433_v12  ;;  %v69_v21 = vsel %vm68_vm1, %v11433_v12, %v65_v8  ;;  %v71_v24 = vsel %vm68_vm1, %v65_v8, %v11432_v13 }
  0xaf   :  { %v11436_v14 = vpop.permute.xlu0 %11435 }
  0xb0   :  { %v11438_v15 = vunpack.i.h.bf16 %v11436_v14  ;;  %v11437_v16 = vunpack.i.l.bf16 %v11436_v14  ;;  %v11446_v17 = vpop.permute.xlu1 %11445 }
  0xb1   :  { %v11448_v18 = vunpack.i.h.bf16 %v11446_v17  ;;  %v11447_v19 = vunpack.i.l.bf16 %v11446_v17 }
  0xb2   :  { %v83_v22 = vsel %vm81_vm2, %v11437_v16, %v11438_v15  ;;  %v82_v23 = vsel %vm81_vm2, %v11438_v15, %v80_v11  ;;  %v84_v25 = vsel %vm81_vm2, %v80_v11, %v11437_v16 }
  0xb3   :  { %v11441_v26 = vpop.permute.xlu0 %11440  ;;  %v10293_v27 = vpack.c.bf16 %v83_v22, %v70_v20  ;;  %v10314_v28 = vpack.c.bf16 %v82_v23, %v69_v21  ;;  %v10295_v29 = vpack.c.bf16 %v84_v25, %v71_v24  ;;  %v109_v33 = vsel %vm107_vm3, %v11447_v19, %v11448_v18  ;;  %v13012_v23 = vld [vmem:[#allocation6] sm:$0xff]  ;;  %v13022_v24 = vld [vmem:[#allocation8 + $0x10] sm:$0xff]  ;;  %v13024_v25 = vld [vmem:[#allocation8] sm:$0xff] }
  0xb4   :  { %v11443_v30 = vunpack.i.h.bf16 %v11441_v26  ;;  %v11442_v31 = vunpack.i.l.bf16 %v11441_v26  ;;  %v106_v32 = vpop.permute.xlu1 %105  ;;  %v13026_v26 = vld [vmem:[#allocation8 + $0x8] sm:$0xff] }
  0xb5   :  { %10294 = vmatprep.subr.bf16.mxu0 %v10293_v27  ;;  %10315 = vmatpush3.bf16.msra.mxu1 %v10314_v28  ;;  %v108_v34 = vsel %vm107_vm3, %v11448_v18, %v106_v32  ;;  %v110_v35 = vsel %vm107_vm3, %v106_v32, %v11447_v19  ;;  %v12848_v19 = vmov 1.0  }
  0xb6   :  { %10296 = vmatpush1.bf16.msra.mxu0 %v10295_v29  ;;  %v96_v36 = vsel %vm94_vm4, %v11442_v31, %v11443_v30  ;;  %10316 = vmatprep.subr.bf16.mxu1 %v12837_v0 }
  0xb7   :  { %v93_v37 = vpop.permute.xlu0 %92  ;;  %v10297_v38 = vpack.c.bf16 %v109_v33, %v96_v36 }
  0xb8   :  { %v95_v39 = vsel %vm94_vm4, %v11443_v30, %v93_v37  ;;  %v97_v40 = vsel %vm94_vm4, %v93_v37, %v11442_v31  ;;  %v118_v41 = vpop.permute.xlu1 %117 }
  0xb9   :  { %10298 = vmatprep.subr.bf16.mxu0 %v10297_v38  ;;  %v10299_v42 = vpack.c.bf16 %v110_v35, %v97_v40  ;;  %v10317_v43 = vpack.c.bf16 %v108_v34, %v95_v39 }
  0xbb   :  { %v11451_v44 = vpop.permute.xlu0 %11450  ;;  %10300 = vmatpush1.bf16.msra.mxu0 %v10299_v42  ;;  %10318 = vmatpush3.bf16.msra.mxu1 %v10317_v43 }
  0xbc   :  { %v11453_v45 = vunpack.i.h.bf16 %v11451_v44  ;;  %v11452_v46 = vunpack.i.l.bf16 %v11451_v44  ;;  %v11461_v47 = vpop.permute.xlu1 %11460  ;;  %10319 = vmatprep.subr.bf16.mxu1 %v12837_v0 }
  0xbd   :  { %v11463_v48 = vunpack.i.h.bf16 %v11461_v47  ;;  %v11462_v49 = vunpack.i.l.bf16 %v11461_v47 }
  0xbe   :  { %v124_v50 = vsel %vm123_vm5, %v11452_v46, %v11453_v45  ;;  %v126_v51 = vsel %vm123_vm5, %v11453_v45, %v118_v41  ;;  %v125_v52 = vsel %vm123_vm5, %v118_v41, %v11452_v46 }
  0xbf   :  { %v11456_v53 = vpop.permute.xlu0 %11455  ;;  %v10301_v54 = vpack.c.bf16 %v124_v50, %v12913_v3  ;;  %v10320_v55 = vpack.c.bf16 %v126_v51, %v12907_v1  ;;  %v10303_v56 = vpack.c.bf16 %v125_v52, %v12909_v2  ;;  %v150_v60 = vsel %vm149_vm6, %v11462_v49, %v11463_v48 }
  0xc0   :  { %v11458_v57 = vunpack.i.h.bf16 %v11456_v53  ;;  %v11457_v58 = vunpack.i.l.bf16 %v11456_v53  ;;  %v144_v59 = vpop.permute.xlu1 %143 }
  0xc1   :  { %10302 = vmatprep.subr.bf16.mxu0 %v10301_v54  ;;  %10321 = vmatpush3.bf16.msra.mxu1 %v10320_v55  ;;  %v151_v61 = vsel %vm149_vm6, %v144_v59, %v11462_v49  ;;  %v152_v62 = vsel %vm149_vm6, %v11463_v48, %v144_v59 }
  0xc2   :  { %10304 = vmatpush1.bf16.msra.mxu0 %v10303_v56  ;;  %v137_v63 = vsel %vm136_vm7, %v11457_v58, %v11458_v57  ;;  %10322 = vmatprep.subr.bf16.mxu1 %v12837_v0 }
  0xc3   :  { %v131_v4 = vpop.permute.xlu0 %130  ;;  %v10305_v5 = vpack.c.bf16 %v150_v60, %v137_v63 }
  0xc4   :  { %v138_v7 = vsel %vm136_vm7, %v131_v4, %v11457_v58  ;;  %v139_v8 = vsel %vm136_vm7, %v11458_v57, %v131_v4  ;;  %v157_v13 = vpop.permute.xlu1 %156 }
  0xc5   :  { %10306 = vmatprep.subr.bf16.mxu0 %v10305_v5  ;;  %v10307_v10 = vpack.c.bf16 %v151_v61, %v138_v7  ;;  %v10323_v11 = vpack.c.bf16 %v152_v62, %v139_v8 }
  0xc7   :  { %v11466_v12 = vpop.permute.xlu0 %11465  ;;  %10308 = vmatpush1.bf16.msra.mxu0 %v10307_v10  ;;  %10324 = vmatpush3.bf16.msra.mxu1 %v10323_v11 }
  0xc8   :  { %v11468_v14 = vunpack.i.h.bf16 %v11466_v12  ;;  %v11467_v15 = vunpack.i.l.bf16 %v11466_v12  ;;  %10325 = vmatprep.subr.bf16.mxu1 %v12837_v0 }
  0xca   :  { %v164_v16 = vsel %vm162_vm8, %v157_v13, %v11467_v15  ;;  %v165_v17 = vsel %vm162_vm8, %v11468_v14, %v157_v13  ;;  %v163_v18 = vsel %vm162_vm8, %v11467_v15, %v11468_v14 }
  0xcb   :  { %v10309_v20 = vpack.c.bf16 %v12848_v19, %v163_v18  ;;  %v10326_v21 = vpack.c.bf16 %v12848_v19, %v165_v17  ;;  %v10311_v22 = vpack.c.bf16 %v12848_v19, %v164_v16 }
  0xcd   :  { %10310 = vmatprep.subr.bf16.mxu0 %v10309_v20  ;;  %10327 = vmatpush3.bf16.msra.mxu1 %v10326_v21 }
  0xce   :  { %10312 = vmatpush1.bf16.msra.mxu0 %v10311_v22  ;;  %10348 = vmatprep.subr.bf16.mxu1 %v12837_v0 }
  0xd0   :  { %9578 = vmatmul.mubr.msk.f32.vlgmr.msra.gmra.mrb[0].mxu1 %vm199_vm9, %v13012_v23 }
  0xd1   :  { %9141 = vmatmul.mubr.msk.f32.vlgmr.msra.gmra.mrb[0].mxu0 %vm199_vm9, %v13012_v23  ;;  %9600 = vmatprep.mubr.msk.f32.mxu1 %vm12845_vm0, %v12846_v6 }
  0xd2   :  { %546 = vmatprep.mubr.f32.mxu0 %v12846_v6 }
 0x1a3   :  { %v340_v27 = vpop.f32.mrb[0].mxu1 }
 0x1a4   :  { %v13029_v28 = vmul.f32 %v340_v27, %v13022_v24  ;;  %v269_v29 = vpop.f32.mrb[0].mxu0  ;;  %v9579_v30 = vpop.f32.mrb[1].mxu1 }
 0x1a5   :  { %v13032_v31 = vmul.f32 %v269_v29, %v13024_v25  ;;  %v271_v32 = vpop.f32.mrb[1].mxu0 }
 0x1a6   :  { %v349_v33 = vmul.f32 0.0625, %v13029_v28  ;;  %v13036_v34 = vmul.f32 %v271_v32, %v13026_v26 }
 0x1a7   :  { %v347_v35 = vmul.f32 0.0625, %v13032_v31 }
 0x1a8   :  { %v13040_v36 = vadd.f32 %v349_v33, %v12907_v1  ;;  %v348_v37 = vmul.f32 0.0625, %v13036_v34 }
 0x1a9   :  { %v13044_v38 = vadd.f32 %v347_v35, %v12909_v2 }
 0x1aa   :  { %369 = vrot.lane.b32.xlu1 %v13040_v36, %s12839_s2  ;;  %357 = vrot.lane.b32.xlu0 %v13040_v36, %s12838_s19  ;;  %v13051_v39 = vadd.f32 %v348_v37, %v12913_v3 }
 0x1ac   :  { %v11474_v40 = vpack.i.bf16 %v13051_v39, %v13044_v38  ;;  %v11499_v41 = vpack.i.bf16 %v13040_v36, %v13051_v39 }
 0x1ae   :  { %393 = vrot.lane.b32.xlu1 %v13040_v36, %s12840_s20  ;;  %381 = vrot.lane.b32.xlu0 %v13040_v36, %s12841_s21 }
 0x1b2   :  { %11475 = vrot.lane.b32.xlu1 %v11474_v40, %s12839_s2  ;;  %11470 = vrot.lane.b32.xlu0 %v11474_v40, %s12838_s19 }
 0x1b6   :  { %11485 = vrot.lane.b32.xlu1 %v11474_v40, %s12840_s20  ;;  %11480 = vrot.lane.b32.xlu0 %v11474_v40, %s12841_s21 }
 0x1ba   :  { %404 = vrot.lane.b32.xlu1 %v13044_v38, %s12842_s22  ;;  %416 = vrot.lane.b32.xlu0 %v13044_v38, %s12844_s24 }
 0x1be   :  { %11500 = vrot.lane.b32.xlu1 %v11499_v41, %s12843_s23  ;;  %11490 = vrot.lane.b32.xlu0 %v11499_v41, %s12842_s22 }
 0x1c2   :  { %428 = vrot.lane.b32.xlu1 %v13044_v38, %s12843_s23  ;;  %11495 = vrot.lane.b32.xlu0 %v11499_v41, %s12844_s24 }
 0x1c6   :  { %440 = vrot.lane.b32.xlu1 %v13044_v38, %s12847_s25  ;;  %11505 = vrot.lane.b32.xlu0 %v11499_v41, %s12847_s25 }
 0x21c   :  { %v370_v42 = vpop.permute.xlu1 %369  ;;  %v358_v43 = vpop.permute.xlu0 %357 }
 0x220   :  { %v394_v44 = vpop.permute.xlu1 %393  ;;  %v382_v45 = vpop.permute.xlu0 %381 }
 0x224   :  { %v11476_v46 = vpop.permute.xlu1 %11475  ;;  %v11471_v47 = vpop.permute.xlu0 %11470 }
 0x225   :  { %v11478_v48 = vunpack.i.h.bf16 %v11476_v46  ;;  %v11477_v49 = vunpack.i.l.bf16 %v11476_v46  ;;  %v11473_v50 = vunpack.i.h.bf16 %v11471_v47  ;;  %v11472_v51 = vunpack.i.l.bf16 %v11471_v47 }
 0x227   :  { %v371_v52 = vsel %vm81_vm2, %v11478_v48, %v370_v42  ;;  %v373_v53 = vsel %vm81_vm2, %v370_v42, %v11477_v49  ;;  %v359_v54 = vsel %vm68_vm1, %v11473_v50, %v358_v43  ;;  %v361_v55 = vsel %vm68_vm1, %v358_v43, %v11472_v51 }
 0x228   :  { %v11486_v56 = vpop.permute.xlu1 %11485  ;;  %v11481_v57 = vpop.permute.xlu0 %11480  ;;  %v360_v58 = vsel %vm68_vm1, %v11472_v51, %v11473_v50  ;;  %v372_v59 = vsel %vm81_vm2, %v11477_v49, %v11478_v48  ;;  %v10349_v60 = vpack.c.bf16 %v371_v52, %v359_v54  ;;  %v10330_v61 = vpack.c.bf16 %v373_v53, %v361_v55 }
 0x229   :  { %v11488_v62 = vunpack.i.h.bf16 %v11486_v56  ;;  %v11487_v63 = vunpack.i.l.bf16 %v11486_v56  ;;  %v11483_v4 = vunpack.i.h.bf16 %v11481_v57  ;;  %v11482_v5 = vunpack.i.l.bf16 %v11481_v57 }
 0x22a   :  { %v10328_v7 = vpack.c.bf16 %v372_v59, %v360_v58  ;;  %10350 = vmatpush3.bf16.msra.mxu1 %v10349_v60 }
 0x22b   :  { %v395_v8 = vsel %vm107_vm3, %v11488_v62, %v394_v44  ;;  %v397_v10 = vsel %vm107_vm3, %v394_v44, %v11487_v63  ;;  %v383_v11 = vsel %vm94_vm4, %v11483_v4, %v382_v45  ;;  %v385_v12 = vsel %vm94_vm4, %v382_v45, %v11482_v5  ;;  %10351 = vmatprep.subr.bf16.mxu1 %v12837_v0 }
 0x22c   :  { %10329 = vmatprep.subr.bf16.mxu0 %v10328_v7  ;;  %v405_v13 = vpop.permute.xlu1 %404  ;;  %v417_v14 = vpop.permute.xlu0 %416  ;;  %v384_v15 = vsel %vm94_vm4, %v11482_v5, %v11483_v4  ;;  %v396_v16 = vsel %vm107_vm3, %v11487_v63, %v11488_v62  ;;  %v10352_v17 = vpack.c.bf16 %v395_v8, %v383_v11  ;;  %v10334_v20 = vpack.c.bf16 %v397_v10, %v385_v12 }
 0x22d   :  { %10331 = vmatpush1.bf16.msra.mxu0 %v10330_v61  ;;  %v10332_v18 = vpack.c.bf16 %v396_v16, %v384_v15 }
 0x22e   :  { %10353 = vmatpush3.bf16.msra.mxu1 %v10352_v17 }
 0x22f   :  { %10333 = vmatprep.subr.bf16.mxu0 %v10332_v18  ;;  %10354 = vmatprep.subr.bf16.mxu1 %v12837_v0 }
 0x230   :  { %v11501_v21 = vpop.permute.xlu1 %11500  ;;  %v11491_v22 = vpop.permute.xlu0 %11490 }
 0x231   :  { %10335 = vmatpush1.bf16.msra.mxu0 %v10334_v20  ;;  %v11493_v27 = vunpack.i.h.bf16 %v11491_v22  ;;  %v11492_v29 = vunpack.i.l.bf16 %v11491_v22  ;;  %v11503_v30 = vunpack.i.h.bf16 %v11501_v21  ;;  %v11502_v32 = vunpack.i.l.bf16 %v11501_v21 }
 0x233   :  { %v412_v33 = vsel %vm123_vm5, %v11493_v27, %v405_v13  ;;  %v411_v35 = vsel %vm123_vm5, %v405_v13, %v11492_v29  ;;  %v410_v37 = vsel %vm123_vm5, %v11492_v29, %v11493_v27  ;;  %v434_v49 = vsel %vm149_vm6, %v11502_v32, %v11503_v30 }
 0x234   :  { %v429_v40 = vpop.permute.xlu1 %428  ;;  %v11496_v41 = vpop.permute.xlu0 %11495  ;;  %v10336_v42 = vpack.c.bf16 %v410_v37, %v13051_v39  ;;  %v10355_v43 = vpack.c.bf16 %v412_v33, %v13040_v36  ;;  %v10338_v44 = vpack.c.bf16 %v411_v35, %v13044_v38 }
 0x235   :  { %v11498_v45 = vunpack.i.h.bf16 %v11496_v41  ;;  %v11497_v46 = vunpack.i.l.bf16 %v11496_v41  ;;  %v435_v47 = vsel %vm149_vm6, %v429_v40, %v11502_v32  ;;  %v436_v48 = vsel %vm149_vm6, %v11503_v30, %v429_v40 }
 0x236   :  { %10337 = vmatprep.subr.bf16.mxu0 %v10336_v42  ;;  %10356 = vmatpush3.bf16.msra.mxu1 %v10355_v43 }
 0x237   :  { %v424_v39 = vsel %vm136_vm7, %v11498_v45, %v417_v14  ;;  %v423_v36 = vsel %vm136_vm7, %v417_v14, %v11497_v46  ;;  %10339 = vmatpush1.bf16.msra.mxu0 %v10338_v44  ;;  %10357 = vmatprep.subr.bf16.mxu1 %v12837_v0  ;;  %v422_v38 = vsel %vm136_vm7, %v11497_v46, %v11498_v45 }
 0x238   :  { %v11506_v50 = vpop.permute.xlu0 %11505  ;;  %v10340_v51 = vpack.c.bf16 %v434_v49, %v422_v38  ;;  %v10358_v52 = vpack.c.bf16 %v436_v48, %v424_v39  ;;  %v10342_v53 = vpack.c.bf16 %v435_v47, %v423_v36  ;;  %v441_v56 = vpop.permute.xlu1 %440 }
 0x239   :  { %v11508_v54 = vunpack.i.h.bf16 %v11506_v50  ;;  %v11507_v55 = vunpack.i.l.bf16 %v11506_v50 }
 0x23a   :  { %10341 = vmatprep.subr.bf16.mxu0 %v10340_v51  ;;  %10359 = vmatpush3.bf16.msra.mxu1 %v10358_v52 }
 0x23b   :  { %v448_v57 = vsel %vm162_vm8, %v11508_v54, %v441_v56  ;;  %v447_v58 = vsel %vm162_vm8, %v441_v56, %v11507_v55  ;;  %10343 = vmatpush1.bf16.msra.mxu0 %v10342_v53  ;;  %10360 = vmatprep.subr.bf16.mxu1 %v12837_v0  ;;  %v446_v59 = vsel %vm162_vm8, %v11507_v55, %v11508_v54 }
 0x23c   :  { %v10344_v60 = vpack.c.bf16 %v12848_v19, %v446_v59  ;;  %v10361_v61 = vpack.c.bf16 %v12848_v19, %v448_v57  ;;  %v10346_v62 = vpack.c.bf16 %v12848_v19, %v447_v58 }
 0x23e   :  { %10345 = vmatprep.subr.bf16.mxu0 %v10344_v60  ;;  %10362 = vmatpush3.bf16.msra.mxu1 %v10361_v61 }
 0x23f   :  { %10347 = vmatpush1.bf16.msra.mxu0 %v10346_v62  ;;  %10383 = vmatprep.subr.bf16.mxu1 %v12837_v0 }
 0x241   :  { %9601 = vmatmul.mubr.msk.f32.vlgmr.msra.gmra.mrb[2].mxu1 %vm199_vm9, %v13012_v23 }
 0x242   :  { %9143 = vmatmul.mubr.msk.f32.vlgmr.msra.gmra.mrb[2].mxu0 %vm199_vm9, %v13012_v23  ;;  %9623 = vmatprep.mubr.msk.f32.mxu1 %vm12845_vm0, %v12846_v6 }
 0x243   :  { %825 = vmatprep.mubr.f32.mxu0 %v12846_v6 }
 0x314   :  { %v619_v63 = vpop.f32.mrb[2].mxu1 }
 0x315   :  { %v13144_v4 = vmul.f32 %v619_v63, %v13022_v24  ;;  %v548_v5 = vpop.f32.mrb[2].mxu0  ;;  %v9602_v7 = vpop.f32.mrb[3].mxu1 }
 0x316   :  { %v13147_v8 = vmul.f32 %v548_v5, %v13024_v25  ;;  %v550_v10 = vpop.f32.mrb[3].mxu0 }
 0x317   :  { %v628_v11 = vmul.f32 0.0625, %v13144_v4  ;;  %v13151_v12 = vmul.f32 %v550_v10, %v13026_v26 }
 0x318   :  { %v626_v13 = vmul.f32 0.0625, %v13147_v8 }
 0x319   :  { %v13155_v14 = vadd.f32 %v628_v11, %v12907_v1  ;;  %v627_v15 = vmul.f32 0.0625, %v13151_v12 }
 0x31a   :  { %v13159_v16 = vadd.f32 %v626_v13, %v12909_v2 }
 0x31b   :  { %648 = vrot.lane.b32.xlu1 %v13155_v14, %s12839_s2  ;;  %636 = vrot.lane.b32.xlu0 %v13155_v14, %s12838_s19  ;;  %v13166_v17 = vadd.f32 %v627_v15, %v12913_v3 }
 0x31d   :  { %v11514_v18 = vpack.i.bf16 %v13166_v17, %v13159_v16  ;;  %v11539_v20 = vpack.i.bf16 %v13155_v14, %v13166_v17 }
 0x31f   :  { %672 = vrot.lane.b32.xlu1 %v13155_v14, %s12840_s20  ;;  %660 = vrot.lane.b32.xlu0 %v13155_v14, %s12841_s21 }
 0x323   :  { %11515 = vrot.lane.b32.xlu1 %v11514_v18, %s12839_s2  ;;  %11510 = vrot.lane.b32.xlu0 %v11514_v18, %s12838_s19 }
 0x327   :  { %11525 = vrot.lane.b32.xlu1 %v11514_v18, %s12840_s20  ;;  %11520 = vrot.lane.b32.xlu0 %v11514_v18, %s12841_s21 }
 0x32b   :  { %683 = vrot.lane.b32.xlu1 %v13159_v16, %s12842_s22  ;;  %695 = vrot.lane.b32.xlu0 %v13159_v16, %s12844_s24 }
 0x32f   :  { %11540 = vrot.lane.b32.xlu1 %v11539_v20, %s12843_s23  ;;  %11530 = vrot.lane.b32.xlu0 %v11539_v20, %s12842_s22 }
 0x333   :  { %707 = vrot.lane.b32.xlu1 %v13159_v16, %s12843_s23  ;;  %11535 = vrot.lane.b32.xlu0 %v11539_v20, %s12844_s24 }
 0x337   :  { %719 = vrot.lane.b32.xlu1 %v13159_v16, %s12847_s25  ;;  %11545 = vrot.lane.b32.xlu0 %v11539_v20, %s12847_s25 }
 0x38d   :  { %v649_v21 = vpop.permute.xlu1 %648  ;;  %v637_v22 = vpop.permute.xlu0 %636 }
 0x391   :  { %v673_v27 = vpop.permute.xlu1 %672  ;;  %v661_v29 = vpop.permute.xlu0 %660 }
 0x395   :  { %v11516_v30 = vpop.permute.xlu1 %11515  ;;  %v11511_v32 = vpop.permute.xlu0 %11510 }
 0x396   :  { %v11518_v33 = vunpack.i.h.bf16 %v11516_v30  ;;  %v11517_v35 = vunpack.i.l.bf16 %v11516_v30  ;;  %v11513_v37 = vunpack.i.h.bf16 %v11511_v32  ;;  %v11512_v40 = vunpack.i.l.bf16 %v11511_v32 }
 0x398   :  { %v650_v41 = vsel %vm81_vm2, %v11518_v33, %v649_v21  ;;  %v652_v42 = vsel %vm81_vm2, %v649_v21, %v11517_v35  ;;  %v638_v43 = vsel %vm68_vm1, %v11513_v37, %v637_v22  ;;  %v640_v44 = vsel %vm68_vm1, %v637_v22, %v11512_v40 }
 0x399   :  { %v11526_v45 = vpop.permute.xlu1 %11525  ;;  %v11521_v46 = vpop.permute.xlu0 %11520  ;;  %v639_v47 = vsel %vm68_vm1, %v11512_v40, %v11513_v37  ;;  %v651_v48 = vsel %vm81_vm2, %v11517_v35, %v11518_v33  ;;  %v10384_v49 = vpack.c.bf16 %v650_v41, %v638_v43  ;;  %v10365_v39 = vpack.c.bf16 %v652_v42, %v640_v44 }
 0x39a   :  { %v11528_v36 = vunpack.i.h.bf16 %v11526_v45  ;;  %v11527_v38 = vunpack.i.l.bf16 %v11526_v45  ;;  %v11523_v50 = vunpack.i.h.bf16 %v11521_v46  ;;  %v11522_v51 = vunpack.i.l.bf16 %v11521_v46 }
 0x39b   :  { %v10363_v52 = vpack.c.bf16 %v651_v48, %v639_v47  ;;  %10385 = vmatpush3.bf16.msra.mxu1 %v10384_v49 }
 0x39c   :  { %v674_v53 = vsel %vm107_vm3, %v11528_v36, %v673_v27  ;;  %v676_v54 = vsel %vm107_vm3, %v673_v27, %v11527_v38  ;;  %v662_v55 = vsel %vm94_vm4, %v11523_v50, %v661_v29  ;;  %v664_v56 = vsel %vm94_vm4, %v661_v29, %v11522_v51  ;;  %10386 = vmatprep.subr.bf16.mxu1 %v12837_v0 }
 0x39d   :  { %10364 = vmatprep.subr.bf16.mxu0 %v10363_v52  ;;  %v684_v57 = vpop.permute.xlu1 %683  ;;  %v696_v58 = vpop.permute.xlu0 %695  ;;  %v663_v59 = vsel %vm94_vm4, %v11522_v51, %v11523_v50  ;;  %v675_v60 = vsel %vm107_vm3, %v11527_v38, %v11528_v36  ;;  %v10387_v61 = vpack.c.bf16 %v674_v53, %v662_v55  ;;  %v10369_v63 = vpack.c.bf16 %v676_v54, %v664_v56 }
 0x39e   :  { %10366 = vmatpush1.bf16.msra.mxu0 %v10365_v39  ;;  %v10367_v62 = vpack.c.bf16 %v675_v60, %v663_v59  ;;  %v1186_v52 = vmul.f32 2.0, %v13144_v4  ;;  %v1184_v53 = vmul.f32 2.0, %v13147_v8  ;;  %v1185_v54 = vmul.f32 2.0, %v13151_v12 }
 0x39f   :  { %10388 = vmatpush3.bf16.msra.mxu1 %v10387_v61 }
 0x3a0   :  { %10368 = vmatprep.subr.bf16.mxu0 %v10367_v62  ;;  %10389 = vmatprep.subr.bf16.mxu1 %v12837_v0  ;;  %v1189_v61 = vadd.f32 %v1186_v52, %v13029_v28  ;;  %v1187_v4 = vadd.f32 %v1184_v53, %v13032_v31  ;;  %v1188_v8 = vadd.f32 %v1185_v54, %v13036_v34 }
 0x3a1   :  { %v11541_v5 = vpop.permute.xlu1 %11540  ;;  %v11531_v7 = vpop.permute.xlu0 %11530 }
 0x3a2   :  { %10370 = vmatpush1.bf16.msra.mxu0 %v10369_v63  ;;  %v11533_v10 = vunpack.i.h.bf16 %v11531_v7  ;;  %v11532_v11 = vunpack.i.l.bf16 %v11531_v7  ;;  %v11543_v13 = vunpack.i.h.bf16 %v11541_v5  ;;  %v11542_v15 = vunpack.i.l.bf16 %v11541_v5 }
 0x3a4   :  { %v691_v18 = vsel %vm123_vm5, %v11533_v10, %v684_v57  ;;  %v690_v20 = vsel %vm123_vm5, %v684_v57, %v11532_v11  ;;  %v689_v21 = vsel %vm123_vm5, %v11532_v11, %v11533_v10  ;;  %v713_v41 = vsel %vm149_vm6, %v11542_v15, %v11543_v13 }
 0x3a5   :  { %v708_v22 = vpop.permute.xlu1 %707  ;;  %v11536_v27 = vpop.permute.xlu0 %11535  ;;  %v10371_v29 = vpack.c.bf16 %v689_v21, %v13166_v17  ;;  %v10390_v30 = vpack.c.bf16 %v691_v18, %v13155_v14  ;;  %v10373_v32 = vpack.c.bf16 %v690_v20, %v13159_v16 }
 0x3a6   :  { %v11538_v33 = vunpack.i.h.bf16 %v11536_v27  ;;  %v11537_v35 = vunpack.i.l.bf16 %v11536_v27  ;;  %v714_v37 = vsel %vm149_vm6, %v708_v22, %v11542_v15  ;;  %v715_v40 = vsel %vm149_vm6, %v11543_v13, %v708_v22 }
 0x3a7   :  { %10372 = vmatprep.subr.bf16.mxu0 %v10371_v29  ;;  %10391 = vmatpush3.bf16.msra.mxu1 %v10390_v30 }
 0x3a8   :  { %v703_v17 = vsel %vm136_vm7, %v11538_v33, %v696_v58  ;;  %v702_v14 = vsel %vm136_vm7, %v696_v58, %v11537_v35  ;;  %10374 = vmatpush1.bf16.msra.mxu0 %v10373_v32  ;;  %10392 = vmatprep.subr.bf16.mxu1 %v12837_v0  ;;  %v701_v16 = vsel %vm136_vm7, %v11537_v35, %v11538_v33 }
 0x3a9   :  { %v11546_v42 = vpop.permute.xlu0 %11545  ;;  %v10375_v43 = vpack.c.bf16 %v713_v41, %v701_v16  ;;  %v10393_v44 = vpack.c.bf16 %v715_v40, %v703_v17  ;;  %v10377_v45 = vpack.c.bf16 %v714_v37, %v702_v14  ;;  %v720_v48 = vpop.permute.xlu1 %719 }
 0x3aa   :  { %v11548_v46 = vunpack.i.h.bf16 %v11546_v42  ;;  %v11547_v47 = vunpack.i.l.bf16 %v11546_v42 }
 0x3ab   :  { %10376 = vmatprep.subr.bf16.mxu0 %v10375_v43  ;;  %10394 = vmatpush3.bf16.msra.mxu1 %v10393_v44 }
 0x3ac   :  { %v727_v49 = vsel %vm162_vm8, %v11548_v46, %v720_v48  ;;  %v726_v39 = vsel %vm162_vm8, %v720_v48, %v11547_v47  ;;  %10378 = vmatpush1.bf16.msra.mxu0 %v10377_v45  ;;  %10395 = vmatprep.subr.bf16.mxu1 %v12837_v0  ;;  %v725_v36 = vsel %vm162_vm8, %v11547_v47, %v11548_v46 }
 0x3ad   :  { %v10379_v38 = vpack.c.bf16 %v12848_v19, %v725_v36  ;;  %v10396_v50 = vpack.c.bf16 %v12848_v19, %v727_v49  ;;  %v10381_v51 = vpack.c.bf16 %v12848_v19, %v726_v39 }
 0x3af   :  { %10380 = vmatprep.subr.bf16.mxu0 %v10379_v38  ;;  %10397 = vmatpush3.bf16.msra.mxu1 %v10396_v50 }
 0x3b0   :  { %10382 = vmatpush1.bf16.msra.mxu0 %v10381_v51  ;;  %10418 = vmatprep.subr.bf16.mxu1 %v12837_v0 }
 0x3b2   :  { %9624 = vmatmul.mubr.msk.f32.vlgmr.msra.gmra.mrb[4].mxu1 %vm199_vm9, %v13012_v23 }
 0x3b3   :  { %9145 = vmatmul.mubr.msk.f32.vlgmr.msra.gmra.mrb[4].mxu0 %vm199_vm9, %v13012_v23  ;;  %9646 = vmatprep.mubr.msk.f32.mxu1 %vm12845_vm0, %v12846_v6 }
 0x3b4   :  { %1104 = vmatprep.mubr.f32.mxu0 %v12846_v6 }
 0x485   :  { %v898_v55 = vpop.f32.mrb[4].mxu1 }
 0x486   :  { %v904_v56 = vmul.f32 %v898_v55, %v13022_v24  ;;  %v827_v57 = vpop.f32.mrb[4].mxu0  ;;  %v9625_v58 = vpop.f32.mrb[5].mxu1 }
 0x487   :  { %v902_v59 = vmul.f32 %v827_v57, %v13024_v25  ;;  %v829_v60 = vpop.f32.mrb[5].mxu0 }
 0x488   :  { %v907_v62 = vmul.f32 0.125, %v904_v56  ;;  %v1192_v63 = vmul.f32 2.0, %v904_v56  ;;  %v903_v5 = vmul.f32 %v829_v60, %v13026_v26 }
 0x489   :  { %v905_v7 = vmul.f32 0.125, %v902_v59  ;;  %v1190_v12 = vmul.f32 2.0, %v902_v59 }
 0x48a   :  { %v13268_v10 = vadd.f32 %v907_v62, %v12907_v1  ;;  %v906_v11 = vmul.f32 0.125, %v903_v5  ;;  %v1191_v13 = vmul.f32 2.0, %v903_v5  ;;  %v13270_v15 = vadd.f32 %v1192_v63, %v1189_v61 }
 0x48b   :  { %v13272_v18 = vadd.f32 %v1190_v12, %v1187_v4  ;;  %v13275_v28 = vadd.f32 %v905_v7, %v12909_v2 }
 0x48c   :  { %927 = vrot.lane.b32.xlu1 %v13268_v10, %s12839_s2  ;;  %915 = vrot.lane.b32.xlu0 %v13268_v10, %s12838_s19  ;;  %v13281_v31 = vadd.f32 %v1191_v13, %v1188_v8  ;;  %v13284_v1 = vadd.f32 %v906_v11, %v12913_v3 }
 0x48e   :  { %v11554_v2 = vpack.i.bf16 %v13284_v1, %v13275_v28  ;;  %v11579_v3 = vpack.i.bf16 %v13268_v10, %v13284_v1 }
 0x490   :  { %951 = vrot.lane.b32.xlu1 %v13268_v10, %s12840_s20  ;;  %939 = vrot.lane.b32.xlu0 %v13268_v10, %s12841_s21 }
 0x494   :  { %11555 = vrot.lane.b32.xlu1 %v11554_v2, %s12839_s2  ;;  %11550 = vrot.lane.b32.xlu0 %v11554_v2, %s12838_s19 }
 0x498   :  { %11565 = vrot.lane.b32.xlu1 %v11554_v2, %s12840_s20  ;;  %11560 = vrot.lane.b32.xlu0 %v11554_v2, %s12841_s21 }
 0x49c   :  { %962 = vrot.lane.b32.xlu1 %v13275_v28, %s12842_s22  ;;  %974 = vrot.lane.b32.xlu0 %v13275_v28, %s12844_s24 }
 0x4a0   :  { %11580 = vrot.lane.b32.xlu1 %v11579_v3, %s12843_s23  ;;  %11570 = vrot.lane.b32.xlu0 %v11579_v3, %s12842_s22 }
 0x4a4   :  { %986 = vrot.lane.b32.xlu1 %v13275_v28, %s12843_s23  ;;  %11575 = vrot.lane.b32.xlu0 %v11579_v3, %s12844_s24 }
 0x4a8   :  { %998 = vrot.lane.b32.xlu1 %v13275_v28, %s12847_s25  ;;  %11585 = vrot.lane.b32.xlu0 %v11579_v3, %s12847_s25 }
 0x4fe   :  { %v928_v34 = vpop.permute.xlu1 %927  ;;  %v916_v20 = vpop.permute.xlu0 %915 }
 0x502   :  { %v952_v21 = vpop.permute.xlu1 %951  ;;  %v940_v22 = vpop.permute.xlu0 %939 }
 0x506   :  { %v11556_v27 = vpop.permute.xlu1 %11555  ;;  %v11551_v29 = vpop.permute.xlu0 %11550 }
 0x507   :  { %v11558_v30 = vunpack.i.h.bf16 %v11556_v27  ;;  %v11557_v32 = vunpack.i.l.bf16 %v11556_v27  ;;  %v11553_v33 = vunpack.i.h.bf16 %v11551_v29  ;;  %v11552_v35 = vunpack.i.l.bf16 %v11551_v29 }
 0x509   :  { %v929_v37 = vsel %vm81_vm2, %v11558_v30, %v928_v34  ;;  %v931_v40 = vsel %vm81_vm2, %v928_v34, %v11557_v32  ;;  %v917_v41 = vsel %vm68_vm1, %v11553_v33, %v916_v20  ;;  %v919_v17 = vsel %vm68_vm1, %v916_v20, %v11552_v35 }
 0x50a   :  { %v11566_v14 = vpop.permute.xlu1 %11565  ;;  %v11561_v16 = vpop.permute.xlu0 %11560  ;;  %v918_v42 = vsel %vm68_vm1, %v11552_v35, %v11553_v33  ;;  %v930_v43 = vsel %vm81_vm2, %v11557_v32, %v11558_v30  ;;  %v10419_v44 = vpack.c.bf16 %v929_v37, %v917_v41  ;;  %v10400_v45 = vpack.c.bf16 %v931_v40, %v919_v17 }
 0x50b   :  { %v11568_v46 = vunpack.i.h.bf16 %v11566_v14  ;;  %v11567_v47 = vunpack.i.l.bf16 %v11566_v14  ;;  %v11563_v48 = vunpack.i.h.bf16 %v11561_v16  ;;  %v11562_v49 = vunpack.i.l.bf16 %v11561_v16 }
 0x50c   :  { %v10398_v39 = vpack.c.bf16 %v930_v43, %v918_v42  ;;  %10420 = vmatpush3.bf16.msra.mxu1 %v10419_v44 }
 0x50d   :  { %v953_v36 = vsel %vm107_vm3, %v11568_v46, %v952_v21  ;;  %v955_v38 = vsel %vm107_vm3, %v952_v21, %v11567_v47  ;;  %v941_v50 = vsel %vm94_vm4, %v11563_v48, %v940_v22  ;;  %v943_v51 = vsel %vm94_vm4, %v940_v22, %v11562_v49  ;;  %10421 = vmatprep.subr.bf16.mxu1 %v12837_v0 }
 0x50e   :  { %10399 = vmatprep.subr.bf16.mxu0 %v10398_v39  ;;  %v963_v52 = vpop.permute.xlu1 %962  ;;  %v975_v53 = vpop.permute.xlu0 %974  ;;  %v942_v54 = vsel %vm94_vm4, %v11562_v49, %v11563_v48  ;;  %v954_v55 = vsel %vm107_vm3, %v11567_v47, %v11568_v46  ;;  %v10422_v56 = vpack.c.bf16 %v953_v36, %v941_v50  ;;  %v10404_v58 = vpack.c.bf16 %v955_v38, %v943_v51  ;;  %v12709_v51 = vld [vmem:[#allocation3 + $0x10] sm:$0xff] }
 0x50f   :  { %10401 = vmatpush1.bf16.msra.mxu0 %v10400_v45  ;;  %v10402_v57 = vpack.c.bf16 %v954_v55, %v942_v54 }
 0x510   :  { %10423 = vmatpush3.bf16.msra.mxu1 %v10422_v56 }
 0x511   :  { %10403 = vmatprep.subr.bf16.mxu0 %v10402_v57  ;;  %10424 = vmatprep.subr.bf16.mxu1 %v12837_v0 }
 0x512   :  { %v11581_v59 = vpop.permute.xlu1 %11580  ;;  %v11571_v60 = vpop.permute.xlu0 %11570 }
 0x513   :  { %10405 = vmatpush1.bf16.msra.mxu0 %v10404_v58  ;;  %v11573_v61 = vunpack.i.h.bf16 %v11571_v60  ;;  %v11572_v62 = vunpack.i.l.bf16 %v11571_v60  ;;  %v11583_v63 = vunpack.i.h.bf16 %v11581_v59  ;;  %v11582_v5 = vunpack.i.l.bf16 %v11581_v59 }
 0x515   :  { %v970_v4 = vsel %vm123_vm5, %v11573_v61, %v963_v52  ;;  %v969_v8 = vsel %vm123_vm5, %v963_v52, %v11572_v62  ;;  %v968_v7 = vsel %vm123_vm5, %v11572_v62, %v11573_v61  ;;  %v992_v27 = vsel %vm149_vm6, %v11582_v5, %v11583_v63 }
 0x516   :  { %v987_v12 = vpop.permute.xlu1 %986  ;;  %v11576_v11 = vpop.permute.xlu0 %11575  ;;  %v10406_v13 = vpack.c.bf16 %v968_v7, %v13284_v1  ;;  %v10425_v2 = vpack.c.bf16 %v970_v4, %v13268_v10  ;;  %v10408_v3 = vpack.c.bf16 %v969_v8, %v13275_v28 }
 0x517   :  { %v11578_v34 = vunpack.i.h.bf16 %v11576_v11  ;;  %v11577_v20 = vunpack.i.l.bf16 %v11576_v11  ;;  %v993_v21 = vsel %vm149_vm6, %v987_v12, %v11582_v5  ;;  %v994_v22 = vsel %vm149_vm6, %v11583_v63, %v987_v12 }
 0x518   :  { %10407 = vmatprep.subr.bf16.mxu0 %v10406_v13  ;;  %10426 = vmatpush3.bf16.msra.mxu1 %v10425_v2 }
 0x519   :  { %v982_v1 = vsel %vm136_vm7, %v11578_v34, %v975_v53  ;;  %v981_v10 = vsel %vm136_vm7, %v975_v53, %v11577_v20  ;;  %10409 = vmatpush1.bf16.msra.mxu0 %v10408_v3  ;;  %10427 = vmatprep.subr.bf16.mxu1 %v12837_v0  ;;  %v980_v28 = vsel %vm136_vm7, %v11577_v20, %v11578_v34 }
 0x51a   :  { %v11586_v29 = vpop.permute.xlu0 %11585  ;;  %v10410_v30 = vpack.c.bf16 %v992_v27, %v980_v28  ;;  %v10428_v32 = vpack.c.bf16 %v994_v22, %v982_v1  ;;  %v10412_v33 = vpack.c.bf16 %v993_v21, %v981_v10  ;;  %v999_v40 = vpop.permute.xlu1 %998 }
 0x51b   :  { %v11588_v35 = vunpack.i.h.bf16 %v11586_v29  ;;  %v11587_v37 = vunpack.i.l.bf16 %v11586_v29 }
 0x51c   :  { %10411 = vmatprep.subr.bf16.mxu0 %v10410_v30  ;;  %10429 = vmatpush3.bf16.msra.mxu1 %v10428_v32 }
 0x51d   :  { %v1006_v41 = vsel %vm162_vm8, %v11588_v35, %v999_v40  ;;  %v1005_v17 = vsel %vm162_vm8, %v999_v40, %v11587_v37  ;;  %10413 = vmatpush1.bf16.msra.mxu0 %v10412_v33  ;;  %10430 = vmatprep.subr.bf16.mxu1 %v12837_v0  ;;  %v1004_v14 = vsel %vm162_vm8, %v11587_v37, %v11588_v35 }
 0x51e   :  { %v10414_v16 = vpack.c.bf16 %v12848_v19, %v1004_v14  ;;  %v10431_v42 = vpack.c.bf16 %v12848_v19, %v1006_v41  ;;  %v10416_v43 = vpack.c.bf16 %v12848_v19, %v1005_v17 }
 0x520   :  { %10415 = vmatprep.subr.bf16.mxu0 %v10414_v16  ;;  %10432 = vmatpush3.bf16.msra.mxu1 %v10431_v42 }
 0x521   :  { %10417 = vmatpush1.bf16.msra.mxu0 %v10416_v43  ;;  %10453 = vmatprep.subr.bf16.mxu1 %v12837_v0 }
 0x523   :  { %9647 = vmatmul.mubr.msk.f32.vlgmr.msra.gmra.mrb[6].mxu1 %vm199_vm9, %v13012_v23 }
 0x524   :  { %9147 = vmatmul.mubr.msk.f32.vlgmr.msra.gmra.mrb[6].mxu0 %vm199_vm9, %v13012_v23  ;;  %9669 = vmatprep.mubr.msk.f32.mxu1 %vm12845_vm0, %v12846_v6 }
 0x525   :  { %1398 = vmatprep.mubr.f32.mxu0 %v12846_v6 }
 0x5f6   :  { %v1177_v44 = vpop.f32.mrb[6].mxu1 }
 0x5f7   :  { %v1183_v45 = vmul.f32 %v1177_v44, %v13022_v24  ;;  %v1106_v46 = vpop.f32.mrb[6].mxu0  ;;  %v9648_v47 = vpop.f32.mrb[7].mxu1  ;;  %v12710_v24 = vld [vmem:[#allocation3] sm:$0xff] }
 0x5f8   :  { %v1181_v48 = vmul.f32 %v1106_v46, %v13024_v25  ;;  %v1108_v49 = vpop.f32.mrb[7].mxu0 }
 0x5f9   :  { %v1198_v39 = vadd.f32 %v13270_v15, %v1183_v45  ;;  %v1182_v36 = vmul.f32 %v1108_v49, %v13026_v26  ;;  %v12711_v26 = vld [vmem:[#allocation3 + $0x8] sm:$0xff] }
 0x5fa   :  { %v1196_v38 = vadd.f32 %v13272_v18, %v1181_v48 }
 0x5fb   :  { %v1201_v23 = vmul.f32 0.020833334, %v1198_v39  ;;  %v1197_v50 = vadd.f32 %v13281_v31, %v1182_v36 }
 0x5fc   :  { %v1199_v53 = vmul.f32 0.020833334, %v1196_v38 }
 0x5fd   :  { %v13382_v52 = vadd.f32 %v12709_v51, %v1201_v23  ;;  %v1200_v54 = vmul.f32 0.020833334, %v1197_v50 }
 0x5fe   :  { %v13388_v25 = vadd.f32 %v12710_v24, %v1199_v53 }
 0x5ff   :  { %1221 = vrot.lane.b32.xlu1 %v13382_v52, %s12839_s2  ;;  %1209 = vrot.lane.b32.xlu0 %v13382_v52, %s12838_s19  ;;  %v13390_v15 = vadd.f32 %v12711_v26, %v1200_v54 }
 0x601   :  { %v11594_v18 = vpack.i.bf16 %v13390_v15, %v13388_v25  ;;  %v11619_v31 = vpack.i.bf16 %v13382_v52, %v13390_v15 }
 0x603   :  { %1245 = vrot.lane.b32.xlu1 %v13382_v52, %s12840_s20  ;;  %1233 = vrot.lane.b32.xlu0 %v13382_v52, %s12841_s21 }
 0x607   :  { %11595 = vrot.lane.b32.xlu1 %v11594_v18, %s12839_s2  ;;  %11590 = vrot.lane.b32.xlu0 %v11594_v18, %s12838_s19 }
 0x60b   :  { %11605 = vrot.lane.b32.xlu1 %v11594_v18, %s12840_s20  ;;  %11600 = vrot.lane.b32.xlu0 %v11594_v18, %s12841_s21 }
 0x60f   :  { %1256 = vrot.lane.b32.xlu1 %v13388_v25, %s12842_s22  ;;  %1268 = vrot.lane.b32.xlu0 %v13388_v25, %s12844_s24 }
 0x613   :  { %11620 = vrot.lane.b32.xlu1 %v11619_v31, %s12843_s23  ;;  %11610 = vrot.lane.b32.xlu0 %v11619_v31, %s12842_s22 }
 0x617   :  { %1280 = vrot.lane.b32.xlu1 %v13388_v25, %s12843_s23  ;;  %11615 = vrot.lane.b32.xlu0 %v11619_v31, %s12844_s24 }
 0x61b   :  { %1292 = vrot.lane.b32.xlu1 %v13388_v25, %s12847_s25  ;;  %11625 = vrot.lane.b32.xlu0 %v11619_v31, %s12847_s25 }
 0x671   :  { %v1222_v55 = vpop.permute.xlu1 %1221  ;;  %v1210_v56 = vpop.permute.xlu0 %1209 }
 0x675   :  { %v1246_v57 = vpop.permute.xlu1 %1245  ;;  %v1234_v58 = vpop.permute.xlu0 %1233 }
 0x679   :  { %v11596_v59 = vpop.permute.xlu1 %11595  ;;  %v11591_v60 = vpop.permute.xlu0 %11590 }
 0x67a   :  { %v11598_v61 = vunpack.i.h.bf16 %v11596_v59  ;;  %v11597_v62 = vunpack.i.l.bf16 %v11596_v59  ;;  %v11593_v63 = vunpack.i.h.bf16 %v11591_v60  ;;  %v11592_v5 = vunpack.i.l.bf16 %v11591_v60 }
 0x67c   :  { %v1223_v4 = vsel %vm81_vm2, %v11598_v61, %v1222_v55  ;;  %v1225_v8 = vsel %vm81_vm2, %v1222_v55, %v11597_v62  ;;  %v1211_v7 = vsel %vm68_vm1, %v11593_v63, %v1210_v56  ;;  %v1213_v12 = vsel %vm68_vm1, %v1210_v56, %v11592_v5 }
 0x67d   :  { %v11606_v11 = vpop.permute.xlu1 %11605  ;;  %v11601_v13 = vpop.permute.xlu0 %11600  ;;  %v1212_v2 = vsel %vm68_vm1, %v11592_v5, %v11593_v63  ;;  %v1224_v3 = vsel %vm81_vm2, %v11597_v62, %v11598_v61  ;;  %v10454_v34 = vpack.c.bf16 %v1223_v4, %v1211_v7  ;;  %v10435_v20 = vpack.c.bf16 %v1225_v8, %v1213_v12 }
 0x67e   :  { %v11608_v21 = vunpack.i.h.bf16 %v11606_v11  ;;  %v11607_v22 = vunpack.i.l.bf16 %v11606_v11  ;;  %v11603_v27 = vunpack.i.h.bf16 %v11601_v13  ;;  %v11602_v1 = vunpack.i.l.bf16 %v11601_v13  ;;  %v13475_v11 = vld [vmem:[#allocation6] sm:$0xff] }
 0x67f   :  { %v10433_v10 = vpack.c.bf16 %v1224_v3, %v1212_v2  ;;  %10455 = vmatpush3.bf16.msra.mxu1 %v10454_v34  ;;  %v13484_v2 = vld [vmem:[#allocation8 + $0x10] sm:$0xff] }
 0x680   :  { %v1247_v28 = vsel %vm107_vm3, %v11608_v21, %v1246_v57  ;;  %v1249_v29 = vsel %vm107_vm3, %v1246_v57, %v11607_v22  ;;  %v1235_v30 = vsel %vm94_vm4, %v11603_v27, %v1234_v58  ;;  %v1237_v32 = vsel %vm94_vm4, %v1234_v58, %v11602_v1  ;;  %10456 = vmatprep.subr.bf16.mxu1 %v12837_v0 }
 0x681   :  { %10434 = vmatprep.subr.bf16.mxu0 %v10433_v10  ;;  %v1257_v33 = vpop.permute.xlu1 %1256  ;;  %v1269_v35 = vpop.permute.xlu0 %1268  ;;  %v1236_v37 = vsel %vm94_vm4, %v11602_v1, %v11603_v27  ;;  %v1248_v40 = vsel %vm107_vm3, %v11607_v22, %v11608_v21  ;;  %v10457_v41 = vpack.c.bf16 %v1247_v28, %v1235_v30  ;;  %v10439_v14 = vpack.c.bf16 %v1249_v29, %v1237_v32  ;;  %v13489_v21 = vld [vmem:[#allocation8] sm:$0xff]  ;;  %v13495_v10 = vld [vmem:[#allocation8 + $0x8] sm:$0xff] }
 0x682   :  { %10436 = vmatpush1.bf16.msra.mxu0 %v10435_v20  ;;  %v10437_v17 = vpack.c.bf16 %v1248_v40, %v1236_v37 }
 0x683   :  { %10458 = vmatpush3.bf16.msra.mxu1 %v10457_v41 }
 0x684   :  { %10438 = vmatprep.subr.bf16.mxu0 %v10437_v17  ;;  %10459 = vmatprep.subr.bf16.mxu1 %v12837_v0 }
 0x685   :  { %v11621_v16 = vpop.permute.xlu1 %11620  ;;  %v11611_v42 = vpop.permute.xlu0 %11610 }
 0x686   :  { %10440 = vmatpush1.bf16.msra.mxu0 %v10439_v14  ;;  %v11613_v43 = vunpack.i.h.bf16 %v11611_v42  ;;  %v11612_v44 = vunpack.i.l.bf16 %v11611_v42  ;;  %v11623_v45 = vunpack.i.h.bf16 %v11621_v16  ;;  %v11622_v46 = vunpack.i.l.bf16 %v11621_v16 }
 0x688   :  { %v1264_v47 = vsel %vm123_vm5, %v11613_v43, %v1257_v33  ;;  %v1263_v48 = vsel %vm123_vm5, %v1257_v33, %v11612_v44  ;;  %v1262_v49 = vsel %vm123_vm5, %v11612_v44, %v11613_v43  ;;  %v1286_v26 = vsel %vm149_vm6, %v11622_v46, %v11623_v45 }
 0x689   :  { %v1281_v39 = vpop.permute.xlu1 %1280  ;;  %v11616_v36 = vpop.permute.xlu0 %11615  ;;  %v10441_v38 = vpack.c.bf16 %v1262_v49, %v13390_v15  ;;  %v10460_v23 = vpack.c.bf16 %v1264_v47, %v13382_v52  ;;  %v10443_v50 = vpack.c.bf16 %v1263_v48, %v13388_v25 }
 0x68a   :  { %v11618_v51 = vunpack.i.h.bf16 %v11616_v36  ;;  %v11617_v53 = vunpack.i.l.bf16 %v11616_v36  ;;  %v1287_v54 = vsel %vm149_vm6, %v1281_v39, %v11622_v46  ;;  %v1288_v24 = vsel %vm149_vm6, %v11623_v45, %v1281_v39 }
 0x68b   :  { %10442 = vmatprep.subr.bf16.mxu0 %v10441_v38  ;;  %10461 = vmatpush3.bf16.msra.mxu1 %v10460_v23 }
 0x68c   :  { %v1276_v18 = vsel %vm136_vm7, %v11618_v51, %v1269_v35  ;;  %v1275_v31 = vsel %vm136_vm7, %v1269_v35, %v11617_v53  ;;  %10444 = vmatpush1.bf16.msra.mxu0 %v10443_v50  ;;  %10462 = vmatprep.subr.bf16.mxu1 %v12837_v0  ;;  %v1274_v55 = vsel %vm136_vm7, %v11617_v53, %v11618_v51 }
 0x68d   :  { %v11626_v56 = vpop.permute.xlu0 %11625  ;;  %v10445_v57 = vpack.c.bf16 %v1286_v26, %v1274_v55  ;;  %v10463_v58 = vpack.c.bf16 %v1288_v24, %v1276_v18  ;;  %v10447_v59 = vpack.c.bf16 %v1287_v54, %v1275_v31  ;;  %v1293_v62 = vpop.permute.xlu1 %1292 }
 0x68e   :  { %v11628_v60 = vunpack.i.h.bf16 %v11626_v56  ;;  %v11627_v61 = vunpack.i.l.bf16 %v11626_v56 }
 0x68f   :  { %10446 = vmatprep.subr.bf16.mxu0 %v10445_v57  ;;  %10464 = vmatpush3.bf16.msra.mxu1 %v10463_v58 }
 0x690   :  { %v1300_v63 = vsel %vm162_vm8, %v11628_v60, %v1293_v62  ;;  %v1299_v5 = vsel %vm162_vm8, %v1293_v62, %v11627_v61  ;;  %10448 = vmatpush1.bf16.msra.mxu0 %v10447_v59  ;;  %10465 = vmatprep.subr.bf16.mxu1 %v12837_v0  ;;  %v1298_v4 = vsel %vm162_vm8, %v11627_v61, %v11628_v60 }
 0x691   :  { %v10449_v8 = vpack.c.bf16 %v12848_v19, %v1298_v4  ;;  %v10466_v7 = vpack.c.bf16 %v12848_v19, %v1300_v63  ;;  %v10451_v12 = vpack.c.bf16 %v12848_v19, %v1299_v5 }
 0x693   :  { %10450 = vmatprep.subr.bf16.mxu0 %v10449_v8  ;;  %10467 = vmatpush3.bf16.msra.mxu1 %v10466_v7 }
 0x694   :  { %10452 = vmatpush1.bf16.msra.mxu0 %v10451_v12  ;;  %10488 = vmatprep.subr.bf16.mxu1 %v12837_v0 }
 0x696   :  { %9670 = vmatmul.mubr.msk.f32.vlgmr.msra.gmra.mrb[8].mxu1 %vm199_vm9, %v13475_v11 }
 0x697   :  { %9149 = vmatmul.mubr.msk.f32.vlgmr.msra.gmra.mrb[8].mxu0 %vm199_vm9, %v13475_v11  ;;  %9692 = vmatprep.mubr.msk.f32.mxu1 %vm12845_vm0, %v12846_v6 }
 0x698   :  { %1677 = vmatprep.mubr.f32.mxu0 %v12846_v6 }
 0x769   :  { %v1471_v13 = vpop.f32.mrb[8].mxu1 }
 0x76a   :  { %v13487_v3 = vmul.f32 %v13484_v2, %v1471_v13  ;;  %v1400_v34 = vpop.f32.mrb[8].mxu0  ;;  %v9671_v20 = vpop.f32.mrb[9].mxu1 }
 0x76b   :  { %v13492_v22 = vmul.f32 %v13489_v21, %v1400_v34  ;;  %v1402_v27 = vpop.f32.mrb[9].mxu0 }
 0x76c   :  { %v1480_v1 = vmul.f32 0.0625, %v13487_v3  ;;  %v13498_v28 = vmul.f32 %v13495_v10, %v1402_v27 }
 0x76d   :  { %v1478_v30 = vmul.f32 0.0625, %v13492_v22 }
 0x76e   :  { %v13501_v29 = vadd.f32 %v1480_v1, %v13382_v52  ;;  %v1479_v32 = vmul.f32 0.0625, %v13498_v28 }
 0x76f   :  { %v13510_v33 = vadd.f32 %v1478_v30, %v13388_v25 }
 0x770   :  { %1500 = vrot.lane.b32.xlu1 %v13501_v29, %s12839_s2  ;;  %1488 = vrot.lane.b32.xlu0 %v13501_v29, %s12838_s19  ;;  %v13513_v35 = vadd.f32 %v1479_v32, %v13390_v15 }
 0x772   :  { %v11634_v37 = vpack.i.bf16 %v13513_v35, %v13510_v33  ;;  %v11659_v40 = vpack.i.bf16 %v13501_v29, %v13513_v35 }
 0x774   :  { %1524 = vrot.lane.b32.xlu1 %v13501_v29, %s12840_s20  ;;  %1512 = vrot.lane.b32.xlu0 %v13501_v29, %s12841_s21 }
 0x778   :  { %11635 = vrot.lane.b32.xlu1 %v11634_v37, %s12839_s2  ;;  %11630 = vrot.lane.b32.xlu0 %v11634_v37, %s12838_s19 }
 0x77c   :  { %11645 = vrot.lane.b32.xlu1 %v11634_v37, %s12840_s20  ;;  %11640 = vrot.lane.b32.xlu0 %v11634_v37, %s12841_s21 }
 0x780   :  { %1535 = vrot.lane.b32.xlu1 %v13510_v33, %s12842_s22  ;;  %1547 = vrot.lane.b32.xlu0 %v13510_v33, %s12844_s24 }
 0x784   :  { %11660 = vrot.lane.b32.xlu1 %v11659_v40, %s12843_s23  ;;  %11650 = vrot.lane.b32.xlu0 %v11659_v40, %s12842_s22 }
 0x788   :  { %1559 = vrot.lane.b32.xlu1 %v13510_v33, %s12843_s23  ;;  %11655 = vrot.lane.b32.xlu0 %v11659_v40, %s12844_s24 }
 0x78c   :  { %1571 = vrot.lane.b32.xlu1 %v13510_v33, %s12847_s25  ;;  %11665 = vrot.lane.b32.xlu0 %v11659_v40, %s12847_s25 }
 0x7e2   :  { %v1501_v41 = vpop.permute.xlu1 %1500  ;;  %v1489_v17 = vpop.permute.xlu0 %1488 }
 0x7e6   :  { %v1525_v14 = vpop.permute.xlu1 %1524  ;;  %v1513_v16 = vpop.permute.xlu0 %1512 }
 0x7ea   :  { %v11636_v42 = vpop.permute.xlu1 %11635  ;;  %v11631_v43 = vpop.permute.xlu0 %11630 }
 0x7eb   :  { %v11638_v44 = vunpack.i.h.bf16 %v11636_v42  ;;  %v11637_v45 = vunpack.i.l.bf16 %v11636_v42  ;;  %v11633_v46 = vunpack.i.h.bf16 %v11631_v43  ;;  %v11632_v47 = vunpack.i.l.bf16 %v11631_v43 }
 0x7ed   :  { %v1502_v48 = vsel %vm81_vm2, %v11638_v44, %v1501_v41  ;;  %v1504_v49 = vsel %vm81_vm2, %v1501_v41, %v11637_v45  ;;  %v1490_v39 = vsel %vm68_vm1, %v11633_v46, %v1489_v17  ;;  %v1492_v36 = vsel %vm68_vm1, %v1489_v17, %v11632_v47 }
 0x7ee   :  { %v11646_v38 = vpop.permute.xlu1 %11645  ;;  %v11641_v23 = vpop.permute.xlu0 %11640  ;;  %v1491_v50 = vsel %vm68_vm1, %v11632_v47, %v11633_v46  ;;  %v1503_v51 = vsel %vm81_vm2, %v11637_v45, %v11638_v44  ;;  %v10489_v53 = vpack.c.bf16 %v1502_v48, %v1490_v39  ;;  %v10470_v54 = vpack.c.bf16 %v1504_v49, %v1492_v36 }
 0x7ef   :  { %v11648_v24 = vunpack.i.h.bf16 %v11646_v38  ;;  %v11647_v26 = vunpack.i.l.bf16 %v11646_v38  ;;  %v11643_v18 = vunpack.i.h.bf16 %v11641_v23  ;;  %v11642_v31 = vunpack.i.l.bf16 %v11641_v23 }
 0x7f0   :  { %v10468_v55 = vpack.c.bf16 %v1503_v51, %v1491_v50  ;;  %10490 = vmatpush3.bf16.msra.mxu1 %v10489_v53 }
 0x7f1   :  { %v1526_v56 = vsel %vm107_vm3, %v11648_v24, %v1525_v14  ;;  %v1528_v57 = vsel %vm107_vm3, %v1525_v14, %v11647_v26  ;;  %v1514_v58 = vsel %vm94_vm4, %v11643_v18, %v1513_v16  ;;  %v1516_v59 = vsel %vm94_vm4, %v1513_v16, %v11642_v31  ;;  %10491 = vmatprep.subr.bf16.mxu1 %v12837_v0 }
 0x7f2   :  { %10469 = vmatprep.subr.bf16.mxu0 %v10468_v55  ;;  %v1536_v60 = vpop.permute.xlu1 %1535  ;;  %v1548_v61 = vpop.permute.xlu0 %1547  ;;  %v1515_v62 = vsel %vm94_vm4, %v11642_v31, %v11643_v18  ;;  %v1527_v63 = vsel %vm107_vm3, %v11647_v26, %v11648_v24  ;;  %v10492_v5 = vpack.c.bf16 %v1526_v56, %v1514_v58  ;;  %v10474_v8 = vpack.c.bf16 %v1528_v57, %v1516_v59 }
 0x7f3   :  { %10471 = vmatpush1.bf16.msra.mxu0 %v10470_v54  ;;  %v10472_v4 = vpack.c.bf16 %v1527_v63, %v1515_v62 }
 0x7f4   :  { %10493 = vmatpush3.bf16.msra.mxu1 %v10492_v5 }
 0x7f5   :  { %10473 = vmatprep.subr.bf16.mxu0 %v10472_v4  ;;  %10494 = vmatprep.subr.bf16.mxu1 %v12837_v0 }
 0x7f6   :  { %v11661_v7 = vpop.permute.xlu1 %11660  ;;  %v11651_v12 = vpop.permute.xlu0 %11650 }
 0x7f7   :  { %10475 = vmatpush1.bf16.msra.mxu0 %v10474_v8  ;;  %v11653_v13 = vunpack.i.h.bf16 %v11651_v12  ;;  %v11652_v34 = vunpack.i.l.bf16 %v11651_v12  ;;  %v11663_v20 = vunpack.i.h.bf16 %v11661_v7  ;;  %v11662_v27 = vunpack.i.l.bf16 %v11661_v7 }
 0x7f9   :  { %v1543_v1 = vsel %vm123_vm5, %v11653_v13, %v1536_v60  ;;  %v1542_v30 = vsel %vm123_vm5, %v1536_v60, %v11652_v34  ;;  %v1541_v32 = vsel %vm123_vm5, %v11652_v34, %v11653_v13  ;;  %v1565_v45 = vsel %vm149_vm6, %v11662_v27, %v11663_v20 }
 0x7fa   :  { %v1560_v37 = vpop.permute.xlu1 %1559  ;;  %v11656_v40 = vpop.permute.xlu0 %11655  ;;  %v10476_v41 = vpack.c.bf16 %v1541_v32, %v13513_v35  ;;  %v10495_v17 = vpack.c.bf16 %v1543_v1, %v13501_v29  ;;  %v10478_v14 = vpack.c.bf16 %v1542_v30, %v13510_v33 }
 0x7fb   :  { %v11658_v16 = vunpack.i.h.bf16 %v11656_v40  ;;  %v11657_v42 = vunpack.i.l.bf16 %v11656_v40  ;;  %v1566_v43 = vsel %vm149_vm6, %v1560_v37, %v11662_v27  ;;  %v1567_v44 = vsel %vm149_vm6, %v11663_v20, %v1560_v37 }
 0x7fc   :  { %10477 = vmatprep.subr.bf16.mxu0 %v10476_v41  ;;  %10496 = vmatpush3.bf16.msra.mxu1 %v10495_v17 }
 0x7fd   :  { %v1555_v35 = vsel %vm136_vm7, %v11658_v16, %v1548_v61  ;;  %v1554_v29 = vsel %vm136_vm7, %v1548_v61, %v11657_v42  ;;  %10479 = vmatpush1.bf16.msra.mxu0 %v10478_v14  ;;  %10497 = vmatprep.subr.bf16.mxu1 %v12837_v0  ;;  %v1553_v33 = vsel %vm136_vm7, %v11657_v42, %v11658_v16 }
 0x7fe   :  { %v11666_v46 = vpop.permute.xlu0 %11665  ;;  %v10480_v47 = vpack.c.bf16 %v1565_v45, %v1553_v33  ;;  %v10498_v48 = vpack.c.bf16 %v1567_v44, %v1555_v35  ;;  %v10482_v49 = vpack.c.bf16 %v1566_v43, %v1554_v29  ;;  %v1572_v38 = vpop.permute.xlu1 %1571 }
 0x7ff   :  { %v11668_v39 = vunpack.i.h.bf16 %v11666_v46  ;;  %v11667_v36 = vunpack.i.l.bf16 %v11666_v46 }
 0x800   :  { %10481 = vmatprep.subr.bf16.mxu0 %v10480_v47  ;;  %10499 = vmatpush3.bf16.msra.mxu1 %v10498_v48 }
 0x801   :  { %v1579_v23 = vsel %vm162_vm8, %v11668_v39, %v1572_v38  ;;  %v1578_v50 = vsel %vm162_vm8, %v1572_v38, %v11667_v36  ;;  %10483 = vmatpush1.bf16.msra.mxu0 %v10482_v49  ;;  %10500 = vmatprep.subr.bf16.mxu1 %v12837_v0  ;;  %v1577_v51 = vsel %vm162_vm8, %v11667_v36, %v11668_v39 }
 0x802   :  { %v10484_v53 = vpack.c.bf16 %v12848_v19, %v1577_v51  ;;  %v10501_v54 = vpack.c.bf16 %v12848_v19, %v1579_v23  ;;  %v10486_v24 = vpack.c.bf16 %v12848_v19, %v1578_v50 }
 0x804   :  { %10485 = vmatprep.subr.bf16.mxu0 %v10484_v53  ;;  %10502 = vmatpush3.bf16.msra.mxu1 %v10501_v54 }
 0x805   :  { %10487 = vmatpush1.bf16.msra.mxu0 %v10486_v24  ;;  %10523 = vmatprep.subr.bf16.mxu1 %v12837_v0 }
 0x807   :  { %9693 = vmatmul.mubr.msk.f32.vlgmr.msra.gmra.mrb[10].mxu1 %vm199_vm9, %v13475_v11 }
 0x808   :  { %9151 = vmatmul.mubr.msk.f32.vlgmr.msra.gmra.mrb[10].mxu0 %vm199_vm9, %v13475_v11  ;;  %9715 = vmatprep.mubr.msk.f32.mxu1 %vm12845_vm0, %v12846_v6 }
 0x809   :  { %1956 = vmatprep.mubr.f32.mxu0 %v12846_v6 }
 0x8da   :  { %v1750_v26 = vpop.f32.mrb[10].mxu1 }
 0x8db   :  { %v13606_v18 = vmul.f32 %v13484_v2, %v1750_v26  ;;  %v1679_v31 = vpop.f32.mrb[10].mxu0  ;;  %v9694_v55 = vpop.f32.mrb[11].mxu1 }
 0x8dc   :  { %v13609_v56 = vmul.f32 %v13489_v21, %v1679_v31  ;;  %v1681_v57 = vpop.f32.mrb[11].mxu0 }
 0x8dd   :  { %v1759_v58 = vmul.f32 0.0625, %v13606_v18  ;;  %v13613_v59 = vmul.f32 %v13495_v10, %v1681_v57 }
 0x8de   :  { %v1757_v61 = vmul.f32 0.0625, %v13609_v56 }
 0x8df   :  { %v13616_v60 = vadd.f32 %v1759_v58, %v13382_v52  ;;  %v1758_v62 = vmul.f32 0.0625, %v13613_v59 }
 0x8e0   :  { %v13625_v63 = vadd.f32 %v1757_v61, %v13388_v25 }
 0x8e1   :  { %1779 = vrot.lane.b32.xlu1 %v13616_v60, %s12839_s2  ;;  %1767 = vrot.lane.b32.xlu0 %v13616_v60, %s12838_s19  ;;  %v13628_v5 = vadd.f32 %v1758_v62, %v13390_v15 }
 0x8e3   :  { %v11674_v4 = vpack.i.bf16 %v13628_v5, %v13625_v63  ;;  %v11699_v8 = vpack.i.bf16 %v13616_v60, %v13628_v5 }
 0x8e5   :  { %1803 = vrot.lane.b32.xlu1 %v13616_v60, %s12840_s20  ;;  %1791 = vrot.lane.b32.xlu0 %v13616_v60, %s12841_s21 }
 0x8e9   :  { %11675 = vrot.lane.b32.xlu1 %v11674_v4, %s12839_s2  ;;  %11670 = vrot.lane.b32.xlu0 %v11674_v4, %s12838_s19 }
 0x8ed   :  { %11685 = vrot.lane.b32.xlu1 %v11674_v4, %s12840_s20  ;;  %11680 = vrot.lane.b32.xlu0 %v11674_v4, %s12841_s21 }
 0x8f1   :  { %1814 = vrot.lane.b32.xlu1 %v13625_v63, %s12842_s22  ;;  %1826 = vrot.lane.b32.xlu0 %v13625_v63, %s12844_s24 }
 0x8f5   :  { %11700 = vrot.lane.b32.xlu1 %v11699_v8, %s12843_s23  ;;  %11690 = vrot.lane.b32.xlu0 %v11699_v8, %s12842_s22 }
 0x8f9   :  { %1838 = vrot.lane.b32.xlu1 %v13625_v63, %s12843_s23  ;;  %11695 = vrot.lane.b32.xlu0 %v11699_v8, %s12844_s24 }
 0x8fd   :  { %1850 = vrot.lane.b32.xlu1 %v13625_v63, %s12847_s25  ;;  %11705 = vrot.lane.b32.xlu0 %v11699_v8, %s12847_s25 }
 0x953   :  { %v1780_v7 = vpop.permute.xlu1 %1779  ;;  %v1768_v12 = vpop.permute.xlu0 %1767 }
 0x957   :  { %v1804_v13 = vpop.permute.xlu1 %1803  ;;  %v1792_v34 = vpop.permute.xlu0 %1791 }
 0x95b   :  { %v11676_v20 = vpop.permute.xlu1 %11675  ;;  %v11671_v27 = vpop.permute.xlu0 %11670 }
 0x95c   :  { %v11678_v1 = vunpack.i.h.bf16 %v11676_v20  ;;  %v11677_v30 = vunpack.i.l.bf16 %v11676_v20  ;;  %v11673_v32 = vunpack.i.h.bf16 %v11671_v27  ;;  %v11672_v37 = vunpack.i.l.bf16 %v11671_v27 }
 0x95e   :  { %v1781_v40 = vsel %vm81_vm2, %v11678_v1, %v1780_v7  ;;  %v1783_v41 = vsel %vm81_vm2, %v1780_v7, %v11677_v30  ;;  %v1769_v17 = vsel %vm68_vm1, %v11673_v32, %v1768_v12  ;;  %v1771_v14 = vsel %vm68_vm1, %v1768_v12, %v11672_v37 }
 0x95f   :  { %v11686_v16 = vpop.permute.xlu1 %11685  ;;  %v11681_v42 = vpop.permute.xlu0 %11680  ;;  %v1770_v43 = vsel %vm68_vm1, %v11672_v37, %v11673_v32  ;;  %v1782_v44 = vsel %vm81_vm2, %v11677_v30, %v11678_v1  ;;  %v10524_v45 = vpack.c.bf16 %v1781_v40, %v1769_v17  ;;  %v10505_v35 = vpack.c.bf16 %v1783_v41, %v1771_v14 }
 0x960   :  { %v11688_v29 = vunpack.i.h.bf16 %v11686_v16  ;;  %v11687_v33 = vunpack.i.l.bf16 %v11686_v16  ;;  %v11683_v46 = vunpack.i.h.bf16 %v11681_v42  ;;  %v11682_v47 = vunpack.i.l.bf16 %v11681_v42 }
 0x961   :  { %v10503_v48 = vpack.c.bf16 %v1782_v44, %v1770_v43  ;;  %10525 = vmatpush3.bf16.msra.mxu1 %v10524_v45 }
 0x962   :  { %v1805_v49 = vsel %vm107_vm3, %v11688_v29, %v1804_v13  ;;  %v1807_v39 = vsel %vm107_vm3, %v1804_v13, %v11687_v33  ;;  %v1793_v36 = vsel %vm94_vm4, %v11683_v46, %v1792_v34  ;;  %v1795_v38 = vsel %vm94_vm4, %v1792_v34, %v11682_v47  ;;  %10526 = vmatprep.subr.bf16.mxu1 %v12837_v0 }
 0x963   :  { %10504 = vmatprep.subr.bf16.mxu0 %v10503_v48  ;;  %v1815_v23 = vpop.permute.xlu1 %1814  ;;  %v1827_v50 = vpop.permute.xlu0 %1826  ;;  %v1794_v51 = vsel %vm94_vm4, %v11682_v47, %v11683_v46  ;;  %v1806_v53 = vsel %vm107_vm3, %v11687_v33, %v11688_v29  ;;  %v10527_v54 = vpack.c.bf16 %v1805_v49, %v1793_v36  ;;  %v10509_v26 = vpack.c.bf16 %v1807_v39, %v1795_v38 }
 0x964   :  { %10506 = vmatpush1.bf16.msra.mxu0 %v10505_v35  ;;  %v10507_v24 = vpack.c.bf16 %v1806_v53, %v1794_v51  ;;  %v2317_v48 = vmul.f32 2.0, %v13606_v18  ;;  %v2315_v49 = vmul.f32 2.0, %v13609_v56  ;;  %v2316_v39 = vmul.f32 2.0, %v13613_v59 }
 0x965   :  { %10528 = vmatpush3.bf16.msra.mxu1 %v10527_v54 }
 0x966   :  { %10508 = vmatprep.subr.bf16.mxu0 %v10507_v24  ;;  %10529 = vmatprep.subr.bf16.mxu1 %v12837_v0  ;;  %v2320_v54 = vadd.f32 %v2317_v48, %v13487_v3  ;;  %v2318_v18 = vadd.f32 %v2315_v49, %v13492_v22  ;;  %v2319_v56 = vadd.f32 %v2316_v39, %v13498_v28 }
 0x967   :  { %v11701_v31 = vpop.permute.xlu1 %11700  ;;  %v11691_v55 = vpop.permute.xlu0 %11690 }
 0x968   :  { %10510 = vmatpush1.bf16.msra.mxu0 %v10509_v26  ;;  %v11693_v57 = vunpack.i.h.bf16 %v11691_v55  ;;  %v11692_v58 = vunpack.i.l.bf16 %v11691_v55  ;;  %v11703_v61 = vunpack.i.h.bf16 %v11701_v31  ;;  %v11702_v62 = vunpack.i.l.bf16 %v11701_v31 }
 0x96a   :  { %v1822_v4 = vsel %vm123_vm5, %v11693_v57, %v1815_v23  ;;  %v1821_v8 = vsel %vm123_vm5, %v1815_v23, %v11692_v58  ;;  %v1820_v7 = vsel %vm123_vm5, %v11692_v58, %v11693_v57  ;;  %v1844_v40 = vsel %vm149_vm6, %v11702_v62, %v11703_v61 }
 0x96b   :  { %v1839_v12 = vpop.permute.xlu1 %1838  ;;  %v11696_v13 = vpop.permute.xlu0 %11695  ;;  %v10511_v34 = vpack.c.bf16 %v1820_v7, %v13628_v5  ;;  %v10530_v20 = vpack.c.bf16 %v1822_v4, %v13616_v60  ;;  %v10513_v27 = vpack.c.bf16 %v1821_v8, %v13625_v63 }
 0x96c   :  { %v11698_v1 = vunpack.i.h.bf16 %v11696_v13  ;;  %v11697_v30 = vunpack.i.l.bf16 %v11696_v13  ;;  %v1845_v32 = vsel %vm149_vm6, %v1839_v12, %v11702_v62  ;;  %v1846_v37 = vsel %vm149_vm6, %v11703_v61, %v1839_v12 }
 0x96d   :  { %10512 = vmatprep.subr.bf16.mxu0 %v10511_v34  ;;  %10531 = vmatpush3.bf16.msra.mxu1 %v10530_v20 }
 0x96e   :  { %v1834_v5 = vsel %vm136_vm7, %v11698_v1, %v1827_v50  ;;  %v1833_v60 = vsel %vm136_vm7, %v1827_v50, %v11697_v30  ;;  %10514 = vmatpush1.bf16.msra.mxu0 %v10513_v27  ;;  %10532 = vmatprep.subr.bf16.mxu1 %v12837_v0  ;;  %v1832_v63 = vsel %vm136_vm7, %v11697_v30, %v11698_v1 }
 0x96f   :  { %v11706_v41 = vpop.permute.xlu0 %11705  ;;  %v10515_v17 = vpack.c.bf16 %v1844_v40, %v1832_v63  ;;  %v10533_v14 = vpack.c.bf16 %v1846_v37, %v1834_v5  ;;  %v10517_v16 = vpack.c.bf16 %v1845_v32, %v1833_v60  ;;  %v1851_v44 = vpop.permute.xlu1 %1850 }
 0x970   :  { %v11708_v42 = vunpack.i.h.bf16 %v11706_v41  ;;  %v11707_v43 = vunpack.i.l.bf16 %v11706_v41 }
 0x971   :  { %10516 = vmatprep.subr.bf16.mxu0 %v10515_v17  ;;  %10534 = vmatpush3.bf16.msra.mxu1 %v10533_v14 }
 0x972   :  { %v1858_v45 = vsel %vm162_vm8, %v11708_v42, %v1851_v44  ;;  %v1857_v35 = vsel %vm162_vm8, %v1851_v44, %v11707_v43  ;;  %10518 = vmatpush1.bf16.msra.mxu0 %v10517_v16  ;;  %10535 = vmatprep.subr.bf16.mxu1 %v12837_v0  ;;  %v1856_v29 = vsel %vm162_vm8, %v11707_v43, %v11708_v42 }
 0x973   :  { %v10519_v33 = vpack.c.bf16 %v12848_v19, %v1856_v29  ;;  %v10536_v46 = vpack.c.bf16 %v12848_v19, %v1858_v45  ;;  %v10521_v47 = vpack.c.bf16 %v12848_v19, %v1857_v35 }
 0x975   :  { %10520 = vmatprep.subr.bf16.mxu0 %v10519_v33  ;;  %10537 = vmatpush3.bf16.msra.mxu1 %v10536_v46 }
 0x976   :  { %10522 = vmatpush1.bf16.msra.mxu0 %v10521_v47  ;;  %10558 = vmatprep.subr.bf16.mxu1 %v12837_v0 }
 0x978   :  { %9716 = vmatmul.mubr.msk.f32.vlgmr.msra.gmra.mrb[12].mxu1 %vm199_vm9, %v13475_v11 }
 0x979   :  { %9153 = vmatmul.mubr.msk.f32.vlgmr.msra.gmra.mrb[12].mxu0 %vm199_vm9, %v13475_v11  ;;  %9738 = vmatprep.mubr.msk.f32.mxu1 %vm12845_vm0, %v12846_v6 }
 0x97a   :  { %2235 = vmatprep.mubr.f32.mxu0 %v12846_v6 }
 0xa4b   :  { %v2029_v36 = vpop.f32.mrb[12].mxu1 }
 0xa4c   :  { %v2035_v38 = vmul.f32 %v13484_v2, %v2029_v36  ;;  %v1958_v23 = vpop.f32.mrb[12].mxu0  ;;  %v9717_v50 = vpop.f32.mrb[13].mxu1 }
 0xa4d   :  { %v2033_v51 = vmul.f32 %v13489_v21, %v1958_v23  ;;  %v1960_v53 = vpop.f32.mrb[13].mxu0 }
 0xa4e   :  { %v2038_v24 = vmul.f32 0.125, %v2035_v38  ;;  %v2323_v26 = vmul.f32 2.0, %v2035_v38  ;;  %v2034_v31 = vmul.f32 %v13495_v10, %v1960_v53 }
 0xa4f   :  { %v2036_v55 = vmul.f32 0.125, %v2033_v51  ;;  %v2321_v59 = vmul.f32 2.0, %v2033_v51 }
 0xa50   :  { %v13730_v57 = vadd.f32 %v2038_v24, %v13382_v52  ;;  %v2037_v58 = vmul.f32 0.125, %v2034_v31  ;;  %v2322_v61 = vmul.f32 2.0, %v2034_v31  ;;  %v13732_v62 = vadd.f32 %v2323_v26, %v2320_v54 }
 0xa51   :  { %v13734_v4 = vadd.f32 %v2321_v59, %v2318_v18  ;;  %v13743_v22 = vadd.f32 %v2036_v55, %v13388_v25 }
 0xa52   :  { %2058 = vrot.lane.b32.xlu1 %v13730_v57, %s12839_s2  ;;  %2046 = vrot.lane.b32.xlu0 %v13730_v57, %s12838_s19  ;;  %v13740_v3 = vadd.f32 %v2322_v61, %v2319_v56  ;;  %v13746_v28 = vadd.f32 %v2037_v58, %v13390_v15 }
 0xa54   :  { %v11714_v8 = vpack.i.bf16 %v13746_v28, %v13743_v22  ;;  %v11739_v7 = vpack.i.bf16 %v13730_v57, %v13746_v28 }
 0xa56   :  { %2082 = vrot.lane.b32.xlu1 %v13730_v57, %s12840_s20  ;;  %2070 = vrot.lane.b32.xlu0 %v13730_v57, %s12841_s21 }
 0xa5a   :  { %11715 = vrot.lane.b32.xlu1 %v11714_v8, %s12839_s2  ;;  %11710 = vrot.lane.b32.xlu0 %v11714_v8, %s12838_s19 }
 0xa5e   :  { %11725 = vrot.lane.b32.xlu1 %v11714_v8, %s12840_s20  ;;  %11720 = vrot.lane.b32.xlu0 %v11714_v8, %s12841_s21 }
 0xa62   :  { %2093 = vrot.lane.b32.xlu1 %v13743_v22, %s12842_s22  ;;  %2105 = vrot.lane.b32.xlu0 %v13743_v22, %s12844_s24 }
 0xa66   :  { %11740 = vrot.lane.b32.xlu1 %v11739_v7, %s12843_s23  ;;  %11730 = vrot.lane.b32.xlu0 %v11739_v7, %s12842_s22 }
 0xa6a   :  { %2117 = vrot.lane.b32.xlu1 %v13743_v22, %s12843_s23  ;;  %11735 = vrot.lane.b32.xlu0 %v11739_v7, %s12844_s24 }
 0xa6e   :  { %2129 = vrot.lane.b32.xlu1 %v13743_v22, %s12847_s25  ;;  %11745 = vrot.lane.b32.xlu0 %v11739_v7, %s12847_s25 }
 0xac4   :  { %v2059_v12 = vpop.permute.xlu1 %2058  ;;  %v2047_v13 = vpop.permute.xlu0 %2046 }
 0xac8   :  { %v2083_v34 = vpop.permute.xlu1 %2082  ;;  %v2071_v20 = vpop.permute.xlu0 %2070 }
 0xacc   :  { %v11716_v27 = vpop.permute.xlu1 %11715  ;;  %v11711_v1 = vpop.permute.xlu0 %11710 }
 0xacd   :  { %v11718_v30 = vunpack.i.h.bf16 %v11716_v27  ;;  %v11717_v32 = vunpack.i.l.bf16 %v11716_v27  ;;  %v11713_v37 = vunpack.i.h.bf16 %v11711_v1  ;;  %v11712_v40 = vunpack.i.l.bf16 %v11711_v1 }
 0xacf   :  { %v2060_v5 = vsel %vm81_vm2, %v11718_v30, %v2059_v12  ;;  %v2062_v60 = vsel %vm81_vm2, %v2059_v12, %v11717_v32  ;;  %v2048_v63 = vsel %vm68_vm1, %v11713_v37, %v2047_v13  ;;  %v2050_v41 = vsel %vm68_vm1, %v2047_v13, %v11712_v40 }
 0xad0   :  { %v11726_v17 = vpop.permute.xlu1 %11725  ;;  %v11721_v14 = vpop.permute.xlu0 %11720  ;;  %v2049_v16 = vsel %vm68_vm1, %v11712_v40, %v11713_v37  ;;  %v2061_v42 = vsel %vm81_vm2, %v11717_v32, %v11718_v30  ;;  %v10559_v43 = vpack.c.bf16 %v2060_v5, %v2048_v63  ;;  %v10540_v44 = vpack.c.bf16 %v2062_v60, %v2050_v41 }
 0xad1   :  { %v11728_v45 = vunpack.i.h.bf16 %v11726_v17  ;;  %v11727_v35 = vunpack.i.l.bf16 %v11726_v17  ;;  %v11723_v29 = vunpack.i.h.bf16 %v11721_v14  ;;  %v11722_v33 = vunpack.i.l.bf16 %v11721_v14 }
 0xad2   :  { %v10538_v46 = vpack.c.bf16 %v2061_v42, %v2049_v16  ;;  %10560 = vmatpush3.bf16.msra.mxu1 %v10559_v43 }
 0xad3   :  { %v2084_v47 = vsel %vm107_vm3, %v11728_v45, %v2083_v34  ;;  %v2086_v48 = vsel %vm107_vm3, %v2083_v34, %v11727_v35  ;;  %v2072_v49 = vsel %vm94_vm4, %v11723_v29, %v2071_v20  ;;  %v2074_v39 = vsel %vm94_vm4, %v2071_v20, %v11722_v33  ;;  %10561 = vmatprep.subr.bf16.mxu1 %v12837_v0 }
 0xad4   :  { %10539 = vmatprep.subr.bf16.mxu0 %v10538_v46  ;;  %v2094_v36 = vpop.permute.xlu1 %2093  ;;  %v2106_v38 = vpop.permute.xlu0 %2105  ;;  %v2073_v23 = vsel %vm94_vm4, %v11722_v33, %v11723_v29  ;;  %v2085_v50 = vsel %vm107_vm3, %v11727_v35, %v11728_v45  ;;  %v10562_v51 = vpack.c.bf16 %v2084_v47, %v2072_v49  ;;  %v10544_v54 = vpack.c.bf16 %v2086_v48, %v2074_v39 }
 0xad5   :  { %10541 = vmatpush1.bf16.msra.mxu0 %v10540_v44  ;;  %v10542_v53 = vpack.c.bf16 %v2085_v50, %v2073_v23 }
 0xad6   :  { %10563 = vmatpush3.bf16.msra.mxu1 %v10562_v51 }
 0xad7   :  { %10543 = vmatprep.subr.bf16.mxu0 %v10542_v53  ;;  %10564 = vmatprep.subr.bf16.mxu1 %v12837_v0 }
 0xad8   :  { %v11741_v24 = vpop.permute.xlu1 %11740  ;;  %v11731_v26 = vpop.permute.xlu0 %11730 }
 0xad9   :  { %10545 = vmatpush1.bf16.msra.mxu0 %v10544_v54  ;;  %v11733_v31 = vunpack.i.h.bf16 %v11731_v26  ;;  %v11732_v18 = vunpack.i.l.bf16 %v11731_v26  ;;  %v11743_v56 = vunpack.i.h.bf16 %v11741_v24  ;;  %v11742_v55 = vunpack.i.l.bf16 %v11741_v24 }
 0xadb   :  { %v2101_v59 = vsel %vm123_vm5, %v11733_v31, %v2094_v36  ;;  %v2100_v58 = vsel %vm123_vm5, %v2094_v36, %v11732_v18  ;;  %v2099_v61 = vsel %vm123_vm5, %v11732_v18, %v11733_v31  ;;  %v2123_v32 = vsel %vm149_vm6, %v11742_v55, %v11743_v56 }
 0xadc   :  { %v2118_v8 = vpop.permute.xlu1 %2117  ;;  %v11736_v7 = vpop.permute.xlu0 %11735  ;;  %v10546_v12 = vpack.c.bf16 %v2099_v61, %v13746_v28  ;;  %v10565_v13 = vpack.c.bf16 %v2101_v59, %v13730_v57  ;;  %v10548_v34 = vpack.c.bf16 %v2100_v58, %v13743_v22 }
 0xadd   :  { %v11738_v20 = vunpack.i.h.bf16 %v11736_v7  ;;  %v11737_v27 = vunpack.i.l.bf16 %v11736_v7  ;;  %v2124_v1 = vsel %vm149_vm6, %v2118_v8, %v11742_v55  ;;  %v2125_v30 = vsel %vm149_vm6, %v11743_v56, %v2118_v8 }
 0xade   :  { %10547 = vmatprep.subr.bf16.mxu0 %v10546_v12  ;;  %10566 = vmatpush3.bf16.msra.mxu1 %v10565_v13 }
 0xadf   :  { %v2113_v28 = vsel %vm136_vm7, %v11738_v20, %v2106_v38  ;;  %v2112_v57 = vsel %vm136_vm7, %v2106_v38, %v11737_v27  ;;  %10549 = vmatpush1.bf16.msra.mxu0 %v10548_v34  ;;  %10567 = vmatprep.subr.bf16.mxu1 %v12837_v0  ;;  %v2111_v22 = vsel %vm136_vm7, %v11737_v27, %v11738_v20 }
 0xae0   :  { %v11746_v37 = vpop.permute.xlu0 %11745  ;;  %v10550_v40 = vpack.c.bf16 %v2123_v32, %v2111_v22  ;;  %v10568_v5 = vpack.c.bf16 %v2125_v30, %v2113_v28  ;;  %v10552_v60 = vpack.c.bf16 %v2124_v1, %v2112_v57  ;;  %v2130_v17 = vpop.permute.xlu1 %2129 }
 0xae1   :  { %v11748_v63 = vunpack.i.h.bf16 %v11746_v37  ;;  %v11747_v41 = vunpack.i.l.bf16 %v11746_v37 }
 0xae2   :  { %10551 = vmatprep.subr.bf16.mxu0 %v10550_v40  ;;  %10569 = vmatpush3.bf16.msra.mxu1 %v10568_v5 }
 0xae3   :  { %v2137_v14 = vsel %vm162_vm8, %v11748_v63, %v2130_v17  ;;  %v2136_v16 = vsel %vm162_vm8, %v2130_v17, %v11747_v41  ;;  %10553 = vmatpush1.bf16.msra.mxu0 %v10552_v60  ;;  %10570 = vmatprep.subr.bf16.mxu1 %v12837_v0  ;;  %v2135_v42 = vsel %vm162_vm8, %v11747_v41, %v11748_v63 }
 0xae4   :  { %v10554_v43 = vpack.c.bf16 %v12848_v19, %v2135_v42  ;;  %v10571_v44 = vpack.c.bf16 %v12848_v19, %v2137_v14  ;;  %v10556_v45 = vpack.c.bf16 %v12848_v19, %v2136_v16 }
 0xae6   :  { %10555 = vmatprep.subr.bf16.mxu0 %v10554_v43  ;;  %10572 = vmatpush3.bf16.msra.mxu1 %v10571_v44 }
 0xae7   :  { %10557 = vmatpush1.bf16.msra.mxu0 %v10556_v45  ;;  %10593 = vmatprep.subr.bf16.mxu1 %v12837_v0 }
 0xae9   :  { %9739 = vmatmul.mubr.msk.f32.vlgmr.msra.gmra.mrb[14].mxu1 %vm199_vm9, %v13475_v11 }
 0xaea   :  { %9155 = vmatmul.mubr.msk.f32.vlgmr.msra.gmra.mrb[14].mxu0 %vm199_vm9, %v13475_v11  ;;  %9761 = vmatprep.mubr.msk.f32.mxu1 %vm12845_vm0, %v12846_v6 }
 0xaeb   :  { %2529 = vmatprep.mubr.f32.mxu0 %v12846_v6 }
 0xbbc   :  { %v2308_v35 = vpop.f32.mrb[14].mxu1 }
 0xbbd   :  { %v2314_v29 = vmul.f32 %v13484_v2, %v2308_v35  ;;  %v2237_v33 = vpop.f32.mrb[14].mxu0  ;;  %v9740_v46 = vpop.f32.mrb[15].mxu1 }
 0xbbe   :  { %v2312_v47 = vmul.f32 %v13489_v21, %v2237_v33  ;;  %v2239_v48 = vpop.f32.mrb[15].mxu0 }
 0xbbf   :  { %v2329_v49 = vadd.f32 %v13732_v62, %v2314_v29  ;;  %v2313_v39 = vmul.f32 %v13495_v10, %v2239_v48 }
 0xbc0   :  { %v2327_v36 = vadd.f32 %v13734_v4, %v2312_v47 }
 0xbc1   :  { %v2332_v11 = vmul.f32 0.020833334, %v2329_v49  ;;  %v2328_v38 = vadd.f32 %v13740_v3, %v2313_v39 }
 0xbc2   :  { %v2330_v50 = vmul.f32 0.020833334, %v2327_v36 }
 0xbc3   :  { %v13845_v23 = vadd.f32 %v2332_v11, %v13382_v52  ;;  %v2331_v51 = vmul.f32 0.020833334, %v2328_v38 }
 0xbc4   :  { %v13852_v2 = vadd.f32 %v2330_v50, %v13388_v25 }
 0xbc5   :  { %2352 = vrot.lane.b32.xlu1 %v13845_v23, %s12839_s2  ;;  %2340 = vrot.lane.b32.xlu0 %v13845_v23, %s12838_s19  ;;  %v13855_v21 = vadd.f32 %v2331_v51, %v13390_v15 }
 0xbc7   :  { %v11754_v52 = vpack.i.bf16 %v13855_v21, %v13852_v2  ;;  %v11779_v25 = vpack.i.bf16 %v13845_v23, %v13855_v21 }
 0xbc9   :  { %2376 = vrot.lane.b32.xlu1 %v13845_v23, %s12840_s20  ;;  %2364 = vrot.lane.b32.xlu0 %v13845_v23, %s12841_s21 }
 0xbcd   :  { %11755 = vrot.lane.b32.xlu1 %v11754_v52, %s12839_s2  ;;  %11750 = vrot.lane.b32.xlu0 %v11754_v52, %s12838_s19 }
 0xbd1   :  { %11765 = vrot.lane.b32.xlu1 %v11754_v52, %s12840_s20  ;;  %11760 = vrot.lane.b32.xlu0 %v11754_v52, %s12841_s21 }
 0xbd5   :  { %2387 = vrot.lane.b32.xlu1 %v13852_v2, %s12842_s22  ;;  %2399 = vrot.lane.b32.xlu0 %v13852_v2, %s12844_s24 }
 0xbd9   :  { %11780 = vrot.lane.b32.xlu1 %v11779_v25, %s12843_s23  ;;  %11770 = vrot.lane.b32.xlu0 %v11779_v25, %s12842_s22 }
 0xbdd   :  { %2411 = vrot.lane.b32.xlu1 %v13852_v2, %s12843_s23  ;;  %11775 = vrot.lane.b32.xlu0 %v11779_v25, %s12844_s24 }
 0xbe1   :  { %2423 = vrot.lane.b32.xlu1 %v13852_v2, %s12847_s25  ;;  %11785 = vrot.lane.b32.xlu0 %v11779_v25, %s12847_s25 }
 0xc37   :  { %v2353_v15 = vpop.permute.xlu1 %2352  ;;  %v2341_v10 = vpop.permute.xlu0 %2340 }
 0xc3b   :  { %v2377_v62 = vpop.permute.xlu1 %2376  ;;  %v2365_v4 = vpop.permute.xlu0 %2364 }
 0xc3f   :  { %v11756_v3 = vpop.permute.xlu1 %11755  ;;  %v11751_v53 = vpop.permute.xlu0 %11750 }
 0xc40   :  { %v11758_v54 = vunpack.i.h.bf16 %v11756_v3  ;;  %v11757_v24 = vunpack.i.l.bf16 %v11756_v3  ;;  %v11753_v26 = vunpack.i.h.bf16 %v11751_v53  ;;  %v11752_v31 = vunpack.i.l.bf16 %v11751_v53 }
 0xc42   :  { %v2354_v18 = vsel %vm81_vm2, %v11758_v54, %v2353_v15  ;;  %v2356_v56 = vsel %vm81_vm2, %v2353_v15, %v11757_v24  ;;  %v2342_v55 = vsel %vm68_vm1, %v11753_v26, %v2341_v10  ;;  %v2344_v59 = vsel %vm68_vm1, %v2341_v10, %v11752_v31 }
 0xc43   :  { %v11766_v58 = vpop.permute.xlu1 %11765  ;;  %v11761_v61 = vpop.permute.xlu0 %11760  ;;  %v2343_v8 = vsel %vm68_vm1, %v11752_v31, %v11753_v26  ;;  %v2355_v7 = vsel %vm81_vm2, %v11757_v24, %v11758_v54  ;;  %v10594_v12 = vpack.c.bf16 %v2354_v18, %v2342_v55  ;;  %v10575_v13 = vpack.c.bf16 %v2356_v56, %v2344_v59 }
 0xc44   :  { %v11768_v34 = vunpack.i.h.bf16 %v11766_v58  ;;  %v11767_v20 = vunpack.i.l.bf16 %v11766_v58  ;;  %v11763_v27 = vunpack.i.h.bf16 %v11761_v61  ;;  %v11762_v1 = vunpack.i.l.bf16 %v11761_v61  ;;  %v13940_v58 = vld [vmem:[#allocation6] sm:$0xff] }
 0xc45   :  { %v10573_v30 = vpack.c.bf16 %v2355_v7, %v2343_v8  ;;  %10595 = vmatpush3.bf16.msra.mxu1 %v10594_v12  ;;  %v13949_v8 = vld [vmem:[#allocation8 + $0x10] sm:$0xff] }
 0xc46   :  { %v2378_v32 = vsel %vm107_vm3, %v11768_v34, %v2377_v62  ;;  %v2380_v28 = vsel %vm107_vm3, %v2377_v62, %v11767_v20  ;;  %v2366_v57 = vsel %vm94_vm4, %v11763_v27, %v2365_v4  ;;  %v2368_v22 = vsel %vm94_vm4, %v2365_v4, %v11762_v1  ;;  %10596 = vmatprep.subr.bf16.mxu1 %v12837_v0 }
 0xc47   :  { %10574 = vmatprep.subr.bf16.mxu0 %v10573_v30  ;;  %v2388_v37 = vpop.permute.xlu1 %2387  ;;  %v2400_v40 = vpop.permute.xlu0 %2399  ;;  %v2367_v5 = vsel %vm94_vm4, %v11762_v1, %v11763_v27  ;;  %v2379_v60 = vsel %vm107_vm3, %v11767_v20, %v11768_v34  ;;  %v10597_v63 = vpack.c.bf16 %v2378_v32, %v2366_v57  ;;  %v10579_v17 = vpack.c.bf16 %v2380_v28, %v2368_v22  ;;  %v13954_v34 = vld [vmem:[#allocation8] sm:$0xff]  ;;  %v13960_v30 = vld [vmem:[#allocation8 + $0x8] sm:$0xff] }
 0xc48   :  { %10576 = vmatpush1.bf16.msra.mxu0 %v10575_v13  ;;  %v10577_v41 = vpack.c.bf16 %v2379_v60, %v2367_v5 }
 0xc49   :  { %10598 = vmatpush3.bf16.msra.mxu1 %v10597_v63 }
 0xc4a   :  { %10578 = vmatprep.subr.bf16.mxu0 %v10577_v41  ;;  %10599 = vmatprep.subr.bf16.mxu1 %v12837_v0 }
 0xc4b   :  { %v11781_v14 = vpop.permute.xlu1 %11780  ;;  %v11771_v16 = vpop.permute.xlu0 %11770 }
 0xc4c   :  { %10580 = vmatpush1.bf16.msra.mxu0 %v10579_v17  ;;  %v11773_v42 = vunpack.i.h.bf16 %v11771_v16  ;;  %v11772_v43 = vunpack.i.l.bf16 %v11771_v16  ;;  %v11783_v44 = vunpack.i.h.bf16 %v11781_v14  ;;  %v11782_v45 = vunpack.i.l.bf16 %v11781_v14 }
 0xc4e   :  { %v2395_v35 = vsel %vm123_vm5, %v11773_v42, %v2388_v37  ;;  %v2394_v29 = vsel %vm123_vm5, %v2388_v37, %v11772_v43  ;;  %v2393_v33 = vsel %vm123_vm5, %v11772_v43, %v11773_v42  ;;  %v2417_v51 = vsel %vm149_vm6, %v11782_v45, %v11783_v44 }
 0xc4f   :  { %v2412_v46 = vpop.permute.xlu1 %2411  ;;  %v11776_v47 = vpop.permute.xlu0 %11775  ;;  %v10581_v48 = vpack.c.bf16 %v2393_v33, %v13855_v21  ;;  %v10600_v49 = vpack.c.bf16 %v2395_v35, %v13845_v23  ;;  %v10583_v39 = vpack.c.bf16 %v2394_v29, %v13852_v2 }
 0xc50   :  { %v11778_v36 = vunpack.i.h.bf16 %v11776_v47  ;;  %v11777_v11 = vunpack.i.l.bf16 %v11776_v47  ;;  %v2418_v38 = vsel %vm149_vm6, %v2412_v46, %v11782_v45  ;;  %v2419_v50 = vsel %vm149_vm6, %v11783_v44, %v2412_v46 }
 0xc51   :  { %10582 = vmatprep.subr.bf16.mxu0 %v10581_v48  ;;  %10601 = vmatpush3.bf16.msra.mxu1 %v10600_v49 }
 0xc52   :  { %v2407_v52 = vsel %vm136_vm7, %v11778_v36, %v2400_v40  ;;  %v2406_v25 = vsel %vm136_vm7, %v2400_v40, %v11777_v11  ;;  %10584 = vmatpush1.bf16.msra.mxu0 %v10583_v39  ;;  %10602 = vmatprep.subr.bf16.mxu1 %v12837_v0  ;;  %v2405_v15 = vsel %vm136_vm7, %v11777_v11, %v11778_v36 }
 0xc53   :  { %v11786_v10 = vpop.permute.xlu0 %11785  ;;  %v10585_v62 = vpack.c.bf16 %v2417_v51, %v2405_v15  ;;  %v10603_v4 = vpack.c.bf16 %v2419_v50, %v2407_v52  ;;  %v10587_v3 = vpack.c.bf16 %v2418_v38, %v2406_v25  ;;  %v2424_v24 = vpop.permute.xlu1 %2423 }
 0xc54   :  { %v11788_v53 = vunpack.i.h.bf16 %v11786_v10  ;;  %v11787_v54 = vunpack.i.l.bf16 %v11786_v10 }
 0xc55   :  { %10586 = vmatprep.subr.bf16.mxu0 %v10585_v62  ;;  %10604 = vmatpush3.bf16.msra.mxu1 %v10603_v4 }
 0xc56   :  { %v2431_v26 = vsel %vm162_vm8, %v11788_v53, %v2424_v24  ;;  %v2430_v31 = vsel %vm162_vm8, %v2424_v24, %v11787_v54  ;;  %10588 = vmatpush1.bf16.msra.mxu0 %v10587_v3  ;;  %10605 = vmatprep.subr.bf16.mxu1 %v12837_v0  ;;  %v2429_v18 = vsel %vm162_vm8, %v11787_v54, %v11788_v53 }
 0xc57   :  { %v10589_v56 = vpack.c.bf16 %v12848_v19, %v2429_v18  ;;  %v10606_v55 = vpack.c.bf16 %v12848_v19, %v2431_v26  ;;  %v10591_v59 = vpack.c.bf16 %v12848_v19, %v2430_v31 }
 0xc59   :  { %10590 = vmatprep.subr.bf16.mxu0 %v10589_v56  ;;  %10607 = vmatpush3.bf16.msra.mxu1 %v10606_v55 }
 0xc5a   :  { %10592 = vmatpush1.bf16.msra.mxu0 %v10591_v59  ;;  %10628 = vmatprep.subr.bf16.mxu1 %v12837_v0 }
 0xc5c   :  { %9762 = vmatmul.mubr.msk.f32.vlgmr.msra.gmra.mrb[16].mxu1 %vm199_vm9, %v13940_v58 }
 0xc5d   :  { %9157 = vmatmul.mubr.msk.f32.vlgmr.msra.gmra.mrb[16].mxu0 %vm199_vm9, %v13940_v58  ;;  %9784 = vmatprep.mubr.msk.f32.mxu1 %vm12845_vm0, %v12846_v6 }
 0xc5e   :  { %2808 = vmatprep.mubr.f32.mxu0 %v12846_v6 }
 0xd2f   :  { %v2602_v61 = vpop.f32.mrb[16].mxu1 }
 0xd30   :  { %v13952_v7 = vmul.f32 %v13949_v8, %v2602_v61  ;;  %v2531_v12 = vpop.f32.mrb[16].mxu0  ;;  %v9763_v13 = vpop.f32.mrb[17].mxu1 }
 0xd31   :  { %v13957_v20 = vmul.f32 %v13954_v34, %v2531_v12  ;;  %v2533_v27 = vpop.f32.mrb[17].mxu0 }
 0xd32   :  { %v2611_v1 = vmul.f32 0.0625, %v13952_v7  ;;  %v13963_v32 = vmul.f32 %v13960_v30, %v2533_v27 }
 0xd33   :  { %v2609_v57 = vmul.f32 0.0625, %v13957_v20 }
 0xd34   :  { %v13966_v28 = vadd.f32 %v2611_v1, %v13845_v23  ;;  %v2610_v22 = vmul.f32 0.0625, %v13963_v32 }
 0xd35   :  { %v13975_v37 = vadd.f32 %v2609_v57, %v13852_v2 }
 0xd36   :  { %2631 = vrot.lane.b32.xlu1 %v13966_v28, %s12839_s2  ;;  %2619 = vrot.lane.b32.xlu0 %v13966_v28, %s12838_s19  ;;  %v13978_v40 = vadd.f32 %v2610_v22, %v13855_v21 }
 0xd38   :  { %v11794_v5 = vpack.i.bf16 %v13978_v40, %v13975_v37  ;;  %v11819_v60 = vpack.i.bf16 %v13966_v28, %v13978_v40 }
 0xd3a   :  { %2655 = vrot.lane.b32.xlu1 %v13966_v28, %s12840_s20  ;;  %2643 = vrot.lane.b32.xlu0 %v13966_v28, %s12841_s21 }
 0xd3e   :  { %11795 = vrot.lane.b32.xlu1 %v11794_v5, %s12839_s2  ;;  %11790 = vrot.lane.b32.xlu0 %v11794_v5, %s12838_s19 }
 0xd42   :  { %11805 = vrot.lane.b32.xlu1 %v11794_v5, %s12840_s20  ;;  %11800 = vrot.lane.b32.xlu0 %v11794_v5, %s12841_s21 }
 0xd46   :  { %2666 = vrot.lane.b32.xlu1 %v13975_v37, %s12842_s22  ;;  %2678 = vrot.lane.b32.xlu0 %v13975_v37, %s12844_s24 }
 0xd4a   :  { %11820 = vrot.lane.b32.xlu1 %v11819_v60, %s12843_s23  ;;  %11810 = vrot.lane.b32.xlu0 %v11819_v60, %s12842_s22 }
 0xd4e   :  { %2690 = vrot.lane.b32.xlu1 %v13975_v37, %s12843_s23  ;;  %11815 = vrot.lane.b32.xlu0 %v11819_v60, %s12844_s24 }
 0xd52   :  { %2702 = vrot.lane.b32.xlu1 %v13975_v37, %s12847_s25  ;;  %11825 = vrot.lane.b32.xlu0 %v11819_v60, %s12847_s25 }
 0xda8   :  { %v2632_v63 = vpop.permute.xlu1 %2631  ;;  %v2620_v41 = vpop.permute.xlu0 %2619 }
 0xdac   :  { %v2656_v17 = vpop.permute.xlu1 %2655  ;;  %v2644_v14 = vpop.permute.xlu0 %2643 }
 0xdb0   :  { %v11796_v16 = vpop.permute.xlu1 %11795  ;;  %v11791_v42 = vpop.permute.xlu0 %11790 }
 0xdb1   :  { %v11798_v43 = vunpack.i.h.bf16 %v11796_v16  ;;  %v11797_v44 = vunpack.i.l.bf16 %v11796_v16  ;;  %v11793_v45 = vunpack.i.h.bf16 %v11791_v42  ;;  %v11792_v35 = vunpack.i.l.bf16 %v11791_v42 }
 0xdb3   :  { %v2633_v29 = vsel %vm81_vm2, %v11798_v43, %v2632_v63  ;;  %v2635_v33 = vsel %vm81_vm2, %v2632_v63, %v11797_v44  ;;  %v2621_v46 = vsel %vm68_vm1, %v11793_v45, %v2620_v41  ;;  %v2623_v47 = vsel %vm68_vm1, %v2620_v41, %v11792_v35 }
 0xdb4   :  { %v11806_v48 = vpop.permute.xlu1 %11805  ;;  %v11801_v49 = vpop.permute.xlu0 %11800  ;;  %v2622_v39 = vsel %vm68_vm1, %v11792_v35, %v11793_v45  ;;  %v2634_v36 = vsel %vm81_vm2, %v11797_v44, %v11798_v43  ;;  %v10629_v11 = vpack.c.bf16 %v2633_v29, %v2621_v46  ;;  %v10610_v38 = vpack.c.bf16 %v2635_v33, %v2623_v47 }
 0xdb5   :  { %v11808_v50 = vunpack.i.h.bf16 %v11806_v48  ;;  %v11807_v51 = vunpack.i.l.bf16 %v11806_v48  ;;  %v11803_v52 = vunpack.i.h.bf16 %v11801_v49  ;;  %v11802_v25 = vunpack.i.l.bf16 %v11801_v49 }
 0xdb6   :  { %v10608_v15 = vpack.c.bf16 %v2634_v36, %v2622_v39  ;;  %10630 = vmatpush3.bf16.msra.mxu1 %v10629_v11 }
 0xdb7   :  { %v2657_v10 = vsel %vm107_vm3, %v11808_v50, %v2656_v17  ;;  %v2659_v62 = vsel %vm107_vm3, %v2656_v17, %v11807_v51  ;;  %v2645_v4 = vsel %vm94_vm4, %v11803_v52, %v2644_v14  ;;  %v2647_v3 = vsel %vm94_vm4, %v2644_v14, %v11802_v25  ;;  %10631 = vmatprep.subr.bf16.mxu1 %v12837_v0 }
 0xdb8   :  { %10609 = vmatprep.subr.bf16.mxu0 %v10608_v15  ;;  %v2667_v53 = vpop.permute.xlu1 %2666  ;;  %v2679_v54 = vpop.permute.xlu0 %2678  ;;  %v2646_v24 = vsel %vm94_vm4, %v11802_v25, %v11803_v52  ;;  %v2658_v26 = vsel %vm107_vm3, %v11807_v51, %v11808_v50  ;;  %v10632_v31 = vpack.c.bf16 %v2657_v10, %v2645_v4  ;;  %v10614_v56 = vpack.c.bf16 %v2659_v62, %v2647_v3 }
 0xdb9   :  { %10611 = vmatpush1.bf16.msra.mxu0 %v10610_v38  ;;  %v10612_v18 = vpack.c.bf16 %v2658_v26, %v2646_v24 }
 0xdba   :  { %10633 = vmatpush3.bf16.msra.mxu1 %v10632_v31 }
 0xdbb   :  { %10613 = vmatprep.subr.bf16.mxu0 %v10612_v18  ;;  %10634 = vmatprep.subr.bf16.mxu1 %v12837_v0 }
 0xdbc   :  { %v11821_v55 = vpop.permute.xlu1 %11820  ;;  %v11811_v59 = vpop.permute.xlu0 %11810 }
 0xdbd   :  { %10615 = vmatpush1.bf16.msra.mxu0 %v10614_v56  ;;  %v11813_v61 = vunpack.i.h.bf16 %v11811_v59  ;;  %v11812_v12 = vunpack.i.l.bf16 %v11811_v59  ;;  %v11823_v13 = vunpack.i.h.bf16 %v11821_v55  ;;  %v11822_v27 = vunpack.i.l.bf16 %v11821_v55 }
 0xdbf   :  { %v2674_v1 = vsel %vm123_vm5, %v11813_v61, %v2667_v53  ;;  %v2673_v57 = vsel %vm123_vm5, %v2667_v53, %v11812_v12  ;;  %v2672_v22 = vsel %vm123_vm5, %v11812_v12, %v11813_v61  ;;  %v2696_v44 = vsel %vm149_vm6, %v11822_v27, %v11823_v13 }
 0xdc0   :  { %v2691_v5 = vpop.permute.xlu1 %2690  ;;  %v11816_v60 = vpop.permute.xlu0 %11815  ;;  %v10616_v63 = vpack.c.bf16 %v2672_v22, %v13978_v40  ;;  %v10635_v41 = vpack.c.bf16 %v2674_v1, %v13966_v28  ;;  %v10618_v17 = vpack.c.bf16 %v2673_v57, %v13975_v37 }
 0xdc1   :  { %v11818_v14 = vunpack.i.h.bf16 %v11816_v60  ;;  %v11817_v16 = vunpack.i.l.bf16 %v11816_v60  ;;  %v2697_v42 = vsel %vm149_vm6, %v2691_v5, %v11822_v27  ;;  %v2698_v43 = vsel %vm149_vm6, %v11823_v13, %v2691_v5 }
 0xdc2   :  { %10617 = vmatprep.subr.bf16.mxu0 %v10616_v63  ;;  %10636 = vmatpush3.bf16.msra.mxu1 %v10635_v41 }
 0xdc3   :  { %v2686_v40 = vsel %vm136_vm7, %v11818_v14, %v2679_v54  ;;  %v2685_v28 = vsel %vm136_vm7, %v2679_v54, %v11817_v16  ;;  %10619 = vmatpush1.bf16.msra.mxu0 %v10618_v17  ;;  %10637 = vmatprep.subr.bf16.mxu1 %v12837_v0  ;;  %v2684_v37 = vsel %vm136_vm7, %v11817_v16, %v11818_v14 }
 0xdc4   :  { %v11826_v45 = vpop.permute.xlu0 %11825  ;;  %v10620_v35 = vpack.c.bf16 %v2696_v44, %v2684_v37  ;;  %v10638_v29 = vpack.c.bf16 %v2698_v43, %v2686_v40  ;;  %v10622_v33 = vpack.c.bf16 %v2697_v42, %v2685_v28  ;;  %v2703_v48 = vpop.permute.xlu1 %2702 }
 0xdc5   :  { %v11828_v46 = vunpack.i.h.bf16 %v11826_v45  ;;  %v11827_v47 = vunpack.i.l.bf16 %v11826_v45 }
 0xdc6   :  { %10621 = vmatprep.subr.bf16.mxu0 %v10620_v35  ;;  %10639 = vmatpush3.bf16.msra.mxu1 %v10638_v29 }
 0xdc7   :  { %v2710_v49 = vsel %vm162_vm8, %v11828_v46, %v2703_v48  ;;  %v2709_v39 = vsel %vm162_vm8, %v2703_v48, %v11827_v47  ;;  %10623 = vmatpush1.bf16.msra.mxu0 %v10622_v33  ;;  %10640 = vmatprep.subr.bf16.mxu1 %v12837_v0  ;;  %v2708_v36 = vsel %vm162_vm8, %v11827_v47, %v11828_v46 }
 0xdc8   :  { %v10624_v11 = vpack.c.bf16 %v12848_v19, %v2708_v36  ;;  %v10641_v38 = vpack.c.bf16 %v12848_v19, %v2710_v49  ;;  %v10626_v50 = vpack.c.bf16 %v12848_v19, %v2709_v39 }
 0xdca   :  { %10625 = vmatprep.subr.bf16.mxu0 %v10624_v11  ;;  %10642 = vmatpush3.bf16.msra.mxu1 %v10641_v38 }
 0xdcb   :  { %10627 = vmatpush1.bf16.msra.mxu0 %v10626_v50  ;;  %10663 = vmatprep.subr.bf16.mxu1 %v12837_v0 }
 0xdcd   :  { %9785 = vmatmul.mubr.msk.f32.vlgmr.msra.gmra.mrb[18].mxu1 %vm199_vm9, %v13940_v58 }
 0xdce   :  { %9159 = vmatmul.mubr.msk.f32.vlgmr.msra.gmra.mrb[18].mxu0 %vm199_vm9, %v13940_v58  ;;  %9807 = vmatprep.mubr.msk.f32.mxu1 %vm12845_vm0, %v12846_v6 }
 0xdcf   :  { %3087 = vmatprep.mubr.f32.mxu0 %v12846_v6 }
 0xea0   :  { %v2881_v51 = vpop.f32.mrb[18].mxu1 }
 0xea1   :  { %v14071_v52 = vmul.f32 %v13949_v8, %v2881_v51  ;;  %v2810_v25 = vpop.f32.mrb[18].mxu0  ;;  %v9786_v15 = vpop.f32.mrb[19].mxu1 }
 0xea2   :  { %v14074_v10 = vmul.f32 %v13954_v34, %v2810_v25  ;;  %v2812_v62 = vpop.f32.mrb[19].mxu0 }
 0xea3   :  { %v2890_v4 = vmul.f32 0.0625, %v14071_v52  ;;  %v14078_v3 = vmul.f32 %v13960_v30, %v2812_v62 }
 0xea4   :  { %v2888_v54 = vmul.f32 0.0625, %v14074_v10 }
 0xea5   :  { %v14081_v53 = vadd.f32 %v2890_v4, %v13845_v23  ;;  %v2889_v24 = vmul.f32 0.0625, %v14078_v3 }
 0xea6   :  { %v14090_v26 = vadd.f32 %v2888_v54, %v13852_v2 }
 0xea7   :  { %2910 = vrot.lane.b32.xlu1 %v14081_v53, %s12839_s2  ;;  %2898 = vrot.lane.b32.xlu0 %v14081_v53, %s12838_s19  ;;  %v14093_v31 = vadd.f32 %v2889_v24, %v13855_v21 }
 0xea9   :  { %v11834_v18 = vpack.i.bf16 %v14093_v31, %v14090_v26  ;;  %v11859_v56 = vpack.i.bf16 %v14081_v53, %v14093_v31 }
 0xeab   :  { %2934 = vrot.lane.b32.xlu1 %v14081_v53, %s12840_s20  ;;  %2922 = vrot.lane.b32.xlu0 %v14081_v53, %s12841_s21 }
 0xeaf   :  { %11835 = vrot.lane.b32.xlu1 %v11834_v18, %s12839_s2  ;;  %11830 = vrot.lane.b32.xlu0 %v11834_v18, %s12838_s19 }
 0xeb3   :  { %11845 = vrot.lane.b32.xlu1 %v11834_v18, %s12840_s20  ;;  %11840 = vrot.lane.b32.xlu0 %v11834_v18, %s12841_s21 }
 0xeb7   :  { %2945 = vrot.lane.b32.xlu1 %v14090_v26, %s12842_s22  ;;  %2957 = vrot.lane.b32.xlu0 %v14090_v26, %s12844_s24 }
 0xebb   :  { %11860 = vrot.lane.b32.xlu1 %v11859_v56, %s12843_s23  ;;  %11850 = vrot.lane.b32.xlu0 %v11859_v56, %s12842_s22 }
 0xebf   :  { %2969 = vrot.lane.b32.xlu1 %v14090_v26, %s12843_s23  ;;  %11855 = vrot.lane.b32.xlu0 %v11859_v56, %s12844_s24 }
 0xec3   :  { %2981 = vrot.lane.b32.xlu1 %v14090_v26, %s12847_s25  ;;  %11865 = vrot.lane.b32.xlu0 %v11859_v56, %s12847_s25 }
 0xf19   :  { %v2911_v55 = vpop.permute.xlu1 %2910  ;;  %v2899_v59 = vpop.permute.xlu0 %2898 }
 0xf1d   :  { %v2935_v61 = vpop.permute.xlu1 %2934  ;;  %v2923_v12 = vpop.permute.xlu0 %2922 }
 0xf21   :  { %v11836_v13 = vpop.permute.xlu1 %11835  ;;  %v11831_v27 = vpop.permute.xlu0 %11830 }
 0xf22   :  { %v11838_v1 = vunpack.i.h.bf16 %v11836_v13  ;;  %v11837_v57 = vunpack.i.l.bf16 %v11836_v13  ;;  %v11833_v22 = vunpack.i.h.bf16 %v11831_v27  ;;  %v11832_v5 = vunpack.i.l.bf16 %v11831_v27 }
 0xf24   :  { %v2912_v60 = vsel %vm81_vm2, %v11838_v1, %v2911_v55  ;;  %v2914_v63 = vsel %vm81_vm2, %v2911_v55, %v11837_v57  ;;  %v2900_v41 = vsel %vm68_vm1, %v11833_v22, %v2899_v59  ;;  %v2902_v17 = vsel %vm68_vm1, %v2899_v59, %v11832_v5 }
 0xf25   :  { %v11846_v14 = vpop.permute.xlu1 %11845  ;;  %v11841_v16 = vpop.permute.xlu0 %11840  ;;  %v2901_v42 = vsel %vm68_vm1, %v11832_v5, %v11833_v22  ;;  %v2913_v43 = vsel %vm81_vm2, %v11837_v57, %v11838_v1  ;;  %v10664_v44 = vpack.c.bf16 %v2912_v60, %v2900_v41  ;;  %v10645_v40 = vpack.c.bf16 %v2914_v63, %v2902_v17 }
 0xf26   :  { %v11848_v28 = vunpack.i.h.bf16 %v11846_v14  ;;  %v11847_v37 = vunpack.i.l.bf16 %v11846_v14  ;;  %v11843_v45 = vunpack.i.h.bf16 %v11841_v16  ;;  %v11842_v35 = vunpack.i.l.bf16 %v11841_v16 }
 0xf27   :  { %v10643_v29 = vpack.c.bf16 %v2913_v43, %v2901_v42  ;;  %10665 = vmatpush3.bf16.msra.mxu1 %v10664_v44 }
 0xf28   :  { %v2936_v33 = vsel %vm107_vm3, %v11848_v28, %v2935_v61  ;;  %v2938_v46 = vsel %vm107_vm3, %v2935_v61, %v11847_v37  ;;  %v2924_v47 = vsel %vm94_vm4, %v11843_v45, %v2923_v12  ;;  %v2926_v48 = vsel %vm94_vm4, %v2923_v12, %v11842_v35  ;;  %10666 = vmatprep.subr.bf16.mxu1 %v12837_v0 }
 0xf29   :  { %10644 = vmatprep.subr.bf16.mxu0 %v10643_v29  ;;  %v2946_v49 = vpop.permute.xlu1 %2945  ;;  %v2958_v39 = vpop.permute.xlu0 %2957  ;;  %v2925_v36 = vsel %vm94_vm4, %v11842_v35, %v11843_v45  ;;  %v2937_v11 = vsel %vm107_vm3, %v11847_v37, %v11848_v28  ;;  %v10667_v38 = vpack.c.bf16 %v2936_v33, %v2924_v47  ;;  %v10649_v51 = vpack.c.bf16 %v2938_v46, %v2926_v48 }
 0xf2a   :  { %10646 = vmatpush1.bf16.msra.mxu0 %v10645_v40  ;;  %v10647_v50 = vpack.c.bf16 %v2937_v11, %v2925_v36  ;;  %v3448_v29 = vmul.f32 2.0, %v14071_v52  ;;  %v3446_v33 = vmul.f32 2.0, %v14074_v10  ;;  %v3447_v46 = vmul.f32 2.0, %v14078_v3 }
 0xf2b   :  { %10668 = vmatpush3.bf16.msra.mxu1 %v10667_v38 }
 0xf2c   :  { %10648 = vmatprep.subr.bf16.mxu0 %v10647_v50  ;;  %10669 = vmatprep.subr.bf16.mxu1 %v12837_v0  ;;  %v3451_v38 = vadd.f32 %v3448_v29, %v13952_v7  ;;  %v3449_v52 = vadd.f32 %v3446_v33, %v13957_v20  ;;  %v3450_v10 = vadd.f32 %v3447_v46, %v13963_v32 }
 0xf2d   :  { %v11861_v25 = vpop.permute.xlu1 %11860  ;;  %v11851_v15 = vpop.permute.xlu0 %11850 }
 0xf2e   :  { %10650 = vmatpush1.bf16.msra.mxu0 %v10649_v51  ;;  %v11853_v62 = vunpack.i.h.bf16 %v11851_v15  ;;  %v11852_v4 = vunpack.i.l.bf16 %v11851_v15  ;;  %v11863_v54 = vunpack.i.h.bf16 %v11861_v25  ;;  %v11862_v24 = vunpack.i.l.bf16 %v11861_v25 }
 0xf30   :  { %v2953_v18 = vsel %vm123_vm5, %v11853_v62, %v2946_v49  ;;  %v2952_v56 = vsel %vm123_vm5, %v2946_v49, %v11852_v4  ;;  %v2951_v55 = vsel %vm123_vm5, %v11852_v4, %v11853_v62  ;;  %v2975_v60 = vsel %vm149_vm6, %v11862_v24, %v11863_v54 }
 0xf31   :  { %v2970_v59 = vpop.permute.xlu1 %2969  ;;  %v11856_v61 = vpop.permute.xlu0 %11855  ;;  %v10651_v12 = vpack.c.bf16 %v2951_v55, %v14093_v31  ;;  %v10670_v13 = vpack.c.bf16 %v2953_v18, %v14081_v53  ;;  %v10653_v27 = vpack.c.bf16 %v2952_v56, %v14090_v26 }
 0xf32   :  { %v11858_v1 = vunpack.i.h.bf16 %v11856_v61  ;;  %v11857_v57 = vunpack.i.l.bf16 %v11856_v61  ;;  %v2976_v22 = vsel %vm149_vm6, %v2970_v59, %v11862_v24  ;;  %v2977_v5 = vsel %vm149_vm6, %v11863_v54, %v2970_v59 }
 0xf33   :  { %10652 = vmatprep.subr.bf16.mxu0 %v10651_v12  ;;  %10671 = vmatpush3.bf16.msra.mxu1 %v10670_v13 }
 0xf34   :  { %v2965_v31 = vsel %vm136_vm7, %v11858_v1, %v2958_v39  ;;  %v2964_v53 = vsel %vm136_vm7, %v2958_v39, %v11857_v57  ;;  %10654 = vmatpush1.bf16.msra.mxu0 %v10653_v27  ;;  %10672 = vmatprep.subr.bf16.mxu1 %v12837_v0  ;;  %v2963_v26 = vsel %vm136_vm7, %v11857_v57, %v11858_v1 }
 0xf35   :  { %v11866_v63 = vpop.permute.xlu0 %11865  ;;  %v10655_v41 = vpack.c.bf16 %v2975_v60, %v2963_v26  ;;  %v10673_v17 = vpack.c.bf16 %v2977_v5, %v2965_v31  ;;  %v10657_v14 = vpack.c.bf16 %v2976_v22, %v2964_v53  ;;  %v2982_v43 = vpop.permute.xlu1 %2981 }
 0xf36   :  { %v11868_v16 = vunpack.i.h.bf16 %v11866_v63  ;;  %v11867_v42 = vunpack.i.l.bf16 %v11866_v63 }
 0xf37   :  { %10656 = vmatprep.subr.bf16.mxu0 %v10655_v41  ;;  %10674 = vmatpush3.bf16.msra.mxu1 %v10673_v17 }
 0xf38   :  { %v2989_v44 = vsel %vm162_vm8, %v11868_v16, %v2982_v43  ;;  %v2988_v40 = vsel %vm162_vm8, %v2982_v43, %v11867_v42  ;;  %10658 = vmatpush1.bf16.msra.mxu0 %v10657_v14  ;;  %10675 = vmatprep.subr.bf16.mxu1 %v12837_v0  ;;  %v2987_v28 = vsel %vm162_vm8, %v11867_v42, %v11868_v16 }
 0xf39   :  { %v10659_v37 = vpack.c.bf16 %v12848_v19, %v2987_v28  ;;  %v10676_v45 = vpack.c.bf16 %v12848_v19, %v2989_v44  ;;  %v10661_v35 = vpack.c.bf16 %v12848_v19, %v2988_v40 }
 0xf3b   :  { %10660 = vmatprep.subr.bf16.mxu0 %v10659_v37  ;;  %10677 = vmatpush3.bf16.msra.mxu1 %v10676_v45 }
 0xf3c   :  { %10662 = vmatpush1.bf16.msra.mxu0 %v10661_v35  ;;  %10698 = vmatprep.subr.bf16.mxu1 %v12837_v0 }
 0xf3e   :  { %9808 = vmatmul.mubr.msk.f32.vlgmr.msra.gmra.mrb[20].mxu1 %vm199_vm9, %v13940_v58 }
 0xf3f   :  { %9161 = vmatmul.mubr.msk.f32.vlgmr.msra.gmra.mrb[20].mxu0 %vm199_vm9, %v13940_v58  ;;  %9830 = vmatprep.mubr.msk.f32.mxu1 %vm12845_vm0, %v12846_v6 }
 0xf40   :  { %3366 = vmatprep.mubr.f32.mxu0 %v12846_v6 }
0x1011   :  { %v3160_v47 = vpop.f32.mrb[20].mxu1 }
0x1012   :  { %v3166_v48 = vmul.f32 %v13949_v8, %v3160_v47  ;;  %v3089_v49 = vpop.f32.mrb[20].mxu0  ;;  %v9809_v39 = vpop.f32.mrb[21].mxu1 }
0x1013   :  { %v3164_v36 = vmul.f32 %v13954_v34, %v3089_v49  ;;  %v3091_v11 = vpop.f32.mrb[21].mxu0 }
0x1014   :  { %v3169_v50 = vmul.f32 0.125, %v3166_v48  ;;  %v3454_v51 = vmul.f32 2.0, %v3166_v48  ;;  %v3165_v25 = vmul.f32 %v13960_v30, %v3091_v11 }
0x1015   :  { %v3167_v15 = vmul.f32 0.125, %v3164_v36  ;;  %v3452_v3 = vmul.f32 2.0, %v3164_v36 }
0x1016   :  { %v14195_v62 = vadd.f32 %v3169_v50, %v13845_v23  ;;  %v3168_v4 = vmul.f32 0.125, %v3165_v25  ;;  %v3453_v54 = vmul.f32 2.0, %v3165_v25  ;;  %v14197_v24 = vadd.f32 %v3454_v51, %v3451_v38 }
0x1017   :  { %v14199_v18 = vadd.f32 %v3452_v3, %v3449_v52  ;;  %v14208_v20 = vadd.f32 %v3167_v15, %v13852_v2 }
0x1018   :  { %3189 = vrot.lane.b32.xlu1 %v14195_v62, %s12839_s2  ;;  %3177 = vrot.lane.b32.xlu0 %v14195_v62, %s12838_s19  ;;  %v14205_v7 = vadd.f32 %v3453_v54, %v3450_v10  ;;  %v14211_v32 = vadd.f32 %v3168_v4, %v13855_v21 }
0x101a   :  { %v11874_v56 = vpack.i.bf16 %v14211_v32, %v14208_v20  ;;  %v11899_v55 = vpack.i.bf16 %v14195_v62, %v14211_v32 }
0x101c   :  { %3213 = vrot.lane.b32.xlu1 %v14195_v62, %s12840_s20  ;;  %3201 = vrot.lane.b32.xlu0 %v14195_v62, %s12841_s21 }
0x1020   :  { %11875 = vrot.lane.b32.xlu1 %v11874_v56, %s12839_s2  ;;  %11870 = vrot.lane.b32.xlu0 %v11874_v56, %s12838_s19 }
0x1024   :  { %11885 = vrot.lane.b32.xlu1 %v11874_v56, %s12840_s20  ;;  %11880 = vrot.lane.b32.xlu0 %v11874_v56, %s12841_s21 }
0x1028   :  { %3224 = vrot.lane.b32.xlu1 %v14208_v20, %s12842_s22  ;;  %3236 = vrot.lane.b32.xlu0 %v14208_v20, %s12844_s24 }
0x102c   :  { %11900 = vrot.lane.b32.xlu1 %v11899_v55, %s12843_s23  ;;  %11890 = vrot.lane.b32.xlu0 %v11899_v55, %s12842_s22 }
0x1030   :  { %3248 = vrot.lane.b32.xlu1 %v14208_v20, %s12843_s23  ;;  %11895 = vrot.lane.b32.xlu0 %v11899_v55, %s12844_s24 }
0x1034   :  { %3260 = vrot.lane.b32.xlu1 %v14208_v20, %s12847_s25  ;;  %11905 = vrot.lane.b32.xlu0 %v11899_v55, %s12847_s25 }
0x108a   :  { %v3190_v59 = vpop.permute.xlu1 %3189  ;;  %v3178_v61 = vpop.permute.xlu0 %3177 }
0x108e   :  { %v3214_v12 = vpop.permute.xlu1 %3213  ;;  %v3202_v13 = vpop.permute.xlu0 %3201 }
0x1092   :  { %v11876_v27 = vpop.permute.xlu1 %11875  ;;  %v11871_v1 = vpop.permute.xlu0 %11870 }
0x1093   :  { %v11878_v57 = vunpack.i.h.bf16 %v11876_v27  ;;  %v11877_v22 = vunpack.i.l.bf16 %v11876_v27  ;;  %v11873_v5 = vunpack.i.h.bf16 %v11871_v1  ;;  %v11872_v60 = vunpack.i.l.bf16 %v11871_v1 }
0x1095   :  { %v3191_v31 = vsel %vm81_vm2, %v11878_v57, %v3190_v59  ;;  %v3193_v53 = vsel %vm81_vm2, %v3190_v59, %v11877_v22  ;;  %v3179_v26 = vsel %vm68_vm1, %v11873_v5, %v3178_v61  ;;  %v3181_v63 = vsel %vm68_vm1, %v3178_v61, %v11872_v60 }
0x1096   :  { %v11886_v41 = vpop.permute.xlu1 %11885  ;;  %v11881_v17 = vpop.permute.xlu0 %11880  ;;  %v3180_v14 = vsel %vm68_vm1, %v11872_v60, %v11873_v5  ;;  %v3192_v16 = vsel %vm81_vm2, %v11877_v22, %v11878_v57  ;;  %v10699_v42 = vpack.c.bf16 %v3191_v31, %v3179_v26  ;;  %v10680_v43 = vpack.c.bf16 %v3193_v53, %v3181_v63 }
0x1097   :  { %v11888_v44 = vunpack.i.h.bf16 %v11886_v41  ;;  %v11887_v40 = vunpack.i.l.bf16 %v11886_v41  ;;  %v11883_v28 = vunpack.i.h.bf16 %v11881_v17  ;;  %v11882_v37 = vunpack.i.l.bf16 %v11881_v17 }
0x1098   :  { %v10678_v45 = vpack.c.bf16 %v3192_v16, %v3180_v14  ;;  %10700 = vmatpush3.bf16.msra.mxu1 %v10699_v42 }
0x1099   :  { %v3215_v35 = vsel %vm107_vm3, %v11888_v44, %v3214_v12  ;;  %v3217_v29 = vsel %vm107_vm3, %v3214_v12, %v11887_v40  ;;  %v3203_v33 = vsel %vm94_vm4, %v11883_v28, %v3202_v13  ;;  %v3205_v46 = vsel %vm94_vm4, %v3202_v13, %v11882_v37  ;;  %10701 = vmatprep.subr.bf16.mxu1 %v12837_v0 }
0x109a   :  { %10679 = vmatprep.subr.bf16.mxu0 %v10678_v45  ;;  %v3225_v47 = vpop.permute.xlu1 %3224  ;;  %v3237_v48 = vpop.permute.xlu0 %3236  ;;  %v3204_v49 = vsel %vm94_vm4, %v11882_v37, %v11883_v28  ;;  %v3216_v39 = vsel %vm107_vm3, %v11887_v40, %v11888_v44  ;;  %v10702_v36 = vpack.c.bf16 %v3215_v35, %v3203_v33  ;;  %v10684_v38 = vpack.c.bf16 %v3217_v29, %v3205_v46 }
0x109b   :  { %10681 = vmatpush1.bf16.msra.mxu0 %v10680_v43  ;;  %v10682_v11 = vpack.c.bf16 %v3216_v39, %v3204_v49 }
0x109c   :  { %10703 = vmatpush3.bf16.msra.mxu1 %v10702_v36 }
0x109d   :  { %10683 = vmatprep.subr.bf16.mxu0 %v10682_v11  ;;  %10704 = vmatprep.subr.bf16.mxu1 %v12837_v0 }
0x109e   :  { %v11901_v50 = vpop.permute.xlu1 %11900  ;;  %v11891_v51 = vpop.permute.xlu0 %11890 }
0x109f   :  { %10685 = vmatpush1.bf16.msra.mxu0 %v10684_v38  ;;  %v11893_v25 = vunpack.i.h.bf16 %v11891_v51  ;;  %v11892_v52 = vunpack.i.l.bf16 %v11891_v51  ;;  %v11903_v10 = vunpack.i.h.bf16 %v11901_v50  ;;  %v11902_v15 = vunpack.i.l.bf16 %v11901_v50 }
0x10a1   :  { %v3232_v3 = vsel %vm123_vm5, %v11893_v25, %v3225_v47  ;;  %v3231_v4 = vsel %vm123_vm5, %v3225_v47, %v11892_v52  ;;  %v3230_v54 = vsel %vm123_vm5, %v11892_v52, %v11893_v25  ;;  %v3254_v22 = vsel %vm149_vm6, %v11902_v15, %v11903_v10 }
0x10a2   :  { %v3249_v56 = vpop.permute.xlu1 %3248  ;;  %v11896_v55 = vpop.permute.xlu0 %11895  ;;  %v10686_v59 = vpack.c.bf16 %v3230_v54, %v14211_v32  ;;  %v10705_v61 = vpack.c.bf16 %v3232_v3, %v14195_v62  ;;  %v10688_v12 = vpack.c.bf16 %v3231_v4, %v14208_v20 }
0x10a3   :  { %v11898_v13 = vunpack.i.h.bf16 %v11896_v55  ;;  %v11897_v27 = vunpack.i.l.bf16 %v11896_v55  ;;  %v3255_v1 = vsel %vm149_vm6, %v3249_v56, %v11902_v15  ;;  %v3256_v57 = vsel %vm149_vm6, %v11903_v10, %v3249_v56 }
0x10a4   :  { %10687 = vmatprep.subr.bf16.mxu0 %v10686_v59  ;;  %10706 = vmatpush3.bf16.msra.mxu1 %v10705_v61 }
0x10a5   :  { %v3244_v32 = vsel %vm136_vm7, %v11898_v13, %v3237_v48  ;;  %v3243_v62 = vsel %vm136_vm7, %v3237_v48, %v11897_v27  ;;  %10689 = vmatpush1.bf16.msra.mxu0 %v10688_v12  ;;  %10707 = vmatprep.subr.bf16.mxu1 %v12837_v0  ;;  %v3242_v20 = vsel %vm136_vm7, %v11897_v27, %v11898_v13 }
0x10a6   :  { %v11906_v5 = vpop.permute.xlu0 %11905  ;;  %v10690_v60 = vpack.c.bf16 %v3254_v22, %v3242_v20  ;;  %v10708_v31 = vpack.c.bf16 %v3256_v57, %v3244_v32  ;;  %v10692_v53 = vpack.c.bf16 %v3255_v1, %v3243_v62  ;;  %v3261_v41 = vpop.permute.xlu1 %3260 }
0x10a7   :  { %v11908_v26 = vunpack.i.h.bf16 %v11906_v5  ;;  %v11907_v63 = vunpack.i.l.bf16 %v11906_v5 }
0x10a8   :  { %10691 = vmatprep.subr.bf16.mxu0 %v10690_v60  ;;  %10709 = vmatpush3.bf16.msra.mxu1 %v10708_v31 }
0x10a9   :  { %v3268_v17 = vsel %vm162_vm8, %v11908_v26, %v3261_v41  ;;  %v3267_v14 = vsel %vm162_vm8, %v3261_v41, %v11907_v63  ;;  %10693 = vmatpush1.bf16.msra.mxu0 %v10692_v53  ;;  %10710 = vmatprep.subr.bf16.mxu1 %v12837_v0  ;;  %v3266_v16 = vsel %vm162_vm8, %v11907_v63, %v11908_v26 }
0x10aa   :  { %v10694_v42 = vpack.c.bf16 %v12848_v19, %v3266_v16  ;;  %v10711_v43 = vpack.c.bf16 %v12848_v19, %v3268_v17  ;;  %v10696_v44 = vpack.c.bf16 %v12848_v19, %v3267_v14 }
0x10ac   :  { %10695 = vmatprep.subr.bf16.mxu0 %v10694_v42  ;;  %10712 = vmatpush3.bf16.msra.mxu1 %v10711_v43 }
0x10ad   :  { %10697 = vmatpush1.bf16.msra.mxu0 %v10696_v44  ;;  %10733 = vmatprep.subr.bf16.mxu1 %v12837_v0 }
0x10af   :  { %9831 = vmatmul.mubr.msk.f32.vlgmr.msra.gmra.mrb[22].mxu1 %vm199_vm9, %v13940_v58 }
0x10b0   :  { %9163 = vmatmul.mubr.msk.f32.vlgmr.msra.gmra.mrb[22].mxu0 %vm199_vm9, %v13940_v58  ;;  %9853 = vmatprep.mubr.msk.f32.mxu1 %vm12845_vm0, %v12846_v6 }
0x10b1   :  { %3660 = vmatprep.mubr.f32.mxu0 %v12846_v6 }
0x1182   :  { %v3439_v40 = vpop.f32.mrb[22].mxu1 }
0x1183   :  { %v3445_v28 = vmul.f32 %v13949_v8, %v3439_v40  ;;  %v3368_v37 = vpop.f32.mrb[22].mxu0  ;;  %v9832_v45 = vpop.f32.mrb[23].mxu1 }
0x1184   :  { %v3443_v35 = vmul.f32 %v13954_v34, %v3368_v37  ;;  %v3370_v29 = vpop.f32.mrb[23].mxu0 }
0x1185   :  { %v3460_v33 = vadd.f32 %v14197_v24, %v3445_v28  ;;  %v3444_v46 = vmul.f32 %v13960_v30, %v3370_v29 }
0x1186   :  { %v3458_v47 = vadd.f32 %v14199_v18, %v3443_v35 }
0x1187   :  { %v3463_v58 = vmul.f32 0.020833334, %v3460_v33  ;;  %v3459_v48 = vadd.f32 %v14205_v7, %v3444_v46 }
0x1188   :  { %v3461_v39 = vmul.f32 0.020833334, %v3458_v47 }
0x1189   :  { %v14310_v49 = vadd.f32 %v3463_v58, %v13845_v23  ;;  %v3462_v36 = vmul.f32 0.020833334, %v3459_v48 }
0x118a   :  { %v14317_v8 = vadd.f32 %v3461_v39, %v13852_v2 }
0x118b   :  { %3483 = vrot.lane.b32.xlu1 %v14310_v49, %s12839_s2  ;;  %3471 = vrot.lane.b32.xlu0 %v14310_v49, %s12838_s19  ;;  %v14320_v34 = vadd.f32 %v3462_v36, %v13855_v21 }
0x118d   :  { %v11914_v23 = vpack.i.bf16 %v14320_v34, %v14317_v8  ;;  %v11939_v2 = vpack.i.bf16 %v14310_v49, %v14320_v34 }
0x118f   :  { %3507 = vrot.lane.b32.xlu1 %v14310_v49, %s12840_s20  ;;  %3495 = vrot.lane.b32.xlu0 %v14310_v49, %s12841_s21 }
0x1193   :  { %11915 = vrot.lane.b32.xlu1 %v11914_v23, %s12839_s2  ;;  %11910 = vrot.lane.b32.xlu0 %v11914_v23, %s12838_s19 }
0x1197   :  { %11925 = vrot.lane.b32.xlu1 %v11914_v23, %s12840_s20  ;;  %11920 = vrot.lane.b32.xlu0 %v11914_v23, %s12841_s21 }
0x119b   :  { %3518 = vrot.lane.b32.xlu1 %v14317_v8, %s12842_s22  ;;  %3530 = vrot.lane.b32.xlu0 %v14317_v8, %s12844_s24 }
0x119f   :  { %11940 = vrot.lane.b32.xlu1 %v11939_v2, %s12843_s23  ;;  %11930 = vrot.lane.b32.xlu0 %v11939_v2, %s12842_s22 }
0x11a3   :  { %3542 = vrot.lane.b32.xlu1 %v14317_v8, %s12843_s23  ;;  %11935 = vrot.lane.b32.xlu0 %v11939_v2, %s12844_s24 }
0x11a7   :  { %3554 = vrot.lane.b32.xlu1 %v14317_v8, %s12847_s25  ;;  %11945 = vrot.lane.b32.xlu0 %v11939_v2, %s12847_s25 }
0x11fd   :  { %v3484_v21 = vpop.permute.xlu1 %3483  ;;  %v3472_v30 = vpop.permute.xlu0 %3471 }
0x1201   :  { %v3508_v24 = vpop.permute.xlu1 %3507  ;;  %v3496_v18 = vpop.permute.xlu0 %3495 }
0x1205   :  { %v11916_v7 = vpop.permute.xlu1 %11915  ;;  %v11911_v11 = vpop.permute.xlu0 %11910 }
0x1206   :  { %v11918_v38 = vunpack.i.h.bf16 %v11916_v7  ;;  %v11917_v50 = vunpack.i.l.bf16 %v11916_v7  ;;  %v11913_v51 = vunpack.i.h.bf16 %v11911_v11  ;;  %v11912_v25 = vunpack.i.l.bf16 %v11911_v11 }
0x1208   :  { %v3485_v52 = vsel %vm81_vm2, %v11918_v38, %v3484_v21  ;;  %v3487_v10 = vsel %vm81_vm2, %v3484_v21, %v11917_v50  ;;  %v3473_v15 = vsel %vm68_vm1, %v11913_v51, %v3472_v30  ;;  %v3475_v3 = vsel %vm68_vm1, %v3472_v30, %v11912_v25 }
0x1209   :  { %v11926_v4 = vpop.permute.xlu1 %11925  ;;  %v11921_v54 = vpop.permute.xlu0 %11920  ;;  %v3474_v56 = vsel %vm68_vm1, %v11912_v25, %v11913_v51  ;;  %v3486_v55 = vsel %vm81_vm2, %v11917_v50, %v11918_v38  ;;  %v10734_v59 = vpack.c.bf16 %v3485_v52, %v3473_v15  ;;  %v10715_v61 = vpack.c.bf16 %v3487_v10, %v3475_v3 }
0x120a   :  { %v11928_v12 = vunpack.i.h.bf16 %v11926_v4  ;;  %v11927_v13 = vunpack.i.l.bf16 %v11926_v4  ;;  %v11923_v27 = vunpack.i.h.bf16 %v11921_v54  ;;  %v11922_v1 = vunpack.i.l.bf16 %v11921_v54  ;;  %v14405_v4 = vld [vmem:[#allocation6] sm:$0xff] }
0x120b   :  { %v10713_v57 = vpack.c.bf16 %v3486_v55, %v3474_v56  ;;  %10735 = vmatpush3.bf16.msra.mxu1 %v10734_v59  ;;  %v14414_v56 = vld [vmem:[#allocation8 + $0x10] sm:$0xff] }
0x120c   :  { %v3509_v22 = vsel %vm107_vm3, %v11928_v12, %v3508_v24  ;;  %v3511_v32 = vsel %vm107_vm3, %v3508_v24, %v11927_v13  ;;  %v3497_v62 = vsel %vm94_vm4, %v11923_v27, %v3496_v18  ;;  %v3499_v20 = vsel %vm94_vm4, %v3496_v18, %v11922_v1  ;;  %10736 = vmatprep.subr.bf16.mxu1 %v12837_v0 }
0x120d   :  { %10714 = vmatprep.subr.bf16.mxu0 %v10713_v57  ;;  %v3519_v5 = vpop.permute.xlu1 %3518  ;;  %v3531_v60 = vpop.permute.xlu0 %3530  ;;  %v3498_v31 = vsel %vm94_vm4, %v11922_v1, %v11923_v27  ;;  %v3510_v53 = vsel %vm107_vm3, %v11927_v13, %v11928_v12  ;;  %v10737_v26 = vpack.c.bf16 %v3509_v22, %v3497_v62  ;;  %v10719_v41 = vpack.c.bf16 %v3511_v32, %v3499_v20  ;;  %v14419_v12 = vld [vmem:[#allocation8] sm:$0xff]  ;;  %v14425_v57 = vld [vmem:[#allocation8 + $0x8] sm:$0xff] }
0x120e   :  { %10716 = vmatpush1.bf16.msra.mxu0 %v10715_v61  ;;  %v10717_v63 = vpack.c.bf16 %v3510_v53, %v3498_v31 }
0x120f   :  { %10738 = vmatpush3.bf16.msra.mxu1 %v10737_v26 }
0x1210   :  { %10718 = vmatprep.subr.bf16.mxu0 %v10717_v63  ;;  %10739 = vmatprep.subr.bf16.mxu1 %v12837_v0 }
0x1211   :  { %v11941_v17 = vpop.permute.xlu1 %11940  ;;  %v11931_v14 = vpop.permute.xlu0 %11930 }
0x1212   :  { %10720 = vmatpush1.bf16.msra.mxu0 %v10719_v41  ;;  %v11933_v16 = vunpack.i.h.bf16 %v11931_v14  ;;  %v11932_v42 = vunpack.i.l.bf16 %v11931_v14  ;;  %v11943_v43 = vunpack.i.h.bf16 %v11941_v17  ;;  %v11942_v44 = vunpack.i.l.bf16 %v11941_v17 }
0x1214   :  { %v3526_v40 = vsel %vm123_vm5, %v11933_v16, %v3519_v5  ;;  %v3525_v28 = vsel %vm123_vm5, %v3519_v5, %v11932_v42  ;;  %v3524_v37 = vsel %vm123_vm5, %v11932_v42, %v11933_v16  ;;  %v3548_v36 = vsel %vm149_vm6, %v11942_v44, %v11943_v43 }
0x1215   :  { %v3543_v45 = vpop.permute.xlu1 %3542  ;;  %v11936_v35 = vpop.permute.xlu0 %11935  ;;  %v10721_v29 = vpack.c.bf16 %v3524_v37, %v14320_v34  ;;  %v10740_v33 = vpack.c.bf16 %v3526_v40, %v14310_v49  ;;  %v10723_v46 = vpack.c.bf16 %v3525_v28, %v14317_v8 }
0x1216   :  { %v11938_v47 = vunpack.i.h.bf16 %v11936_v35  ;;  %v11937_v58 = vunpack.i.l.bf16 %v11936_v35  ;;  %v3549_v48 = vsel %vm149_vm6, %v3543_v45, %v11942_v44  ;;  %v3550_v39 = vsel %vm149_vm6, %v11943_v43, %v3543_v45 }
0x1217   :  { %10722 = vmatprep.subr.bf16.mxu0 %v10721_v29  ;;  %10741 = vmatpush3.bf16.msra.mxu1 %v10740_v33 }
0x1218   :  { %v3538_v23 = vsel %vm136_vm7, %v11938_v47, %v3531_v60  ;;  %v3537_v2 = vsel %vm136_vm7, %v3531_v60, %v11937_v58  ;;  %10724 = vmatpush1.bf16.msra.mxu0 %v10723_v46  ;;  %10742 = vmatprep.subr.bf16.mxu1 %v12837_v0  ;;  %v3536_v21 = vsel %vm136_vm7, %v11937_v58, %v11938_v47 }
0x1219   :  { %v11946_v30 = vpop.permute.xlu0 %11945  ;;  %v10725_v24 = vpack.c.bf16 %v3548_v36, %v3536_v21  ;;  %v10743_v18 = vpack.c.bf16 %v3550_v39, %v3538_v23  ;;  %v10727_v7 = vpack.c.bf16 %v3549_v48, %v3537_v2  ;;  %v3555_v50 = vpop.permute.xlu1 %3554 }
0x121a   :  { %v11948_v11 = vunpack.i.h.bf16 %v11946_v30  ;;  %v11947_v38 = vunpack.i.l.bf16 %v11946_v30 }
0x121b   :  { %10726 = vmatprep.subr.bf16.mxu0 %v10725_v24  ;;  %10744 = vmatpush3.bf16.msra.mxu1 %v10743_v18 }
0x121c   :  { %v3562_v51 = vsel %vm162_vm8, %v11948_v11, %v3555_v50  ;;  %v3561_v25 = vsel %vm162_vm8, %v3555_v50, %v11947_v38  ;;  %10728 = vmatpush1.bf16.msra.mxu0 %v10727_v7  ;;  %10745 = vmatprep.subr.bf16.mxu1 %v12837_v0  ;;  %v3560_v52 = vsel %vm162_vm8, %v11947_v38, %v11948_v11 }
0x121d   :  { %v10729_v10 = vpack.c.bf16 %v12848_v19, %v3560_v52  ;;  %v10746_v15 = vpack.c.bf16 %v12848_v19, %v3562_v51  ;;  %v10731_v3 = vpack.c.bf16 %v12848_v19, %v3561_v25 }
0x121f   :  { %10730 = vmatprep.subr.bf16.mxu0 %v10729_v10  ;;  %10747 = vmatpush3.bf16.msra.mxu1 %v10746_v15 }
0x1220   :  { %10732 = vmatpush1.bf16.msra.mxu0 %v10731_v3  ;;  %10768 = vmatprep.subr.bf16.mxu1 %v12837_v0 }
0x1222   :  { %9854 = vmatmul.mubr.msk.f32.vlgmr.msra.gmra.mrb[24].mxu1 %vm199_vm9, %v14405_v4 }
0x1223   :  { %9165 = vmatmul.mubr.msk.f32.vlgmr.msra.gmra.mrb[24].mxu0 %vm199_vm9, %v14405_v4  ;;  %9876 = vmatprep.mubr.msk.f32.mxu1 %vm12845_vm0, %v12846_v6 }
0x1224   :  { %3939 = vmatprep.mubr.f32.mxu0 %v12846_v6 }
0x12f5   :  { %v3733_v54 = vpop.f32.mrb[24].mxu1 }
0x12f6   :  { %v14417_v55 = vmul.f32 %v14414_v56, %v3733_v54  ;;  %v3662_v59 = vpop.f32.mrb[24].mxu0  ;;  %v9855_v61 = vpop.f32.mrb[25].mxu1 }
0x12f7   :  { %v14422_v13 = vmul.f32 %v14419_v12, %v3662_v59  ;;  %v3664_v27 = vpop.f32.mrb[25].mxu0 }
0x12f8   :  { %v3742_v1 = vmul.f32 0.0625, %v14417_v55  ;;  %v14428_v22 = vmul.f32 %v14425_v57, %v3664_v27 }
0x12f9   :  { %v3740_v62 = vmul.f32 0.0625, %v14422_v13 }
0x12fa   :  { %v14431_v32 = vadd.f32 %v3742_v1, %v14310_v49  ;;  %v3741_v20 = vmul.f32 0.0625, %v14428_v22 }
0x12fb   :  { %v14440_v5 = vadd.f32 %v3740_v62, %v14317_v8 }
0x12fc   :  { %3762 = vrot.lane.b32.xlu1 %v14431_v32, %s12839_s2  ;;  %3750 = vrot.lane.b32.xlu0 %v14431_v32, %s12838_s19  ;;  %v14443_v60 = vadd.f32 %v3741_v20, %v14320_v34 }
0x12fe   :  { %v11954_v31 = vpack.i.bf16 %v14443_v60, %v14440_v5  ;;  %v11979_v53 = vpack.i.bf16 %v14431_v32, %v14443_v60 }
0x1300   :  { %3786 = vrot.lane.b32.xlu1 %v14431_v32, %s12840_s20  ;;  %3774 = vrot.lane.b32.xlu0 %v14431_v32, %s12841_s21 }
0x1304   :  { %11955 = vrot.lane.b32.xlu1 %v11954_v31, %s12839_s2  ;;  %11950 = vrot.lane.b32.xlu0 %v11954_v31, %s12838_s19 }
0x1308   :  { %11965 = vrot.lane.b32.xlu1 %v11954_v31, %s12840_s20  ;;  %11960 = vrot.lane.b32.xlu0 %v11954_v31, %s12841_s21 }
0x130c   :  { %3797 = vrot.lane.b32.xlu1 %v14440_v5, %s12842_s22  ;;  %3809 = vrot.lane.b32.xlu0 %v14440_v5, %s12844_s24 }
0x1310   :  { %11980 = vrot.lane.b32.xlu1 %v11979_v53, %s12843_s23  ;;  %11970 = vrot.lane.b32.xlu0 %v11979_v53, %s12842_s22 }
0x1314   :  { %3821 = vrot.lane.b32.xlu1 %v14440_v5, %s12843_s23  ;;  %11975 = vrot.lane.b32.xlu0 %v11979_v53, %s12844_s24 }
0x1318   :  { %3833 = vrot.lane.b32.xlu1 %v14440_v5, %s12847_s25  ;;  %11985 = vrot.lane.b32.xlu0 %v11979_v53, %s12847_s25 }
0x136e   :  { %v3763_v26 = vpop.permute.xlu1 %3762  ;;  %v3751_v63 = vpop.permute.xlu0 %3750 }
0x1372   :  { %v3787_v41 = vpop.permute.xlu1 %3786  ;;  %v3775_v17 = vpop.permute.xlu0 %3774 }
0x1376   :  { %v11956_v14 = vpop.permute.xlu1 %11955  ;;  %v11951_v16 = vpop.permute.xlu0 %11950 }
0x1377   :  { %v11958_v42 = vunpack.i.h.bf16 %v11956_v14  ;;  %v11957_v43 = vunpack.i.l.bf16 %v11956_v14  ;;  %v11953_v44 = vunpack.i.h.bf16 %v11951_v16  ;;  %v11952_v40 = vunpack.i.l.bf16 %v11951_v16 }
0x1379   :  { %v3764_v28 = vsel %vm81_vm2, %v11958_v42, %v3763_v26  ;;  %v3766_v37 = vsel %vm81_vm2, %v3763_v26, %v11957_v43  ;;  %v3752_v45 = vsel %vm68_vm1, %v11953_v44, %v3751_v63  ;;  %v3754_v35 = vsel %vm68_vm1, %v3751_v63, %v11952_v40 }
0x137a   :  { %v11966_v29 = vpop.permute.xlu1 %11965  ;;  %v11961_v33 = vpop.permute.xlu0 %11960  ;;  %v3753_v46 = vsel %vm68_vm1, %v11952_v40, %v11953_v44  ;;  %v3765_v47 = vsel %vm81_vm2, %v11957_v43, %v11958_v42  ;;  %v10769_v58 = vpack.c.bf16 %v3764_v28, %v3752_v45  ;;  %v10750_v48 = vpack.c.bf16 %v3766_v37, %v3754_v35 }
0x137b   :  { %v11968_v39 = vunpack.i.h.bf16 %v11966_v29  ;;  %v11967_v36 = vunpack.i.l.bf16 %v11966_v29  ;;  %v11963_v23 = vunpack.i.h.bf16 %v11961_v33  ;;  %v11962_v2 = vunpack.i.l.bf16 %v11961_v33 }
0x137c   :  { %v10748_v21 = vpack.c.bf16 %v3765_v47, %v3753_v46  ;;  %10770 = vmatpush3.bf16.msra.mxu1 %v10769_v58 }
0x137d   :  { %v3788_v30 = vsel %vm107_vm3, %v11968_v39, %v3787_v41  ;;  %v3790_v24 = vsel %vm107_vm3, %v3787_v41, %v11967_v36  ;;  %v3776_v18 = vsel %vm94_vm4, %v11963_v23, %v3775_v17  ;;  %v3778_v7 = vsel %vm94_vm4, %v3775_v17, %v11962_v2  ;;  %10771 = vmatprep.subr.bf16.mxu1 %v12837_v0 }
0x137e   :  { %10749 = vmatprep.subr.bf16.mxu0 %v10748_v21  ;;  %v3798_v11 = vpop.permute.xlu1 %3797  ;;  %v3810_v38 = vpop.permute.xlu0 %3809  ;;  %v3777_v50 = vsel %vm94_vm4, %v11962_v2, %v11963_v23  ;;  %v3789_v51 = vsel %vm107_vm3, %v11967_v36, %v11968_v39  ;;  %v10772_v25 = vpack.c.bf16 %v3788_v30, %v3776_v18  ;;  %v10754_v10 = vpack.c.bf16 %v3790_v24, %v3778_v7 }
0x137f   :  { %10751 = vmatpush1.bf16.msra.mxu0 %v10750_v48  ;;  %v10752_v52 = vpack.c.bf16 %v3789_v51, %v3777_v50 }
0x1380   :  { %10773 = vmatpush3.bf16.msra.mxu1 %v10772_v25 }
0x1381   :  { %10753 = vmatprep.subr.bf16.mxu0 %v10752_v52  ;;  %10774 = vmatprep.subr.bf16.mxu1 %v12837_v0 }
0x1382   :  { %v11981_v15 = vpop.permute.xlu1 %11980  ;;  %v11971_v3 = vpop.permute.xlu0 %11970 }
0x1383   :  { %10755 = vmatpush1.bf16.msra.mxu0 %v10754_v10  ;;  %v11973_v54 = vunpack.i.h.bf16 %v11971_v3  ;;  %v11972_v59 = vunpack.i.l.bf16 %v11971_v3  ;;  %v11983_v61 = vunpack.i.h.bf16 %v11981_v15  ;;  %v11982_v27 = vunpack.i.l.bf16 %v11981_v15 }
0x1385   :  { %v3805_v1 = vsel %vm123_vm5, %v11973_v54, %v3798_v11  ;;  %v3804_v62 = vsel %vm123_vm5, %v3798_v11, %v11972_v59  ;;  %v3803_v20 = vsel %vm123_vm5, %v11972_v59, %v11973_v54  ;;  %v3827_v43 = vsel %vm149_vm6, %v11982_v27, %v11983_v61 }
0x1386   :  { %v3822_v31 = vpop.permute.xlu1 %3821  ;;  %v11976_v53 = vpop.permute.xlu0 %11975  ;;  %v10756_v26 = vpack.c.bf16 %v3803_v20, %v14443_v60  ;;  %v10775_v63 = vpack.c.bf16 %v3805_v1, %v14431_v32  ;;  %v10758_v41 = vpack.c.bf16 %v3804_v62, %v14440_v5 }
0x1387   :  { %v11978_v17 = vunpack.i.h.bf16 %v11976_v53  ;;  %v11977_v14 = vunpack.i.l.bf16 %v11976_v53  ;;  %v3828_v16 = vsel %vm149_vm6, %v3822_v31, %v11982_v27  ;;  %v3829_v42 = vsel %vm149_vm6, %v11983_v61, %v3822_v31 }
0x1388   :  { %10757 = vmatprep.subr.bf16.mxu0 %v10756_v26  ;;  %10776 = vmatpush3.bf16.msra.mxu1 %v10775_v63 }
0x1389   :  { %v3817_v60 = vsel %vm136_vm7, %v11978_v17, %v3810_v38  ;;  %v3816_v32 = vsel %vm136_vm7, %v3810_v38, %v11977_v14  ;;  %10759 = vmatpush1.bf16.msra.mxu0 %v10758_v41  ;;  %10777 = vmatprep.subr.bf16.mxu1 %v12837_v0  ;;  %v3815_v5 = vsel %vm136_vm7, %v11977_v14, %v11978_v17 }
0x138a   :  { %v11986_v44 = vpop.permute.xlu0 %11985  ;;  %v10760_v40 = vpack.c.bf16 %v3827_v43, %v3815_v5  ;;  %v10778_v28 = vpack.c.bf16 %v3829_v42, %v3817_v60  ;;  %v10762_v37 = vpack.c.bf16 %v3828_v16, %v3816_v32  ;;  %v3834_v29 = vpop.permute.xlu1 %3833 }
0x138b   :  { %v11988_v45 = vunpack.i.h.bf16 %v11986_v44  ;;  %v11987_v35 = vunpack.i.l.bf16 %v11986_v44 }
0x138c   :  { %10761 = vmatprep.subr.bf16.mxu0 %v10760_v40  ;;  %10779 = vmatpush3.bf16.msra.mxu1 %v10778_v28 }
0x138d   :  { %v3841_v33 = vsel %vm162_vm8, %v11988_v45, %v3834_v29  ;;  %v3840_v46 = vsel %vm162_vm8, %v3834_v29, %v11987_v35  ;;  %10763 = vmatpush1.bf16.msra.mxu0 %v10762_v37  ;;  %10780 = vmatprep.subr.bf16.mxu1 %v12837_v0  ;;  %v3839_v47 = vsel %vm162_vm8, %v11987_v35, %v11988_v45 }
0x138e   :  { %v10764_v58 = vpack.c.bf16 %v12848_v19, %v3839_v47  ;;  %v10781_v48 = vpack.c.bf16 %v12848_v19, %v3841_v33  ;;  %v10766_v39 = vpack.c.bf16 %v12848_v19, %v3840_v46 }
0x1390   :  { %10765 = vmatprep.subr.bf16.mxu0 %v10764_v58  ;;  %10782 = vmatpush3.bf16.msra.mxu1 %v10781_v48 }
0x1391   :  { %10767 = vmatpush1.bf16.msra.mxu0 %v10766_v39  ;;  %10803 = vmatprep.subr.bf16.mxu1 %v12837_v0 }
0x1393   :  { %9877 = vmatmul.mubr.msk.f32.vlgmr.msra.gmra.mrb[26].mxu1 %vm199_vm9, %v14405_v4 }
0x1394   :  { %9167 = vmatmul.mubr.msk.f32.vlgmr.msra.gmra.mrb[26].mxu0 %vm199_vm9, %v14405_v4  ;;  %9899 = vmatprep.mubr.msk.f32.mxu1 %vm12845_vm0, %v12846_v6 }
0x1395   :  { %4218 = vmatprep.mubr.f32.mxu0 %v12846_v6 }
0x1466   :  { %v4012_v36 = vpop.f32.mrb[26].mxu1 }
0x1467   :  { %v14536_v23 = vmul.f32 %v14414_v56, %v4012_v36  ;;  %v3941_v2 = vpop.f32.mrb[26].mxu0  ;;  %v9878_v21 = vpop.f32.mrb[27].mxu1 }
0x1468   :  { %v14539_v30 = vmul.f32 %v14419_v12, %v3941_v2  ;;  %v3943_v24 = vpop.f32.mrb[27].mxu0 }
0x1469   :  { %v4021_v18 = vmul.f32 0.0625, %v14536_v23  ;;  %v14543_v7 = vmul.f32 %v14425_v57, %v3943_v24 }
0x146a   :  { %v4019_v38 = vmul.f32 0.0625, %v14539_v30 }
0x146b   :  { %v14546_v11 = vadd.f32 %v4021_v18, %v14310_v49  ;;  %v4020_v50 = vmul.f32 0.0625, %v14543_v7 }
0x146c   :  { %v14555_v51 = vadd.f32 %v4019_v38, %v14317_v8 }
0x146d   :  { %4041 = vrot.lane.b32.xlu1 %v14546_v11, %s12839_s2  ;;  %4029 = vrot.lane.b32.xlu0 %v14546_v11, %s12838_s19  ;;  %v14558_v25 = vadd.f32 %v4020_v50, %v14320_v34 }
0x146f   :  { %v11994_v52 = vpack.i.bf16 %v14558_v25, %v14555_v51  ;;  %v12019_v10 = vpack.i.bf16 %v14546_v11, %v14558_v25 }
0x1471   :  { %4065 = vrot.lane.b32.xlu1 %v14546_v11, %s12840_s20  ;;  %4053 = vrot.lane.b32.xlu0 %v14546_v11, %s12841_s21 }
0x1475   :  { %11995 = vrot.lane.b32.xlu1 %v11994_v52, %s12839_s2  ;;  %11990 = vrot.lane.b32.xlu0 %v11994_v52, %s12838_s19 }
0x1479   :  { %12005 = vrot.lane.b32.xlu1 %v11994_v52, %s12840_s20  ;;  %12000 = vrot.lane.b32.xlu0 %v11994_v52, %s12841_s21 }
0x147d   :  { %4076 = vrot.lane.b32.xlu1 %v14555_v51, %s12842_s22  ;;  %4088 = vrot.lane.b32.xlu0 %v14555_v51, %s12844_s24 }
0x1481   :  { %12020 = vrot.lane.b32.xlu1 %v12019_v10, %s12843_s23  ;;  %12010 = vrot.lane.b32.xlu0 %v12019_v10, %s12842_s22 }
0x1485   :  { %4100 = vrot.lane.b32.xlu1 %v14555_v51, %s12843_s23  ;;  %12015 = vrot.lane.b32.xlu0 %v12019_v10, %s12844_s24 }
0x1489   :  { %4112 = vrot.lane.b32.xlu1 %v14555_v51, %s12847_s25  ;;  %12025 = vrot.lane.b32.xlu0 %v12019_v10, %s12847_s25 }
0x14df   :  { %v4042_v15 = vpop.permute.xlu1 %4041  ;;  %v4030_v3 = vpop.permute.xlu0 %4029 }
0x14e3   :  { %v4066_v54 = vpop.permute.xlu1 %4065  ;;  %v4054_v59 = vpop.permute.xlu0 %4053 }
0x14e7   :  { %v11996_v61 = vpop.permute.xlu1 %11995  ;;  %v11991_v27 = vpop.permute.xlu0 %11990 }
0x14e8   :  { %v11998_v1 = vunpack.i.h.bf16 %v11996_v61  ;;  %v11997_v62 = vunpack.i.l.bf16 %v11996_v61  ;;  %v11993_v20 = vunpack.i.h.bf16 %v11991_v27  ;;  %v11992_v31 = vunpack.i.l.bf16 %v11991_v27 }
0x14ea   :  { %v4043_v53 = vsel %vm81_vm2, %v11998_v1, %v4042_v15  ;;  %v4045_v26 = vsel %vm81_vm2, %v4042_v15, %v11997_v62  ;;  %v4031_v63 = vsel %vm68_vm1, %v11993_v20, %v4030_v3  ;;  %v4033_v41 = vsel %vm68_vm1, %v4030_v3, %v11992_v31 }
0x14eb   :  { %v12006_v17 = vpop.permute.xlu1 %12005  ;;  %v12001_v14 = vpop.permute.xlu0 %12000  ;;  %v4032_v16 = vsel %vm68_vm1, %v11992_v31, %v11993_v20  ;;  %v4044_v42 = vsel %vm81_vm2, %v11997_v62, %v11998_v1  ;;  %v10804_v43 = vpack.c.bf16 %v4043_v53, %v4031_v63  ;;  %v10785_v60 = vpack.c.bf16 %v4045_v26, %v4033_v41 }
0x14ec   :  { %v12008_v32 = vunpack.i.h.bf16 %v12006_v17  ;;  %v12007_v5 = vunpack.i.l.bf16 %v12006_v17  ;;  %v12003_v44 = vunpack.i.h.bf16 %v12001_v14  ;;  %v12002_v40 = vunpack.i.l.bf16 %v12001_v14 }
0x14ed   :  { %v10783_v28 = vpack.c.bf16 %v4044_v42, %v4032_v16  ;;  %10805 = vmatpush3.bf16.msra.mxu1 %v10804_v43 }
0x14ee   :  { %v4067_v37 = vsel %vm107_vm3, %v12008_v32, %v4066_v54  ;;  %v4069_v45 = vsel %vm107_vm3, %v4066_v54, %v12007_v5  ;;  %v4055_v35 = vsel %vm94_vm4, %v12003_v44, %v4054_v59  ;;  %v4057_v29 = vsel %vm94_vm4, %v4054_v59, %v12002_v40  ;;  %10806 = vmatprep.subr.bf16.mxu1 %v12837_v0 }
0x14ef   :  { %10784 = vmatprep.subr.bf16.mxu0 %v10783_v28  ;;  %v4077_v33 = vpop.permute.xlu1 %4076  ;;  %v4089_v46 = vpop.permute.xlu0 %4088  ;;  %v4056_v47 = vsel %vm94_vm4, %v12002_v40, %v12003_v44  ;;  %v4068_v58 = vsel %vm107_vm3, %v12007_v5, %v12008_v32  ;;  %v10807_v48 = vpack.c.bf16 %v4067_v37, %v4055_v35  ;;  %v10789_v36 = vpack.c.bf16 %v4069_v45, %v4057_v29 }
0x14f0   :  { %10786 = vmatpush1.bf16.msra.mxu0 %v10785_v60  ;;  %v10787_v39 = vpack.c.bf16 %v4068_v58, %v4056_v47  ;;  %v4579_v28 = vmul.f32 2.0, %v14536_v23  ;;  %v4577_v37 = vmul.f32 2.0, %v14539_v30  ;;  %v4578_v45 = vmul.f32 2.0, %v14543_v7 }
0x14f1   :  { %10808 = vmatpush3.bf16.msra.mxu1 %v10807_v48 }
0x14f2   :  { %10788 = vmatprep.subr.bf16.mxu0 %v10787_v39  ;;  %10809 = vmatprep.subr.bf16.mxu1 %v12837_v0  ;;  %v4582_v48 = vadd.f32 %v4579_v28, %v14417_v55  ;;  %v4580_v23 = vadd.f32 %v4577_v37, %v14422_v13  ;;  %v4581_v30 = vadd.f32 %v4578_v45, %v14428_v22 }
0x14f3   :  { %v12021_v2 = vpop.permute.xlu1 %12020  ;;  %v12011_v21 = vpop.permute.xlu0 %12010 }
0x14f4   :  { %10790 = vmatpush1.bf16.msra.mxu0 %v10789_v36  ;;  %v12013_v24 = vunpack.i.h.bf16 %v12011_v21  ;;  %v12012_v18 = vunpack.i.l.bf16 %v12011_v21  ;;  %v12023_v38 = vunpack.i.h.bf16 %v12021_v2  ;;  %v12022_v50 = vunpack.i.l.bf16 %v12021_v2 }
0x14f6   :  { %v4084_v52 = vsel %vm123_vm5, %v12013_v24, %v4077_v33  ;;  %v4083_v10 = vsel %vm123_vm5, %v4077_v33, %v12012_v18  ;;  %v4082_v15 = vsel %vm123_vm5, %v12012_v18, %v12013_v24  ;;  %v4106_v53 = vsel %vm149_vm6, %v12022_v50, %v12023_v38 }
0x14f7   :  { %v4101_v3 = vpop.permute.xlu1 %4100  ;;  %v12016_v54 = vpop.permute.xlu0 %12015  ;;  %v10791_v59 = vpack.c.bf16 %v4082_v15, %v14558_v25  ;;  %v10810_v61 = vpack.c.bf16 %v4084_v52, %v14546_v11  ;;  %v10793_v27 = vpack.c.bf16 %v4083_v10, %v14555_v51 }
0x14f8   :  { %v12018_v1 = vunpack.i.h.bf16 %v12016_v54  ;;  %v12017_v62 = vunpack.i.l.bf16 %v12016_v54  ;;  %v4107_v20 = vsel %vm149_vm6, %v4101_v3, %v12022_v50  ;;  %v4108_v31 = vsel %vm149_vm6, %v12023_v38, %v4101_v3 }
0x14f9   :  { %10792 = vmatprep.subr.bf16.mxu0 %v10791_v59  ;;  %10811 = vmatpush3.bf16.msra.mxu1 %v10810_v61 }
0x14fa   :  { %v4096_v25 = vsel %vm136_vm7, %v12018_v1, %v4089_v46  ;;  %v4095_v11 = vsel %vm136_vm7, %v4089_v46, %v12017_v62  ;;  %10794 = vmatpush1.bf16.msra.mxu0 %v10793_v27  ;;  %10812 = vmatprep.subr.bf16.mxu1 %v12837_v0  ;;  %v4094_v51 = vsel %vm136_vm7, %v12017_v62, %v12018_v1 }
0x14fb   :  { %v12026_v26 = vpop.permute.xlu0 %12025  ;;  %v10795_v63 = vpack.c.bf16 %v4106_v53, %v4094_v51  ;;  %v10813_v41 = vpack.c.bf16 %v4108_v31, %v4096_v25  ;;  %v10797_v17 = vpack.c.bf16 %v4107_v20, %v4095_v11  ;;  %v4113_v42 = vpop.permute.xlu1 %4112 }
0x14fc   :  { %v12028_v14 = vunpack.i.h.bf16 %v12026_v26  ;;  %v12027_v16 = vunpack.i.l.bf16 %v12026_v26 }
0x14fd   :  { %10796 = vmatprep.subr.bf16.mxu0 %v10795_v63  ;;  %10814 = vmatpush3.bf16.msra.mxu1 %v10813_v41 }
0x14fe   :  { %v4120_v43 = vsel %vm162_vm8, %v12028_v14, %v4113_v42  ;;  %v4119_v60 = vsel %vm162_vm8, %v4113_v42, %v12027_v16  ;;  %10798 = vmatpush1.bf16.msra.mxu0 %v10797_v17  ;;  %10815 = vmatprep.subr.bf16.mxu1 %v12837_v0  ;;  %v4118_v32 = vsel %vm162_vm8, %v12027_v16, %v12028_v14 }
0x14ff   :  { %v10799_v5 = vpack.c.bf16 %v12848_v19, %v4118_v32  ;;  %v10816_v44 = vpack.c.bf16 %v12848_v19, %v4120_v43  ;;  %v10801_v40 = vpack.c.bf16 %v12848_v19, %v4119_v60 }
0x1501   :  { %10800 = vmatprep.subr.bf16.mxu0 %v10799_v5  ;;  %10817 = vmatpush3.bf16.msra.mxu1 %v10816_v44 }
0x1502   :  { %10802 = vmatpush1.bf16.msra.mxu0 %v10801_v40  ;;  %10838 = vmatprep.subr.bf16.mxu1 %v12837_v0 }
0x1504   :  { %9900 = vmatmul.mubr.msk.f32.vlgmr.msra.gmra.mrb[28].mxu1 %vm199_vm9, %v14405_v4 }
0x1505   :  { %9169 = vmatmul.mubr.msk.f32.vlgmr.msra.gmra.mrb[28].mxu0 %vm199_vm9, %v14405_v4  ;;  %9922 = vmatprep.mubr.msk.f32.mxu1 %vm12845_vm0, %v12846_v6 }
0x1506   :  { %4497 = vmatprep.mubr.f32.mxu0 %v12846_v6 }
0x15d7   :  { %v4291_v35 = vpop.f32.mrb[28].mxu1 }
0x15d8   :  { %v4297_v29 = vmul.f32 %v14414_v56, %v4291_v35  ;;  %v4220_v33 = vpop.f32.mrb[28].mxu0  ;;  %v9901_v46 = vpop.f32.mrb[29].mxu1 }
0x15d9   :  { %v4295_v47 = vmul.f32 %v14419_v12, %v4220_v33  ;;  %v4222_v58 = vpop.f32.mrb[29].mxu0 }
0x15da   :  { %v4300_v39 = vmul.f32 0.125, %v4297_v29  ;;  %v4585_v36 = vmul.f32 2.0, %v4297_v29  ;;  %v4296_v2 = vmul.f32 %v14425_v57, %v4222_v58 }
0x15db   :  { %v4298_v21 = vmul.f32 0.125, %v4295_v47  ;;  %v4583_v7 = vmul.f32 2.0, %v4295_v47 }
0x15dc   :  { %v14660_v24 = vadd.f32 %v4300_v39, %v14310_v49  ;;  %v4299_v18 = vmul.f32 0.125, %v4296_v2  ;;  %v4584_v38 = vmul.f32 2.0, %v4296_v2  ;;  %v14662_v50 = vadd.f32 %v4585_v36, %v4582_v48 }
0x15dd   :  { %v14664_v52 = vadd.f32 %v4583_v7, %v4580_v23  ;;  %v14673_v13 = vadd.f32 %v4298_v21, %v14317_v8 }
0x15de   :  { %4320 = vrot.lane.b32.xlu1 %v14660_v24, %s12839_s2  ;;  %4308 = vrot.lane.b32.xlu0 %v14660_v24, %s12838_s19  ;;  %v14670_v55 = vadd.f32 %v4584_v38, %v4581_v30  ;;  %v14676_v22 = vadd.f32 %v4299_v18, %v14320_v34 }
0x15e0   :  { %v12034_v10 = vpack.i.bf16 %v14676_v22, %v14673_v13  ;;  %v12059_v15 = vpack.i.bf16 %v14660_v24, %v14676_v22 }
0x15e2   :  { %4344 = vrot.lane.b32.xlu1 %v14660_v24, %s12840_s20  ;;  %4332 = vrot.lane.b32.xlu0 %v14660_v24, %s12841_s21 }
0x15e6   :  { %12035 = vrot.lane.b32.xlu1 %v12034_v10, %s12839_s2  ;;  %12030 = vrot.lane.b32.xlu0 %v12034_v10, %s12838_s19 }
0x15ea   :  { %12045 = vrot.lane.b32.xlu1 %v12034_v10, %s12840_s20  ;;  %12040 = vrot.lane.b32.xlu0 %v12034_v10, %s12841_s21 }
0x15ee   :  { %4355 = vrot.lane.b32.xlu1 %v14673_v13, %s12842_s22  ;;  %4367 = vrot.lane.b32.xlu0 %v14673_v13, %s12844_s24 }
0x15f2   :  { %12060 = vrot.lane.b32.xlu1 %v12059_v15, %s12843_s23  ;;  %12050 = vrot.lane.b32.xlu0 %v12059_v15, %s12842_s22 }
0x15f6   :  { %4379 = vrot.lane.b32.xlu1 %v14673_v13, %s12843_s23  ;;  %12055 = vrot.lane.b32.xlu0 %v12059_v15, %s12844_s24 }
0x15fa   :  { %4391 = vrot.lane.b32.xlu1 %v14673_v13, %s12847_s25  ;;  %12065 = vrot.lane.b32.xlu0 %v12059_v15, %s12847_s25 }
0x1650   :  { %v4321_v3 = vpop.permute.xlu1 %4320  ;;  %v4309_v54 = vpop.permute.xlu0 %4308 }
0x1654   :  { %v4345_v59 = vpop.permute.xlu1 %4344  ;;  %v4333_v61 = vpop.permute.xlu0 %4332 }
0x1658   :  { %v12036_v27 = vpop.permute.xlu1 %12035  ;;  %v12031_v1 = vpop.permute.xlu0 %12030 }
0x1659   :  { %v12038_v62 = vunpack.i.h.bf16 %v12036_v27  ;;  %v12037_v20 = vunpack.i.l.bf16 %v12036_v27  ;;  %v12033_v31 = vunpack.i.h.bf16 %v12031_v1  ;;  %v12032_v53 = vunpack.i.l.bf16 %v12031_v1 }
0x165b   :  { %v4322_v25 = vsel %vm81_vm2, %v12038_v62, %v4321_v3  ;;  %v4324_v11 = vsel %vm81_vm2, %v4321_v3, %v12037_v20  ;;  %v4310_v51 = vsel %vm68_vm1, %v12033_v31, %v4309_v54  ;;  %v4312_v26 = vsel %vm68_vm1, %v4309_v54, %v12032_v53 }
0x165c   :  { %v12046_v63 = vpop.permute.xlu1 %12045  ;;  %v12041_v41 = vpop.permute.xlu0 %12040  ;;  %v4311_v17 = vsel %vm68_vm1, %v12032_v53, %v12033_v31  ;;  %v4323_v14 = vsel %vm81_vm2, %v12037_v20, %v12038_v62  ;;  %v10839_v16 = vpack.c.bf16 %v4322_v25, %v4310_v51  ;;  %v10820_v42 = vpack.c.bf16 %v4324_v11, %v4312_v26 }
0x165d   :  { %v12048_v43 = vunpack.i.h.bf16 %v12046_v63  ;;  %v12047_v60 = vunpack.i.l.bf16 %v12046_v63  ;;  %v12043_v32 = vunpack.i.h.bf16 %v12041_v41  ;;  %v12042_v5 = vunpack.i.l.bf16 %v12041_v41 }
0x165e   :  { %v10818_v44 = vpack.c.bf16 %v4323_v14, %v4311_v17  ;;  %10840 = vmatpush3.bf16.msra.mxu1 %v10839_v16 }
0x165f   :  { %v4346_v40 = vsel %vm107_vm3, %v12048_v43, %v4345_v59  ;;  %v4348_v28 = vsel %vm107_vm3, %v4345_v59, %v12047_v60  ;;  %v4334_v37 = vsel %vm94_vm4, %v12043_v32, %v4333_v61  ;;  %v4336_v45 = vsel %vm94_vm4, %v4333_v61, %v12042_v5  ;;  %10841 = vmatprep.subr.bf16.mxu1 %v12837_v0 }
0x1660   :  { %10819 = vmatprep.subr.bf16.mxu0 %v10818_v44  ;;  %v4356_v35 = vpop.permute.xlu1 %4355  ;;  %v4368_v29 = vpop.permute.xlu0 %4367  ;;  %v4335_v33 = vsel %vm94_vm4, %v12042_v5, %v12043_v32  ;;  %v4347_v46 = vsel %vm107_vm3, %v12047_v60, %v12048_v43  ;;  %v10842_v47 = vpack.c.bf16 %v4346_v40, %v4334_v37  ;;  %v10824_v48 = vpack.c.bf16 %v4348_v28, %v4336_v45 }
0x1661   :  { %10821 = vmatpush1.bf16.msra.mxu0 %v10820_v42  ;;  %v10822_v58 = vpack.c.bf16 %v4347_v46, %v4335_v33 }
0x1662   :  { %10843 = vmatpush3.bf16.msra.mxu1 %v10842_v47 }
0x1663   :  { %10823 = vmatprep.subr.bf16.mxu0 %v10822_v58  ;;  %10844 = vmatprep.subr.bf16.mxu1 %v12837_v0 }
0x1664   :  { %v12061_v39 = vpop.permute.xlu1 %12060  ;;  %v12051_v36 = vpop.permute.xlu0 %12050 }
0x1665   :  { %10825 = vmatpush1.bf16.msra.mxu0 %v10824_v48  ;;  %v12053_v2 = vunpack.i.h.bf16 %v12051_v36  ;;  %v12052_v23 = vunpack.i.l.bf16 %v12051_v36  ;;  %v12063_v30 = vunpack.i.h.bf16 %v12061_v39  ;;  %v12062_v21 = vunpack.i.l.bf16 %v12061_v39 }
0x1667   :  { %v4363_v7 = vsel %vm123_vm5, %v12053_v2, %v4356_v35  ;;  %v4362_v18 = vsel %vm123_vm5, %v4356_v35, %v12052_v23  ;;  %v4361_v38 = vsel %vm123_vm5, %v12052_v23, %v12053_v2  ;;  %v4385_v20 = vsel %vm149_vm6, %v12062_v21, %v12063_v30 }
0x1668   :  { %v4380_v10 = vpop.permute.xlu1 %4379  ;;  %v12056_v15 = vpop.permute.xlu0 %12055  ;;  %v10826_v3 = vpack.c.bf16 %v4361_v38, %v14676_v22  ;;  %v10845_v54 = vpack.c.bf16 %v4363_v7, %v14660_v24  ;;  %v10828_v59 = vpack.c.bf16 %v4362_v18, %v14673_v13 }
0x1669   :  { %v12058_v61 = vunpack.i.h.bf16 %v12056_v15  ;;  %v12057_v27 = vunpack.i.l.bf16 %v12056_v15  ;;  %v4386_v1 = vsel %vm149_vm6, %v4380_v10, %v12062_v21  ;;  %v4387_v62 = vsel %vm149_vm6, %v12063_v30, %v4380_v10 }
0x166a   :  { %10827 = vmatprep.subr.bf16.mxu0 %v10826_v3  ;;  %10846 = vmatpush3.bf16.msra.mxu1 %v10845_v54 }
0x166b   :  { %v4375_v22 = vsel %vm136_vm7, %v12058_v61, %v4368_v29  ;;  %v4374_v24 = vsel %vm136_vm7, %v4368_v29, %v12057_v27  ;;  %10829 = vmatpush1.bf16.msra.mxu0 %v10828_v59  ;;  %10847 = vmatprep.subr.bf16.mxu1 %v12837_v0  ;;  %v4373_v13 = vsel %vm136_vm7, %v12057_v27, %v12058_v61 }
0x166c   :  { %v12066_v31 = vpop.permute.xlu0 %12065  ;;  %v10830_v53 = vpack.c.bf16 %v4385_v20, %v4373_v13  ;;  %v10848_v25 = vpack.c.bf16 %v4387_v62, %v4375_v22  ;;  %v10832_v11 = vpack.c.bf16 %v4386_v1, %v4374_v24  ;;  %v4392_v63 = vpop.permute.xlu1 %4391 }
0x166d   :  { %v12068_v51 = vunpack.i.h.bf16 %v12066_v31  ;;  %v12067_v26 = vunpack.i.l.bf16 %v12066_v31 }
0x166e   :  { %10831 = vmatprep.subr.bf16.mxu0 %v10830_v53  ;;  %10849 = vmatpush3.bf16.msra.mxu1 %v10848_v25 }
0x166f   :  { %v4399_v41 = vsel %vm162_vm8, %v12068_v51, %v4392_v63  ;;  %v4398_v17 = vsel %vm162_vm8, %v4392_v63, %v12067_v26  ;;  %10833 = vmatpush1.bf16.msra.mxu0 %v10832_v11  ;;  %10850 = vmatprep.subr.bf16.mxu1 %v12837_v0  ;;  %v4397_v14 = vsel %vm162_vm8, %v12067_v26, %v12068_v51 }
0x1670   :  { %v10834_v16 = vpack.c.bf16 %v12848_v19, %v4397_v14  ;;  %v10851_v42 = vpack.c.bf16 %v12848_v19, %v4399_v41  ;;  %v10836_v43 = vpack.c.bf16 %v12848_v19, %v4398_v17 }
0x1672   :  { %10835 = vmatprep.subr.bf16.mxu0 %v10834_v16  ;;  %10852 = vmatpush3.bf16.msra.mxu1 %v10851_v42 }
0x1673   :  { %10837 = vmatpush1.bf16.msra.mxu0 %v10836_v43  ;;  %10873 = vmatprep.subr.bf16.mxu1 %v12837_v0 }
0x1675   :  { %9923 = vmatmul.mubr.msk.f32.vlgmr.msra.gmra.mrb[30].mxu1 %vm199_vm9, %v14405_v4 }
0x1676   :  { %9171 = vmatmul.mubr.msk.f32.vlgmr.msra.gmra.mrb[30].mxu0 %vm199_vm9, %v14405_v4  ;;  %9945 = vmatprep.mubr.msk.f32.mxu1 %vm12845_vm0, %v12846_v6 }
0x1677   :  { %4791 = vmatprep.mubr.f32.mxu0 %v12846_v6 }
0x1748   :  { %v4570_v60 = vpop.f32.mrb[30].mxu1 }
0x1749   :  { %v4576_v32 = vmul.f32 %v14414_v56, %v4570_v60  ;;  %v4499_v5 = vpop.f32.mrb[30].mxu0  ;;  %v9924_v44 = vpop.f32.mrb[31].mxu1 }
0x174a   :  { %v4574_v40 = vmul.f32 %v14419_v12, %v4499_v5  ;;  %v4501_v28 = vpop.f32.mrb[31].mxu0 }
0x174b   :  { %v4591_v37 = vadd.f32 %v14662_v50, %v4576_v32  ;;  %v4575_v45 = vmul.f32 %v14425_v57, %v4501_v28 }
0x174c   :  { %v4589_v35 = vadd.f32 %v14664_v52, %v4574_v40 }
0x174d   :  { %v4594_v4 = vmul.f32 0.020833334, %v4591_v37  ;;  %v4590_v29 = vadd.f32 %v14670_v55, %v4575_v45 }
0x174e   :  { %v4592_v46 = vmul.f32 0.020833334, %v4589_v35 }
0x174f   :  { %v14775_v33 = vadd.f32 %v4594_v4, %v14310_v49  ;;  %v4593_v47 = vmul.f32 0.020833334, %v4590_v29 }
0x1750   :  { %v14782_v56 = vadd.f32 %v4592_v46, %v14317_v8 }
0x1751   :  { %4614 = vrot.lane.b32.xlu1 %v14775_v33, %s12839_s2  ;;  %4602 = vrot.lane.b32.xlu0 %v14775_v33, %s12838_s19  ;;  %v14785_v12 = vadd.f32 %v4593_v47, %v14320_v34 }
0x1753   :  { %v12074_v49 = vpack.i.bf16 %v14785_v12, %v14782_v56  ;;  %v12099_v8 = vpack.i.bf16 %v14775_v33, %v14785_v12 }
0x1755   :  { %4638 = vrot.lane.b32.xlu1 %v14775_v33, %s12840_s20  ;;  %4626 = vrot.lane.b32.xlu0 %v14775_v33, %s12841_s21 }
0x1759   :  { %12075 = vrot.lane.b32.xlu1 %v12074_v49, %s12839_s2  ;;  %12070 = vrot.lane.b32.xlu0 %v12074_v49, %s12838_s19 }
0x175d   :  { %12085 = vrot.lane.b32.xlu1 %v12074_v49, %s12840_s20  ;;  %12080 = vrot.lane.b32.xlu0 %v12074_v49, %s12841_s21 }
0x1761   :  { %4649 = vrot.lane.b32.xlu1 %v14782_v56, %s12842_s22  ;;  %4661 = vrot.lane.b32.xlu0 %v14782_v56, %s12844_s24 }
0x1765   :  { %12100 = vrot.lane.b32.xlu1 %v12099_v8, %s12843_s23  ;;  %12090 = vrot.lane.b32.xlu0 %v12099_v8, %s12842_s22 }
0x1769   :  { %4673 = vrot.lane.b32.xlu1 %v14782_v56, %s12843_s23  ;;  %12095 = vrot.lane.b32.xlu0 %v12099_v8, %s12844_s24 }
0x176d   :  { %4685 = vrot.lane.b32.xlu1 %v14782_v56, %s12847_s25  ;;  %12105 = vrot.lane.b32.xlu0 %v12099_v8, %s12847_s25 }
0x17c3   :  { %v4615_v34 = vpop.permute.xlu1 %4614  ;;  %v4603_v57 = vpop.permute.xlu0 %4602 }
0x17c7   :  { %v4639_v50 = vpop.permute.xlu1 %4638  ;;  %v4627_v52 = vpop.permute.xlu0 %4626 }
0x17cb   :  { %v12076_v55 = vpop.permute.xlu1 %12075  ;;  %v12071_v58 = vpop.permute.xlu0 %12070 }
0x17cc   :  { %v12078_v48 = vunpack.i.h.bf16 %v12076_v55  ;;  %v12077_v39 = vunpack.i.l.bf16 %v12076_v55  ;;  %v12073_v36 = vunpack.i.h.bf16 %v12071_v58  ;;  %v12072_v2 = vunpack.i.l.bf16 %v12071_v58 }
0x17ce   :  { %v4616_v23 = vsel %vm81_vm2, %v12078_v48, %v4615_v34  ;;  %v4618_v30 = vsel %vm81_vm2, %v4615_v34, %v12077_v39  ;;  %v4604_v21 = vsel %vm68_vm1, %v12073_v36, %v4603_v57  ;;  %v4606_v7 = vsel %vm68_vm1, %v4603_v57, %v12072_v2 }
0x17cf   :  { %v12086_v18 = vpop.permute.xlu1 %12085  ;;  %v12081_v38 = vpop.permute.xlu0 %12080  ;;  %v4605_v10 = vsel %vm68_vm1, %v12072_v2, %v12073_v36  ;;  %v4617_v15 = vsel %vm81_vm2, %v12077_v39, %v12078_v48  ;;  %v10874_v3 = vpack.c.bf16 %v4616_v23, %v4604_v21  ;;  %v10855_v54 = vpack.c.bf16 %v4618_v30, %v4606_v7 }
0x17d0   :  { %v12088_v59 = vunpack.i.h.bf16 %v12086_v18  ;;  %v12087_v61 = vunpack.i.l.bf16 %v12086_v18  ;;  %v12083_v27 = vunpack.i.h.bf16 %v12081_v38  ;;  %v12082_v1 = vunpack.i.l.bf16 %v12081_v38  ;;  %v14870_v18 = vld [vmem:[#allocation6] sm:$0xff] }
0x17d1   :  { %v10853_v62 = vpack.c.bf16 %v4617_v15, %v4605_v10  ;;  %10875 = vmatpush3.bf16.msra.mxu1 %v10874_v3  ;;  %v14879_v10 = vld [vmem:[#allocation8 + $0x10] sm:$0xff] }
0x17d2   :  { %v4640_v20 = vsel %vm107_vm3, %v12088_v59, %v4639_v50  ;;  %v4642_v22 = vsel %vm107_vm3, %v4639_v50, %v12087_v61  ;;  %v4628_v24 = vsel %vm94_vm4, %v12083_v27, %v4627_v52  ;;  %v4630_v13 = vsel %vm94_vm4, %v4627_v52, %v12082_v1  ;;  %10876 = vmatprep.subr.bf16.mxu1 %v12837_v0 }
0x17d3   :  { %10854 = vmatprep.subr.bf16.mxu0 %v10853_v62  ;;  %v4650_v31 = vpop.permute.xlu1 %4649  ;;  %v4662_v53 = vpop.permute.xlu0 %4661  ;;  %v4629_v25 = vsel %vm94_vm4, %v12082_v1, %v12083_v27  ;;  %v4641_v11 = vsel %vm107_vm3, %v12087_v61, %v12088_v59  ;;  %v10877_v51 = vpack.c.bf16 %v4640_v20, %v4628_v24  ;;  %v10859_v63 = vpack.c.bf16 %v4642_v22, %v4630_v13  ;;  %v14884_v59 = vld [vmem:[#allocation8] sm:$0xff]  ;;  %v14890_v62 = vld [vmem:[#allocation8 + $0x8] sm:$0xff] }
0x17d4   :  { %10856 = vmatpush1.bf16.msra.mxu0 %v10855_v54  ;;  %v10857_v26 = vpack.c.bf16 %v4641_v11, %v4629_v25 }
0x17d5   :  { %10878 = vmatpush3.bf16.msra.mxu1 %v10877_v51 }
0x17d6   :  { %10858 = vmatprep.subr.bf16.mxu0 %v10857_v26  ;;  %10879 = vmatprep.subr.bf16.mxu1 %v12837_v0 }
0x17d7   :  { %v12101_v41 = vpop.permute.xlu1 %12100  ;;  %v12091_v17 = vpop.permute.xlu0 %12090 }
0x17d8   :  { %10860 = vmatpush1.bf16.msra.mxu0 %v10859_v63  ;;  %v12093_v14 = vunpack.i.h.bf16 %v12091_v17  ;;  %v12092_v16 = vunpack.i.l.bf16 %v12091_v17  ;;  %v12103_v42 = vunpack.i.h.bf16 %v12101_v41  ;;  %v12102_v43 = vunpack.i.l.bf16 %v12101_v41 }
0x17da   :  { %v4657_v60 = vsel %vm123_vm5, %v12093_v14, %v4650_v31  ;;  %v4656_v32 = vsel %vm123_vm5, %v4650_v31, %v12092_v16  ;;  %v4655_v5 = vsel %vm123_vm5, %v12092_v16, %v12093_v14  ;;  %v4679_v47 = vsel %vm149_vm6, %v12102_v43, %v12103_v42 }
0x17db   :  { %v4674_v44 = vpop.permute.xlu1 %4673  ;;  %v12096_v40 = vpop.permute.xlu0 %12095  ;;  %v10861_v28 = vpack.c.bf16 %v4655_v5, %v14785_v12  ;;  %v10880_v37 = vpack.c.bf16 %v4657_v60, %v14775_v33  ;;  %v10863_v45 = vpack.c.bf16 %v4656_v32, %v14782_v56 }
0x17dc   :  { %v12098_v35 = vunpack.i.h.bf16 %v12096_v40  ;;  %v12097_v4 = vunpack.i.l.bf16 %v12096_v40  ;;  %v4680_v29 = vsel %vm149_vm6, %v4674_v44, %v12102_v43  ;;  %v4681_v46 = vsel %vm149_vm6, %v12103_v42, %v4674_v44 }
0x17dd   :  { %10862 = vmatprep.subr.bf16.mxu0 %v10861_v28  ;;  %10881 = vmatpush3.bf16.msra.mxu1 %v10880_v37 }
0x17de   :  { %v4669_v49 = vsel %vm136_vm7, %v12098_v35, %v4662_v53  ;;  %v4668_v8 = vsel %vm136_vm7, %v4662_v53, %v12097_v4  ;;  %10864 = vmatpush1.bf16.msra.mxu0 %v10863_v45  ;;  %10882 = vmatprep.subr.bf16.mxu1 %v12837_v0  ;;  %v4667_v34 = vsel %vm136_vm7, %v12097_v4, %v12098_v35 }
0x17df   :  { %v12106_v57 = vpop.permute.xlu0 %12105  ;;  %v10865_v50 = vpack.c.bf16 %v4679_v47, %v4667_v34  ;;  %v10883_v52 = vpack.c.bf16 %v4681_v46, %v4669_v49  ;;  %v10867_v55 = vpack.c.bf16 %v4680_v29, %v4668_v8  ;;  %v4686_v39 = vpop.permute.xlu1 %4685 }
0x17e0   :  { %v12108_v58 = vunpack.i.h.bf16 %v12106_v57  ;;  %v12107_v48 = vunpack.i.l.bf16 %v12106_v57 }
0x17e1   :  { %10866 = vmatprep.subr.bf16.mxu0 %v10865_v50  ;;  %10884 = vmatpush3.bf16.msra.mxu1 %v10883_v52 }
0x17e2   :  { %v4693_v36 = vsel %vm162_vm8, %v12108_v58, %v4686_v39  ;;  %v4692_v2 = vsel %vm162_vm8, %v4686_v39, %v12107_v48  ;;  %10868 = vmatpush1.bf16.msra.mxu0 %v10867_v55  ;;  %10885 = vmatprep.subr.bf16.mxu1 %v12837_v0  ;;  %v4691_v23 = vsel %vm162_vm8, %v12107_v48, %v12108_v58 }
0x17e3   :  { %v10869_v30 = vpack.c.bf16 %v12848_v19, %v4691_v23  ;;  %v10886_v21 = vpack.c.bf16 %v12848_v19, %v4693_v36  ;;  %v10871_v7 = vpack.c.bf16 %v12848_v19, %v4692_v2 }
0x17e5   :  { %10870 = vmatprep.subr.bf16.mxu0 %v10869_v30  ;;  %10887 = vmatpush3.bf16.msra.mxu1 %v10886_v21 }
0x17e6   :  { %10872 = vmatpush1.bf16.msra.mxu0 %v10871_v7  ;;  %10908 = vmatprep.subr.bf16.mxu1 %v12837_v0 }
0x17e8   :  { %9946 = vmatmul.mubr.msk.f32.vlgmr.msra.gmra.mrb[32].mxu1 %vm199_vm9, %v14870_v18 }
0x17e9   :  { %9173 = vmatmul.mubr.msk.f32.vlgmr.msra.gmra.mrb[32].mxu0 %vm199_vm9, %v14870_v18  ;;  %9968 = vmatprep.mubr.msk.f32.mxu1 %vm12845_vm0, %v12846_v6 }
0x17ea   :  { %5070 = vmatprep.mubr.f32.mxu0 %v12846_v6 }
0x18bb   :  { %v4864_v38 = vpop.f32.mrb[32].mxu1 }
0x18bc   :  { %v14882_v15 = vmul.f32 %v14879_v10, %v4864_v38  ;;  %v4793_v3 = vpop.f32.mrb[32].mxu0  ;;  %v9947_v54 = vpop.f32.mrb[33].mxu1 }
0x18bd   :  { %v14887_v61 = vmul.f32 %v14884_v59, %v4793_v3  ;;  %v4795_v27 = vpop.f32.mrb[33].mxu0 }
0x18be   :  { %v4873_v1 = vmul.f32 0.0625, %v14882_v15  ;;  %v14893_v20 = vmul.f32 %v14890_v62, %v4795_v27 }
0x18bf   :  { %v4871_v24 = vmul.f32 0.0625, %v14887_v61 }
0x18c0   :  { %v14896_v22 = vadd.f32 %v4873_v1, %v14775_v33  ;;  %v4872_v13 = vmul.f32 0.0625, %v14893_v20 }
0x18c1   :  { %v14905_v31 = vadd.f32 %v4871_v24, %v14782_v56 }
0x18c2   :  { %4893 = vrot.lane.b32.xlu1 %v14896_v22, %s12839_s2  ;;  %4881 = vrot.lane.b32.xlu0 %v14896_v22, %s12838_s19  ;;  %v14908_v53 = vadd.f32 %v4872_v13, %v14785_v12 }
0x18c4   :  { %v12114_v25 = vpack.i.bf16 %v14908_v53, %v14905_v31  ;;  %v12139_v11 = vpack.i.bf16 %v14896_v22, %v14908_v53 }
0x18c6   :  { %4917 = vrot.lane.b32.xlu1 %v14896_v22, %s12840_s20  ;;  %4905 = vrot.lane.b32.xlu0 %v14896_v22, %s12841_s21 }
0x18ca   :  { %12115 = vrot.lane.b32.xlu1 %v12114_v25, %s12839_s2  ;;  %12110 = vrot.lane.b32.xlu0 %v12114_v25, %s12838_s19 }
0x18ce   :  { %12125 = vrot.lane.b32.xlu1 %v12114_v25, %s12840_s20  ;;  %12120 = vrot.lane.b32.xlu0 %v12114_v25, %s12841_s21 }
0x18d2   :  { %4928 = vrot.lane.b32.xlu1 %v14905_v31, %s12842_s22  ;;  %4940 = vrot.lane.b32.xlu0 %v14905_v31, %s12844_s24 }
0x18d6   :  { %12140 = vrot.lane.b32.xlu1 %v12139_v11, %s12843_s23  ;;  %12130 = vrot.lane.b32.xlu0 %v12139_v11, %s12842_s22 }
0x18da   :  { %4952 = vrot.lane.b32.xlu1 %v14905_v31, %s12843_s23  ;;  %12135 = vrot.lane.b32.xlu0 %v12139_v11, %s12844_s24 }
0x18de   :  { %4964 = vrot.lane.b32.xlu1 %v14905_v31, %s12847_s25  ;;  %12145 = vrot.lane.b32.xlu0 %v12139_v11, %s12847_s25 }
0x1934   :  { %v4894_v51 = vpop.permute.xlu1 %4893  ;;  %v4882_v26 = vpop.permute.xlu0 %4881 }
0x1938   :  { %v4918_v63 = vpop.permute.xlu1 %4917  ;;  %v4906_v41 = vpop.permute.xlu0 %4905 }
0x193c   :  { %v12116_v17 = vpop.permute.xlu1 %12115  ;;  %v12111_v14 = vpop.permute.xlu0 %12110 }
0x193d   :  { %v12118_v16 = vunpack.i.h.bf16 %v12116_v17  ;;  %v12117_v42 = vunpack.i.l.bf16 %v12116_v17  ;;  %v12113_v43 = vunpack.i.h.bf16 %v12111_v14  ;;  %v12112_v60 = vunpack.i.l.bf16 %v12111_v14 }
0x193f   :  { %v4895_v32 = vsel %vm81_vm2, %v12118_v16, %v4894_v51  ;;  %v4897_v5 = vsel %vm81_vm2, %v4894_v51, %v12117_v42  ;;  %v4883_v44 = vsel %vm68_vm1, %v12113_v43, %v4882_v26  ;;  %v4885_v40 = vsel %vm68_vm1, %v4882_v26, %v12112_v60 }
0x1940   :  { %v12126_v28 = vpop.permute.xlu1 %12125  ;;  %v12121_v37 = vpop.permute.xlu0 %12120  ;;  %v4884_v45 = vsel %vm68_vm1, %v12112_v60, %v12113_v43  ;;  %v4896_v35 = vsel %vm81_vm2, %v12117_v42, %v12118_v16  ;;  %v10909_v4 = vpack.c.bf16 %v4895_v32, %v4883_v44  ;;  %v10890_v29 = vpack.c.bf16 %v4897_v5, %v4885_v40 }
0x1941   :  { %v12128_v46 = vunpack.i.h.bf16 %v12126_v28  ;;  %v12127_v47 = vunpack.i.l.bf16 %v12126_v28  ;;  %v12123_v49 = vunpack.i.h.bf16 %v12121_v37  ;;  %v12122_v8 = vunpack.i.l.bf16 %v12121_v37 }
0x1942   :  { %v10888_v34 = vpack.c.bf16 %v4896_v35, %v4884_v45  ;;  %10910 = vmatpush3.bf16.msra.mxu1 %v10909_v4 }
0x1943   :  { %v4919_v57 = vsel %vm107_vm3, %v12128_v46, %v4918_v63  ;;  %v4921_v50 = vsel %vm107_vm3, %v4918_v63, %v12127_v47  ;;  %v4907_v52 = vsel %vm94_vm4, %v12123_v49, %v4906_v41  ;;  %v4909_v55 = vsel %vm94_vm4, %v4906_v41, %v12122_v8  ;;  %10911 = vmatprep.subr.bf16.mxu1 %v12837_v0 }
0x1944   :  { %10889 = vmatprep.subr.bf16.mxu0 %v10888_v34  ;;  %v4929_v58 = vpop.permute.xlu1 %4928  ;;  %v4941_v48 = vpop.permute.xlu0 %4940  ;;  %v4908_v39 = vsel %vm94_vm4, %v12122_v8, %v12123_v49  ;;  %v4920_v36 = vsel %vm107_vm3, %v12127_v47, %v12128_v46  ;;  %v10912_v2 = vpack.c.bf16 %v4919_v57, %v4907_v52  ;;  %v10894_v30 = vpack.c.bf16 %v4921_v50, %v4909_v55 }
0x1945   :  { %10891 = vmatpush1.bf16.msra.mxu0 %v10890_v29  ;;  %v10892_v23 = vpack.c.bf16 %v4920_v36, %v4908_v39 }
0x1946   :  { %10913 = vmatpush3.bf16.msra.mxu1 %v10912_v2 }
0x1947   :  { %10893 = vmatprep.subr.bf16.mxu0 %v10892_v23  ;;  %10914 = vmatprep.subr.bf16.mxu1 %v12837_v0 }
0x1948   :  { %v12141_v21 = vpop.permute.xlu1 %12140  ;;  %v12131_v7 = vpop.permute.xlu0 %12130 }
0x1949   :  { %10895 = vmatpush1.bf16.msra.mxu0 %v10894_v30  ;;  %v12133_v38 = vunpack.i.h.bf16 %v12131_v7  ;;  %v12132_v3 = vunpack.i.l.bf16 %v12131_v7  ;;  %v12143_v54 = vunpack.i.h.bf16 %v12141_v21  ;;  %v12142_v27 = vunpack.i.l.bf16 %v12141_v21 }
0x194b   :  { %v4936_v1 = vsel %vm123_vm5, %v12133_v38, %v4929_v58  ;;  %v4935_v24 = vsel %vm123_vm5, %v4929_v58, %v12132_v3  ;;  %v4934_v13 = vsel %vm123_vm5, %v12132_v3, %v12133_v38  ;;  %v4958_v42 = vsel %vm149_vm6, %v12142_v27, %v12143_v54 }
0x194c   :  { %v4953_v25 = vpop.permute.xlu1 %4952  ;;  %v12136_v11 = vpop.permute.xlu0 %12135  ;;  %v10896_v51 = vpack.c.bf16 %v4934_v13, %v14908_v53  ;;  %v10915_v26 = vpack.c.bf16 %v4936_v1, %v14896_v22  ;;  %v10898_v63 = vpack.c.bf16 %v4935_v24, %v14905_v31 }
0x194d   :  { %v12138_v41 = vunpack.i.h.bf16 %v12136_v11  ;;  %v12137_v17 = vunpack.i.l.bf16 %v12136_v11  ;;  %v4959_v14 = vsel %vm149_vm6, %v4953_v25, %v12142_v27  ;;  %v4960_v16 = vsel %vm149_vm6, %v12143_v54, %v4953_v25 }
0x194e   :  { %10897 = vmatprep.subr.bf16.mxu0 %v10896_v51  ;;  %10916 = vmatpush3.bf16.msra.mxu1 %v10915_v26 }
0x194f   :  { %v4948_v53 = vsel %vm136_vm7, %v12138_v41, %v4941_v48  ;;  %v4947_v22 = vsel %vm136_vm7, %v4941_v48, %v12137_v17  ;;  %10899 = vmatpush1.bf16.msra.mxu0 %v10898_v63  ;;  %10917 = vmatprep.subr.bf16.mxu1 %v12837_v0  ;;  %v4946_v31 = vsel %vm136_vm7, %v12137_v17, %v12138_v41 }
0x1950   :  { %v12146_v43 = vpop.permute.xlu0 %12145  ;;  %v10900_v60 = vpack.c.bf16 %v4958_v42, %v4946_v31  ;;  %v10918_v32 = vpack.c.bf16 %v4960_v16, %v4948_v53  ;;  %v10902_v5 = vpack.c.bf16 %v4959_v14, %v4947_v22  ;;  %v4965_v28 = vpop.permute.xlu1 %4964 }
0x1951   :  { %v12148_v44 = vunpack.i.h.bf16 %v12146_v43  ;;  %v12147_v40 = vunpack.i.l.bf16 %v12146_v43 }
0x1952   :  { %10901 = vmatprep.subr.bf16.mxu0 %v10900_v60  ;;  %10919 = vmatpush3.bf16.msra.mxu1 %v10918_v32 }
0x1953   :  { %v4972_v37 = vsel %vm162_vm8, %v12148_v44, %v4965_v28  ;;  %v4971_v45 = vsel %vm162_vm8, %v4965_v28, %v12147_v40  ;;  %10903 = vmatpush1.bf16.msra.mxu0 %v10902_v5  ;;  %10920 = vmatprep.subr.bf16.mxu1 %v12837_v0  ;;  %v4970_v35 = vsel %vm162_vm8, %v12147_v40, %v12148_v44 }
0x1954   :  { %v10904_v4 = vpack.c.bf16 %v12848_v19, %v4970_v35  ;;  %v10921_v29 = vpack.c.bf16 %v12848_v19, %v4972_v37  ;;  %v10906_v46 = vpack.c.bf16 %v12848_v19, %v4971_v45 }
0x1956   :  { %10905 = vmatprep.subr.bf16.mxu0 %v10904_v4  ;;  %10922 = vmatpush3.bf16.msra.mxu1 %v10921_v29 }
0x1957   :  { %10907 = vmatpush1.bf16.msra.mxu0 %v10906_v46  ;;  %10943 = vmatprep.subr.bf16.mxu1 %v12837_v0 }
0x1959   :  { %9969 = vmatmul.mubr.msk.f32.vlgmr.msra.gmra.mrb[34].mxu1 %vm199_vm9, %v14870_v18 }
0x195a   :  { %9175 = vmatmul.mubr.msk.f32.vlgmr.msra.gmra.mrb[34].mxu0 %vm199_vm9, %v14870_v18  ;;  %9991 = vmatprep.mubr.msk.f32.mxu1 %vm12845_vm0, %v12846_v6 }
0x195b   :  { %5349 = vmatprep.mubr.f32.mxu0 %v12846_v6 }
0x1a2c   :  { %v5143_v47 = vpop.f32.mrb[34].mxu1 }
0x1a2d   :  { %v15001_v49 = vmul.f32 %v14879_v10, %v5143_v47  ;;  %v5072_v8 = vpop.f32.mrb[34].mxu0  ;;  %v9970_v34 = vpop.f32.mrb[35].mxu1 }
0x1a2e   :  { %v15004_v57 = vmul.f32 %v14884_v59, %v5072_v8  ;;  %v5074_v50 = vpop.f32.mrb[35].mxu0 }
0x1a2f   :  { %v5152_v52 = vmul.f32 0.0625, %v15001_v49  ;;  %v15008_v55 = vmul.f32 %v14890_v62, %v5074_v50 }
0x1a30   :  { %v5150_v48 = vmul.f32 0.0625, %v15004_v57 }
0x1a31   :  { %v15011_v58 = vadd.f32 %v5152_v52, %v14775_v33  ;;  %v5151_v39 = vmul.f32 0.0625, %v15008_v55 }
0x1a32   :  { %v15020_v36 = vadd.f32 %v5150_v48, %v14782_v56 }
0x1a33   :  { %5172 = vrot.lane.b32.xlu1 %v15011_v58, %s12839_s2  ;;  %5160 = vrot.lane.b32.xlu0 %v15011_v58, %s12838_s19  ;;  %v15023_v2 = vadd.f32 %v5151_v39, %v14785_v12 }
0x1a35   :  { %v12154_v23 = vpack.i.bf16 %v15023_v2, %v15020_v36  ;;  %v12179_v30 = vpack.i.bf16 %v15011_v58, %v15023_v2 }
0x1a37   :  { %5196 = vrot.lane.b32.xlu1 %v15011_v58, %s12840_s20  ;;  %5184 = vrot.lane.b32.xlu0 %v15011_v58, %s12841_s21 }
0x1a3b   :  { %12155 = vrot.lane.b32.xlu1 %v12154_v23, %s12839_s2  ;;  %12150 = vrot.lane.b32.xlu0 %v12154_v23, %s12838_s19 }
0x1a3f   :  { %12165 = vrot.lane.b32.xlu1 %v12154_v23, %s12840_s20  ;;  %12160 = vrot.lane.b32.xlu0 %v12154_v23, %s12841_s21 }
0x1a43   :  { %5207 = vrot.lane.b32.xlu1 %v15020_v36, %s12842_s22  ;;  %5219 = vrot.lane.b32.xlu0 %v15020_v36, %s12844_s24 }
0x1a47   :  { %12180 = vrot.lane.b32.xlu1 %v12179_v30, %s12843_s23  ;;  %12170 = vrot.lane.b32.xlu0 %v12179_v30, %s12842_s22 }
0x1a4b   :  { %5231 = vrot.lane.b32.xlu1 %v15020_v36, %s12843_s23  ;;  %12175 = vrot.lane.b32.xlu0 %v12179_v30, %s12844_s24 }
0x1a4f   :  { %5243 = vrot.lane.b32.xlu1 %v15020_v36, %s12847_s25  ;;  %12185 = vrot.lane.b32.xlu0 %v12179_v30, %s12847_s25 }
0x1aa5   :  { %v5173_v21 = vpop.permute.xlu1 %5172  ;;  %v5161_v7 = vpop.permute.xlu0 %5160 }
0x1aa9   :  { %v5197_v38 = vpop.permute.xlu1 %5196  ;;  %v5185_v3 = vpop.permute.xlu0 %5184 }
0x1aad   :  { %v12156_v54 = vpop.permute.xlu1 %12155  ;;  %v12151_v27 = vpop.permute.xlu0 %12150 }
0x1aae   :  { %v12158_v1 = vunpack.i.h.bf16 %v12156_v54  ;;  %v12157_v24 = vunpack.i.l.bf16 %v12156_v54  ;;  %v12153_v13 = vunpack.i.h.bf16 %v12151_v27  ;;  %v12152_v25 = vunpack.i.l.bf16 %v12151_v27 }
0x1ab0   :  { %v5174_v11 = vsel %vm81_vm2, %v12158_v1, %v5173_v21  ;;  %v5176_v51 = vsel %vm81_vm2, %v5173_v21, %v12157_v24  ;;  %v5162_v26 = vsel %vm68_vm1, %v12153_v13, %v5161_v7  ;;  %v5164_v63 = vsel %vm68_vm1, %v5161_v7, %v12152_v25 }
0x1ab1   :  { %v12166_v41 = vpop.permute.xlu1 %12165  ;;  %v12161_v17 = vpop.permute.xlu0 %12160  ;;  %v5163_v14 = vsel %vm68_vm1, %v12152_v25, %v12153_v13  ;;  %v5175_v16 = vsel %vm81_vm2, %v12157_v24, %v12158_v1  ;;  %v10944_v42 = vpack.c.bf16 %v5174_v11, %v5162_v26  ;;  %v10925_v53 = vpack.c.bf16 %v5176_v51, %v5164_v63 }
0x1ab2   :  { %v12168_v22 = vunpack.i.h.bf16 %v12166_v41  ;;  %v12167_v31 = vunpack.i.l.bf16 %v12166_v41  ;;  %v12163_v43 = vunpack.i.h.bf16 %v12161_v17  ;;  %v12162_v60 = vunpack.i.l.bf16 %v12161_v17 }
0x1ab3   :  { %v10923_v32 = vpack.c.bf16 %v5175_v16, %v5163_v14  ;;  %10945 = vmatpush3.bf16.msra.mxu1 %v10944_v42 }
0x1ab4   :  { %v5198_v5 = vsel %vm107_vm3, %v12168_v22, %v5197_v38  ;;  %v5200_v44 = vsel %vm107_vm3, %v5197_v38, %v12167_v31  ;;  %v5186_v40 = vsel %vm94_vm4, %v12163_v43, %v5185_v3  ;;  %v5188_v28 = vsel %vm94_vm4, %v5185_v3, %v12162_v60  ;;  %10946 = vmatprep.subr.bf16.mxu1 %v12837_v0 }
0x1ab5   :  { %10924 = vmatprep.subr.bf16.mxu0 %v10923_v32  ;;  %v5208_v37 = vpop.permute.xlu1 %5207  ;;  %v5220_v45 = vpop.permute.xlu0 %5219  ;;  %v5187_v35 = vsel %vm94_vm4, %v12162_v60, %v12163_v43  ;;  %v5199_v4 = vsel %vm107_vm3, %v12167_v31, %v12168_v22  ;;  %v10947_v29 = vpack.c.bf16 %v5198_v5, %v5186_v40  ;;  %v10929_v47 = vpack.c.bf16 %v5200_v44, %v5188_v28 }
0x1ab6   :  { %10926 = vmatpush1.bf16.msra.mxu0 %v10925_v53  ;;  %v10927_v46 = vpack.c.bf16 %v5199_v4, %v5187_v35  ;;  %v5710_v32 = vmul.f32 2.0, %v15001_v49  ;;  %v5708_v5 = vmul.f32 2.0, %v15004_v57  ;;  %v5709_v44 = vmul.f32 2.0, %v15008_v55 }
0x1ab7   :  { %10948 = vmatpush3.bf16.msra.mxu1 %v10947_v29 }
0x1ab8   :  { %10928 = vmatprep.subr.bf16.mxu0 %v10927_v46  ;;  %10949 = vmatprep.subr.bf16.mxu1 %v12837_v0  ;;  %v5713_v29 = vadd.f32 %v5710_v32, %v14882_v15  ;;  %v5711_v49 = vadd.f32 %v5708_v5, %v14887_v61  ;;  %v5712_v57 = vadd.f32 %v5709_v44, %v14893_v20 }
0x1ab9   :  { %v12181_v8 = vpop.permute.xlu1 %12180  ;;  %v12171_v34 = vpop.permute.xlu0 %12170 }
0x1aba   :  { %10930 = vmatpush1.bf16.msra.mxu0 %v10929_v47  ;;  %v12173_v50 = vunpack.i.h.bf16 %v12171_v34  ;;  %v12172_v52 = vunpack.i.l.bf16 %v12171_v34  ;;  %v12183_v48 = vunpack.i.h.bf16 %v12181_v8  ;;  %v12182_v39 = vunpack.i.l.bf16 %v12181_v8 }
0x1abc   :  { %v5215_v23 = vsel %vm123_vm5, %v12173_v50, %v5208_v37  ;;  %v5214_v30 = vsel %vm123_vm5, %v5208_v37, %v12172_v52  ;;  %v5213_v21 = vsel %vm123_vm5, %v12172_v52, %v12173_v50  ;;  %v5237_v11 = vsel %vm149_vm6, %v12182_v39, %v12183_v48 }
0x1abd   :  { %v5232_v7 = vpop.permute.xlu1 %5231  ;;  %v12176_v38 = vpop.permute.xlu0 %12175  ;;  %v10931_v3 = vpack.c.bf16 %v5213_v21, %v15023_v2  ;;  %v10950_v54 = vpack.c.bf16 %v5215_v23, %v15011_v58  ;;  %v10933_v27 = vpack.c.bf16 %v5214_v30, %v15020_v36 }
0x1abe   :  { %v12178_v1 = vunpack.i.h.bf16 %v12176_v38  ;;  %v12177_v24 = vunpack.i.l.bf16 %v12176_v38  ;;  %v5238_v13 = vsel %vm149_vm6, %v5232_v7, %v12182_v39  ;;  %v5239_v25 = vsel %vm149_vm6, %v12183_v48, %v5232_v7 }
0x1abf   :  { %10932 = vmatprep.subr.bf16.mxu0 %v10931_v3  ;;  %10951 = vmatpush3.bf16.msra.mxu1 %v10950_v54 }
0x1ac0   :  { %v5227_v2 = vsel %vm136_vm7, %v12178_v1, %v5220_v45  ;;  %v5226_v58 = vsel %vm136_vm7, %v5220_v45, %v12177_v24  ;;  %10934 = vmatpush1.bf16.msra.mxu0 %v10933_v27  ;;  %10952 = vmatprep.subr.bf16.mxu1 %v12837_v0  ;;  %v5225_v36 = vsel %vm136_vm7, %v12177_v24, %v12178_v1 }
0x1ac1   :  { %v12186_v51 = vpop.permute.xlu0 %12185  ;;  %v10935_v26 = vpack.c.bf16 %v5237_v11, %v5225_v36  ;;  %v10953_v63 = vpack.c.bf16 %v5239_v25, %v5227_v2  ;;  %v10937_v41 = vpack.c.bf16 %v5238_v13, %v5226_v58  ;;  %v5244_v16 = vpop.permute.xlu1 %5243 }
0x1ac2   :  { %v12188_v17 = vunpack.i.h.bf16 %v12186_v51  ;;  %v12187_v14 = vunpack.i.l.bf16 %v12186_v51 }
0x1ac3   :  { %10936 = vmatprep.subr.bf16.mxu0 %v10935_v26  ;;  %10954 = vmatpush3.bf16.msra.mxu1 %v10953_v63 }
0x1ac4   :  { %v5251_v42 = vsel %vm162_vm8, %v12188_v17, %v5244_v16  ;;  %v5250_v53 = vsel %vm162_vm8, %v5244_v16, %v12187_v14  ;;  %10938 = vmatpush1.bf16.msra.mxu0 %v10937_v41  ;;  %10955 = vmatprep.subr.bf16.mxu1 %v12837_v0  ;;  %v5249_v22 = vsel %vm162_vm8, %v12187_v14, %v12188_v17 }
0x1ac5   :  { %v10939_v31 = vpack.c.bf16 %v12848_v19, %v5249_v22  ;;  %v10956_v43 = vpack.c.bf16 %v12848_v19, %v5251_v42  ;;  %v10941_v60 = vpack.c.bf16 %v12848_v19, %v5250_v53 }
0x1ac7   :  { %10940 = vmatprep.subr.bf16.mxu0 %v10939_v31  ;;  %10957 = vmatpush3.bf16.msra.mxu1 %v10956_v43 }
0x1ac8   :  { %10942 = vmatpush1.bf16.msra.mxu0 %v10941_v60  ;;  %10978 = vmatprep.subr.bf16.mxu1 %v12837_v0 }
0x1aca   :  { %9992 = vmatmul.mubr.msk.f32.vlgmr.msra.gmra.mrb[36].mxu1 %vm199_vm9, %v14870_v18 }
0x1acb   :  { %9177 = vmatmul.mubr.msk.f32.vlgmr.msra.gmra.mrb[36].mxu0 %vm199_vm9, %v14870_v18  ;;  %10014 = vmatprep.mubr.msk.f32.mxu1 %vm12845_vm0, %v12846_v6 }
0x1acc   :  { %5628 = vmatprep.mubr.f32.mxu0 %v12846_v6 }
0x1b9d   :  { %v5422_v40 = vpop.f32.mrb[36].mxu1 }
0x1b9e   :  { %v5428_v28 = vmul.f32 %v14879_v10, %v5422_v40  ;;  %v5351_v37 = vpop.f32.mrb[36].mxu0  ;;  %v9993_v45 = vpop.f32.mrb[37].mxu1 }
0x1b9f   :  { %v5426_v35 = vmul.f32 %v14884_v59, %v5351_v37  ;;  %v5353_v4 = vpop.f32.mrb[37].mxu0 }
0x1ba0   :  { %v5431_v46 = vmul.f32 0.125, %v5428_v28  ;;  %v5716_v47 = vmul.f32 2.0, %v5428_v28  ;;  %v5427_v8 = vmul.f32 %v14890_v62, %v5353_v4 }
0x1ba1   :  { %v5429_v34 = vmul.f32 0.125, %v5426_v35  ;;  %v5714_v55 = vmul.f32 2.0, %v5426_v35 }
0x1ba2   :  { %v15125_v50 = vadd.f32 %v5431_v46, %v14775_v33  ;;  %v5430_v52 = vmul.f32 0.125, %v5427_v8  ;;  %v5715_v48 = vmul.f32 2.0, %v5427_v8  ;;  %v15127_v39 = vadd.f32 %v5716_v47, %v5713_v29 }
0x1ba3   :  { %v15129_v23 = vadd.f32 %v5714_v55, %v5711_v49  ;;  %v15138_v61 = vadd.f32 %v5429_v34, %v14782_v56 }
0x1ba4   :  { %5451 = vrot.lane.b32.xlu1 %v15125_v50, %s12839_s2  ;;  %5439 = vrot.lane.b32.xlu0 %v15125_v50, %s12838_s19  ;;  %v15135_v15 = vadd.f32 %v5715_v48, %v5712_v57  ;;  %v15141_v20 = vadd.f32 %v5430_v52, %v14785_v12 }
0x1ba6   :  { %v12194_v30 = vpack.i.bf16 %v15141_v20, %v15138_v61  ;;  %v12219_v21 = vpack.i.bf16 %v15125_v50, %v15141_v20 }
0x1ba8   :  { %5475 = vrot.lane.b32.xlu1 %v15125_v50, %s12840_s20  ;;  %5463 = vrot.lane.b32.xlu0 %v15125_v50, %s12841_s21 }
0x1bac   :  { %12195 = vrot.lane.b32.xlu1 %v12194_v30, %s12839_s2  ;;  %12190 = vrot.lane.b32.xlu0 %v12194_v30, %s12838_s19 }
0x1bb0   :  { %12205 = vrot.lane.b32.xlu1 %v12194_v30, %s12840_s20  ;;  %12200 = vrot.lane.b32.xlu0 %v12194_v30, %s12841_s21 }
0x1bb4   :  { %5486 = vrot.lane.b32.xlu1 %v15138_v61, %s12842_s22  ;;  %5498 = vrot.lane.b32.xlu0 %v15138_v61, %s12844_s24 }
0x1bb8   :  { %12220 = vrot.lane.b32.xlu1 %v12219_v21, %s12843_s23  ;;  %12210 = vrot.lane.b32.xlu0 %v12219_v21, %s12842_s22 }
0x1bbc   :  { %5510 = vrot.lane.b32.xlu1 %v15138_v61, %s12843_s23  ;;  %12215 = vrot.lane.b32.xlu0 %v12219_v21, %s12844_s24 }
0x1bc0   :  { %5522 = vrot.lane.b32.xlu1 %v15138_v61, %s12847_s25  ;;  %12225 = vrot.lane.b32.xlu0 %v12219_v21, %s12847_s25 }
0x1c16   :  { %v5452_v7 = vpop.permute.xlu1 %5451  ;;  %v5440_v38 = vpop.permute.xlu0 %5439 }
0x1c1a   :  { %v5476_v3 = vpop.permute.xlu1 %5475  ;;  %v5464_v54 = vpop.permute.xlu0 %5463 }
0x1c1e   :  { %v12196_v27 = vpop.permute.xlu1 %12195  ;;  %v12191_v1 = vpop.permute.xlu0 %12190 }
0x1c1f   :  { %v12198_v24 = vunpack.i.h.bf16 %v12196_v27  ;;  %v12197_v13 = vunpack.i.l.bf16 %v12196_v27  ;;  %v12193_v25 = vunpack.i.h.bf16 %v12191_v1  ;;  %v12192_v11 = vunpack.i.l.bf16 %v12191_v1 }
0x1c21   :  { %v5453_v2 = vsel %vm81_vm2, %v12198_v24, %v5452_v7  ;;  %v5455_v58 = vsel %vm81_vm2, %v5452_v7, %v12197_v13  ;;  %v5441_v36 = vsel %vm68_vm1, %v12193_v25, %v5440_v38  ;;  %v5443_v51 = vsel %vm68_vm1, %v5440_v38, %v12192_v11 }
0x1c22   :  { %v12206_v26 = vpop.permute.xlu1 %12205  ;;  %v12201_v63 = vpop.permute.xlu0 %12200  ;;  %v5442_v41 = vsel %vm68_vm1, %v12192_v11, %v12193_v25  ;;  %v5454_v17 = vsel %vm81_vm2, %v12197_v13, %v12198_v24  ;;  %v10979_v14 = vpack.c.bf16 %v5453_v2, %v5441_v36  ;;  %v10960_v16 = vpack.c.bf16 %v5455_v58, %v5443_v51 }
0x1c23   :  { %v12208_v42 = vunpack.i.h.bf16 %v12206_v26  ;;  %v12207_v53 = vunpack.i.l.bf16 %v12206_v26  ;;  %v12203_v22 = vunpack.i.h.bf16 %v12201_v63  ;;  %v12202_v31 = vunpack.i.l.bf16 %v12201_v63 }
0x1c24   :  { %v10958_v43 = vpack.c.bf16 %v5454_v17, %v5442_v41  ;;  %10980 = vmatpush3.bf16.msra.mxu1 %v10979_v14 }
0x1c25   :  { %v5477_v60 = vsel %vm107_vm3, %v12208_v42, %v5476_v3  ;;  %v5479_v32 = vsel %vm107_vm3, %v5476_v3, %v12207_v53  ;;  %v5465_v5 = vsel %vm94_vm4, %v12203_v22, %v5464_v54  ;;  %v5467_v44 = vsel %vm94_vm4, %v5464_v54, %v12202_v31  ;;  %10981 = vmatprep.subr.bf16.mxu1 %v12837_v0 }
0x1c26   :  { %10959 = vmatprep.subr.bf16.mxu0 %v10958_v43  ;;  %v5487_v40 = vpop.permute.xlu1 %5486  ;;  %v5499_v28 = vpop.permute.xlu0 %5498  ;;  %v5466_v37 = vsel %vm94_vm4, %v12202_v31, %v12203_v22  ;;  %v5478_v45 = vsel %vm107_vm3, %v12207_v53, %v12208_v42  ;;  %v10982_v35 = vpack.c.bf16 %v5477_v60, %v5465_v5  ;;  %v10964_v29 = vpack.c.bf16 %v5479_v32, %v5467_v44 }
0x1c27   :  { %10961 = vmatpush1.bf16.msra.mxu0 %v10960_v16  ;;  %v10962_v4 = vpack.c.bf16 %v5478_v45, %v5466_v37 }
0x1c28   :  { %10983 = vmatpush3.bf16.msra.mxu1 %v10982_v35 }
0x1c29   :  { %10963 = vmatprep.subr.bf16.mxu0 %v10962_v4  ;;  %10984 = vmatprep.subr.bf16.mxu1 %v12837_v0 }
0x1c2a   :  { %v12221_v46 = vpop.permute.xlu1 %12220  ;;  %v12211_v47 = vpop.permute.xlu0 %12210 }
0x1c2b   :  { %10965 = vmatpush1.bf16.msra.mxu0 %v10964_v29  ;;  %v12213_v8 = vunpack.i.h.bf16 %v12211_v47  ;;  %v12212_v49 = vunpack.i.l.bf16 %v12211_v47  ;;  %v12223_v57 = vunpack.i.h.bf16 %v12221_v46  ;;  %v12222_v34 = vunpack.i.l.bf16 %v12221_v46 }
0x1c2d   :  { %v5494_v55 = vsel %vm123_vm5, %v12213_v8, %v5487_v40  ;;  %v5493_v52 = vsel %vm123_vm5, %v5487_v40, %v12212_v49  ;;  %v5492_v48 = vsel %vm123_vm5, %v12212_v49, %v12213_v8  ;;  %v5516_v13 = vsel %vm149_vm6, %v12222_v34, %v12223_v57 }
0x1c2e   :  { %v5511_v30 = vpop.permute.xlu1 %5510  ;;  %v12216_v21 = vpop.permute.xlu0 %12215  ;;  %v10966_v7 = vpack.c.bf16 %v5492_v48, %v15141_v20  ;;  %v10985_v38 = vpack.c.bf16 %v5494_v55, %v15125_v50  ;;  %v10968_v3 = vpack.c.bf16 %v5493_v52, %v15138_v61 }
0x1c2f   :  { %v12218_v54 = vunpack.i.h.bf16 %v12216_v21  ;;  %v12217_v27 = vunpack.i.l.bf16 %v12216_v21  ;;  %v5517_v1 = vsel %vm149_vm6, %v5511_v30, %v12222_v34  ;;  %v5518_v24 = vsel %vm149_vm6, %v12223_v57, %v5511_v30 }
0x1c30   :  { %10967 = vmatprep.subr.bf16.mxu0 %v10966_v7  ;;  %10986 = vmatpush3.bf16.msra.mxu1 %v10985_v38 }
0x1c31   :  { %v5506_v20 = vsel %vm136_vm7, %v12218_v54, %v5499_v28  ;;  %v5505_v50 = vsel %vm136_vm7, %v5499_v28, %v12217_v27  ;;  %10969 = vmatpush1.bf16.msra.mxu0 %v10968_v3  ;;  %10987 = vmatprep.subr.bf16.mxu1 %v12837_v0  ;;  %v5504_v61 = vsel %vm136_vm7, %v12217_v27, %v12218_v54 }
0x1c32   :  { %v12226_v25 = vpop.permute.xlu0 %12225  ;;  %v10970_v11 = vpack.c.bf16 %v5516_v13, %v5504_v61  ;;  %v10988_v2 = vpack.c.bf16 %v5518_v24, %v5506_v20  ;;  %v10972_v58 = vpack.c.bf16 %v5517_v1, %v5505_v50  ;;  %v5523_v26 = vpop.permute.xlu1 %5522 }
0x1c33   :  { %v12228_v36 = vunpack.i.h.bf16 %v12226_v25  ;;  %v12227_v51 = vunpack.i.l.bf16 %v12226_v25 }
0x1c34   :  { %10971 = vmatprep.subr.bf16.mxu0 %v10970_v11  ;;  %10989 = vmatpush3.bf16.msra.mxu1 %v10988_v2 }
0x1c35   :  { %v5530_v63 = vsel %vm162_vm8, %v12228_v36, %v5523_v26  ;;  %v5529_v41 = vsel %vm162_vm8, %v5523_v26, %v12227_v51  ;;  %10973 = vmatpush1.bf16.msra.mxu0 %v10972_v58  ;;  %10990 = vmatprep.subr.bf16.mxu1 %v12837_v0  ;;  %v5528_v17 = vsel %vm162_vm8, %v12227_v51, %v12228_v36 }
0x1c36   :  { %v10974_v14 = vpack.c.bf16 %v12848_v19, %v5528_v17  ;;  %v10991_v16 = vpack.c.bf16 %v12848_v19, %v5530_v63  ;;  %v10976_v42 = vpack.c.bf16 %v12848_v19, %v5529_v41 }
0x1c38   :  { %10975 = vmatprep.subr.bf16.mxu0 %v10974_v14  ;;  %10992 = vmatpush3.bf16.msra.mxu1 %v10991_v16 }
0x1c39   :  { %10977 = vmatpush1.bf16.msra.mxu0 %v10976_v42  ;;  %11013 = vmatprep.subr.bf16.mxu1 %v12837_v0 }
0x1c3b   :  { %10015 = vmatmul.mubr.msk.f32.vlgmr.msra.gmra.mrb[38].mxu1 %vm199_vm9, %v14870_v18 }
0x1c3c   :  { %9179 = vmatmul.mubr.msk.f32.vlgmr.msra.gmra.mrb[38].mxu0 %vm199_vm9, %v14870_v18  ;;  %10037 = vmatprep.mubr.msk.f32.mxu1 %vm12845_vm0, %v12846_v6 }
0x1c3d   :  { %5922 = vmatprep.mubr.f32.mxu0 %v12846_v6 }
0x1d0e   :  { %v5701_v53 = vpop.f32.mrb[38].mxu1 }
0x1d0f   :  { %v5707_v22 = vmul.f32 %v14879_v10, %v5701_v53  ;;  %v5630_v31 = vpop.f32.mrb[38].mxu0  ;;  %v10016_v43 = vpop.f32.mrb[39].mxu1 }
0x1d10   :  { %v5705_v60 = vmul.f32 %v14884_v59, %v5630_v31  ;;  %v5632_v32 = vpop.f32.mrb[39].mxu0 }
0x1d11   :  { %v5722_v5 = vadd.f32 %v15127_v39, %v5707_v22  ;;  %v5706_v44 = vmul.f32 %v14890_v62, %v5632_v32 }
0x1d12   :  { %v5720_v40 = vadd.f32 %v15129_v23, %v5705_v60 }
0x1d13   :  { %v5725_v18 = vmul.f32 0.020833334, %v5722_v5  ;;  %v5721_v28 = vadd.f32 %v15135_v15, %v5706_v44 }
0x1d14   :  { %v5723_v45 = vmul.f32 0.020833334, %v5720_v40 }
0x1d15   :  { %v15240_v37 = vadd.f32 %v5725_v18, %v14775_v33  ;;  %v5724_v35 = vmul.f32 0.020833334, %v5721_v28 }
0x1d16   :  { %v15247_v10 = vadd.f32 %v5723_v45, %v14782_v56 }
0x1d17   :  { %5745 = vrot.lane.b32.xlu1 %v15240_v37, %s12839_s2  ;;  %5733 = vrot.lane.b32.xlu0 %v15240_v37, %s12838_s19  ;;  %v15250_v59 = vadd.f32 %v5724_v35, %v14785_v12 }
0x1d19   :  { %v12234_v33 = vpack.i.bf16 %v15250_v59, %v15247_v10  ;;  %v12259_v56 = vpack.i.bf16 %v15240_v37, %v15250_v59 }
0x1d1b   :  { %5769 = vrot.lane.b32.xlu1 %v15240_v37, %s12840_s20  ;;  %5757 = vrot.lane.b32.xlu0 %v15240_v37, %s12841_s21 }
0x1d1f   :  { %12235 = vrot.lane.b32.xlu1 %v12234_v33, %s12839_s2  ;;  %12230 = vrot.lane.b32.xlu0 %v12234_v33, %s12838_s19 }
0x1d23   :  { %12245 = vrot.lane.b32.xlu1 %v12234_v33, %s12840_s20  ;;  %12240 = vrot.lane.b32.xlu0 %v12234_v33, %s12841_s21 }
0x1d27   :  { %5780 = vrot.lane.b32.xlu1 %v15247_v10, %s12842_s22  ;;  %5792 = vrot.lane.b32.xlu0 %v15247_v10, %s12844_s24 }
0x1d2b   :  { %12260 = vrot.lane.b32.xlu1 %v12259_v56, %s12843_s23  ;;  %12250 = vrot.lane.b32.xlu0 %v12259_v56, %s12842_s22 }
0x1d2f   :  { %5804 = vrot.lane.b32.xlu1 %v15247_v10, %s12843_s23  ;;  %12255 = vrot.lane.b32.xlu0 %v12259_v56, %s12844_s24 }
0x1d33   :  { %5816 = vrot.lane.b32.xlu1 %v15247_v10, %s12847_s25  ;;  %12265 = vrot.lane.b32.xlu0 %v12259_v56, %s12847_s25 }
0x1d89   :  { %v5746_v12 = vpop.permute.xlu1 %5745  ;;  %v5734_v62 = vpop.permute.xlu0 %5733 }
0x1d8d   :  { %v5770_v39 = vpop.permute.xlu1 %5769  ;;  %v5758_v23 = vpop.permute.xlu0 %5757 }
0x1d91   :  { %v12236_v15 = vpop.permute.xlu1 %12235  ;;  %v12231_v4 = vpop.permute.xlu0 %12230 }
0x1d92   :  { %v12238_v29 = vunpack.i.h.bf16 %v12236_v15  ;;  %v12237_v46 = vunpack.i.l.bf16 %v12236_v15  ;;  %v12233_v47 = vunpack.i.h.bf16 %v12231_v4  ;;  %v12232_v8 = vunpack.i.l.bf16 %v12231_v4 }
0x1d94   :  { %v5747_v49 = vsel %vm81_vm2, %v12238_v29, %v5746_v12  ;;  %v5749_v57 = vsel %vm81_vm2, %v5746_v12, %v12237_v46  ;;  %v5735_v34 = vsel %vm68_vm1, %v12233_v47, %v5734_v62  ;;  %v5737_v55 = vsel %vm68_vm1, %v5734_v62, %v12232_v8 }
0x1d95   :  { %v12246_v52 = vpop.permute.xlu1 %12245  ;;  %v12241_v48 = vpop.permute.xlu0 %12240  ;;  %v5736_v30 = vsel %vm68_vm1, %v12232_v8, %v12233_v47  ;;  %v5748_v21 = vsel %vm81_vm2, %v12237_v46, %v12238_v29  ;;  %v11014_v7 = vpack.c.bf16 %v5747_v49, %v5735_v34  ;;  %v10995_v38 = vpack.c.bf16 %v5749_v57, %v5737_v55 }
0x1d96   :  { %v12248_v3 = vunpack.i.h.bf16 %v12246_v52  ;;  %v12247_v54 = vunpack.i.l.bf16 %v12246_v52  ;;  %v12243_v27 = vunpack.i.h.bf16 %v12241_v48  ;;  %v12242_v1 = vunpack.i.l.bf16 %v12241_v48  ;;  %v15335_v52 = vld [vmem:[#allocation6] sm:$0xff] }
0x1d97   :  { %v10993_v24 = vpack.c.bf16 %v5748_v21, %v5736_v30  ;;  %11015 = vmatpush3.bf16.msra.mxu1 %v11014_v7  ;;  %v15344_v30 = vld [vmem:[#allocation8 + $0x10] sm:$0xff] }
0x1d98   :  { %v5771_v13 = vsel %vm107_vm3, %v12248_v3, %v5770_v39  ;;  %v5773_v20 = vsel %vm107_vm3, %v5770_v39, %v12247_v54  ;;  %v5759_v50 = vsel %vm94_vm4, %v12243_v27, %v5758_v23  ;;  %v5761_v61 = vsel %vm94_vm4, %v5758_v23, %v12242_v1  ;;  %11016 = vmatprep.subr.bf16.mxu1 %v12837_v0 }
0x1d99   :  { %10994 = vmatprep.subr.bf16.mxu0 %v10993_v24  ;;  %v5781_v25 = vpop.permute.xlu1 %5780  ;;  %v5793_v11 = vpop.permute.xlu0 %5792  ;;  %v5760_v2 = vsel %vm94_vm4, %v12242_v1, %v12243_v27  ;;  %v5772_v58 = vsel %vm107_vm3, %v12247_v54, %v12248_v3  ;;  %v11017_v36 = vpack.c.bf16 %v5771_v13, %v5759_v50  ;;  %v10999_v26 = vpack.c.bf16 %v5773_v20, %v5761_v61  ;;  %v15349_v3 = vld [vmem:[#allocation8] sm:$0xff]  ;;  %v15355_v24 = vld [vmem:[#allocation8 + $0x8] sm:$0xff] }
0x1d9a   :  { %10996 = vmatpush1.bf16.msra.mxu0 %v10995_v38  ;;  %v10997_v51 = vpack.c.bf16 %v5772_v58, %v5760_v2 }
0x1d9b   :  { %11018 = vmatpush3.bf16.msra.mxu1 %v11017_v36 }
0x1d9c   :  { %10998 = vmatprep.subr.bf16.mxu0 %v10997_v51  ;;  %11019 = vmatprep.subr.bf16.mxu1 %v12837_v0 }
0x1d9d   :  { %v12261_v63 = vpop.permute.xlu1 %12260  ;;  %v12251_v41 = vpop.permute.xlu0 %12250 }
0x1d9e   :  { %11000 = vmatpush1.bf16.msra.mxu0 %v10999_v26  ;;  %v12253_v17 = vunpack.i.h.bf16 %v12251_v41  ;;  %v12252_v14 = vunpack.i.l.bf16 %v12251_v41  ;;  %v12263_v16 = vunpack.i.h.bf16 %v12261_v63  ;;  %v12262_v42 = vunpack.i.l.bf16 %v12261_v63 }
0x1da0   :  { %v5788_v53 = vsel %vm123_vm5, %v12253_v17, %v5781_v25  ;;  %v5787_v22 = vsel %vm123_vm5, %v5781_v25, %v12252_v14  ;;  %v5786_v31 = vsel %vm123_vm5, %v12252_v14, %v12253_v17  ;;  %v5810_v35 = vsel %vm149_vm6, %v12262_v42, %v12263_v16 }
0x1da1   :  { %v5805_v43 = vpop.permute.xlu1 %5804  ;;  %v12256_v60 = vpop.permute.xlu0 %12255  ;;  %v11001_v32 = vpack.c.bf16 %v5786_v31, %v15250_v59  ;;  %v11020_v5 = vpack.c.bf16 %v5788_v53, %v15240_v37  ;;  %v11003_v44 = vpack.c.bf16 %v5787_v22, %v15247_v10 }
0x1da2   :  { %v12258_v40 = vunpack.i.h.bf16 %v12256_v60  ;;  %v12257_v18 = vunpack.i.l.bf16 %v12256_v60  ;;  %v5811_v28 = vsel %vm149_vm6, %v5805_v43, %v12262_v42  ;;  %v5812_v45 = vsel %vm149_vm6, %v12263_v16, %v5805_v43 }
0x1da3   :  { %11002 = vmatprep.subr.bf16.mxu0 %v11001_v32  ;;  %11021 = vmatpush3.bf16.msra.mxu1 %v11020_v5 }
0x1da4   :  { %v5800_v33 = vsel %vm136_vm7, %v12258_v40, %v5793_v11  ;;  %v5799_v56 = vsel %vm136_vm7, %v5793_v11, %v12257_v18  ;;  %11004 = vmatpush1.bf16.msra.mxu0 %v11003_v44  ;;  %11022 = vmatprep.subr.bf16.mxu1 %v12837_v0  ;;  %v5798_v12 = vsel %vm136_vm7, %v12257_v18, %v12258_v40 }
0x1da5   :  { %v12266_v62 = vpop.permute.xlu0 %12265  ;;  %v11005_v39 = vpack.c.bf16 %v5810_v35, %v5798_v12  ;;  %v11023_v23 = vpack.c.bf16 %v5812_v45, %v5800_v33  ;;  %v11007_v15 = vpack.c.bf16 %v5811_v28, %v5799_v56  ;;  %v5817_v46 = vpop.permute.xlu1 %5816 }
0x1da6   :  { %v12268_v4 = vunpack.i.h.bf16 %v12266_v62  ;;  %v12267_v29 = vunpack.i.l.bf16 %v12266_v62 }
0x1da7   :  { %11006 = vmatprep.subr.bf16.mxu0 %v11005_v39  ;;  %11024 = vmatpush3.bf16.msra.mxu1 %v11023_v23 }
0x1da8   :  { %v5824_v47 = vsel %vm162_vm8, %v12268_v4, %v5817_v46  ;;  %v5823_v8 = vsel %vm162_vm8, %v5817_v46, %v12267_v29  ;;  %11008 = vmatpush1.bf16.msra.mxu0 %v11007_v15  ;;  %11025 = vmatprep.subr.bf16.mxu1 %v12837_v0  ;;  %v5822_v49 = vsel %vm162_vm8, %v12267_v29, %v12268_v4 }
0x1da9   :  { %v11009_v57 = vpack.c.bf16 %v12848_v19, %v5822_v49  ;;  %v11026_v34 = vpack.c.bf16 %v12848_v19, %v5824_v47  ;;  %v11011_v55 = vpack.c.bf16 %v12848_v19, %v5823_v8 }
0x1dab   :  { %11010 = vmatprep.subr.bf16.mxu0 %v11009_v57  ;;  %11027 = vmatpush3.bf16.msra.mxu1 %v11026_v34 }
0x1dac   :  { %11012 = vmatpush1.bf16.msra.mxu0 %v11011_v55  ;;  %11048 = vmatprep.subr.bf16.mxu1 %v12837_v0 }
0x1dae   :  { %10038 = vmatmul.mubr.msk.f32.vlgmr.msra.gmra.mrb[40].mxu1 %vm199_vm9, %v15335_v52 }
0x1daf   :  { %9181 = vmatmul.mubr.msk.f32.vlgmr.msra.gmra.mrb[40].mxu0 %vm199_vm9, %v15335_v52  ;;  %10060 = vmatprep.mubr.msk.f32.mxu1 %vm12845_vm0, %v12846_v6 }
0x1db0   :  { %6201 = vmatprep.mubr.f32.mxu0 %v12846_v6 }
0x1e81   :  { %v5995_v48 = vpop.f32.mrb[40].mxu1 }
0x1e82   :  { %v15347_v21 = vmul.f32 %v15344_v30, %v5995_v48  ;;  %v5924_v7 = vpop.f32.mrb[40].mxu0  ;;  %v10039_v38 = vpop.f32.mrb[41].mxu1 }
0x1e83   :  { %v15352_v54 = vmul.f32 %v15349_v3, %v5924_v7  ;;  %v5926_v27 = vpop.f32.mrb[41].mxu0 }
0x1e84   :  { %v6004_v1 = vmul.f32 0.0625, %v15347_v21  ;;  %v15358_v13 = vmul.f32 %v15355_v24, %v5926_v27 }
0x1e85   :  { %v6002_v50 = vmul.f32 0.0625, %v15352_v54 }
0x1e86   :  { %v15361_v20 = vadd.f32 %v6004_v1, %v15240_v37  ;;  %v6003_v61 = vmul.f32 0.0625, %v15358_v13 }
0x1e87   :  { %v15370_v25 = vadd.f32 %v6002_v50, %v15247_v10 }
0x1e88   :  { %6024 = vrot.lane.b32.xlu1 %v15361_v20, %s12839_s2  ;;  %6012 = vrot.lane.b32.xlu0 %v15361_v20, %s12838_s19  ;;  %v15373_v11 = vadd.f32 %v6003_v61, %v15250_v59 }
0x1e8a   :  { %v12274_v2 = vpack.i.bf16 %v15373_v11, %v15370_v25  ;;  %v12299_v58 = vpack.i.bf16 %v15361_v20, %v15373_v11 }
0x1e8c   :  { %6048 = vrot.lane.b32.xlu1 %v15361_v20, %s12840_s20  ;;  %6036 = vrot.lane.b32.xlu0 %v15361_v20, %s12841_s21 }
0x1e90   :  { %12275 = vrot.lane.b32.xlu1 %v12274_v2, %s12839_s2  ;;  %12270 = vrot.lane.b32.xlu0 %v12274_v2, %s12838_s19 }
0x1e94   :  { %12285 = vrot.lane.b32.xlu1 %v12274_v2, %s12840_s20  ;;  %12280 = vrot.lane.b32.xlu0 %v12274_v2, %s12841_s21 }
0x1e98   :  { %6059 = vrot.lane.b32.xlu1 %v15370_v25, %s12842_s22  ;;  %6071 = vrot.lane.b32.xlu0 %v15370_v25, %s12844_s24 }
0x1e9c   :  { %12300 = vrot.lane.b32.xlu1 %v12299_v58, %s12843_s23  ;;  %12290 = vrot.lane.b32.xlu0 %v12299_v58, %s12842_s22 }
0x1ea0   :  { %6083 = vrot.lane.b32.xlu1 %v15370_v25, %s12843_s23  ;;  %12295 = vrot.lane.b32.xlu0 %v12299_v58, %s12844_s24 }
0x1ea4   :  { %6095 = vrot.lane.b32.xlu1 %v15370_v25, %s12847_s25  ;;  %12305 = vrot.lane.b32.xlu0 %v12299_v58, %s12847_s25 }
0x1efa   :  { %v6025_v36 = vpop.permute.xlu1 %6024  ;;  %v6013_v51 = vpop.permute.xlu0 %6012 }
0x1efe   :  { %v6049_v26 = vpop.permute.xlu1 %6048  ;;  %v6037_v63 = vpop.permute.xlu0 %6036 }
0x1f02   :  { %v12276_v41 = vpop.permute.xlu1 %12275  ;;  %v12271_v17 = vpop.permute.xlu0 %12270 }
0x1f03   :  { %v12278_v14 = vunpack.i.h.bf16 %v12276_v41  ;;  %v12277_v16 = vunpack.i.l.bf16 %v12276_v41  ;;  %v12273_v42 = vunpack.i.h.bf16 %v12271_v17  ;;  %v12272_v53 = vunpack.i.l.bf16 %v12271_v17 }
0x1f05   :  { %v6026_v22 = vsel %vm81_vm2, %v12278_v14, %v6025_v36  ;;  %v6028_v31 = vsel %vm81_vm2, %v6025_v36, %v12277_v16  ;;  %v6014_v43 = vsel %vm68_vm1, %v12273_v42, %v6013_v51  ;;  %v6016_v60 = vsel %vm68_vm1, %v6013_v51, %v12272_v53 }
0x1f06   :  { %v12286_v32 = vpop.permute.xlu1 %12285  ;;  %v12281_v5 = vpop.permute.xlu0 %12280  ;;  %v6015_v44 = vsel %vm68_vm1, %v12272_v53, %v12273_v42  ;;  %v6027_v40 = vsel %vm81_vm2, %v12277_v16, %v12278_v14  ;;  %v11049_v18 = vpack.c.bf16 %v6026_v22, %v6014_v43  ;;  %v11030_v28 = vpack.c.bf16 %v6028_v31, %v6016_v60 }
0x1f07   :  { %v12288_v45 = vunpack.i.h.bf16 %v12286_v32  ;;  %v12287_v35 = vunpack.i.l.bf16 %v12286_v32  ;;  %v12283_v33 = vunpack.i.h.bf16 %v12281_v5  ;;  %v12282_v56 = vunpack.i.l.bf16 %v12281_v5 }
0x1f08   :  { %v11028_v12 = vpack.c.bf16 %v6027_v40, %v6015_v44  ;;  %11050 = vmatpush3.bf16.msra.mxu1 %v11049_v18 }
0x1f09   :  { %v6050_v62 = vsel %vm107_vm3, %v12288_v45, %v6049_v26  ;;  %v6052_v39 = vsel %vm107_vm3, %v6049_v26, %v12287_v35  ;;  %v6038_v23 = vsel %vm94_vm4, %v12283_v33, %v6037_v63  ;;  %v6040_v15 = vsel %vm94_vm4, %v6037_v63, %v12282_v56  ;;  %11051 = vmatprep.subr.bf16.mxu1 %v12837_v0 }
0x1f0a   :  { %11029 = vmatprep.subr.bf16.mxu0 %v11028_v12  ;;  %v6060_v4 = vpop.permute.xlu1 %6059  ;;  %v6072_v29 = vpop.permute.xlu0 %6071  ;;  %v6039_v46 = vsel %vm94_vm4, %v12282_v56, %v12283_v33  ;;  %v6051_v47 = vsel %vm107_vm3, %v12287_v35, %v12288_v45  ;;  %v11052_v8 = vpack.c.bf16 %v6050_v62, %v6038_v23  ;;  %v11034_v57 = vpack.c.bf16 %v6052_v39, %v6040_v15 }
0x1f0b   :  { %11031 = vmatpush1.bf16.msra.mxu0 %v11030_v28  ;;  %v11032_v49 = vpack.c.bf16 %v6051_v47, %v6039_v46 }
0x1f0c   :  { %11053 = vmatpush3.bf16.msra.mxu1 %v11052_v8 }
0x1f0d   :  { %11033 = vmatprep.subr.bf16.mxu0 %v11032_v49  ;;  %11054 = vmatprep.subr.bf16.mxu1 %v12837_v0 }
0x1f0e   :  { %v12301_v34 = vpop.permute.xlu1 %12300  ;;  %v12291_v55 = vpop.permute.xlu0 %12290 }
0x1f0f   :  { %11035 = vmatpush1.bf16.msra.mxu0 %v11034_v57  ;;  %v12293_v48 = vunpack.i.h.bf16 %v12291_v55  ;;  %v12292_v7 = vunpack.i.l.bf16 %v12291_v55  ;;  %v12303_v38 = vunpack.i.h.bf16 %v12301_v34  ;;  %v12302_v27 = vunpack.i.l.bf16 %v12301_v34 }
0x1f11   :  { %v6067_v1 = vsel %vm123_vm5, %v12293_v48, %v6060_v4  ;;  %v6066_v50 = vsel %vm123_vm5, %v6060_v4, %v12292_v7  ;;  %v6065_v61 = vsel %vm123_vm5, %v12292_v7, %v12293_v48  ;;  %v6089_v16 = vsel %vm149_vm6, %v12302_v27, %v12303_v38 }
0x1f12   :  { %v6084_v2 = vpop.permute.xlu1 %6083  ;;  %v12296_v58 = vpop.permute.xlu0 %12295  ;;  %v11036_v36 = vpack.c.bf16 %v6065_v61, %v15373_v11  ;;  %v11055_v51 = vpack.c.bf16 %v6067_v1, %v15361_v20  ;;  %v11038_v26 = vpack.c.bf16 %v6066_v50, %v15370_v25 }
0x1f13   :  { %v12298_v63 = vunpack.i.h.bf16 %v12296_v58  ;;  %v12297_v41 = vunpack.i.l.bf16 %v12296_v58  ;;  %v6090_v17 = vsel %vm149_vm6, %v6084_v2, %v12302_v27  ;;  %v6091_v14 = vsel %vm149_vm6, %v12303_v38, %v6084_v2 }
0x1f14   :  { %11037 = vmatprep.subr.bf16.mxu0 %v11036_v36  ;;  %11056 = vmatpush3.bf16.msra.mxu1 %v11055_v51 }
0x1f15   :  { %v6079_v11 = vsel %vm136_vm7, %v12298_v63, %v6072_v29  ;;  %v6078_v20 = vsel %vm136_vm7, %v6072_v29, %v12297_v41  ;;  %11039 = vmatpush1.bf16.msra.mxu0 %v11038_v26  ;;  %11057 = vmatprep.subr.bf16.mxu1 %v12837_v0  ;;  %v6077_v25 = vsel %vm136_vm7, %v12297_v41, %v12298_v63 }
0x1f16   :  { %v12306_v42 = vpop.permute.xlu0 %12305  ;;  %v11040_v53 = vpack.c.bf16 %v6089_v16, %v6077_v25  ;;  %v11058_v22 = vpack.c.bf16 %v6091_v14, %v6079_v11  ;;  %v11042_v31 = vpack.c.bf16 %v6090_v17, %v6078_v20  ;;  %v6096_v32 = vpop.permute.xlu1 %6095 }
0x1f17   :  { %v12308_v43 = vunpack.i.h.bf16 %v12306_v42  ;;  %v12307_v60 = vunpack.i.l.bf16 %v12306_v42 }
0x1f18   :  { %11041 = vmatprep.subr.bf16.mxu0 %v11040_v53  ;;  %11059 = vmatpush3.bf16.msra.mxu1 %v11058_v22 }
0x1f19   :  { %v6103_v5 = vsel %vm162_vm8, %v12308_v43, %v6096_v32  ;;  %v6102_v44 = vsel %vm162_vm8, %v6096_v32, %v12307_v60  ;;  %11043 = vmatpush1.bf16.msra.mxu0 %v11042_v31  ;;  %11060 = vmatprep.subr.bf16.mxu1 %v12837_v0  ;;  %v6101_v40 = vsel %vm162_vm8, %v12307_v60, %v12308_v43 }
0x1f1a   :  { %v11044_v18 = vpack.c.bf16 %v12848_v19, %v6101_v40  ;;  %v11061_v28 = vpack.c.bf16 %v12848_v19, %v6103_v5  ;;  %v11046_v45 = vpack.c.bf16 %v12848_v19, %v6102_v44 }
0x1f1c   :  { %11045 = vmatprep.subr.bf16.mxu0 %v11044_v18  ;;  %11062 = vmatpush3.bf16.msra.mxu1 %v11061_v28 }
0x1f1d   :  { %11047 = vmatpush1.bf16.msra.mxu0 %v11046_v45  ;;  %11083 = vmatprep.subr.bf16.mxu1 %v12837_v0 }
0x1f1f   :  { %10061 = vmatmul.mubr.msk.f32.vlgmr.msra.gmra.mrb[42].mxu1 %vm199_vm9, %v15335_v52 }
0x1f20   :  { %9183 = vmatmul.mubr.msk.f32.vlgmr.msra.gmra.mrb[42].mxu0 %vm199_vm9, %v15335_v52  ;;  %10083 = vmatprep.mubr.msk.f32.mxu1 %vm12845_vm0, %v12846_v6 }
0x1f21   :  { %6480 = vmatprep.mubr.f32.mxu0 %v12846_v6 }
0x1ff2   :  { %v6274_v35 = vpop.f32.mrb[42].mxu1 }
0x1ff3   :  { %v15466_v33 = vmul.f32 %v15344_v30, %v6274_v35  ;;  %v6203_v56 = vpop.f32.mrb[42].mxu0  ;;  %v10062_v12 = vpop.f32.mrb[43].mxu1 }
0x1ff4   :  { %v15469_v62 = vmul.f32 %v15349_v3, %v6203_v56  ;;  %v6205_v39 = vpop.f32.mrb[43].mxu0 }
0x1ff5   :  { %v6283_v23 = vmul.f32 0.0625, %v15466_v33  ;;  %v15473_v15 = vmul.f32 %v15355_v24, %v6205_v39 }
0x1ff6   :  { %v6281_v29 = vmul.f32 0.0625, %v15469_v62 }
0x1ff7   :  { %v15476_v4 = vadd.f32 %v6283_v23, %v15240_v37  ;;  %v6282_v46 = vmul.f32 0.0625, %v15473_v15 }
0x1ff8   :  { %v15485_v47 = vadd.f32 %v6281_v29, %v15247_v10 }
0x1ff9   :  { %6303 = vrot.lane.b32.xlu1 %v15476_v4, %s12839_s2  ;;  %6291 = vrot.lane.b32.xlu0 %v15476_v4, %s12838_s19  ;;  %v15488_v8 = vadd.f32 %v6282_v46, %v15250_v59 }
0x1ffb   :  { %v12314_v49 = vpack.i.bf16 %v15488_v8, %v15485_v47  ;;  %v12339_v57 = vpack.i.bf16 %v15476_v4, %v15488_v8 }
0x1ffd   :  { %6327 = vrot.lane.b32.xlu1 %v15476_v4, %s12840_s20  ;;  %6315 = vrot.lane.b32.xlu0 %v15476_v4, %s12841_s21 }
0x2001   :  { %12315 = vrot.lane.b32.xlu1 %v12314_v49, %s12839_s2  ;;  %12310 = vrot.lane.b32.xlu0 %v12314_v49, %s12838_s19 }
0x2005   :  { %12325 = vrot.lane.b32.xlu1 %v12314_v49, %s12840_s20  ;;  %12320 = vrot.lane.b32.xlu0 %v12314_v49, %s12841_s21 }
0x2009   :  { %6338 = vrot.lane.b32.xlu1 %v15485_v47, %s12842_s22  ;;  %6350 = vrot.lane.b32.xlu0 %v15485_v47, %s12844_s24 }
0x200d   :  { %12340 = vrot.lane.b32.xlu1 %v12339_v57, %s12843_s23  ;;  %12330 = vrot.lane.b32.xlu0 %v12339_v57, %s12842_s22 }
0x2011   :  { %6362 = vrot.lane.b32.xlu1 %v15485_v47, %s12843_s23  ;;  %12335 = vrot.lane.b32.xlu0 %v12339_v57, %s12844_s24 }
0x2015   :  { %6374 = vrot.lane.b32.xlu1 %v15485_v47, %s12847_s25  ;;  %12345 = vrot.lane.b32.xlu0 %v12339_v57, %s12847_s25 }
0x206b   :  { %v6304_v34 = vpop.permute.xlu1 %6303  ;;  %v6292_v55 = vpop.permute.xlu0 %6291 }
0x206f   :  { %v6328_v48 = vpop.permute.xlu1 %6327  ;;  %v6316_v7 = vpop.permute.xlu0 %6315 }
0x2073   :  { %v12316_v38 = vpop.permute.xlu1 %12315  ;;  %v12311_v27 = vpop.permute.xlu0 %12310 }
0x2074   :  { %v12318_v1 = vunpack.i.h.bf16 %v12316_v38  ;;  %v12317_v50 = vunpack.i.l.bf16 %v12316_v38  ;;  %v12313_v61 = vunpack.i.h.bf16 %v12311_v27  ;;  %v12312_v2 = vunpack.i.l.bf16 %v12311_v27 }
0x2076   :  { %v6305_v58 = vsel %vm81_vm2, %v12318_v1, %v6304_v34  ;;  %v6307_v36 = vsel %vm81_vm2, %v6304_v34, %v12317_v50  ;;  %v6293_v51 = vsel %vm68_vm1, %v12313_v61, %v6292_v55  ;;  %v6295_v26 = vsel %vm68_vm1, %v6292_v55, %v12312_v2 }
0x2077   :  { %v12326_v63 = vpop.permute.xlu1 %12325  ;;  %v12321_v41 = vpop.permute.xlu0 %12320  ;;  %v6294_v17 = vsel %vm68_vm1, %v12312_v2, %v12313_v61  ;;  %v6306_v14 = vsel %vm81_vm2, %v12317_v50, %v12318_v1  ;;  %v11084_v16 = vpack.c.bf16 %v6305_v58, %v6293_v51  ;;  %v11065_v11 = vpack.c.bf16 %v6307_v36, %v6295_v26 }
0x2078   :  { %v12328_v20 = vunpack.i.h.bf16 %v12326_v63  ;;  %v12327_v25 = vunpack.i.l.bf16 %v12326_v63  ;;  %v12323_v42 = vunpack.i.h.bf16 %v12321_v41  ;;  %v12322_v53 = vunpack.i.l.bf16 %v12321_v41 }
0x2079   :  { %v11063_v22 = vpack.c.bf16 %v6306_v14, %v6294_v17  ;;  %11085 = vmatpush3.bf16.msra.mxu1 %v11084_v16 }
0x207a   :  { %v6329_v31 = vsel %vm107_vm3, %v12328_v20, %v6328_v48  ;;  %v6331_v43 = vsel %vm107_vm3, %v6328_v48, %v12327_v25  ;;  %v6317_v60 = vsel %vm94_vm4, %v12323_v42, %v6316_v7  ;;  %v6319_v32 = vsel %vm94_vm4, %v6316_v7, %v12322_v53  ;;  %11086 = vmatprep.subr.bf16.mxu1 %v12837_v0 }
0x207b   :  { %11064 = vmatprep.subr.bf16.mxu0 %v11063_v22  ;;  %v6339_v5 = vpop.permute.xlu1 %6338  ;;  %v6351_v44 = vpop.permute.xlu0 %6350  ;;  %v6318_v40 = vsel %vm94_vm4, %v12322_v53, %v12323_v42  ;;  %v6330_v18 = vsel %vm107_vm3, %v12327_v25, %v12328_v20  ;;  %v11087_v28 = vpack.c.bf16 %v6329_v31, %v6317_v60  ;;  %v11069_v35 = vpack.c.bf16 %v6331_v43, %v6319_v32 }
0x207c   :  { %11066 = vmatpush1.bf16.msra.mxu0 %v11065_v11  ;;  %v11067_v45 = vpack.c.bf16 %v6330_v18, %v6318_v40  ;;  %v6841_v22 = vmul.f32 2.0, %v15466_v33  ;;  %v6839_v31 = vmul.f32 2.0, %v15469_v62  ;;  %v6840_v43 = vmul.f32 2.0, %v15473_v15 }
0x207d   :  { %11088 = vmatpush3.bf16.msra.mxu1 %v11087_v28 }
0x207e   :  { %11068 = vmatprep.subr.bf16.mxu0 %v11067_v45  ;;  %11089 = vmatprep.subr.bf16.mxu1 %v12837_v0  ;;  %v6844_v28 = vadd.f32 %v6841_v22, %v15347_v21  ;;  %v6842_v33 = vadd.f32 %v6839_v31, %v15352_v54  ;;  %v6843_v62 = vadd.f32 %v6840_v43, %v15358_v13 }
0x207f   :  { %v12341_v56 = vpop.permute.xlu1 %12340  ;;  %v12331_v12 = vpop.permute.xlu0 %12330 }
0x2080   :  { %11070 = vmatpush1.bf16.msra.mxu0 %v11069_v35  ;;  %v12333_v39 = vunpack.i.h.bf16 %v12331_v12  ;;  %v12332_v23 = vunpack.i.l.bf16 %v12331_v12  ;;  %v12343_v29 = vunpack.i.h.bf16 %v12341_v56  ;;  %v12342_v46 = vunpack.i.l.bf16 %v12341_v56 }
0x2082   :  { %v6346_v49 = vsel %vm123_vm5, %v12333_v39, %v6339_v5  ;;  %v6345_v57 = vsel %vm123_vm5, %v6339_v5, %v12332_v23  ;;  %v6344_v34 = vsel %vm123_vm5, %v12332_v23, %v12333_v39  ;;  %v6368_v58 = vsel %vm149_vm6, %v12342_v46, %v12343_v29 }
0x2083   :  { %v6363_v55 = vpop.permute.xlu1 %6362  ;;  %v12336_v48 = vpop.permute.xlu0 %12335  ;;  %v11071_v7 = vpack.c.bf16 %v6344_v34, %v15488_v8  ;;  %v11090_v38 = vpack.c.bf16 %v6346_v49, %v15476_v4  ;;  %v11073_v27 = vpack.c.bf16 %v6345_v57, %v15485_v47 }
0x2084   :  { %v12338_v1 = vunpack.i.h.bf16 %v12336_v48  ;;  %v12337_v50 = vunpack.i.l.bf16 %v12336_v48  ;;  %v6369_v61 = vsel %vm149_vm6, %v6363_v55, %v12342_v46  ;;  %v6370_v2 = vsel %vm149_vm6, %v12343_v29, %v6363_v55 }
0x2085   :  { %11072 = vmatprep.subr.bf16.mxu0 %v11071_v7  ;;  %11091 = vmatpush3.bf16.msra.mxu1 %v11090_v38 }
0x2086   :  { %v6358_v8 = vsel %vm136_vm7, %v12338_v1, %v6351_v44  ;;  %v6357_v4 = vsel %vm136_vm7, %v6351_v44, %v12337_v50  ;;  %11074 = vmatpush1.bf16.msra.mxu0 %v11073_v27  ;;  %11092 = vmatprep.subr.bf16.mxu1 %v12837_v0  ;;  %v6356_v47 = vsel %vm136_vm7, %v12337_v50, %v12338_v1 }
0x2087   :  { %v12346_v36 = vpop.permute.xlu0 %12345  ;;  %v11075_v51 = vpack.c.bf16 %v6368_v58, %v6356_v47  ;;  %v11093_v26 = vpack.c.bf16 %v6370_v2, %v6358_v8  ;;  %v11077_v63 = vpack.c.bf16 %v6369_v61, %v6357_v4  ;;  %v6375_v14 = vpop.permute.xlu1 %6374 }
0x2088   :  { %v12348_v41 = vunpack.i.h.bf16 %v12346_v36  ;;  %v12347_v17 = vunpack.i.l.bf16 %v12346_v36 }
0x2089   :  { %11076 = vmatprep.subr.bf16.mxu0 %v11075_v51  ;;  %11094 = vmatpush3.bf16.msra.mxu1 %v11093_v26 }
0x208a   :  { %v6382_v16 = vsel %vm162_vm8, %v12348_v41, %v6375_v14  ;;  %v6381_v11 = vsel %vm162_vm8, %v6375_v14, %v12347_v17  ;;  %11078 = vmatpush1.bf16.msra.mxu0 %v11077_v63  ;;  %11095 = vmatprep.subr.bf16.mxu1 %v12837_v0  ;;  %v6380_v20 = vsel %vm162_vm8, %v12347_v17, %v12348_v41 }
0x208b   :  { %v11079_v25 = vpack.c.bf16 %v12848_v19, %v6380_v20  ;;  %v11096_v42 = vpack.c.bf16 %v12848_v19, %v6382_v16  ;;  %v11081_v53 = vpack.c.bf16 %v12848_v19, %v6381_v11 }
0x208d   :  { %11080 = vmatprep.subr.bf16.mxu0 %v11079_v25  ;;  %11097 = vmatpush3.bf16.msra.mxu1 %v11096_v42 }
0x208e   :  { %11082 = vmatpush1.bf16.msra.mxu0 %v11081_v53  ;;  %11118 = vmatprep.subr.bf16.mxu1 %v12837_v0 }
0x2090   :  { %10084 = vmatmul.mubr.msk.f32.vlgmr.msra.gmra.mrb[44].mxu1 %vm199_vm9, %v15335_v52 }
0x2091   :  { %9185 = vmatmul.mubr.msk.f32.vlgmr.msra.gmra.mrb[44].mxu0 %vm199_vm9, %v15335_v52  ;;  %10106 = vmatprep.mubr.msk.f32.mxu1 %vm12845_vm0, %v12846_v6 }
0x2092   :  { %6759 = vmatprep.mubr.f32.mxu0 %v12846_v6 }
0x2163   :  { %v6553_v60 = vpop.f32.mrb[44].mxu1 }
0x2164   :  { %v6559_v32 = vmul.f32 %v15344_v30, %v6553_v60  ;;  %v6482_v5 = vpop.f32.mrb[44].mxu0  ;;  %v10085_v44 = vpop.f32.mrb[45].mxu1 }
0x2165   :  { %v6557_v40 = vmul.f32 %v15349_v3, %v6482_v5  ;;  %v6484_v18 = vpop.f32.mrb[45].mxu0 }
0x2166   :  { %v6562_v45 = vmul.f32 0.125, %v6559_v32  ;;  %v6847_v35 = vmul.f32 2.0, %v6559_v32  ;;  %v6558_v56 = vmul.f32 %v15355_v24, %v6484_v18 }
0x2167   :  { %v6560_v12 = vmul.f32 0.125, %v6557_v40  ;;  %v6845_v15 = vmul.f32 2.0, %v6557_v40 }
0x2168   :  { %v15590_v39 = vadd.f32 %v6562_v45, %v15240_v37  ;;  %v6561_v23 = vmul.f32 0.125, %v6558_v56  ;;  %v6846_v29 = vmul.f32 2.0, %v6558_v56  ;;  %v15592_v46 = vadd.f32 %v6847_v35, %v6844_v28 }
0x2169   :  { %v15594_v49 = vadd.f32 %v6845_v15, %v6842_v33  ;;  %v15603_v54 = vadd.f32 %v6560_v12, %v15247_v10 }
0x216a   :  { %6582 = vrot.lane.b32.xlu1 %v15590_v39, %s12839_s2  ;;  %6570 = vrot.lane.b32.xlu0 %v15590_v39, %s12838_s19  ;;  %v15600_v21 = vadd.f32 %v6846_v29, %v6843_v62  ;;  %v15606_v13 = vadd.f32 %v6561_v23, %v15250_v59 }
0x216c   :  { %v12354_v57 = vpack.i.bf16 %v15606_v13, %v15603_v54  ;;  %v12379_v34 = vpack.i.bf16 %v15590_v39, %v15606_v13 }
0x216e   :  { %6606 = vrot.lane.b32.xlu1 %v15590_v39, %s12840_s20  ;;  %6594 = vrot.lane.b32.xlu0 %v15590_v39, %s12841_s21 }
0x2172   :  { %12355 = vrot.lane.b32.xlu1 %v12354_v57, %s12839_s2  ;;  %12350 = vrot.lane.b32.xlu0 %v12354_v57, %s12838_s19 }
0x2176   :  { %12365 = vrot.lane.b32.xlu1 %v12354_v57, %s12840_s20  ;;  %12360 = vrot.lane.b32.xlu0 %v12354_v57, %s12841_s21 }
0x217a   :  { %6617 = vrot.lane.b32.xlu1 %v15603_v54, %s12842_s22  ;;  %6629 = vrot.lane.b32.xlu0 %v15603_v54, %s12844_s24 }
0x217e   :  { %12380 = vrot.lane.b32.xlu1 %v12379_v34, %s12843_s23  ;;  %12370 = vrot.lane.b32.xlu0 %v12379_v34, %s12842_s22 }
0x2182   :  { %6641 = vrot.lane.b32.xlu1 %v15603_v54, %s12843_s23  ;;  %12375 = vrot.lane.b32.xlu0 %v12379_v34, %s12844_s24 }
0x2186   :  { %6653 = vrot.lane.b32.xlu1 %v15603_v54, %s12847_s25  ;;  %12385 = vrot.lane.b32.xlu0 %v12379_v34, %s12847_s25 }
0x21dc   :  { %v6583_v55 = vpop.permute.xlu1 %6582  ;;  %v6571_v48 = vpop.permute.xlu0 %6570 }
0x21e0   :  { %v6607_v7 = vpop.permute.xlu1 %6606  ;;  %v6595_v38 = vpop.permute.xlu0 %6594 }
0x21e4   :  { %v12356_v27 = vpop.permute.xlu1 %12355  ;;  %v12351_v1 = vpop.permute.xlu0 %12350 }
0x21e5   :  { %v12358_v50 = vunpack.i.h.bf16 %v12356_v27  ;;  %v12357_v61 = vunpack.i.l.bf16 %v12356_v27  ;;  %v12353_v2 = vunpack.i.h.bf16 %v12351_v1  ;;  %v12352_v58 = vunpack.i.l.bf16 %v12351_v1 }
0x21e7   :  { %v6584_v8 = vsel %vm81_vm2, %v12358_v50, %v6583_v55  ;;  %v6586_v4 = vsel %vm81_vm2, %v6583_v55, %v12357_v61  ;;  %v6572_v47 = vsel %vm68_vm1, %v12353_v2, %v6571_v48  ;;  %v6574_v36 = vsel %vm68_vm1, %v6571_v48, %v12352_v58 }
0x21e8   :  { %v12366_v51 = vpop.permute.xlu1 %12365  ;;  %v12361_v26 = vpop.permute.xlu0 %12360  ;;  %v6573_v63 = vsel %vm68_vm1, %v12352_v58, %v12353_v2  ;;  %v6585_v41 = vsel %vm81_vm2, %v12357_v61, %v12358_v50  ;;  %v11119_v17 = vpack.c.bf16 %v6584_v8, %v6572_v47  ;;  %v11100_v14 = vpack.c.bf16 %v6586_v4, %v6574_v36 }
0x21e9   :  { %v12368_v16 = vunpack.i.h.bf16 %v12366_v51  ;;  %v12367_v11 = vunpack.i.l.bf16 %v12366_v51  ;;  %v12363_v20 = vunpack.i.h.bf16 %v12361_v26  ;;  %v12362_v25 = vunpack.i.l.bf16 %v12361_v26 }
0x21ea   :  { %v11098_v42 = vpack.c.bf16 %v6585_v41, %v6573_v63  ;;  %11120 = vmatpush3.bf16.msra.mxu1 %v11119_v17 }
0x21eb   :  { %v6608_v53 = vsel %vm107_vm3, %v12368_v16, %v6607_v7  ;;  %v6610_v22 = vsel %vm107_vm3, %v6607_v7, %v12367_v11  ;;  %v6596_v31 = vsel %vm94_vm4, %v12363_v20, %v6595_v38  ;;  %v6598_v43 = vsel %vm94_vm4, %v6595_v38, %v12362_v25  ;;  %11121 = vmatprep.subr.bf16.mxu1 %v12837_v0 }
0x21ec   :  { %11099 = vmatprep.subr.bf16.mxu0 %v11098_v42  ;;  %v6618_v60 = vpop.permute.xlu1 %6617  ;;  %v6630_v32 = vpop.permute.xlu0 %6629  ;;  %v6597_v5 = vsel %vm94_vm4, %v12362_v25, %v12363_v20  ;;  %v6609_v44 = vsel %vm107_vm3, %v12367_v11, %v12368_v16  ;;  %v11122_v40 = vpack.c.bf16 %v6608_v53, %v6596_v31  ;;  %v11104_v28 = vpack.c.bf16 %v6610_v22, %v6598_v43 }
0x21ed   :  { %11101 = vmatpush1.bf16.msra.mxu0 %v11100_v14  ;;  %v11102_v18 = vpack.c.bf16 %v6609_v44, %v6597_v5 }
0x21ee   :  { %11123 = vmatpush3.bf16.msra.mxu1 %v11122_v40 }
0x21ef   :  { %11103 = vmatprep.subr.bf16.mxu0 %v11102_v18  ;;  %11124 = vmatprep.subr.bf16.mxu1 %v12837_v0 }
0x21f0   :  { %v12381_v45 = vpop.permute.xlu1 %12380  ;;  %v12371_v35 = vpop.permute.xlu0 %12370 }
0x21f1   :  { %11105 = vmatpush1.bf16.msra.mxu0 %v11104_v28  ;;  %v12373_v56 = vunpack.i.h.bf16 %v12371_v35  ;;  %v12372_v33 = vunpack.i.l.bf16 %v12371_v35  ;;  %v12383_v62 = vunpack.i.h.bf16 %v12381_v45  ;;  %v12382_v12 = vunpack.i.l.bf16 %v12381_v45 }
0x21f3   :  { %v6625_v15 = vsel %vm123_vm5, %v12373_v56, %v6618_v60  ;;  %v6624_v23 = vsel %vm123_vm5, %v6618_v60, %v12372_v33  ;;  %v6623_v29 = vsel %vm123_vm5, %v12372_v33, %v12373_v56  ;;  %v6647_v61 = vsel %vm149_vm6, %v12382_v12, %v12383_v62 }
0x21f4   :  { %v6642_v57 = vpop.permute.xlu1 %6641  ;;  %v12376_v34 = vpop.permute.xlu0 %12375  ;;  %v11106_v55 = vpack.c.bf16 %v6623_v29, %v15606_v13  ;;  %v11125_v48 = vpack.c.bf16 %v6625_v15, %v15590_v39  ;;  %v11108_v7 = vpack.c.bf16 %v6624_v23, %v15603_v54 }
0x21f5   :  { %v12378_v38 = vunpack.i.h.bf16 %v12376_v34  ;;  %v12377_v27 = vunpack.i.l.bf16 %v12376_v34  ;;  %v6648_v1 = vsel %vm149_vm6, %v6642_v57, %v12382_v12  ;;  %v6649_v50 = vsel %vm149_vm6, %v12383_v62, %v6642_v57 }
0x21f6   :  { %11107 = vmatprep.subr.bf16.mxu0 %v11106_v55  ;;  %11126 = vmatpush3.bf16.msra.mxu1 %v11125_v48 }
0x21f7   :  { %v6637_v13 = vsel %vm136_vm7, %v12378_v38, %v6630_v32  ;;  %v6636_v39 = vsel %vm136_vm7, %v6630_v32, %v12377_v27  ;;  %11109 = vmatpush1.bf16.msra.mxu0 %v11108_v7  ;;  %11127 = vmatprep.subr.bf16.mxu1 %v12837_v0  ;;  %v6635_v54 = vsel %vm136_vm7, %v12377_v27, %v12378_v38 }
0x21f8   :  { %v12386_v2 = vpop.permute.xlu0 %12385  ;;  %v11110_v58 = vpack.c.bf16 %v6647_v61, %v6635_v54  ;;  %v11128_v8 = vpack.c.bf16 %v6649_v50, %v6637_v13  ;;  %v11112_v4 = vpack.c.bf16 %v6648_v1, %v6636_v39  ;;  %v6654_v51 = vpop.permute.xlu1 %6653 }
0x21f9   :  { %v12388_v47 = vunpack.i.h.bf16 %v12386_v2  ;;  %v12387_v36 = vunpack.i.l.bf16 %v12386_v2 }
0x21fa   :  { %11111 = vmatprep.subr.bf16.mxu0 %v11110_v58  ;;  %11129 = vmatpush3.bf16.msra.mxu1 %v11128_v8 }
0x21fb   :  { %v6661_v26 = vsel %vm162_vm8, %v12388_v47, %v6654_v51  ;;  %v6660_v63 = vsel %vm162_vm8, %v6654_v51, %v12387_v36  ;;  %11113 = vmatpush1.bf16.msra.mxu0 %v11112_v4  ;;  %11130 = vmatprep.subr.bf16.mxu1 %v12837_v0  ;;  %v6659_v41 = vsel %vm162_vm8, %v12387_v36, %v12388_v47 }
0x21fc   :  { %v11114_v17 = vpack.c.bf16 %v12848_v19, %v6659_v41  ;;  %v11131_v14 = vpack.c.bf16 %v12848_v19, %v6661_v26  ;;  %v11116_v16 = vpack.c.bf16 %v12848_v19, %v6660_v63 }
0x21fe   :  { %11115 = vmatprep.subr.bf16.mxu0 %v11114_v17  ;;  %11132 = vmatpush3.bf16.msra.mxu1 %v11131_v14 }
0x21ff   :  { %11117 = vmatpush1.bf16.msra.mxu0 %v11116_v16  ;;  %11153 = vmatprep.subr.bf16.mxu1 %v12837_v0 }
0x2201   :  { %10107 = vmatmul.mubr.msk.f32.vlgmr.msra.gmra.mrb[46].mxu1 %vm199_vm9, %v15335_v52 }
0x2202   :  { %9187 = vmatmul.mubr.msk.f32.vlgmr.msra.gmra.mrb[46].mxu0 %vm199_vm9, %v15335_v52  ;;  %10129 = vmatprep.mubr.msk.f32.mxu1 %vm12845_vm0, %v12846_v6 }
0x2203   :  { %7053 = vmatprep.mubr.f32.mxu0 %v12846_v6 }
0x22d4   :  { %v6832_v11 = vpop.f32.mrb[46].mxu1 }
0x22d5   :  { %v6838_v20 = vmul.f32 %v15344_v30, %v6832_v11  ;;  %v6761_v25 = vpop.f32.mrb[46].mxu0  ;;  %v10108_v42 = vpop.f32.mrb[47].mxu1 }
0x22d6   :  { %v6836_v53 = vmul.f32 %v15349_v3, %v6761_v25  ;;  %v6763_v22 = vpop.f32.mrb[47].mxu0 }
0x22d7   :  { %v6853_v31 = vadd.f32 %v15592_v46, %v6838_v20  ;;  %v6837_v43 = vmul.f32 %v15355_v24, %v6763_v22 }
0x22d8   :  { %v6851_v60 = vadd.f32 %v15594_v49, %v6836_v53 }
0x22d9   :  { %v6856_v52 = vmul.f32 0.020833334, %v6853_v31  ;;  %v6852_v32 = vadd.f32 %v15600_v21, %v6837_v43 }
0x22da   :  { %v6854_v44 = vmul.f32 0.020833334, %v6851_v60 }
0x22db   :  { %v15705_v5 = vadd.f32 %v6856_v52, %v15240_v37  ;;  %v6855_v40 = vmul.f32 0.020833334, %v6852_v32 }
0x22dc   :  { %v15712_v30 = vadd.f32 %v6854_v44, %v15247_v10 }
0x22dd   :  { %6876 = vrot.lane.b32.xlu1 %v15705_v5, %s12839_s2  ;;  %6864 = vrot.lane.b32.xlu0 %v15705_v5, %s12838_s19  ;;  %v15715_v3 = vadd.f32 %v6855_v40, %v15250_v59 }
0x22df   :  { %v12394_v37 = vpack.i.bf16 %v15715_v3, %v15712_v30  ;;  %v12419_v10 = vpack.i.bf16 %v15705_v5, %v15715_v3 }
0x22e1   :  { %6900 = vrot.lane.b32.xlu1 %v15705_v5, %s12840_s20  ;;  %6888 = vrot.lane.b32.xlu0 %v15705_v5, %s12841_s21 }
0x22e5   :  { %12395 = vrot.lane.b32.xlu1 %v12394_v37, %s12839_s2  ;;  %12390 = vrot.lane.b32.xlu0 %v12394_v37, %s12838_s19 }
0x22e9   :  { %12405 = vrot.lane.b32.xlu1 %v12394_v37, %s12840_s20  ;;  %12400 = vrot.lane.b32.xlu0 %v12394_v37, %s12841_s21 }
0x22ed   :  { %6911 = vrot.lane.b32.xlu1 %v15712_v30, %s12842_s22  ;;  %6923 = vrot.lane.b32.xlu0 %v15712_v30, %s12844_s24 }
0x22f1   :  { %12420 = vrot.lane.b32.xlu1 %v12419_v10, %s12843_s23  ;;  %12410 = vrot.lane.b32.xlu0 %v12419_v10, %s12842_s22 }
0x22f5   :  { %6935 = vrot.lane.b32.xlu1 %v15712_v30, %s12843_s23  ;;  %12415 = vrot.lane.b32.xlu0 %v12419_v10, %s12844_s24 }
0x22f9   :  { %6947 = vrot.lane.b32.xlu1 %v15712_v30, %s12847_s25  ;;  %12425 = vrot.lane.b32.xlu0 %v12419_v10, %s12847_s25 }
0x234f   :  { %v6877_v59 = vpop.permute.xlu1 %6876  ;;  %v6865_v24 = vpop.permute.xlu0 %6864 }
0x2353   :  { %v6901_v46 = vpop.permute.xlu1 %6900  ;;  %v6889_v49 = vpop.permute.xlu0 %6888 }
0x2357   :  { %v12396_v21 = vpop.permute.xlu1 %12395  ;;  %v12391_v18 = vpop.permute.xlu0 %12390 }
0x2358   :  { %v12398_v28 = vunpack.i.h.bf16 %v12396_v21  ;;  %v12397_v45 = vunpack.i.l.bf16 %v12396_v21  ;;  %v12393_v35 = vunpack.i.h.bf16 %v12391_v18  ;;  %v12392_v56 = vunpack.i.l.bf16 %v12391_v18 }
0x235a   :  { %v6878_v33 = vsel %vm81_vm2, %v12398_v28, %v6877_v59  ;;  %v6880_v62 = vsel %vm81_vm2, %v6877_v59, %v12397_v45  ;;  %v6866_v12 = vsel %vm68_vm1, %v12393_v35, %v6865_v24  ;;  %v6868_v15 = vsel %vm68_vm1, %v6865_v24, %v12392_v56 }
0x235b   :  { %v12406_v23 = vpop.permute.xlu1 %12405  ;;  %v12401_v29 = vpop.permute.xlu0 %12400  ;;  %v6867_v57 = vsel %vm68_vm1, %v12392_v56, %v12393_v35  ;;  %v6879_v34 = vsel %vm81_vm2, %v12397_v45, %v12398_v28  ;;  %v11154_v55 = vpack.c.bf16 %v6878_v33, %v6866_v12  ;;  %v11135_v48 = vpack.c.bf16 %v6880_v62, %v6868_v15 }
0x235c   :  { %v12408_v7 = vunpack.i.h.bf16 %v12406_v23  ;;  %v12407_v38 = vunpack.i.l.bf16 %v12406_v23  ;;  %v12403_v27 = vunpack.i.h.bf16 %v12401_v29  ;;  %v12402_v1 = vunpack.i.l.bf16 %v12401_v29  ;;  %v15800_v23 = vld [vmem:[#allocation6] sm:$0xff] }
0x235d   :  { %v11133_v50 = vpack.c.bf16 %v6879_v34, %v6867_v57  ;;  %11155 = vmatpush3.bf16.msra.mxu1 %v11154_v55  ;;  %v15809_v57 = vld [vmem:[#allocation8 + $0x10] sm:$0xff] }
0x235e   :  { %v6902_v61 = vsel %vm107_vm3, %v12408_v7, %v6901_v46  ;;  %v6904_v13 = vsel %vm107_vm3, %v6901_v46, %v12407_v38  ;;  %v6890_v39 = vsel %vm94_vm4, %v12403_v27, %v6889_v49  ;;  %v6892_v54 = vsel %vm94_vm4, %v6889_v49, %v12402_v1  ;;  %11156 = vmatprep.subr.bf16.mxu1 %v12837_v0 }
0x235f   :  { %11134 = vmatprep.subr.bf16.mxu0 %v11133_v50  ;;  %v6912_v2 = vpop.permute.xlu1 %6911  ;;  %v6924_v58 = vpop.permute.xlu0 %6923  ;;  %v6891_v8 = vsel %vm94_vm4, %v12402_v1, %v12403_v27  ;;  %v6903_v4 = vsel %vm107_vm3, %v12407_v38, %v12408_v7  ;;  %v11157_v47 = vpack.c.bf16 %v6902_v61, %v6890_v39  ;;  %v11139_v51 = vpack.c.bf16 %v6904_v13, %v6892_v54  ;;  %v15814_v7 = vld [vmem:[#allocation8] sm:$0xff]  ;;  %v15820_v50 = vld [vmem:[#allocation8 + $0x8] sm:$0xff] }
0x2360   :  { %11136 = vmatpush1.bf16.msra.mxu0 %v11135_v48  ;;  %v11137_v36 = vpack.c.bf16 %v6903_v4, %v6891_v8 }
0x2361   :  { %11158 = vmatpush3.bf16.msra.mxu1 %v11157_v47 }
0x2362   :  { %11138 = vmatprep.subr.bf16.mxu0 %v11137_v36  ;;  %11159 = vmatprep.subr.bf16.mxu1 %v12837_v0 }
0x2363   :  { %v12421_v26 = vpop.permute.xlu1 %12420  ;;  %v12411_v63 = vpop.permute.xlu0 %12410 }
0x2364   :  { %11140 = vmatpush1.bf16.msra.mxu0 %v11139_v51  ;;  %v12413_v41 = vunpack.i.h.bf16 %v12411_v63  ;;  %v12412_v17 = vunpack.i.l.bf16 %v12411_v63  ;;  %v12423_v14 = vunpack.i.h.bf16 %v12421_v26  ;;  %v12422_v16 = vunpack.i.l.bf16 %v12421_v26 }
0x2366   :  { %v6919_v11 = vsel %vm123_vm5, %v12413_v41, %v6912_v2  ;;  %v6918_v20 = vsel %vm123_vm5, %v6912_v2, %v12412_v17  ;;  %v6917_v25 = vsel %vm123_vm5, %v12412_v17, %v12413_v41  ;;  %v6941_v40 = vsel %vm149_vm6, %v12422_v16, %v12423_v14 }
0x2367   :  { %v6936_v42 = vpop.permute.xlu1 %6935  ;;  %v12416_v53 = vpop.permute.xlu0 %12415  ;;  %v11141_v22 = vpack.c.bf16 %v6917_v25, %v15715_v3  ;;  %v11160_v31 = vpack.c.bf16 %v6919_v11, %v15705_v5  ;;  %v11143_v43 = vpack.c.bf16 %v6918_v20, %v15712_v30 }
0x2368   :  { %v12418_v60 = vunpack.i.h.bf16 %v12416_v53  ;;  %v12417_v52 = vunpack.i.l.bf16 %v12416_v53  ;;  %v6942_v32 = vsel %vm149_vm6, %v6936_v42, %v12422_v16  ;;  %v6943_v44 = vsel %vm149_vm6, %v12423_v14, %v6936_v42 }
0x2369   :  { %11142 = vmatprep.subr.bf16.mxu0 %v11141_v22  ;;  %11161 = vmatpush3.bf16.msra.mxu1 %v11160_v31 }
0x236a   :  { %v6931_v37 = vsel %vm136_vm7, %v12418_v60, %v6924_v58  ;;  %v6930_v10 = vsel %vm136_vm7, %v6924_v58, %v12417_v52  ;;  %11144 = vmatpush1.bf16.msra.mxu0 %v11143_v43  ;;  %11162 = vmatprep.subr.bf16.mxu1 %v12837_v0  ;;  %v6929_v59 = vsel %vm136_vm7, %v12417_v52, %v12418_v60 }
0x236b   :  { %v12426_v24 = vpop.permute.xlu0 %12425  ;;  %v11145_v46 = vpack.c.bf16 %v6941_v40, %v6929_v59  ;;  %v11163_v49 = vpack.c.bf16 %v6943_v44, %v6931_v37  ;;  %v11147_v21 = vpack.c.bf16 %v6942_v32, %v6930_v10  ;;  %v6948_v45 = vpop.permute.xlu1 %6947 }
0x236c   :  { %v12428_v18 = vunpack.i.h.bf16 %v12426_v24  ;;  %v12427_v28 = vunpack.i.l.bf16 %v12426_v24 }
0x236d   :  { %11146 = vmatprep.subr.bf16.mxu0 %v11145_v46  ;;  %11164 = vmatpush3.bf16.msra.mxu1 %v11163_v49 }
0x236e   :  { %v6955_v35 = vsel %vm162_vm8, %v12428_v18, %v6948_v45  ;;  %v6954_v56 = vsel %vm162_vm8, %v6948_v45, %v12427_v28  ;;  %11148 = vmatpush1.bf16.msra.mxu0 %v11147_v21  ;;  %11165 = vmatprep.subr.bf16.mxu1 %v12837_v0  ;;  %v6953_v33 = vsel %vm162_vm8, %v12427_v28, %v12428_v18 }
0x236f   :  { %v11149_v62 = vpack.c.bf16 %v12848_v19, %v6953_v33  ;;  %v11166_v12 = vpack.c.bf16 %v12848_v19, %v6955_v35  ;;  %v11151_v15 = vpack.c.bf16 %v12848_v19, %v6954_v56 }
0x2371   :  { %11150 = vmatprep.subr.bf16.mxu0 %v11149_v62  ;;  %11167 = vmatpush3.bf16.msra.mxu1 %v11166_v12 }
0x2372   :  { %11152 = vmatpush1.bf16.msra.mxu0 %v11151_v15  ;;  %11188 = vmatprep.subr.bf16.mxu1 %v12837_v0 }
0x2374   :  { %10130 = vmatmul.mubr.msk.f32.vlgmr.msra.gmra.mrb[48].mxu1 %vm199_vm9, %v15800_v23 }
0x2375   :  { %9189 = vmatmul.mubr.msk.f32.vlgmr.msra.gmra.mrb[48].mxu0 %vm199_vm9, %v15800_v23  ;;  %10152 = vmatprep.mubr.msk.f32.mxu1 %vm12845_vm0, %v12846_v6 }
0x2376   :  { %7332 = vmatprep.mubr.f32.mxu0 %v12846_v6 }
0x2447   :  { %v7126_v29 = vpop.f32.mrb[48].mxu1 }
0x2448   :  { %v15812_v34 = vmul.f32 %v15809_v57, %v7126_v29  ;;  %v7055_v55 = vpop.f32.mrb[48].mxu0  ;;  %v10131_v48 = vpop.f32.mrb[49].mxu1 }
0x2449   :  { %v15817_v38 = vmul.f32 %v15814_v7, %v7055_v55  ;;  %v7057_v27 = vpop.f32.mrb[49].mxu0 }
0x244a   :  { %v7135_v1 = vmul.f32 0.0625, %v15812_v34  ;;  %v15823_v61 = vmul.f32 %v15820_v50, %v7057_v27 }
0x244b   :  { %v7133_v39 = vmul.f32 0.0625, %v15817_v38 }
0x244c   :  { %v15826_v13 = vadd.f32 %v7135_v1, %v15705_v5  ;;  %v7134_v54 = vmul.f32 0.0625, %v15823_v61 }
0x244d   :  { %v15835_v2 = vadd.f32 %v7133_v39, %v15712_v30 }
0x244e   :  { %7155 = vrot.lane.b32.xlu1 %v15826_v13, %s12839_s2  ;;  %7143 = vrot.lane.b32.xlu0 %v15826_v13, %s12838_s19  ;;  %v15838_v58 = vadd.f32 %v7134_v54, %v15715_v3 }
0x2450   :  { %v12434_v8 = vpack.i.bf16 %v15838_v58, %v15835_v2  ;;  %v12459_v4 = vpack.i.bf16 %v15826_v13, %v15838_v58 }
0x2452   :  { %7179 = vrot.lane.b32.xlu1 %v15826_v13, %s12840_s20  ;;  %7167 = vrot.lane.b32.xlu0 %v15826_v13, %s12841_s21 }
0x2456   :  { %12435 = vrot.lane.b32.xlu1 %v12434_v8, %s12839_s2  ;;  %12430 = vrot.lane.b32.xlu0 %v12434_v8, %s12838_s19 }
0x245a   :  { %12445 = vrot.lane.b32.xlu1 %v12434_v8, %s12840_s20  ;;  %12440 = vrot.lane.b32.xlu0 %v12434_v8, %s12841_s21 }
0x245e   :  { %7190 = vrot.lane.b32.xlu1 %v15835_v2, %s12842_s22  ;;  %7202 = vrot.lane.b32.xlu0 %v15835_v2, %s12844_s24 }
0x2462   :  { %12460 = vrot.lane.b32.xlu1 %v12459_v4, %s12843_s23  ;;  %12450 = vrot.lane.b32.xlu0 %v12459_v4, %s12842_s22 }
0x2466   :  { %7214 = vrot.lane.b32.xlu1 %v15835_v2, %s12843_s23  ;;  %12455 = vrot.lane.b32.xlu0 %v12459_v4, %s12844_s24 }
0x246a   :  { %7226 = vrot.lane.b32.xlu1 %v15835_v2, %s12847_s25  ;;  %12465 = vrot.lane.b32.xlu0 %v12459_v4, %s12847_s25 }
0x24c0   :  { %v7156_v47 = vpop.permute.xlu1 %7155  ;;  %v7144_v36 = vpop.permute.xlu0 %7143 }
0x24c4   :  { %v7180_v51 = vpop.permute.xlu1 %7179  ;;  %v7168_v26 = vpop.permute.xlu0 %7167 }
0x24c8   :  { %v12436_v63 = vpop.permute.xlu1 %12435  ;;  %v12431_v41 = vpop.permute.xlu0 %12430 }
0x24c9   :  { %v12438_v17 = vunpack.i.h.bf16 %v12436_v63  ;;  %v12437_v14 = vunpack.i.l.bf16 %v12436_v63  ;;  %v12433_v16 = vunpack.i.h.bf16 %v12431_v41  ;;  %v12432_v11 = vunpack.i.l.bf16 %v12431_v41 }
0x24cb   :  { %v7157_v20 = vsel %vm81_vm2, %v12438_v17, %v7156_v47  ;;  %v7159_v25 = vsel %vm81_vm2, %v7156_v47, %v12437_v14  ;;  %v7145_v42 = vsel %vm68_vm1, %v12433_v16, %v7144_v36  ;;  %v7147_v53 = vsel %vm68_vm1, %v7144_v36, %v12432_v11 }
0x24cc   :  { %v12446_v22 = vpop.permute.xlu1 %12445  ;;  %v12441_v31 = vpop.permute.xlu0 %12440  ;;  %v7146_v43 = vsel %vm68_vm1, %v12432_v11, %v12433_v16  ;;  %v7158_v60 = vsel %vm81_vm2, %v12437_v14, %v12438_v17  ;;  %v11189_v52 = vpack.c.bf16 %v7157_v20, %v7145_v42  ;;  %v11170_v32 = vpack.c.bf16 %v7159_v25, %v7147_v53 }
0x24cd   :  { %v12448_v44 = vunpack.i.h.bf16 %v12446_v22  ;;  %v12447_v40 = vunpack.i.l.bf16 %v12446_v22  ;;  %v12443_v37 = vunpack.i.h.bf16 %v12441_v31  ;;  %v12442_v10 = vunpack.i.l.bf16 %v12441_v31 }
0x24ce   :  { %v11168_v59 = vpack.c.bf16 %v7158_v60, %v7146_v43  ;;  %11190 = vmatpush3.bf16.msra.mxu1 %v11189_v52 }
0x24cf   :  { %v7181_v24 = vsel %vm107_vm3, %v12448_v44, %v7180_v51  ;;  %v7183_v46 = vsel %vm107_vm3, %v7180_v51, %v12447_v40  ;;  %v7169_v49 = vsel %vm94_vm4, %v12443_v37, %v7168_v26  ;;  %v7171_v21 = vsel %vm94_vm4, %v7168_v26, %v12442_v10  ;;  %11191 = vmatprep.subr.bf16.mxu1 %v12837_v0 }
0x24d0   :  { %11169 = vmatprep.subr.bf16.mxu0 %v11168_v59  ;;  %v7191_v18 = vpop.permute.xlu1 %7190  ;;  %v7203_v28 = vpop.permute.xlu0 %7202  ;;  %v7170_v45 = vsel %vm94_vm4, %v12442_v10, %v12443_v37  ;;  %v7182_v35 = vsel %vm107_vm3, %v12447_v40, %v12448_v44  ;;  %v11192_v56 = vpack.c.bf16 %v7181_v24, %v7169_v49  ;;  %v11174_v62 = vpack.c.bf16 %v7183_v46, %v7171_v21 }
0x24d1   :  { %11171 = vmatpush1.bf16.msra.mxu0 %v11170_v32  ;;  %v11172_v33 = vpack.c.bf16 %v7182_v35, %v7170_v45 }
0x24d2   :  { %11193 = vmatpush3.bf16.msra.mxu1 %v11192_v56 }
0x24d3   :  { %11173 = vmatprep.subr.bf16.mxu0 %v11172_v33  ;;  %11194 = vmatprep.subr.bf16.mxu1 %v12837_v0 }
0x24d4   :  { %v12461_v12 = vpop.permute.xlu1 %12460  ;;  %v12451_v15 = vpop.permute.xlu0 %12450 }
0x24d5   :  { %11175 = vmatpush1.bf16.msra.mxu0 %v11174_v62  ;;  %v12453_v29 = vunpack.i.h.bf16 %v12451_v15  ;;  %v12452_v55 = vunpack.i.l.bf16 %v12451_v15  ;;  %v12463_v48 = vunpack.i.h.bf16 %v12461_v12  ;;  %v12462_v27 = vunpack.i.l.bf16 %v12461_v12 }
0x24d7   :  { %v7198_v1 = vsel %vm123_vm5, %v12453_v29, %v7191_v18  ;;  %v7197_v39 = vsel %vm123_vm5, %v7191_v18, %v12452_v55  ;;  %v7196_v54 = vsel %vm123_vm5, %v12452_v55, %v12453_v29  ;;  %v7220_v14 = vsel %vm149_vm6, %v12462_v27, %v12463_v48 }
0x24d8   :  { %v7215_v8 = vpop.permute.xlu1 %7214  ;;  %v12456_v4 = vpop.permute.xlu0 %12455  ;;  %v11176_v47 = vpack.c.bf16 %v7196_v54, %v15838_v58  ;;  %v11195_v36 = vpack.c.bf16 %v7198_v1, %v15826_v13  ;;  %v11178_v51 = vpack.c.bf16 %v7197_v39, %v15835_v2 }
0x24d9   :  { %v12458_v26 = vunpack.i.h.bf16 %v12456_v4  ;;  %v12457_v63 = vunpack.i.l.bf16 %v12456_v4  ;;  %v7221_v41 = vsel %vm149_vm6, %v7215_v8, %v12462_v27  ;;  %v7222_v17 = vsel %vm149_vm6, %v12463_v48, %v7215_v8 }
0x24da   :  { %11177 = vmatprep.subr.bf16.mxu0 %v11176_v47  ;;  %11196 = vmatpush3.bf16.msra.mxu1 %v11195_v36 }
0x24db   :  { %v7210_v58 = vsel %vm136_vm7, %v12458_v26, %v7203_v28  ;;  %v7209_v13 = vsel %vm136_vm7, %v7203_v28, %v12457_v63  ;;  %11179 = vmatpush1.bf16.msra.mxu0 %v11178_v51  ;;  %11197 = vmatprep.subr.bf16.mxu1 %v12837_v0  ;;  %v7208_v2 = vsel %vm136_vm7, %v12457_v63, %v12458_v26 }
0x24dc   :  { %v12466_v16 = vpop.permute.xlu0 %12465  ;;  %v11180_v11 = vpack.c.bf16 %v7220_v14, %v7208_v2  ;;  %v11198_v20 = vpack.c.bf16 %v7222_v17, %v7210_v58  ;;  %v11182_v25 = vpack.c.bf16 %v7221_v41, %v7209_v13  ;;  %v7227_v22 = vpop.permute.xlu1 %7226 }
0x24dd   :  { %v12468_v42 = vunpack.i.h.bf16 %v12466_v16  ;;  %v12467_v53 = vunpack.i.l.bf16 %v12466_v16 }
0x24de   :  { %11181 = vmatprep.subr.bf16.mxu0 %v11180_v11  ;;  %11199 = vmatpush3.bf16.msra.mxu1 %v11198_v20 }
0x24df   :  { %v7234_v31 = vsel %vm162_vm8, %v12468_v42, %v7227_v22  ;;  %v7233_v43 = vsel %vm162_vm8, %v7227_v22, %v12467_v53  ;;  %11183 = vmatpush1.bf16.msra.mxu0 %v11182_v25  ;;  %11200 = vmatprep.subr.bf16.mxu1 %v12837_v0  ;;  %v7232_v60 = vsel %vm162_vm8, %v12467_v53, %v12468_v42 }
0x24e0   :  { %v11201_v52 = vpack.c.bf16 %v12848_v19, %v7234_v31  ;;  %v11186_v32 = vpack.c.bf16 %v12848_v19, %v7233_v43  ;;  %v11184_v44 = vpack.c.bf16 %v12848_v19, %v7232_v60 }
0x24e2   :  { %11185 = vmatprep.subr.bf16.mxu0 %v11184_v44  ;;  %11202 = vmatpush3.bf16.msra.mxu1 %v11201_v52 }
0x24e3   :  { %11187 = vmatpush1.bf16.msra.mxu0 %v11186_v32  ;;  %11223 = vmatprep.subr.bf16.mxu1 %v12837_v0 }
0x24e5   :  { %10153 = vmatmul.mubr.msk.f32.vlgmr.msra.gmra.mrb[50].mxu1 %vm199_vm9, %v15800_v23 }
0x24e6   :  { %9191 = vmatmul.mubr.msk.f32.vlgmr.msra.gmra.mrb[50].mxu0 %vm199_vm9, %v15800_v23  ;;  %10175 = vmatprep.mubr.msk.f32.mxu1 %vm12845_vm0, %v12846_v6 }
0x24e7   :  { %7611 = vmatprep.mubr.f32.mxu0 %v12846_v6 }
0x25b8   :  { %v7405_v40 = vpop.f32.mrb[50].mxu1 }
0x25b9   :  { %v15931_v37 = vmul.f32 %v15809_v57, %v7405_v40  ;;  %v7334_v10 = vpop.f32.mrb[50].mxu0  ;;  %v10154_v59 = vpop.f32.mrb[51].mxu1 }
0x25ba   :  { %v15934_v24 = vmul.f32 %v15814_v7, %v7334_v10  ;;  %v7336_v46 = vpop.f32.mrb[51].mxu0 }
0x25bb   :  { %v7414_v49 = vmul.f32 0.0625, %v15931_v37  ;;  %v15938_v21 = vmul.f32 %v15820_v50, %v7336_v46 }
0x25bc   :  { %v7412_v28 = vmul.f32 0.0625, %v15934_v24 }
0x25bd   :  { %v15941_v18 = vadd.f32 %v7414_v49, %v15705_v5  ;;  %v7413_v45 = vmul.f32 0.0625, %v15938_v21 }
0x25be   :  { %v15950_v35 = vadd.f32 %v7412_v28, %v15712_v30 }
0x25bf   :  { %7434 = vrot.lane.b32.xlu1 %v15941_v18, %s12839_s2  ;;  %7422 = vrot.lane.b32.xlu0 %v15941_v18, %s12838_s19  ;;  %v15953_v56 = vadd.f32 %v7413_v45, %v15715_v3 }
0x25c1   :  { %v12474_v33 = vpack.i.bf16 %v15953_v56, %v15950_v35  ;;  %v12499_v62 = vpack.i.bf16 %v15941_v18, %v15953_v56 }
0x25c3   :  { %7458 = vrot.lane.b32.xlu1 %v15941_v18, %s12840_s20  ;;  %7446 = vrot.lane.b32.xlu0 %v15941_v18, %s12841_s21 }
0x25c7   :  { %12475 = vrot.lane.b32.xlu1 %v12474_v33, %s12839_s2  ;;  %12470 = vrot.lane.b32.xlu0 %v12474_v33, %s12838_s19 }
0x25cb   :  { %12485 = vrot.lane.b32.xlu1 %v12474_v33, %s12840_s20  ;;  %12480 = vrot.lane.b32.xlu0 %v12474_v33, %s12841_s21 }
0x25cf   :  { %7469 = vrot.lane.b32.xlu1 %v15950_v35, %s12842_s22  ;;  %7481 = vrot.lane.b32.xlu0 %v15950_v35, %s12844_s24 }
0x25d3   :  { %12500 = vrot.lane.b32.xlu1 %v12499_v62, %s12843_s23  ;;  %12490 = vrot.lane.b32.xlu0 %v12499_v62, %s12842_s22 }
0x25d7   :  { %7493 = vrot.lane.b32.xlu1 %v15950_v35, %s12843_s23  ;;  %12495 = vrot.lane.b32.xlu0 %v12499_v62, %s12844_s24 }
0x25db   :  { %7505 = vrot.lane.b32.xlu1 %v15950_v35, %s12847_s25  ;;  %12505 = vrot.lane.b32.xlu0 %v12499_v62, %s12847_s25 }
0x2631   :  { %v7435_v12 = vpop.permute.xlu1 %7434  ;;  %v7423_v15 = vpop.permute.xlu0 %7422 }
0x2635   :  { %v7459_v29 = vpop.permute.xlu1 %7458  ;;  %v7447_v55 = vpop.permute.xlu0 %7446 }
0x2639   :  { %v12476_v48 = vpop.permute.xlu1 %12475  ;;  %v12471_v27 = vpop.permute.xlu0 %12470 }
0x263a   :  { %v12478_v1 = vunpack.i.h.bf16 %v12476_v48  ;;  %v12477_v39 = vunpack.i.l.bf16 %v12476_v48  ;;  %v12473_v54 = vunpack.i.h.bf16 %v12471_v27  ;;  %v12472_v8 = vunpack.i.l.bf16 %v12471_v27 }
0x263c   :  { %v7436_v4 = vsel %vm81_vm2, %v12478_v1, %v7435_v12  ;;  %v7438_v47 = vsel %vm81_vm2, %v7435_v12, %v12477_v39  ;;  %v7424_v36 = vsel %vm68_vm1, %v12473_v54, %v7423_v15  ;;  %v7426_v51 = vsel %vm68_vm1, %v7423_v15, %v12472_v8 }
0x263d   :  { %v11224_v26 = vpack.c.bf16 %v7436_v4, %v7424_v36  ;;  %v11205_v63 = vpack.c.bf16 %v7438_v47, %v7426_v51  ;;  %v12486_v41 = vpop.permute.xlu1 %12485  ;;  %v12481_v17 = vpop.permute.xlu0 %12480  ;;  %v7425_v14 = vsel %vm68_vm1, %v12472_v8, %v12473_v54  ;;  %v7437_v58 = vsel %vm81_vm2, %v12477_v39, %v12478_v1 }
0x263e   :  { %v12488_v13 = vunpack.i.h.bf16 %v12486_v41  ;;  %v12487_v2 = vunpack.i.l.bf16 %v12486_v41  ;;  %v12483_v16 = vunpack.i.h.bf16 %v12481_v17  ;;  %v12482_v11 = vunpack.i.l.bf16 %v12481_v17 }
0x263f   :  { %v11203_v20 = vpack.c.bf16 %v7437_v58, %v7425_v14  ;;  %11225 = vmatpush3.bf16.msra.mxu1 %v11224_v26 }
0x2640   :  { %v7460_v25 = vsel %vm107_vm3, %v12488_v13, %v7459_v29  ;;  %v7462_v42 = vsel %vm107_vm3, %v7459_v29, %v12487_v2  ;;  %v7448_v53 = vsel %vm94_vm4, %v12483_v16, %v7447_v55  ;;  %v7450_v22 = vsel %vm94_vm4, %v7447_v55, %v12482_v11  ;;  %11226 = vmatprep.subr.bf16.mxu1 %v12837_v0 }
0x2641   :  { %v11227_v31 = vpack.c.bf16 %v7460_v25, %v7448_v53  ;;  %11204 = vmatprep.subr.bf16.mxu0 %v11203_v20  ;;  %v7470_v43 = vpop.permute.xlu1 %7469  ;;  %v7482_v60 = vpop.permute.xlu0 %7481  ;;  %v7449_v52 = vsel %vm94_vm4, %v12482_v11, %v12483_v16  ;;  %v7461_v32 = vsel %vm107_vm3, %v12487_v2, %v12488_v13  ;;  %v11209_v44 = vpack.c.bf16 %v7462_v42, %v7450_v22 }
0x2642   :  { %11206 = vmatpush1.bf16.msra.mxu0 %v11205_v63  ;;  %v11207_v40 = vpack.c.bf16 %v7461_v32, %v7449_v52  ;;  %v7972_v20 = vmul.f32 2.0, %v15931_v37  ;;  %v7970_v25 = vmul.f32 2.0, %v15934_v24  ;;  %v7971_v42 = vmul.f32 2.0, %v15938_v21 }
0x2643   :  { %11228 = vmatpush3.bf16.msra.mxu1 %v11227_v31 }
0x2644   :  { %11208 = vmatprep.subr.bf16.mxu0 %v11207_v40  ;;  %11229 = vmatprep.subr.bf16.mxu1 %v12837_v0  ;;  %v7975_v32 = vadd.f32 %v7972_v20, %v15812_v34  ;;  %v7973_v37 = vadd.f32 %v7970_v25, %v15817_v38  ;;  %v7974_v24 = vadd.f32 %v7971_v42, %v15823_v61 }
0x2645   :  { %v12501_v10 = vpop.permute.xlu1 %12500  ;;  %v12491_v59 = vpop.permute.xlu0 %12490 }
0x2646   :  { %11210 = vmatpush1.bf16.msra.mxu0 %v11209_v44  ;;  %v12493_v46 = vunpack.i.h.bf16 %v12491_v59  ;;  %v12492_v49 = vunpack.i.l.bf16 %v12491_v59  ;;  %v12503_v28 = vunpack.i.h.bf16 %v12501_v10  ;;  %v12502_v45 = vunpack.i.l.bf16 %v12501_v10 }
0x2648   :  { %v7477_v33 = vsel %vm123_vm5, %v12493_v46, %v7470_v43  ;;  %v7476_v62 = vsel %vm123_vm5, %v7470_v43, %v12492_v49  ;;  %v7475_v12 = vsel %vm123_vm5, %v12492_v49, %v12493_v46  ;;  %v7499_v4 = vsel %vm149_vm6, %v12502_v45, %v12503_v28 }
0x2649   :  { %v11230_v15 = vpack.c.bf16 %v7477_v33, %v15941_v18  ;;  %v11213_v29 = vpack.c.bf16 %v7476_v62, %v15950_v35  ;;  %v7494_v55 = vpop.permute.xlu1 %7493  ;;  %v12496_v48 = vpop.permute.xlu0 %12495  ;;  %v11211_v27 = vpack.c.bf16 %v7475_v12, %v15953_v56 }
0x264a   :  { %v12498_v1 = vunpack.i.h.bf16 %v12496_v48  ;;  %v12497_v39 = vunpack.i.l.bf16 %v12496_v48  ;;  %v7500_v54 = vsel %vm149_vm6, %v7494_v55, %v12502_v45  ;;  %v7501_v8 = vsel %vm149_vm6, %v12503_v28, %v7494_v55 }
0x264b   :  { %11212 = vmatprep.subr.bf16.mxu0 %v11211_v27  ;;  %11231 = vmatpush3.bf16.msra.mxu1 %v11230_v15 }
0x264c   :  { %v7489_v18 = vsel %vm136_vm7, %v12498_v1, %v7482_v60  ;;  %v7488_v35 = vsel %vm136_vm7, %v7482_v60, %v12497_v39  ;;  %11214 = vmatpush1.bf16.msra.mxu0 %v11213_v29  ;;  %11232 = vmatprep.subr.bf16.mxu1 %v12837_v0  ;;  %v7487_v56 = vsel %vm136_vm7, %v12497_v39, %v12498_v1 }
0x264d   :  { %v11233_v47 = vpack.c.bf16 %v7501_v8, %v7489_v18  ;;  %v11217_v36 = vpack.c.bf16 %v7500_v54, %v7488_v35  ;;  %v12506_v51 = vpop.permute.xlu0 %12505  ;;  %v11215_v26 = vpack.c.bf16 %v7499_v4, %v7487_v56  ;;  %v7506_v17 = vpop.permute.xlu1 %7505 }
0x264e   :  { %v12508_v63 = vunpack.i.h.bf16 %v12506_v51  ;;  %v12507_v41 = vunpack.i.l.bf16 %v12506_v51 }
0x264f   :  { %11216 = vmatprep.subr.bf16.mxu0 %v11215_v26  ;;  %11234 = vmatpush3.bf16.msra.mxu1 %v11233_v47 }
0x2650   :  { %v7513_v14 = vsel %vm162_vm8, %v12508_v63, %v7506_v17  ;;  %v7512_v58 = vsel %vm162_vm8, %v7506_v17, %v12507_v41  ;;  %11218 = vmatpush1.bf16.msra.mxu0 %v11217_v36  ;;  %11235 = vmatprep.subr.bf16.mxu1 %v12837_v0  ;;  %v7511_v13 = vsel %vm162_vm8, %v12507_v41, %v12508_v63 }
0x2651   :  { %v11236_v2 = vpack.c.bf16 %v12848_v19, %v7513_v14  ;;  %v11221_v16 = vpack.c.bf16 %v12848_v19, %v7512_v58  ;;  %v11219_v11 = vpack.c.bf16 %v12848_v19, %v7511_v13 }
0x2653   :  { %11220 = vmatprep.subr.bf16.mxu0 %v11219_v11  ;;  %11237 = vmatpush3.bf16.msra.mxu1 %v11236_v2 }
0x2654   :  { %11222 = vmatpush1.bf16.msra.mxu0 %v11221_v16  ;;  %11258 = vmatprep.subr.bf16.mxu1 %v12837_v0 }
0x2656   :  { %10176 = vmatmul.mubr.msk.f32.vlgmr.msra.gmra.mrb[52].mxu1 %vm199_vm9, %v15800_v23 }
0x2657   :  { %9193 = vmatmul.mubr.msk.f32.vlgmr.msra.gmra.mrb[52].mxu0 %vm199_vm9, %v15800_v23  ;;  %10198 = vmatprep.mubr.msk.f32.mxu1 %vm12845_vm0, %v12846_v6 }
0x2658   :  { %7890 = vmatprep.mubr.f32.mxu0 %v12846_v6 }
0x2729   :  { %v7684_v53 = vpop.f32.mrb[52].mxu1 }
0x272a   :  { %v7690_v22 = vmul.f32 %v15809_v57, %v7684_v53  ;;  %v7613_v31 = vpop.f32.mrb[52].mxu0  ;;  %v10177_v43 = vpop.f32.mrb[53].mxu1 }
0x272b   :  { %v7688_v60 = vmul.f32 %v15814_v7, %v7613_v31  ;;  %v7615_v52 = vpop.f32.mrb[53].mxu0 }
0x272c   :  { %v7693_v44 = vmul.f32 0.125, %v7690_v22  ;;  %v7978_v40 = vmul.f32 2.0, %v7690_v22  ;;  %v7689_v10 = vmul.f32 %v15820_v50, %v7615_v52 }
0x272d   :  { %v7691_v59 = vmul.f32 0.125, %v7688_v60  ;;  %v7976_v21 = vmul.f32 2.0, %v7688_v60 }
0x272e   :  { %v16055_v46 = vadd.f32 %v7693_v44, %v15705_v5  ;;  %v7692_v49 = vmul.f32 0.125, %v7689_v10  ;;  %v7977_v28 = vmul.f32 2.0, %v7689_v10  ;;  %v16057_v45 = vadd.f32 %v7978_v40, %v7975_v32 }
0x272f   :  { %v16059_v33 = vadd.f32 %v7976_v21, %v7973_v37  ;;  %v16068_v38 = vadd.f32 %v7691_v59, %v15712_v30 }
0x2730   :  { %7713 = vrot.lane.b32.xlu1 %v16055_v46, %s12839_s2  ;;  %7701 = vrot.lane.b32.xlu0 %v16055_v46, %s12838_s19  ;;  %v16065_v34 = vadd.f32 %v7977_v28, %v7974_v24  ;;  %v16071_v61 = vadd.f32 %v7692_v49, %v15715_v3 }
0x2732   :  { %v12514_v62 = vpack.i.bf16 %v16071_v61, %v16068_v38  ;;  %v12539_v12 = vpack.i.bf16 %v16055_v46, %v16071_v61 }
0x2734   :  { %7737 = vrot.lane.b32.xlu1 %v16055_v46, %s12840_s20  ;;  %7725 = vrot.lane.b32.xlu0 %v16055_v46, %s12841_s21 }
0x2738   :  { %12515 = vrot.lane.b32.xlu1 %v12514_v62, %s12839_s2  ;;  %12510 = vrot.lane.b32.xlu0 %v12514_v62, %s12838_s19 }
0x273c   :  { %12525 = vrot.lane.b32.xlu1 %v12514_v62, %s12840_s20  ;;  %12520 = vrot.lane.b32.xlu0 %v12514_v62, %s12841_s21 }
0x2740   :  { %7748 = vrot.lane.b32.xlu1 %v16068_v38, %s12842_s22  ;;  %7760 = vrot.lane.b32.xlu0 %v16068_v38, %s12844_s24 }
0x2744   :  { %12540 = vrot.lane.b32.xlu1 %v12539_v12, %s12843_s23  ;;  %12530 = vrot.lane.b32.xlu0 %v12539_v12, %s12842_s22 }
0x2748   :  { %7772 = vrot.lane.b32.xlu1 %v16068_v38, %s12843_s23  ;;  %12535 = vrot.lane.b32.xlu0 %v12539_v12, %s12844_s24 }
0x274c   :  { %7784 = vrot.lane.b32.xlu1 %v16068_v38, %s12847_s25  ;;  %12545 = vrot.lane.b32.xlu0 %v12539_v12, %s12847_s25 }
0x27a2   :  { %v7714_v15 = vpop.permute.xlu1 %7713  ;;  %v7702_v29 = vpop.permute.xlu0 %7701 }
0x27a6   :  { %v7738_v55 = vpop.permute.xlu1 %7737  ;;  %v7726_v48 = vpop.permute.xlu0 %7725 }
0x27aa   :  { %v12516_v27 = vpop.permute.xlu1 %12515  ;;  %v12511_v1 = vpop.permute.xlu0 %12510 }
0x27ab   :  { %v12518_v39 = vunpack.i.h.bf16 %v12516_v27  ;;  %v12517_v54 = vunpack.i.l.bf16 %v12516_v27  ;;  %v12513_v8 = vunpack.i.h.bf16 %v12511_v1  ;;  %v12512_v4 = vunpack.i.l.bf16 %v12511_v1 }
0x27ad   :  { %v7715_v18 = vsel %vm81_vm2, %v12518_v39, %v7714_v15  ;;  %v7717_v35 = vsel %vm81_vm2, %v7714_v15, %v12517_v54  ;;  %v7703_v56 = vsel %vm68_vm1, %v12513_v8, %v7702_v29  ;;  %v7705_v47 = vsel %vm68_vm1, %v7702_v29, %v12512_v4 }
0x27ae   :  { %v11259_v36 = vpack.c.bf16 %v7715_v18, %v7703_v56  ;;  %v11240_v51 = vpack.c.bf16 %v7717_v35, %v7705_v47  ;;  %v12526_v26 = vpop.permute.xlu1 %12525  ;;  %v12521_v63 = vpop.permute.xlu0 %12520  ;;  %v7704_v41 = vsel %vm68_vm1, %v12512_v4, %v12513_v8  ;;  %v7716_v17 = vsel %vm81_vm2, %v12517_v54, %v12518_v39 }
0x27af   :  { %v12528_v14 = vunpack.i.h.bf16 %v12526_v26  ;;  %v12527_v58 = vunpack.i.l.bf16 %v12526_v26  ;;  %v12523_v13 = vunpack.i.h.bf16 %v12521_v63  ;;  %v12522_v2 = vunpack.i.l.bf16 %v12521_v63 }
0x27b0   :  { %v11238_v16 = vpack.c.bf16 %v7716_v17, %v7704_v41  ;;  %11260 = vmatpush3.bf16.msra.mxu1 %v11259_v36 }
0x27b1   :  { %v7739_v11 = vsel %vm107_vm3, %v12528_v14, %v7738_v55  ;;  %v7741_v20 = vsel %vm107_vm3, %v7738_v55, %v12527_v58  ;;  %v7727_v25 = vsel %vm94_vm4, %v12523_v13, %v7726_v48  ;;  %v7729_v42 = vsel %vm94_vm4, %v7726_v48, %v12522_v2  ;;  %11261 = vmatprep.subr.bf16.mxu1 %v12837_v0 }
0x27b2   :  { %v11262_v53 = vpack.c.bf16 %v7739_v11, %v7727_v25  ;;  %11239 = vmatprep.subr.bf16.mxu0 %v11238_v16  ;;  %v7749_v22 = vpop.permute.xlu1 %7748  ;;  %v7761_v31 = vpop.permute.xlu0 %7760  ;;  %v7728_v43 = vsel %vm94_vm4, %v12522_v2, %v12523_v13  ;;  %v7740_v60 = vsel %vm107_vm3, %v12527_v58, %v12528_v14  ;;  %v11244_v52 = vpack.c.bf16 %v7741_v20, %v7729_v42 }
0x27b3   :  { %11241 = vmatpush1.bf16.msra.mxu0 %v11240_v51  ;;  %v11242_v32 = vpack.c.bf16 %v7740_v60, %v7728_v43 }
0x27b4   :  { %11263 = vmatpush3.bf16.msra.mxu1 %v11262_v53 }
0x27b5   :  { %11243 = vmatprep.subr.bf16.mxu0 %v11242_v32  ;;  %11264 = vmatprep.subr.bf16.mxu1 %v12837_v0 }
0x27b6   :  { %v12541_v44 = vpop.permute.xlu1 %12540  ;;  %v12531_v40 = vpop.permute.xlu0 %12530 }
0x27b7   :  { %11245 = vmatpush1.bf16.msra.mxu0 %v11244_v52  ;;  %v12533_v10 = vunpack.i.h.bf16 %v12531_v40  ;;  %v12532_v37 = vunpack.i.l.bf16 %v12531_v40  ;;  %v12543_v24 = vunpack.i.h.bf16 %v12541_v44  ;;  %v12542_v59 = vunpack.i.l.bf16 %v12541_v44 }
0x27b9   :  { %v7756_v21 = vsel %vm123_vm5, %v12533_v10, %v7749_v22  ;;  %v7755_v49 = vsel %vm123_vm5, %v7749_v22, %v12532_v37  ;;  %v7754_v28 = vsel %vm123_vm5, %v12532_v37, %v12533_v10  ;;  %v7778_v54 = vsel %vm149_vm6, %v12542_v59, %v12543_v24 }
0x27ba   :  { %v11265_v62 = vpack.c.bf16 %v7756_v21, %v16055_v46  ;;  %v11248_v12 = vpack.c.bf16 %v7755_v49, %v16068_v38  ;;  %v7773_v15 = vpop.permute.xlu1 %7772  ;;  %v12536_v29 = vpop.permute.xlu0 %12535  ;;  %v11246_v55 = vpack.c.bf16 %v7754_v28, %v16071_v61 }
0x27bb   :  { %v12538_v48 = vunpack.i.h.bf16 %v12536_v29  ;;  %v12537_v27 = vunpack.i.l.bf16 %v12536_v29  ;;  %v7779_v1 = vsel %vm149_vm6, %v7773_v15, %v12542_v59  ;;  %v7780_v39 = vsel %vm149_vm6, %v12543_v24, %v7773_v15 }
0x27bc   :  { %11247 = vmatprep.subr.bf16.mxu0 %v11246_v55  ;;  %11266 = vmatpush3.bf16.msra.mxu1 %v11265_v62 }
0x27bd   :  { %v7768_v46 = vsel %vm136_vm7, %v12538_v48, %v7761_v31  ;;  %v7767_v38 = vsel %vm136_vm7, %v7761_v31, %v12537_v27  ;;  %11249 = vmatpush1.bf16.msra.mxu0 %v11248_v12  ;;  %11267 = vmatprep.subr.bf16.mxu1 %v12837_v0  ;;  %v7766_v61 = vsel %vm136_vm7, %v12537_v27, %v12538_v48 }
0x27be   :  { %v11268_v8 = vpack.c.bf16 %v7780_v39, %v7768_v46  ;;  %v11252_v4 = vpack.c.bf16 %v7779_v1, %v7767_v38  ;;  %v12546_v18 = vpop.permute.xlu0 %12545  ;;  %v11250_v35 = vpack.c.bf16 %v7778_v54, %v7766_v61  ;;  %v7785_v36 = vpop.permute.xlu1 %7784 }
0x27bf   :  { %v12548_v56 = vunpack.i.h.bf16 %v12546_v18  ;;  %v12547_v47 = vunpack.i.l.bf16 %v12546_v18 }
0x27c0   :  { %11251 = vmatprep.subr.bf16.mxu0 %v11250_v35  ;;  %11269 = vmatpush3.bf16.msra.mxu1 %v11268_v8 }
0x27c1   :  { %v7792_v51 = vsel %vm162_vm8, %v12548_v56, %v7785_v36  ;;  %v7791_v26 = vsel %vm162_vm8, %v7785_v36, %v12547_v47  ;;  %11253 = vmatpush1.bf16.msra.mxu0 %v11252_v4  ;;  %11270 = vmatprep.subr.bf16.mxu1 %v12837_v0  ;;  %v7790_v63 = vsel %vm162_vm8, %v12547_v47, %v12548_v56 }
0x27c2   :  { %v11271_v41 = vpack.c.bf16 %v12848_v19, %v7792_v51  ;;  %v11256_v17 = vpack.c.bf16 %v12848_v19, %v7791_v26  ;;  %v11254_v14 = vpack.c.bf16 %v12848_v19, %v7790_v63 }
0x27c4   :  { %11255 = vmatprep.subr.bf16.mxu0 %v11254_v14  ;;  %11272 = vmatpush3.bf16.msra.mxu1 %v11271_v41 }
0x27c5   :  { %11257 = vmatpush1.bf16.msra.mxu0 %v11256_v17  ;;  %11293 = vmatprep.subr.bf16.mxu1 %v12837_v0 }
0x27c7   :  { %10199 = vmatmul.mubr.msk.f32.vlgmr.msra.gmra.mrb[54].mxu1 %vm199_vm9, %v15800_v23 }
0x27c8   :  { %9195 = vmatmul.mubr.msk.f32.vlgmr.msra.gmra.mrb[54].mxu0 %vm199_vm9, %v15800_v23  ;;  %10221 = vmatprep.mubr.msk.f32.mxu1 %vm12845_vm0, %v12846_v6 }
0x27c9   :  { %8184 = vmatprep.mubr.f32.mxu0 %v12846_v6 }
0x289a   :  { %v7963_v58 = vpop.f32.mrb[54].mxu1 }
0x289b   :  { %v7969_v13 = vmul.f32 %v15809_v57, %v7963_v58  ;;  %v7892_v2 = vpop.f32.mrb[54].mxu0  ;;  %v10200_v16 = vpop.f32.mrb[55].mxu1 }
0x289c   :  { %v7967_v11 = vmul.f32 %v15814_v7, %v7892_v2  ;;  %v7894_v20 = vpop.f32.mrb[55].mxu0 }
0x289d   :  { %v7984_v25 = vadd.f32 %v16057_v45, %v7969_v13  ;;  %v7968_v42 = vmul.f32 %v15820_v50, %v7894_v20 }
0x289e   :  { %v7982_v53 = vadd.f32 %v16059_v33, %v7967_v11 }
0x289f   :  { %v7987_v23 = vmul.f32 0.020833334, %v7984_v25  ;;  %v7983_v22 = vadd.f32 %v16065_v34, %v7968_v42 }
0x28a0   :  { %v7985_v43 = vmul.f32 0.020833334, %v7982_v53 }
0x28a1   :  { %v16170_v31 = vadd.f32 %v7987_v23, %v15705_v5  ;;  %v7986_v60 = vmul.f32 0.020833334, %v7983_v22 }
0x28a2   :  { %v16177_v57 = vadd.f32 %v7985_v43, %v15712_v30 }
0x28a3   :  { %8007 = vrot.lane.b32.xlu1 %v16170_v31, %s12839_s2  ;;  %7995 = vrot.lane.b32.xlu0 %v16170_v31, %s12838_s19  ;;  %v16180_v7 = vadd.f32 %v7986_v60, %v15715_v3 }
0x28a5   :  { %v12554_v5 = vpack.i.bf16 %v16180_v7, %v16177_v57  ;;  %v12579_v30 = vpack.i.bf16 %v16170_v31, %v16180_v7 }
0x28a7   :  { %8031 = vrot.lane.b32.xlu1 %v16170_v31, %s12840_s20  ;;  %8019 = vrot.lane.b32.xlu0 %v16170_v31, %s12841_s21 }
0x28ab   :  { %12555 = vrot.lane.b32.xlu1 %v12554_v5, %s12839_s2  ;;  %12550 = vrot.lane.b32.xlu0 %v12554_v5, %s12838_s19 }
0x28af   :  { %12565 = vrot.lane.b32.xlu1 %v12554_v5, %s12840_s20  ;;  %12560 = vrot.lane.b32.xlu0 %v12554_v5, %s12841_s21 }
0x28b3   :  { %8042 = vrot.lane.b32.xlu1 %v16177_v57, %s12842_s22  ;;  %8054 = vrot.lane.b32.xlu0 %v16177_v57, %s12844_s24 }
0x28b7   :  { %12580 = vrot.lane.b32.xlu1 %v12579_v30, %s12843_s23  ;;  %12570 = vrot.lane.b32.xlu0 %v12579_v30, %s12842_s22 }
0x28bb   :  { %8066 = vrot.lane.b32.xlu1 %v16177_v57, %s12843_s23  ;;  %12575 = vrot.lane.b32.xlu0 %v12579_v30, %s12844_s24 }
0x28bf   :  { %8078 = vrot.lane.b32.xlu1 %v16177_v57, %s12847_s25  ;;  %12585 = vrot.lane.b32.xlu0 %v12579_v30, %s12847_s25 }
0x2915   :  { %v8008_v3 = vpop.permute.xlu1 %8007  ;;  %v7996_v50 = vpop.permute.xlu0 %7995 }
0x2919   :  { %v8032_v45 = vpop.permute.xlu1 %8031  ;;  %v8020_v33 = vpop.permute.xlu0 %8019 }
0x291d   :  { %v12556_v34 = vpop.permute.xlu1 %12555  ;;  %v12551_v52 = vpop.permute.xlu0 %12550 }
0x291e   :  { %v12558_v32 = vunpack.i.h.bf16 %v12556_v34  ;;  %v12557_v44 = vunpack.i.l.bf16 %v12556_v34  ;;  %v12553_v40 = vunpack.i.h.bf16 %v12551_v52  ;;  %v12552_v10 = vunpack.i.l.bf16 %v12551_v52 }
0x2920   :  { %v8009_v37 = vsel %vm81_vm2, %v12558_v32, %v8008_v3  ;;  %v8011_v24 = vsel %vm81_vm2, %v8008_v3, %v12557_v44  ;;  %v7997_v59 = vsel %vm68_vm1, %v12553_v40, %v7996_v50  ;;  %v7999_v21 = vsel %vm68_vm1, %v7996_v50, %v12552_v10 }
0x2921   :  { %v11294_v49 = vpack.c.bf16 %v8009_v37, %v7997_v59  ;;  %v11275_v28 = vpack.c.bf16 %v8011_v24, %v7999_v21  ;;  %v12566_v62 = vpop.permute.xlu1 %12565  ;;  %v12561_v12 = vpop.permute.xlu0 %12560  ;;  %v7998_v15 = vsel %vm68_vm1, %v12552_v10, %v12553_v40  ;;  %v8010_v29 = vsel %vm81_vm2, %v12557_v44, %v12558_v32 }
0x2922   :  { %v12568_v55 = vunpack.i.h.bf16 %v12566_v62  ;;  %v12567_v48 = vunpack.i.l.bf16 %v12566_v62  ;;  %v12563_v27 = vunpack.i.h.bf16 %v12561_v12  ;;  %v12562_v1 = vunpack.i.l.bf16 %v12561_v12  ;;  %v16274_v62 = vld [vmem:[#allocation8 + $0x10] sm:$0xff] }
0x2923   :  { %v11273_v39 = vpack.c.bf16 %v8010_v29, %v7998_v15  ;;  %11295 = vmatpush3.bf16.msra.mxu1 %v11294_v49  ;;  %v16265_v49 = vld [vmem:[#allocation6] sm:$0xff] }
0x2924   :  { %v8033_v54 = vsel %vm107_vm3, %v12568_v55, %v8032_v45  ;;  %v8035_v46 = vsel %vm107_vm3, %v8032_v45, %v12567_v48  ;;  %v8021_v38 = vsel %vm94_vm4, %v12563_v27, %v8020_v33  ;;  %v8023_v61 = vsel %vm94_vm4, %v8020_v33, %v12562_v1  ;;  %11296 = vmatprep.subr.bf16.mxu1 %v12837_v0 }
0x2925   :  { %v11297_v8 = vpack.c.bf16 %v8033_v54, %v8021_v38  ;;  %11274 = vmatprep.subr.bf16.mxu0 %v11273_v39  ;;  %v8043_v4 = vpop.permute.xlu1 %8042  ;;  %v8055_v18 = vpop.permute.xlu0 %8054  ;;  %v8022_v35 = vsel %vm94_vm4, %v12562_v1, %v12563_v27  ;;  %v8034_v56 = vsel %vm107_vm3, %v12567_v48, %v12568_v55  ;;  %v11279_v47 = vpack.c.bf16 %v8035_v46, %v8023_v61  ;;  %v16279_v55 = vld [vmem:[#allocation8] sm:$0xff]  ;;  %v16285_v39 = vld [vmem:[#allocation8 + $0x8] sm:$0xff] }
0x2926   :  { %11276 = vmatpush1.bf16.msra.mxu0 %v11275_v28  ;;  %v11277_v36 = vpack.c.bf16 %v8034_v56, %v8022_v35 }
0x2927   :  { %11298 = vmatpush3.bf16.msra.mxu1 %v11297_v8 }
0x2928   :  { %11278 = vmatprep.subr.bf16.mxu0 %v11277_v36  ;;  %11299 = vmatprep.subr.bf16.mxu1 %v12837_v0 }
0x2929   :  { %v12581_v51 = vpop.permute.xlu1 %12580  ;;  %v12571_v26 = vpop.permute.xlu0 %12570 }
0x292a   :  { %11280 = vmatpush1.bf16.msra.mxu0 %v11279_v47  ;;  %v12573_v63 = vunpack.i.h.bf16 %v12571_v26  ;;  %v12572_v41 = vunpack.i.l.bf16 %v12571_v26  ;;  %v12583_v17 = vunpack.i.h.bf16 %v12581_v51  ;;  %v12582_v14 = vunpack.i.l.bf16 %v12581_v51 }
0x292c   :  { %v8050_v58 = vsel %vm123_vm5, %v12573_v63, %v8043_v4  ;;  %v8049_v13 = vsel %vm123_vm5, %v8043_v4, %v12572_v41  ;;  %v8048_v2 = vsel %vm123_vm5, %v12572_v41, %v12573_v63  ;;  %v8072_v60 = vsel %vm149_vm6, %v12582_v14, %v12583_v17 }
0x292d   :  { %v11300_v16 = vpack.c.bf16 %v8050_v58, %v16170_v31  ;;  %v11283_v11 = vpack.c.bf16 %v8049_v13, %v16177_v57  ;;  %v8067_v20 = vpop.permute.xlu1 %8066  ;;  %v12576_v25 = vpop.permute.xlu0 %12575  ;;  %v11281_v42 = vpack.c.bf16 %v8048_v2, %v16180_v7 }
0x292e   :  { %v12578_v53 = vunpack.i.h.bf16 %v12576_v25  ;;  %v12577_v23 = vunpack.i.l.bf16 %v12576_v25  ;;  %v8073_v22 = vsel %vm149_vm6, %v8067_v20, %v12582_v14  ;;  %v8074_v43 = vsel %vm149_vm6, %v12583_v17, %v8067_v20 }
0x292f   :  { %11282 = vmatprep.subr.bf16.mxu0 %v11281_v42  ;;  %11301 = vmatpush3.bf16.msra.mxu1 %v11300_v16 }
0x2930   :  { %v8062_v5 = vsel %vm136_vm7, %v12578_v53, %v8055_v18  ;;  %v8061_v30 = vsel %vm136_vm7, %v8055_v18, %v12577_v23  ;;  %11284 = vmatpush1.bf16.msra.mxu0 %v11283_v11  ;;  %11302 = vmatprep.subr.bf16.mxu1 %v12837_v0  ;;  %v8060_v3 = vsel %vm136_vm7, %v12577_v23, %v12578_v53 }
0x2931   :  { %v11303_v50 = vpack.c.bf16 %v8074_v43, %v8062_v5  ;;  %v11287_v45 = vpack.c.bf16 %v8073_v22, %v8061_v30  ;;  %v12586_v33 = vpop.permute.xlu0 %12585  ;;  %v11285_v34 = vpack.c.bf16 %v8072_v60, %v8060_v3  ;;  %v8079_v44 = vpop.permute.xlu1 %8078 }
0x2932   :  { %v12588_v52 = vunpack.i.h.bf16 %v12586_v33  ;;  %v12587_v32 = vunpack.i.l.bf16 %v12586_v33 }
0x2933   :  { %11286 = vmatprep.subr.bf16.mxu0 %v11285_v34  ;;  %11304 = vmatpush3.bf16.msra.mxu1 %v11303_v50 }
0x2934   :  { %v8086_v40 = vsel %vm162_vm8, %v12588_v52, %v8079_v44  ;;  %v8085_v10 = vsel %vm162_vm8, %v8079_v44, %v12587_v32  ;;  %11288 = vmatpush1.bf16.msra.mxu0 %v11287_v45  ;;  %11305 = vmatprep.subr.bf16.mxu1 %v12837_v0  ;;  %v8084_v37 = vsel %vm162_vm8, %v12587_v32, %v12588_v52 }
0x2935   :  { %v11306_v24 = vpack.c.bf16 %v12848_v19, %v8086_v40  ;;  %v11291_v59 = vpack.c.bf16 %v12848_v19, %v8085_v10  ;;  %v11289_v21 = vpack.c.bf16 %v12848_v19, %v8084_v37 }
0x2937   :  { %11290 = vmatprep.subr.bf16.mxu0 %v11289_v21  ;;  %11307 = vmatpush3.bf16.msra.mxu1 %v11306_v24 }
0x2938   :  { %11292 = vmatpush1.bf16.msra.mxu0 %v11291_v59  ;;  %11328 = vmatprep.subr.bf16.mxu1 %v12837_v0 }
0x293a   :  { %10222 = vmatmul.mubr.msk.f32.vlgmr.msra.gmra.mrb[56].mxu1 %vm199_vm9, %v16265_v49 }
0x293b   :  { %9197 = vmatmul.mubr.msk.f32.vlgmr.msra.gmra.mrb[56].mxu0 %vm199_vm9, %v16265_v49  ;;  %10244 = vmatprep.mubr.msk.f32.mxu1 %vm12845_vm0, %v12846_v6 }
0x293c   :  { %8463 = vmatprep.mubr.f32.mxu0 %v12846_v6 }
0x2a0d   :  { %v8257_v28 = vpop.f32.mrb[56].mxu1 }
0x2a0e   :  { %v16277_v12 = vmul.f32 %v16274_v62, %v8257_v28  ;;  %v8186_v15 = vpop.f32.mrb[56].mxu0  ;;  %v10223_v29 = vpop.f32.mrb[57].mxu1 }
0x2a0f   :  { %v16282_v48 = vmul.f32 %v16279_v55, %v8186_v15  ;;  %v8188_v27 = vpop.f32.mrb[57].mxu0 }
0x2a10   :  { %v8266_v1 = vmul.f32 0.0625, %v16277_v12  ;;  %v16288_v54 = vmul.f32 %v16285_v39, %v8188_v27 }
0x2a11   :  { %v8264_v38 = vmul.f32 0.0625, %v16282_v48 }
0x2a12   :  { %v16291_v46 = vadd.f32 %v8266_v1, %v16170_v31  ;;  %v8265_v61 = vmul.f32 0.0625, %v16288_v54 }
0x2a13   :  { %v16300_v8 = vadd.f32 %v8264_v38, %v16177_v57 }
0x2a14   :  { %8286 = vrot.lane.b32.xlu1 %v16291_v46, %s12839_s2  ;;  %8274 = vrot.lane.b32.xlu0 %v16291_v46, %s12838_s19  ;;  %v16303_v4 = vadd.f32 %v8265_v61, %v16180_v7 }
0x2a16   :  { %v12594_v18 = vpack.i.bf16 %v16303_v4, %v16300_v8  ;;  %v12619_v35 = vpack.i.bf16 %v16291_v46, %v16303_v4 }
0x2a18   :  { %8310 = vrot.lane.b32.xlu1 %v16291_v46, %s12840_s20  ;;  %8298 = vrot.lane.b32.xlu0 %v16291_v46, %s12841_s21 }
0x2a1c   :  { %12595 = vrot.lane.b32.xlu1 %v12594_v18, %s12839_s2  ;;  %12590 = vrot.lane.b32.xlu0 %v12594_v18, %s12838_s19 }
0x2a20   :  { %12605 = vrot.lane.b32.xlu1 %v12594_v18, %s12840_s20  ;;  %12600 = vrot.lane.b32.xlu0 %v12594_v18, %s12841_s21 }
0x2a24   :  { %8321 = vrot.lane.b32.xlu1 %v16300_v8, %s12842_s22  ;;  %8333 = vrot.lane.b32.xlu0 %v16300_v8, %s12844_s24 }
0x2a28   :  { %12620 = vrot.lane.b32.xlu1 %v12619_v35, %s12843_s23  ;;  %12610 = vrot.lane.b32.xlu0 %v12619_v35, %s12842_s22 }
0x2a2c   :  { %8345 = vrot.lane.b32.xlu1 %v16300_v8, %s12843_s23  ;;  %12615 = vrot.lane.b32.xlu0 %v12619_v35, %s12844_s24 }
0x2a30   :  { %8357 = vrot.lane.b32.xlu1 %v16300_v8, %s12847_s25  ;;  %12625 = vrot.lane.b32.xlu0 %v12619_v35, %s12847_s25 }
0x2a86   :  { %v8287_v56 = vpop.permute.xlu1 %8286  ;;  %v8275_v47 = vpop.permute.xlu0 %8274 }
0x2a8a   :  { %v8311_v36 = vpop.permute.xlu1 %8310  ;;  %v8299_v51 = vpop.permute.xlu0 %8298 }
0x2a8e   :  { %v12596_v26 = vpop.permute.xlu1 %12595  ;;  %v12591_v63 = vpop.permute.xlu0 %12590 }
0x2a8f   :  { %v12598_v41 = vunpack.i.h.bf16 %v12596_v26  ;;  %v12597_v17 = vunpack.i.l.bf16 %v12596_v26  ;;  %v12593_v14 = vunpack.i.h.bf16 %v12591_v63  ;;  %v12592_v58 = vunpack.i.l.bf16 %v12591_v63 }
0x2a91   :  { %v8288_v13 = vsel %vm81_vm2, %v12598_v41, %v8287_v56  ;;  %v8290_v2 = vsel %vm81_vm2, %v8287_v56, %v12597_v17  ;;  %v8276_v16 = vsel %vm68_vm1, %v12593_v14, %v8275_v47  ;;  %v8278_v11 = vsel %vm68_vm1, %v8275_v47, %v12592_v58 }
0x2a92   :  { %v11329_v20 = vpack.c.bf16 %v8288_v13, %v8276_v16  ;;  %v11310_v25 = vpack.c.bf16 %v8290_v2, %v8278_v11  ;;  %v12606_v42 = vpop.permute.xlu1 %12605  ;;  %v12601_v53 = vpop.permute.xlu0 %12600  ;;  %v8277_v23 = vsel %vm68_vm1, %v12592_v58, %v12593_v14  ;;  %v8289_v22 = vsel %vm81_vm2, %v12597_v17, %v12598_v41 }
0x2a93   :  { %v12608_v43 = vunpack.i.h.bf16 %v12606_v42  ;;  %v12607_v60 = vunpack.i.l.bf16 %v12606_v42  ;;  %v12603_v5 = vunpack.i.h.bf16 %v12601_v53  ;;  %v12602_v30 = vunpack.i.l.bf16 %v12601_v53 }
0x2a94   :  { %v11308_v3 = vpack.c.bf16 %v8289_v22, %v8277_v23  ;;  %11330 = vmatpush3.bf16.msra.mxu1 %v11329_v20 }
0x2a95   :  { %v8312_v50 = vsel %vm107_vm3, %v12608_v43, %v8311_v36  ;;  %v8314_v45 = vsel %vm107_vm3, %v8311_v36, %v12607_v60  ;;  %v8300_v33 = vsel %vm94_vm4, %v12603_v5, %v8299_v51  ;;  %v8302_v34 = vsel %vm94_vm4, %v8299_v51, %v12602_v30  ;;  %11331 = vmatprep.subr.bf16.mxu1 %v12837_v0 }
0x2a96   :  { %v11332_v52 = vpack.c.bf16 %v8312_v50, %v8300_v33  ;;  %11309 = vmatprep.subr.bf16.mxu0 %v11308_v3  ;;  %v8322_v32 = vpop.permute.xlu1 %8321  ;;  %v8334_v44 = vpop.permute.xlu0 %8333  ;;  %v8301_v40 = vsel %vm94_vm4, %v12602_v30, %v12603_v5  ;;  %v8313_v10 = vsel %vm107_vm3, %v12607_v60, %v12608_v43  ;;  %v11314_v37 = vpack.c.bf16 %v8314_v45, %v8302_v34 }
0x2a97   :  { %11311 = vmatpush1.bf16.msra.mxu0 %v11310_v25  ;;  %v11312_v24 = vpack.c.bf16 %v8313_v10, %v8301_v40 }
0x2a98   :  { %11333 = vmatpush3.bf16.msra.mxu1 %v11332_v52 }
0x2a99   :  { %11313 = vmatprep.subr.bf16.mxu0 %v11312_v24  ;;  %11334 = vmatprep.subr.bf16.mxu1 %v12837_v0 }
0x2a9a   :  { %v12621_v59 = vpop.permute.xlu1 %12620  ;;  %v12611_v21 = vpop.permute.xlu0 %12610 }
0x2a9b   :  { %11315 = vmatpush1.bf16.msra.mxu0 %v11314_v37  ;;  %v12613_v28 = vunpack.i.h.bf16 %v12611_v21  ;;  %v12612_v15 = vunpack.i.l.bf16 %v12611_v21  ;;  %v12623_v29 = vunpack.i.h.bf16 %v12621_v59  ;;  %v12622_v27 = vunpack.i.l.bf16 %v12621_v59 }
0x2a9d   :  { %v8329_v1 = vsel %vm123_vm5, %v12613_v28, %v8322_v32  ;;  %v8328_v38 = vsel %vm123_vm5, %v8322_v32, %v12612_v15  ;;  %v8327_v61 = vsel %vm123_vm5, %v12612_v15, %v12613_v28  ;;  %v8351_v17 = vsel %vm149_vm6, %v12622_v27, %v12623_v29 }
0x2a9e   :  { %v11335_v18 = vpack.c.bf16 %v8329_v1, %v16291_v46  ;;  %v11318_v35 = vpack.c.bf16 %v8328_v38, %v16300_v8  ;;  %v8346_v56 = vpop.permute.xlu1 %8345  ;;  %v12616_v47 = vpop.permute.xlu0 %12615  ;;  %v11316_v36 = vpack.c.bf16 %v8327_v61, %v16303_v4 }
0x2a9f   :  { %v12618_v51 = vunpack.i.h.bf16 %v12616_v47  ;;  %v12617_v26 = vunpack.i.l.bf16 %v12616_v47  ;;  %v8352_v63 = vsel %vm149_vm6, %v8346_v56, %v12622_v27  ;;  %v8353_v41 = vsel %vm149_vm6, %v12623_v29, %v8346_v56 }
0x2aa0   :  { %11317 = vmatprep.subr.bf16.mxu0 %v11316_v36  ;;  %11336 = vmatpush3.bf16.msra.mxu1 %v11335_v18 }
0x2aa1   :  { %v8341_v46 = vsel %vm136_vm7, %v12618_v51, %v8334_v44  ;;  %v8340_v8 = vsel %vm136_vm7, %v8334_v44, %v12617_v26  ;;  %11319 = vmatpush1.bf16.msra.mxu0 %v11318_v35  ;;  %11337 = vmatprep.subr.bf16.mxu1 %v12837_v0  ;;  %v8339_v4 = vsel %vm136_vm7, %v12617_v26, %v12618_v51 }
0x2aa2   :  { %v11338_v14 = vpack.c.bf16 %v8353_v41, %v8341_v46  ;;  %v11322_v58 = vpack.c.bf16 %v8352_v63, %v8340_v8  ;;  %v12626_v13 = vpop.permute.xlu0 %12625  ;;  %v11320_v2 = vpack.c.bf16 %v8351_v17, %v8339_v4  ;;  %v8358_v20 = vpop.permute.xlu1 %8357 }
0x2aa3   :  { %v12628_v16 = vunpack.i.h.bf16 %v12626_v13  ;;  %v12627_v11 = vunpack.i.l.bf16 %v12626_v13 }
0x2aa4   :  { %11321 = vmatprep.subr.bf16.mxu0 %v11320_v2  ;;  %11339 = vmatpush3.bf16.msra.mxu1 %v11338_v14 }
0x2aa5   :  { %v8365_v25 = vsel %vm162_vm8, %v12628_v16, %v8358_v20  ;;  %v8364_v42 = vsel %vm162_vm8, %v8358_v20, %v12627_v11  ;;  %11323 = vmatpush1.bf16.msra.mxu0 %v11322_v58  ;;  %11340 = vmatprep.subr.bf16.mxu1 %v12837_v0  ;;  %v8363_v53 = vsel %vm162_vm8, %v12627_v11, %v12628_v16 }
0x2aa6   :  { %v11341_v23 = vpack.c.bf16 %v12848_v19, %v8365_v25  ;;  %v11326_v22 = vpack.c.bf16 %v12848_v19, %v8364_v42  ;;  %v11324_v43 = vpack.c.bf16 %v12848_v19, %v8363_v53 }
0x2aa8   :  { %11325 = vmatprep.subr.bf16.mxu0 %v11324_v43  ;;  %11342 = vmatpush3.bf16.msra.mxu1 %v11341_v23 }
0x2aa9   :  { %11327 = vmatpush1.bf16.msra.mxu0 %v11326_v22  ;;  %11363 = vmatprep.subr.bf16.mxu1 %v12837_v0 }
0x2aab   :  { %10245 = vmatmul.mubr.msk.f32.vlgmr.msra.gmra.mrb[58].mxu1 %vm199_vm9, %v16265_v49 }
0x2aac   :  { %9199 = vmatmul.mubr.msk.f32.vlgmr.msra.gmra.mrb[58].mxu0 %vm199_vm9, %v16265_v49  ;;  %10267 = vmatprep.mubr.msk.f32.mxu1 %vm12845_vm0, %v12846_v6 }
0x2aad   :  { %8742 = vmatprep.mubr.f32.mxu0 %v12846_v6 }
0x2b7e   :  { %v8536_v60 = vpop.f32.mrb[58].mxu1 }
0x2b7f   :  { %v16396_v5 = vmul.f32 %v16274_v62, %v8536_v60  ;;  %v8465_v30 = vpop.f32.mrb[58].mxu0  ;;  %v10246_v3 = vpop.f32.mrb[59].mxu1 }
0x2b80   :  { %v16399_v50 = vmul.f32 %v16279_v55, %v8465_v30  ;;  %v8467_v45 = vpop.f32.mrb[59].mxu0 }
0x2b81   :  { %v8545_v33 = vmul.f32 0.0625, %v16396_v5  ;;  %v16403_v34 = vmul.f32 %v16285_v39, %v8467_v45 }
0x2b82   :  { %v8543_v32 = vmul.f32 0.0625, %v16399_v50 }
0x2b83   :  { %v16406_v52 = vadd.f32 %v8545_v33, %v16170_v31  ;;  %v8544_v44 = vmul.f32 0.0625, %v16403_v34 }
0x2b84   :  { %v16415_v40 = vadd.f32 %v8543_v32, %v16177_v57 }
0x2b85   :  { %8565 = vrot.lane.b32.xlu1 %v16406_v52, %s12839_s2  ;;  %8553 = vrot.lane.b32.xlu0 %v16406_v52, %s12838_s19  ;;  %v16418_v10 = vadd.f32 %v8544_v44, %v16180_v7 }
0x2b87   :  { %v12634_v37 = vpack.i.bf16 %v16418_v10, %v16415_v40  ;;  %v12659_v24 = vpack.i.bf16 %v16406_v52, %v16418_v10 }
0x2b89   :  { %8589 = vrot.lane.b32.xlu1 %v16406_v52, %s12840_s20  ;;  %8577 = vrot.lane.b32.xlu0 %v16406_v52, %s12841_s21 }
0x2b8d   :  { %12635 = vrot.lane.b32.xlu1 %v12634_v37, %s12839_s2  ;;  %12630 = vrot.lane.b32.xlu0 %v12634_v37, %s12838_s19 }
0x2b91   :  { %12645 = vrot.lane.b32.xlu1 %v12634_v37, %s12840_s20  ;;  %12640 = vrot.lane.b32.xlu0 %v12634_v37, %s12841_s21 }
0x2b95   :  { %8600 = vrot.lane.b32.xlu1 %v16415_v40, %s12842_s22  ;;  %8612 = vrot.lane.b32.xlu0 %v16415_v40, %s12844_s24 }
0x2b99   :  { %12660 = vrot.lane.b32.xlu1 %v12659_v24, %s12843_s23  ;;  %12650 = vrot.lane.b32.xlu0 %v12659_v24, %s12842_s22 }
0x2b9d   :  { %8624 = vrot.lane.b32.xlu1 %v16415_v40, %s12843_s23  ;;  %12655 = vrot.lane.b32.xlu0 %v12659_v24, %s12844_s24 }
0x2ba1   :  { %8636 = vrot.lane.b32.xlu1 %v16415_v40, %s12847_s25  ;;  %12665 = vrot.lane.b32.xlu0 %v12659_v24, %s12847_s25 }
0x2bf7   :  { %v8566_v59 = vpop.permute.xlu1 %8565  ;;  %v8554_v21 = vpop.permute.xlu0 %8553 }
0x2bfb   :  { %v8590_v28 = vpop.permute.xlu1 %8589  ;;  %v8578_v15 = vpop.permute.xlu0 %8577 }
0x2bff   :  { %v12636_v29 = vpop.permute.xlu1 %12635  ;;  %v12631_v27 = vpop.permute.xlu0 %12630 }
0x2c00   :  { %v12638_v1 = vunpack.i.h.bf16 %v12636_v29  ;;  %v12637_v38 = vunpack.i.l.bf16 %v12636_v29  ;;  %v12633_v61 = vunpack.i.h.bf16 %v12631_v27  ;;  %v12632_v18 = vunpack.i.l.bf16 %v12631_v27 }
0x2c02   :  { %v8567_v35 = vsel %vm81_vm2, %v12638_v1, %v8566_v59  ;;  %v8569_v56 = vsel %vm81_vm2, %v8566_v59, %v12637_v38  ;;  %v8555_v47 = vsel %vm68_vm1, %v12633_v61, %v8554_v21  ;;  %v8557_v36 = vsel %vm68_vm1, %v8554_v21, %v12632_v18 }
0x2c03   :  { %v11364_v51 = vpack.c.bf16 %v8567_v35, %v8555_v47  ;;  %v11345_v26 = vpack.c.bf16 %v8569_v56, %v8557_v36  ;;  %v12646_v63 = vpop.permute.xlu1 %12645  ;;  %v12641_v41 = vpop.permute.xlu0 %12640  ;;  %v8556_v17 = vsel %vm68_vm1, %v12632_v18, %v12633_v61  ;;  %v8568_v46 = vsel %vm81_vm2, %v12637_v38, %v12638_v1 }
0x2c04   :  { %v12648_v8 = vunpack.i.h.bf16 %v12646_v63  ;;  %v12647_v4 = vunpack.i.l.bf16 %v12646_v63  ;;  %v12643_v14 = vunpack.i.h.bf16 %v12641_v41  ;;  %v12642_v58 = vunpack.i.l.bf16 %v12641_v41 }
0x2c05   :  { %v11343_v13 = vpack.c.bf16 %v8568_v46, %v8556_v17  ;;  %11365 = vmatpush3.bf16.msra.mxu1 %v11364_v51 }
0x2c06   :  { %v8591_v2 = vsel %vm107_vm3, %v12648_v8, %v8590_v28  ;;  %v8593_v16 = vsel %vm107_vm3, %v8590_v28, %v12647_v4  ;;  %v8579_v11 = vsel %vm94_vm4, %v12643_v14, %v8578_v15  ;;  %v8581_v20 = vsel %vm94_vm4, %v8578_v15, %v12642_v58  ;;  %11366 = vmatprep.subr.bf16.mxu1 %v12837_v0 }
0x2c07   :  { %v11367_v25 = vpack.c.bf16 %v8591_v2, %v8579_v11  ;;  %11344 = vmatprep.subr.bf16.mxu0 %v11343_v13  ;;  %v8601_v42 = vpop.permute.xlu1 %8600  ;;  %v8613_v53 = vpop.permute.xlu0 %8612  ;;  %v8580_v23 = vsel %vm94_vm4, %v12642_v58, %v12643_v14  ;;  %v8592_v22 = vsel %vm107_vm3, %v12647_v4, %v12648_v8  ;;  %v11349_v43 = vpack.c.bf16 %v8593_v16, %v8581_v20 }
0x2c08   :  { %11346 = vmatpush1.bf16.msra.mxu0 %v11345_v26  ;;  %v11347_v60 = vpack.c.bf16 %v8592_v22, %v8580_v23  ;;  %v9103_v13 = vmul.f32 2.0, %v16396_v5  ;;  %v9101_v2 = vmul.f32 2.0, %v16399_v50  ;;  %v9102_v16 = vmul.f32 2.0, %v16403_v34 }
0x2c09   :  { %11368 = vmatpush3.bf16.msra.mxu1 %v11367_v25 }
0x2c0a   :  { %11348 = vmatprep.subr.bf16.mxu0 %v11347_v60  ;;  %11369 = vmatprep.subr.bf16.mxu1 %v12837_v0  ;;  %v9106_v22 = vadd.f32 %v9103_v13, %v16277_v12  ;;  %v9104_v5 = vadd.f32 %v9101_v2, %v16282_v48  ;;  %v9105_v50 = vadd.f32 %v9102_v16, %v16288_v54 }
0x2c0b   :  { %v12661_v30 = vpop.permute.xlu1 %12660  ;;  %v12651_v3 = vpop.permute.xlu0 %12650 }
0x2c0c   :  { %11350 = vmatpush1.bf16.msra.mxu0 %v11349_v43  ;;  %v12653_v45 = vunpack.i.h.bf16 %v12651_v3  ;;  %v12652_v33 = vunpack.i.l.bf16 %v12651_v3  ;;  %v12663_v32 = vunpack.i.h.bf16 %v12661_v30  ;;  %v12662_v44 = vunpack.i.l.bf16 %v12661_v30 }
0x2c0e   :  { %v8608_v37 = vsel %vm123_vm5, %v12653_v45, %v8601_v42  ;;  %v8607_v24 = vsel %vm123_vm5, %v8601_v42, %v12652_v33  ;;  %v8606_v59 = vsel %vm123_vm5, %v12652_v33, %v12653_v45  ;;  %v8630_v35 = vsel %vm149_vm6, %v12662_v44, %v12663_v32 }
0x2c0f   :  { %v11370_v21 = vpack.c.bf16 %v8608_v37, %v16406_v52  ;;  %v11353_v28 = vpack.c.bf16 %v8607_v24, %v16415_v40  ;;  %v8625_v15 = vpop.permute.xlu1 %8624  ;;  %v12656_v29 = vpop.permute.xlu0 %12655  ;;  %v11351_v27 = vpack.c.bf16 %v8606_v59, %v16418_v10 }
0x2c10   :  { %v12658_v1 = vunpack.i.h.bf16 %v12656_v29  ;;  %v12657_v38 = vunpack.i.l.bf16 %v12656_v29  ;;  %v8631_v61 = vsel %vm149_vm6, %v8625_v15, %v12662_v44  ;;  %v8632_v18 = vsel %vm149_vm6, %v12663_v32, %v8625_v15 }
0x2c11   :  { %11352 = vmatprep.subr.bf16.mxu0 %v11351_v27  ;;  %11371 = vmatpush3.bf16.msra.mxu1 %v11370_v21 }
0x2c12   :  { %v8620_v52 = vsel %vm136_vm7, %v12658_v1, %v8613_v53  ;;  %v8619_v40 = vsel %vm136_vm7, %v8613_v53, %v12657_v38  ;;  %11354 = vmatpush1.bf16.msra.mxu0 %v11353_v28  ;;  %11372 = vmatprep.subr.bf16.mxu1 %v12837_v0  ;;  %v8618_v10 = vsel %vm136_vm7, %v12657_v38, %v12658_v1 }
0x2c13   :  { %v11373_v56 = vpack.c.bf16 %v8632_v18, %v8620_v52  ;;  %v11357_v47 = vpack.c.bf16 %v8631_v61, %v8619_v40  ;;  %v12666_v36 = vpop.permute.xlu0 %12665  ;;  %v11355_v51 = vpack.c.bf16 %v8630_v35, %v8618_v10  ;;  %v8637_v41 = vpop.permute.xlu1 %8636 }
0x2c14   :  { %v12668_v26 = vunpack.i.h.bf16 %v12666_v36  ;;  %v12667_v63 = vunpack.i.l.bf16 %v12666_v36 }
0x2c15   :  { %11356 = vmatprep.subr.bf16.mxu0 %v11355_v51  ;;  %11374 = vmatpush3.bf16.msra.mxu1 %v11373_v56 }
0x2c16   :  { %v8644_v17 = vsel %vm162_vm8, %v12668_v26, %v8637_v41  ;;  %v8643_v46 = vsel %vm162_vm8, %v8637_v41, %v12667_v63  ;;  %11358 = vmatpush1.bf16.msra.mxu0 %v11357_v47  ;;  %11375 = vmatprep.subr.bf16.mxu1 %v12837_v0  ;;  %v8642_v8 = vsel %vm162_vm8, %v12667_v63, %v12668_v26 }
0x2c17   :  { %v11376_v4 = vpack.c.bf16 %v12848_v19, %v8644_v17  ;;  %v11361_v14 = vpack.c.bf16 %v12848_v19, %v8643_v46  ;;  %v11359_v58 = vpack.c.bf16 %v12848_v19, %v8642_v8 }
0x2c19   :  { %11360 = vmatprep.subr.bf16.mxu0 %v11359_v58  ;;  %11377 = vmatpush3.bf16.msra.mxu1 %v11376_v4 }
0x2c1a   :  { %11362 = vmatpush1.bf16.msra.mxu0 %v11361_v14  ;;  %11398 = vmatprep.subr.bf16.mxu1 %v12837_v0 }
0x2c1c   :  { %10268 = vmatmul.mubr.msk.f32.vlgmr.msra.gmra.mrb[60].mxu1 %vm199_vm9, %v16265_v49 }
0x2c1d   :  { %9201 = vmatmul.mubr.msk.f32.vlgmr.msra.gmra.mrb[60].mxu0 %vm199_vm9, %v16265_v49  ;;  %10290 = vmatprep.mubr.msk.f32.mxu1 %vm12845_vm0, %v12846_v6 }
0x2c1e   :  { %9021 = vmatprep.mubr.f32.mxu0 %v12846_v6 }
0x2cef   :  { %v8815_v11 = vpop.f32.mrb[60].mxu1 }
0x2cf0   :  { %v8821_v20 = vmul.f32 %v16274_v62, %v8815_v11  ;;  %v8744_v25 = vpop.f32.mrb[60].mxu0  ;;  %v10269_v42 = vpop.f32.mrb[61].mxu1 }
0x2cf1   :  { %v8819_v53 = vmul.f32 %v16279_v55, %v8744_v25  ;;  %v8746_v23 = vpop.f32.mrb[61].mxu0 }
0x2cf2   :  { %v8824_v43 = vmul.f32 0.125, %v8821_v20  ;;  %v9109_v60 = vmul.f32 2.0, %v8821_v20  ;;  %v8820_v6 = vmul.f32 %v16285_v39, %v8746_v23 }
0x2cf3   :  { %v8822_v30 = vmul.f32 0.125, %v8819_v53  ;;  %v9107_v34 = vmul.f32 2.0, %v8819_v53 }
0x2cf4   :  { %v16520_v3 = vadd.f32 %v8824_v43, %v16170_v31  ;;  %v8823_v45 = vmul.f32 0.125, %v8820_v6  ;;  %v9108_v33 = vmul.f32 2.0, %v8820_v6  ;;  %v16522_v32 = vadd.f32 %v9109_v60, %v9106_v22 }
0x2cf5   :  { %v16524_v44 = vadd.f32 %v9107_v34, %v9104_v5  ;;  %v16533_v48 = vadd.f32 %v8822_v30, %v16177_v57 }
0x2cf6   :  { %8844 = vrot.lane.b32.xlu1 %v16520_v3, %s12839_s2  ;;  %8832 = vrot.lane.b32.xlu0 %v16520_v3, %s12838_s19  ;;  %v16530_v12 = vadd.f32 %v9108_v33, %v9105_v50  ;;  %v16536_v54 = vadd.f32 %v8823_v45, %v16180_v7 }
0x2cf8   :  { %v12674_v37 = vpack.i.bf16 %v16536_v54, %v16533_v48  ;;  %v12699_v24 = vpack.i.bf16 %v16520_v3, %v16536_v54 }
0x2cfa   :  { %8868 = vrot.lane.b32.xlu1 %v16520_v3, %s12840_s20  ;;  %8856 = vrot.lane.b32.xlu0 %v16520_v3, %s12841_s21 }
0x2cfe   :  { %12675 = vrot.lane.b32.xlu1 %v12674_v37, %s12839_s2  ;;  %12670 = vrot.lane.b32.xlu0 %v12674_v37, %s12838_s19 }
0x2d02   :  { %12685 = vrot.lane.b32.xlu1 %v12674_v37, %s12840_s20  ;;  %12680 = vrot.lane.b32.xlu0 %v12674_v37, %s12841_s21 }
0x2d06   :  { %8879 = vrot.lane.b32.xlu1 %v16533_v48, %s12842_s22  ;;  %8891 = vrot.lane.b32.xlu0 %v16533_v48, %s12844_s24 }
0x2d0a   :  { %12700 = vrot.lane.b32.xlu1 %v12699_v24, %s12843_s23  ;;  %12690 = vrot.lane.b32.xlu0 %v12699_v24, %s12842_s22 }
0x2d0e   :  { %8903 = vrot.lane.b32.xlu1 %v16533_v48, %s12843_s23  ;;  %12695 = vrot.lane.b32.xlu0 %v12699_v24, %s12844_s24 }
0x2d12   :  { %8915 = vrot.lane.b32.xlu1 %v16533_v48, %s12847_s25  ;;  %12705 = vrot.lane.b32.xlu0 %v12699_v24, %s12847_s25 }
0x2d68   :  { %v8845_v59 = vpop.permute.xlu1 %8844  ;;  %v8833_v21 = vpop.permute.xlu0 %8832 }
0x2d6c   :  { %v8869_v28 = vpop.permute.xlu1 %8868  ;;  %v8857_v15 = vpop.permute.xlu0 %8856 }
0x2d70   :  { %v12676_v29 = vpop.permute.xlu1 %12675  ;;  %v12671_v27 = vpop.permute.xlu0 %12670 }
0x2d71   :  { %v12678_v1 = vunpack.i.h.bf16 %v12676_v29  ;;  %v12677_v38 = vunpack.i.l.bf16 %v12676_v29  ;;  %v12673_v61 = vunpack.i.h.bf16 %v12671_v27  ;;  %v12672_v18 = vunpack.i.l.bf16 %v12671_v27 }
0x2d73   :  { %v8846_v35 = vsel %vm81_vm2, %v12678_v1, %v8845_v59  ;;  %v8848_v52 = vsel %vm81_vm2, %v8845_v59, %v12677_v38  ;;  %v8834_v40 = vsel %vm68_vm1, %v12673_v61, %v8833_v21  ;;  %v8836_v10 = vsel %vm68_vm1, %v8833_v21, %v12672_v18 }
0x2d74   :  { %v11399_v56 = vpack.c.bf16 %v8846_v35, %v8834_v40  ;;  %v11380_v47 = vpack.c.bf16 %v8848_v52, %v8836_v10  ;;  %v12686_v36 = vpop.permute.xlu1 %12685  ;;  %v12681_v51 = vpop.permute.xlu0 %12680  ;;  %v8835_v26 = vsel %vm68_vm1, %v12672_v18, %v12673_v61  ;;  %v8847_v63 = vsel %vm81_vm2, %v12677_v38, %v12678_v1 }
0x2d75   :  { %v12688_v41 = vunpack.i.h.bf16 %v12686_v36  ;;  %v12687_v17 = vunpack.i.l.bf16 %v12686_v36  ;;  %v12683_v46 = vunpack.i.h.bf16 %v12681_v51  ;;  %v12682_v8 = vunpack.i.l.bf16 %v12681_v51 }
0x2d76   :  { %v11378_v4 = vpack.c.bf16 %v8847_v63, %v8835_v26  ;;  %11400 = vmatpush3.bf16.msra.mxu1 %v11399_v56 }
0x2d77   :  { %v8870_v14 = vsel %vm107_vm3, %v12688_v41, %v8869_v28  ;;  %v8872_v58 = vsel %vm107_vm3, %v8869_v28, %v12687_v17  ;;  %v8858_v13 = vsel %vm94_vm4, %v12683_v46, %v8857_v15  ;;  %v8860_v2 = vsel %vm94_vm4, %v8857_v15, %v12682_v8  ;;  %11401 = vmatprep.subr.bf16.mxu1 %v12837_v0 }
0x2d78   :  { %v11402_v16 = vpack.c.bf16 %v8870_v14, %v8858_v13  ;;  %11379 = vmatprep.subr.bf16.mxu0 %v11378_v4  ;;  %v8880_v11 = vpop.permute.xlu1 %8879  ;;  %v8892_v20 = vpop.permute.xlu0 %8891  ;;  %v8859_v25 = vsel %vm94_vm4, %v12682_v8, %v12683_v46  ;;  %v8871_v42 = vsel %vm107_vm3, %v12687_v17, %v12688_v41  ;;  %v11384_v53 = vpack.c.bf16 %v8872_v58, %v8860_v2 }
0x2d79   :  { %11381 = vmatpush1.bf16.msra.mxu0 %v11380_v47  ;;  %v11382_v23 = vpack.c.bf16 %v8871_v42, %v8859_v25 }
0x2d7a   :  { %11403 = vmatpush3.bf16.msra.mxu1 %v11402_v16 }
0x2d7b   :  { %11383 = vmatprep.subr.bf16.mxu0 %v11382_v23  ;;  %11404 = vmatprep.subr.bf16.mxu1 %v12837_v0 }
0x2d7c   :  { %v12701_v22 = vpop.permute.xlu1 %12700  ;;  %v12691_v43 = vpop.permute.xlu0 %12690 }
0x2d7d   :  { %11385 = vmatpush1.bf16.msra.mxu0 %v11384_v53  ;;  %v12693_v60 = vunpack.i.h.bf16 %v12691_v43  ;;  %v12692_v6 = vunpack.i.l.bf16 %v12691_v43  ;;  %v12703_v5 = vunpack.i.h.bf16 %v12701_v22  ;;  %v12702_v50 = vunpack.i.l.bf16 %v12701_v22 }
0x2d7f   :  { %v8887_v30 = vsel %vm123_vm5, %v12693_v60, %v8880_v11  ;;  %v8886_v34 = vsel %vm123_vm5, %v8880_v11, %v12692_v6  ;;  %v8885_v45 = vsel %vm123_vm5, %v12692_v6, %v12693_v60  ;;  %v8909_v1 = vsel %vm149_vm6, %v12702_v50, %v12703_v5 }
0x2d80   :  { %v11405_v33 = vpack.c.bf16 %v8887_v30, %v16520_v3  ;;  %v11388_v37 = vpack.c.bf16 %v8886_v34, %v16533_v48  ;;  %v8904_v24 = vpop.permute.xlu1 %8903  ;;  %v12696_v59 = vpop.permute.xlu0 %12695  ;;  %v11386_v21 = vpack.c.bf16 %v8885_v45, %v16536_v54 }
0x2d81   :  { %v12698_v28 = vunpack.i.h.bf16 %v12696_v59  ;;  %v12697_v15 = vunpack.i.l.bf16 %v12696_v59  ;;  %v8910_v29 = vsel %vm149_vm6, %v8904_v24, %v12702_v50  ;;  %v8911_v27 = vsel %vm149_vm6, %v12703_v5, %v8904_v24 }
0x2d82   :  { %11387 = vmatprep.subr.bf16.mxu0 %v11386_v21  ;;  %11406 = vmatpush3.bf16.msra.mxu1 %v11405_v33 }
0x2d83   :  { %v8899_v3 = vsel %vm136_vm7, %v12698_v28, %v8892_v20  ;;  %v8898_v48 = vsel %vm136_vm7, %v8892_v20, %v12697_v15  ;;  %11389 = vmatpush1.bf16.msra.mxu0 %v11388_v37  ;;  %11407 = vmatprep.subr.bf16.mxu1 %v12837_v0  ;;  %v8897_v54 = vsel %vm136_vm7, %v12697_v15, %v12698_v28 }
0x2d84   :  { %v11408_v38 = vpack.c.bf16 %v8911_v27, %v8899_v3  ;;  %v11392_v61 = vpack.c.bf16 %v8910_v29, %v8898_v48  ;;  %v12706_v18 = vpop.permute.xlu0 %12705  ;;  %v11390_v35 = vpack.c.bf16 %v8909_v1, %v8897_v54  ;;  %v8916_v10 = vpop.permute.xlu1 %8915 }
0x2d85   :  { %v12708_v52 = vunpack.i.h.bf16 %v12706_v18  ;;  %v12707_v40 = vunpack.i.l.bf16 %v12706_v18 }
0x2d86   :  { %11391 = vmatprep.subr.bf16.mxu0 %v11390_v35  ;;  %11409 = vmatpush3.bf16.msra.mxu1 %v11408_v38 }
0x2d87   :  { %v8923_v56 = vsel %vm162_vm8, %v12708_v52, %v8916_v10  ;;  %v8922_v47 = vsel %vm162_vm8, %v8916_v10, %v12707_v40  ;;  %11393 = vmatpush1.bf16.msra.mxu0 %v11392_v61  ;;  %11410 = vmatprep.subr.bf16.mxu1 %v12837_v0  ;;  %v8921_v36 = vsel %vm162_vm8, %v12707_v40, %v12708_v52 }
0x2d88   :  { %v11411_v51 = vpack.c.bf16 %v12848_v19, %v8923_v56  ;;  %v11396_v26 = vpack.c.bf16 %v12848_v19, %v8922_v47  ;;  %v11394_v63 = vpack.c.bf16 %v12848_v19, %v8921_v36 }
0x2d8a   :  { %11395 = vmatprep.subr.bf16.mxu0 %v11394_v63  ;;  %11412 = vmatpush3.bf16.msra.mxu1 %v11411_v51 }
0x2d8b   :  { %11397 = vmatpush1.bf16.msra.mxu0 %v11396_v26 }
0x2d8d   :  { %10291 = vmatmul.mubr.msk.f32.vlgmr.msra.gmra.mrb[62].mxu1 %vm199_vm9, %v16265_v49 }
0x2d8e   :  { %9203 = vmatmul.mubr.msk.f32.vlgmr.msra.gmra.mrb[62].mxu0 %vm199_vm9, %v16265_v49 }
0x2e60   :  { %v9094_v41 = vpop.f32.mrb[62].mxu1 }
0x2e61   :  { %v9100_v0 = vmul.f32 %v16274_v62, %v9094_v41  ;;  %v9023_v9 = vpop.f32.mrb[62].mxu0  ;;  %v10292_v17 = vpop.f32.mrb[63].mxu1 }
0x2e62   :  { %v9098_v46 = vmul.f32 %v16279_v55, %v9023_v9  ;;  %v9025_v8 = vpop.f32.mrb[63].mxu0 }
0x2e63   :  { %v9115_v4 = vadd.f32 %v16522_v32, %v9100_v0  ;;  %v9099_v19 = vmul.f32 %v16285_v39, %v9025_v8 }
0x2e64   :  { %v9113_v14 = vadd.f32 %v16524_v44, %v9098_v46 }
0x2e65   :  { %v9118_v58 = vmul.f32 0.020833334, %v9115_v4  ;;  %v9114_v13 = vadd.f32 %v16530_v12, %v9099_v19 }
0x2e66   :  { %v9116_v2 = vmul.f32 0.020833334, %v9113_v14 }
0x2e67   :  { %v9121_v49 = vadd.f32 %v9118_v58, %v16170_v31  ;;  %v9117_v62 = vmul.f32 0.020833334, %v9114_v13 }
0x2e68   :  { %v9119_v16 = vadd.f32 %v9116_v2, %v16177_v57 }
0x2e69   :  { %9124 = vst [vmem:[#allocation9 + $0x10] sm:$0xff] %v9121_v49  ;;  %v9120_v55 = vadd.f32 %v9117_v62, %v16180_v7 }
0x2e6a   :  { %9122 = vst [vmem:[#allocation9] sm:$0xff] %v9119_v16 }
0x2e6b   :  { %9123 = vst [vmem:[#allocation9 + $0x8] sm:$0xff] %v9120_v55 }
0x2e6c   :  { %12817 = shalt.err (!%p12814_p0)
}
0x2e6d   :  { %s12818_s4 = scalar_lea.hbm %s16648_s3, 384 }
0x2e6e   :  { %p12819_p1 = scmp.ne.s32.totalorder %s16648_s3, %s12818_s4  ;;  %p12822_p2 = scmp.lt.u32.totalorder %s12818_s4, %s16648_s3 }
0x2e70   :  { %p12824_p3 = pnand %p12822_p2, %p12819_p1 }
0x2e72   :  { %12827 = shalt.err (!%p12824_p3)
}
0x2e73   :  { %9134 = dma.vmem_to_hbm [thread:$0]  %s9132_s27, 384, %s16648_s3, [#allocation5]  }
0x2e74   :  { %12832 = dma.done.wait [#allocation5], 384  }
0x2e75   :  { %12833 = vsyncadd [#allocation5], 4294966912 }
0x2e76   :  { %9138 = vsyncpa [#allocation4], 1 }
0x2e77   :  { %9139 = vsyncpa [#allocation7], 1 }
0x2e78   :  { %9140 = vsyncpa [#allocation5], 1 }

</bundles_post_ra>
